<compile_context>
chip_gen: v7x
topology: tpu7x:2x2x1
jax: 0.10.0
libtpu: 0.0.40
codegen_flags: <defaults>
</compile_context>

<pallas_src>
import functools

import jax
import jax.numpy as jnp
from jax.experimental import pallas as pl
from jax.experimental.pallas import tpu as pltpu


# ----------------------------------------------------------------------------
# Kernel: composes `num_layers` affine coupling transforms on one batch tile.
#   z_{l+1}[keep]  = z_l[keep]
#   z_{l+1}[trans] = z_l[trans] * exp(s) + t,  (s||t) = MLP(z_l[keep])
#   logdet        += sum(s)   (reduced in-kernel, stored as (tile_n, 1))
# forward() of the original module returns only z; logdet is the by-product
# that log_prob would accumulate.
# ----------------------------------------------------------------------------
def flow_forward_kernel(x_ref, w1_ref, b1_ref, wst_ref, bst_ref,
                        z_ref, ld_ref, *, num_layers, eup_dtype):
    n, d = x_ref.shape
    half = d // 2
    mm_dtype = w1_ref.dtype            # f32 or bf16 (MXU input precision)

    # keep the two halves as separate live values -> no per-layer concatenate
    za = x_ref[:, :half].astype(jnp.float32)     # 128-lane aligned slice (free)
    zb = x_ref[:, half:].astype(jnp.float32)
    ld = jnp.zeros((n, 1), jnp.float32)          # in-kernel logdet accumulator

    # static unroll over layers (L is small here)
    # TODO(synk): for deep flows (L >~ 16) switch to lax.fori_loop with dynamic
    # w1_ref[l]/wst_ref[l] indexing to bound code size and vreg live ranges.
    for l in range(num_layers):
        xa, xb = (za, zb) if l % 2 == 0 else (zb, za)

        # conditioner MLP: Linear -> ReLU -> fused (scale||shift) Linear
        h = jnp.dot(xa.astype(mm_dtype), w1_ref[l],
                    preferred_element_type=jnp.float32) + b1_ref[l]
        h = jnp.maximum(h, 0.0)
        st = jnp.dot(h.astype(mm_dtype), wst_ref[l],
                     preferred_element_type=jnp.float32) + bst_ref[l]

        s_in = st[:, :half]                       # 128-lane aligned slices
        t = st[:, half:]
        if eup_dtype == jnp.float32:
            s = jnp.tanh(s_in)                    # f32 EUP (v5e-safe)
            es = jnp.exp(s)
        else:
            # bf16 EUP path (v6e/v7x): only the transcendental operands go
            # through bf16; the affine update and logdet stay f32.
            s = jnp.tanh(s_in.astype(eup_dtype)).astype(jnp.float32)
            es = jnp.exp(s.astype(eup_dtype)).astype(jnp.float32)

        yb = xb * es + t                          # f32 elementwise
        ld = ld + jnp.sum(s, axis=-1, keepdims=True)   # XLU lane reduce (idle slot)

        if l % 2 == 0:
            zb = yb
        else:
            za = yb

    # two 128-lane-aligned unmasked stores instead of a concat + full store
    z_ref[:, :half] = za.astype(z_ref.dtype)
    z_ref[:, half:] = zb.astype(z_ref.dtype)
    ld_ref[...] = ld                              # single narrow store, negligible


# ------------------------- one-time parameter packing -----------------------
def pack_params(params, *, matmul_dtype=jnp.float32):
    """Fuse (ws||wt), (bs||bt) and pre-cast matmul weights ONCE, outside the
    per-call path (the previous version paid this concat+cast every forward)."""
    wst = jnp.concatenate([params["ws"], params["wt"]], axis=-1)   # (L, H, 2h)
    bst = jnp.concatenate([params["bs"], params["bt"]], axis=-1)   # (L, 1, 2h)
    packed = {
        "w1": params["w1"].astype(matmul_dtype),   # bf16 MXU inputs, f32 acc
        "b1": params["b1"],                        # biases stay f32 (post-acc add)
        "wst": wst.astype(matmul_dtype),
        "bst": bst,
    }
    return jax.block_until_ready(packed)


# --------------------------- generation gating -------------------------------
def _device_kind():
    try:
        return jax.devices()[0].device_kind.lower()
    except Exception:
        return ""


def _default_tile_n(N):
    kind = _device_kind()
    multi_tc = "v7" in kind                 # v7x: 2 TensorCores per chip
    max_tile = 512 if multi_tc else 1024    # single-TC: bigger tiles amortize
    min_steps = 2 if multi_tc else 1        # per-step overhead; v7x needs >=2
    tile = min(max_tile, N)                 # "parallel" steps to feed both TCs
    while tile > 8 and (N % tile != 0 or N // tile < min_steps):
        tile //= 2
    return max(tile, 8)


def _default_eup_dtype():
    kind = _device_kind()
    if ("v6" in kind) or ("v7" in kind):
        return jnp.bfloat16                 # bf16 EUP ~2x rate on v6e/v7x
    return jnp.float32                      # v5e and older: no bf16 EUP


# ------------------------------- wrapper -------------------------------------
def flow_forward(x, packed, *, tile_n=None, eup_dtype=None):
    """NormalizingFlow.forward(x): returns z (and log|det| as a by-product)."""
    N, D = x.shape
    L, half, H = packed["w1"].shape
    assert D == 2 * half
    if tile_n is None:
        tile_n = _default_tile_n(N)
    if eup_dtype is None:
        eup_dtype = _default_eup_dtype()
    tile_n = min(tile_n, N)
    assert N % tile_n == 0 and tile_n % 8 == 0

    kernel = functools.partial(flow_forward_kernel, num_layers=L,
                               eup_dtype=eup_dtype)
    z, ld = pl.pallas_call(
        kernel,
        out_shape=(jax.ShapeDtypeStruct((N, D), jnp.float32),
                   jax.ShapeDtypeStruct((N, 1), jnp.float32)),
        grid_spec=pltpu.PrefetchScalarGridSpec(
            num_scalar_prefetch=0,
            grid=(N // tile_n,),
            in_specs=[
                pl.BlockSpec((tile_n, D), lambda i: (i, 0)),          # x
                pl.BlockSpec((L, half, H), lambda i: (0, 0, 0)),      # w1
                pl.BlockSpec((L, 1, H), lambda i: (0, 0, 0)),         # b1
                pl.BlockSpec((L, H, 2 * half), lambda i: (0, 0, 0)),  # ws||wt
                pl.BlockSpec((L, 1, 2 * half), lambda i: (0, 0, 0)),  # bs||bt
            ],
            out_specs=[
                pl.BlockSpec((tile_n, D), lambda i: (i, 0)),          # z
                pl.BlockSpec((tile_n, 1), lambda i: (i, 0)),          # logdet
            ],
        ),
        compiler_params=pltpu.CompilerParams(
            dimension_semantics=("parallel",)),
    )(x, packed["w1"], packed["b1"], packed["wst"], packed["bst"])

    return z, ld[:, 0]


# -------------------------- pure-JAX reference ------------------------------
def flow_forward_ref(x, params):
    L = params["w1"].shape[0]
    D = x.shape[-1]
    half = D // 2
    z = x.astype(jnp.float32)
    logdet = jnp.zeros((x.shape[0],), jnp.float32)
    for l in range(L):
        if l % 2 == 0:
            xa, xb = z[:, :half], z[:, half:]
        else:
            xa, xb = z[:, half:], z[:, :half]
        h = jnp.maximum(xa @ params["w1"][l] + params["b1"][l], 0.0)
        s = jnp.tanh(h @ params["ws"][l] + params["bs"][l])
        t = h @ params["wt"][l] + params["bt"][l]
        yb = xb * jnp.exp(s) + t
        logdet = logdet + jnp.sum(s, axis=-1)
        z = jnp.concatenate([xa, yb] if l % 2 == 0 else [yb, xa], axis=-1)
    return z, logdet


def init_params(key, num_layers, input_dim, hidden):
    half = input_dim // 2
    keys = jax.random.split(key, 6)
    scale = 0.05
    return {
        "w1": scale * jax.random.normal(keys[0], (num_layers, half, hidden), jnp.float32),
        "b1": scale * jax.random.normal(keys[1], (num_layers, 1, hidden), jnp.float32),
        "ws": scale * jax.random.normal(keys[2], (num_layers, hidden, half), jnp.float32),
        "bs": scale * jax.random.normal(keys[3], (num_layers, 1, half), jnp.float32),
        "wt": scale * jax.random.normal(keys[4], (num_layers, hidden, half), jnp.float32),
        "bt": scale * jax.random.normal(keys[5], (num_layers, 1, half), jnp.float32),
    }


if __name__ == "__main__":
    # batch / dims: big enough that generation-gated tiling matters, still small
    N, D, H, L = 512, 256, 128, 4

    key = jax.random.PRNGKey(0)
    kx, kp = jax.random.split(key)
    x = jax.random.normal(kx, (N, D), jnp.float32)
    params = init_params(kp, L, D, H)

    z_ref, ld_ref = flow_forward_ref(x, params)

    # --- exact-ish path: f32 matmuls + f32 transcendentals -------------------
    packed_f32 = pack_params(params, matmul_dtype=jnp.float32)   # hoisted, one-time
    z, logdet = flow_forward(x, packed_f32, eup_dtype=jnp.float32)
    z = jax.block_until_ready(z)
    logdet = jax.block_until_ready(logdet)
    assert jnp.allclose(z, z_ref, rtol=1e-4, atol=1e-4)
    assert jnp.allclose(logdet, ld_ref, rtol=1e-4, atol=1e-4)

    # --- fast path: bf16 MXU + generation-gated bf16 EUP (f32 accumulation) --
    packed_bf16 = pack_params(params, matmul_dtype=jnp.bfloat16)  # hoisted, one-time
    z16, ld16 = flow_forward(x, packed_bf16)                      # defaults per chip
    z16 = jax.block_until_ready(z16)
    ld16 = jax.block_until_ready(ld16)
    assert jnp.allclose(z16, z_ref, rtol=5e-2, atol=1.5e-1)
    assert jnp.allclose(ld16, ld_ref, rtol=5e-2, atol=4e-1)

    # note: base_dist (loc=0, log_scale=0 buffers), log_prob's base-dist term,
    # sample, and inverse are non-forward paths and stay outside the kernel.
    print("KERNEL_OK")
</pallas_src>

<mosaic_0001>
module attributes {stable_mosaic.version = 11 : i64} {
  func.func @flow_forward_kernel(%arg0: i32, %arg1: memref<512x256xf32, #tpu.memory_space<vmem>>, %arg2: memref<4x128x128xf32, #tpu.memory_space<vmem>>, %arg3: memref<4x1x128xf32, #tpu.memory_space<vmem>>, %arg4: memref<4x128x256xf32, #tpu.memory_space<vmem>>, %arg5: memref<4x1x256xf32, #tpu.memory_space<vmem>>, %arg6: memref<512x256xf32, #tpu.memory_space<vmem>>, %arg7: memref<512x1xf32, #tpu.memory_space<vmem>>) attributes {dimension_semantics = [#tpu.dimension_semantics<parallel>], iteration_bounds = array<i64: 1>, scalar_prefetch = 0 : i64, scratch_operands = 0 : i64, tpu.core_type = #tpu.core_type<tc>, window_params = [{transform_indices = @transform_0, window_bounds = array<i64: 512, 256>}, {pipeline_mode = #tpu.pipeline_mode<synchronous>, transform_indices = @transform_1, window_bounds = array<i64: 4, 128, 128>}, {pipeline_mode = #tpu.pipeline_mode<synchronous>, transform_indices = @transform_2, window_bounds = array<i64: 4, 1, 128>}, {pipeline_mode = #tpu.pipeline_mode<synchronous>, transform_indices = @transform_3, window_bounds = array<i64: 4, 128, 256>}, {pipeline_mode = #tpu.pipeline_mode<synchronous>, transform_indices = @transform_4, window_bounds = array<i64: 4, 1, 256>}, {transform_indices = @transform_5, window_bounds = array<i64: 512, 256>}, {transform_indices = @transform_6, window_bounds = array<i64: 512, 1>}]} {
    %c0 = arith.constant 0 : index
    %c0_0 = arith.constant 0 : index
    %0 = vector.load %arg1[%c0, %c0_0] : memref<512x256xf32, #tpu.memory_space<vmem>>, vector<512x128xf32>
    %c0_1 = arith.constant 0 : index
    %c128 = arith.constant 128 : index
    %1 = vector.load %arg1[%c0_1, %c128] : memref<512x256xf32, #tpu.memory_space<vmem>>, vector<512x128xf32>
    %cst = arith.constant 0.000000e+00 : f32
    %2 = vector.broadcast %cst : f32 to vector<512x1xf32>
    %c0_2 = arith.constant 0 : index
    %c0_3 = arith.constant 0 : index
    %c0_4 = arith.constant 0 : index
    %3 = vector.load %arg2[%c0_2, %c0_3, %c0_4] : memref<4x128x128xf32, #tpu.memory_space<vmem>>, vector<1x128x128xf32>
    %4 = vector.shape_cast %3 : vector<1x128x128xf32> to vector<128x128xf32>
    %cst_5 = arith.constant dense<0.000000e+00> : vector<512x128xf32>
    %5 = tpu.matmul %0, %4, %cst_5 {dimension_numbers = #tpu.dot_dimension_numbers<[1], [0], [0], [1], [0, 0, 1, 1], [], []>} : vector<512x128xf32>, vector<128x128xf32>, vector<512x128xf32> -> vector<512x128xf32>
    %c0_6 = arith.constant 0 : index
    %c0_7 = arith.constant 0 : index
    %c0_8 = arith.constant 0 : index
    %6 = vector.load %arg3[%c0_6, %c0_7, %c0_8] : memref<4x1x128xf32, #tpu.memory_space<vmem>>, vector<1x1x128xf32>
    %7 = vector.shape_cast %6 : vector<1x1x128xf32> to vector<1x128xf32>
    %8 = vector.broadcast %7 : vector<1x128xf32> to vector<512x128xf32>
    %9 = arith.addf %5, %8 : vector<512x128xf32>
    %cst_9 = arith.constant 0.000000e+00 : f32
    %10 = vector.broadcast %cst_9 : f32 to vector<512x128xf32>
    %11 = arith.maximumf %9, %10 : vector<512x128xf32>
    %c0_10 = arith.constant 0 : index
    %c0_11 = arith.constant 0 : index
    %c0_12 = arith.constant 0 : index
    %12 = vector.load %arg4[%c0_10, %c0_11, %c0_12] : memref<4x128x256xf32, #tpu.memory_space<vmem>>, vector<1x128x256xf32>
    %13 = vector.shape_cast %12 : vector<1x128x256xf32> to vector<128x256xf32>
    %cst_13 = arith.constant dense<0.000000e+00> : vector<512x256xf32>
    %14 = tpu.matmul %11, %13, %cst_13 {dimension_numbers = #tpu.dot_dimension_numbers<[1], [0], [0], [1], [0, 0, 1, 1], [], []>} : vector<512x128xf32>, vector<128x256xf32>, vector<512x256xf32> -> vector<512x256xf32>
    %c0_14 = arith.constant 0 : index
    %c0_15 = arith.constant 0 : index
    %c0_16 = arith.constant 0 : index
    %15 = vector.load %arg5[%c0_14, %c0_15, %c0_16] : memref<4x1x256xf32, #tpu.memory_space<vmem>>, vector<1x1x256xf32>
    %16 = vector.shape_cast %15 : vector<1x1x256xf32> to vector<1x256xf32>
    %17 = vector.broadcast %16 : vector<1x256xf32> to vector<512x256xf32>
    %18 = arith.addf %14, %17 : vector<512x256xf32>
    %19 = vector.extract_strided_slice %18 {offsets = [0, 0], sizes = [512, 128], strides = [1, 1]} : vector<512x256xf32> to vector<512x128xf32>
    %20 = vector.extract_strided_slice %18 {offsets = [0, 128], sizes = [512, 128], strides = [1, 1]} : vector<512x256xf32> to vector<512x128xf32>
    %21 = math.tanh %19 : vector<512x128xf32>
    %22 = math.exp %21 : vector<512x128xf32>
    %23 = arith.mulf %1, %22 : vector<512x128xf32>
    %24 = arith.addf %23, %20 : vector<512x128xf32>
    %cst_17 = arith.constant dense<0.000000e+00> : vector<512xf32>
    %25 = vector.multi_reduction <add>, %21, %cst_17 [1] : vector<512x128xf32> to vector<512xf32>
    %26 = vector.shape_cast %25 : vector<512xf32> to vector<512x1xf32>
    %27 = arith.addf %2, %26 : vector<512x1xf32>
    %c1 = arith.constant 1 : index
    %c0_18 = arith.constant 0 : index
    %c0_19 = arith.constant 0 : index
    %28 = vector.load %arg2[%c1, %c0_18, %c0_19] : memref<4x128x128xf32, #tpu.memory_space<vmem>>, vector<1x128x128xf32>
    %29 = vector.shape_cast %28 : vector<1x128x128xf32> to vector<128x128xf32>
    %cst_20 = arith.constant dense<0.000000e+00> : vector<512x128xf32>
    %30 = tpu.matmul %24, %29, %cst_20 {dimension_numbers = #tpu.dot_dimension_numbers<[1], [0], [0], [1], [0, 0, 1, 1], [], []>} : vector<512x128xf32>, vector<128x128xf32>, vector<512x128xf32> -> vector<512x128xf32>
    %c1_21 = arith.constant 1 : index
    %c0_22 = arith.constant 0 : index
    %c0_23 = arith.constant 0 : index
    %31 = vector.load %arg3[%c1_21, %c0_22, %c0_23] : memref<4x1x128xf32, #tpu.memory_space<vmem>>, vector<1x1x128xf32>
    %32 = vector.shape_cast %31 : vector<1x1x128xf32> to vector<1x128xf32>
    %33 = vector.broadcast %32 : vector<1x128xf32> to vector<512x128xf32>
    %34 = arith.addf %30, %33 : vector<512x128xf32>
    %cst_24 = arith.constant 0.000000e+00 : f32
    %35 = vector.broadcast %cst_24 : f32 to vector<512x128xf32>
    %36 = arith.maximumf %34, %35 : vector<512x128xf32>
    %c1_25 = arith.constant 1 : index
    %c0_26 = arith.constant 0 : index
    %c0_27 = arith.constant 0 : index
    %37 = vector.load %arg4[%c1_25, %c0_26, %c0_27] : memref<4x128x256xf32, #tpu.memory_space<vmem>>, vector<1x128x256xf32>
    %38 = vector.shape_cast %37 : vector<1x128x256xf32> to vector<128x256xf32>
    %cst_28 = arith.constant dense<0.000000e+00> : vector<512x256xf32>
    %39 = tpu.matmul %36, %38, %cst_28 {dimension_numbers = #tpu.dot_dimension_numbers<[1], [0], [0], [1], [0, 0, 1, 1], [], []>} : vector<512x128xf32>, vector<128x256xf32>, vector<512x256xf32> -> vector<512x256xf32>
    %c1_29 = arith.constant 1 : index
    %c0_30 = arith.constant 0 : index
    %c0_31 = arith.constant 0 : index
    %40 = vector.load %arg5[%c1_29, %c0_30, %c0_31] : memref<4x1x256xf32, #tpu.memory_space<vmem>>, vector<1x1x256xf32>
    %41 = vector.shape_cast %40 : vector<1x1x256xf32> to vector<1x256xf32>
    %42 = vector.broadcast %41 : vector<1x256xf32> to vector<512x256xf32>
    %43 = arith.addf %39, %42 : vector<512x256xf32>
    %44 = vector.extract_strided_slice %43 {offsets = [0, 0], sizes = [512, 128], strides = [1, 1]} : vector<512x256xf32> to vector<512x128xf32>
    %45 = vector.extract_strided_slice %43 {offsets = [0, 128], sizes = [512, 128], strides = [1, 1]} : vector<512x256xf32> to vector<512x128xf32>
    %46 = math.tanh %44 : vector<512x128xf32>
    %47 = math.exp %46 : vector<512x128xf32>
    %48 = arith.mulf %0, %47 : vector<512x128xf32>
    %49 = arith.addf %48, %45 : vector<512x128xf32>
    %cst_32 = arith.constant dense<0.000000e+00> : vector<512xf32>
    %50 = vector.multi_reduction <add>, %46, %cst_32 [1] : vector<512x128xf32> to vector<512xf32>
    %51 = vector.shape_cast %50 : vector<512xf32> to vector<512x1xf32>
    %52 = arith.addf %27, %51 : vector<512x1xf32>
    %c2 = arith.constant 2 : index
    %c0_33 = arith.constant 0 : index
    %c0_34 = arith.constant 0 : index
    %53 = vector.load %arg2[%c2, %c0_33, %c0_34] : memref<4x128x128xf32, #tpu.memory_space<vmem>>, vector<1x128x128xf32>
    %54 = vector.shape_cast %53 : vector<1x128x128xf32> to vector<128x128xf32>
    %cst_35 = arith.constant dense<0.000000e+00> : vector<512x128xf32>
    %55 = tpu.matmul %49, %54, %cst_35 {dimension_numbers = #tpu.dot_dimension_numbers<[1], [0], [0], [1], [0, 0, 1, 1], [], []>} : vector<512x128xf32>, vector<128x128xf32>, vector<512x128xf32> -> vector<512x128xf32>
    %c2_36 = arith.constant 2 : index
    %c0_37 = arith.constant 0 : index
    %c0_38 = arith.constant 0 : index
    %56 = vector.load %arg3[%c2_36, %c0_37, %c0_38] : memref<4x1x128xf32, #tpu.memory_space<vmem>>, vector<1x1x128xf32>
    %57 = vector.shape_cast %56 : vector<1x1x128xf32> to vector<1x128xf32>
    %58 = vector.broadcast %57 : vector<1x128xf32> to vector<512x128xf32>
    %59 = arith.addf %55, %58 : vector<512x128xf32>
    %cst_39 = arith.constant 0.000000e+00 : f32
    %60 = vector.broadcast %cst_39 : f32 to vector<512x128xf32>
    %61 = arith.maximumf %59, %60 : vector<512x128xf32>
    %c2_40 = arith.constant 2 : index
    %c0_41 = arith.constant 0 : index
    %c0_42 = arith.constant 0 : index
    %62 = vector.load %arg4[%c2_40, %c0_41, %c0_42] : memref<4x128x256xf32, #tpu.memory_space<vmem>>, vector<1x128x256xf32>
    %63 = vector.shape_cast %62 : vector<1x128x256xf32> to vector<128x256xf32>
    %cst_43 = arith.constant dense<0.000000e+00> : vector<512x256xf32>
    %64 = tpu.matmul %61, %63, %cst_43 {dimension_numbers = #tpu.dot_dimension_numbers<[1], [0], [0], [1], [0, 0, 1, 1], [], []>} : vector<512x128xf32>, vector<128x256xf32>, vector<512x256xf32> -> vector<512x256xf32>
    %c2_44 = arith.constant 2 : index
    %c0_45 = arith.constant 0 : index
    %c0_46 = arith.constant 0 : index
    %65 = vector.load %arg5[%c2_44, %c0_45, %c0_46] : memref<4x1x256xf32, #tpu.memory_space<vmem>>, vector<1x1x256xf32>
    %66 = vector.shape_cast %65 : vector<1x1x256xf32> to vector<1x256xf32>
    %67 = vector.broadcast %66 : vector<1x256xf32> to vector<512x256xf32>
    %68 = arith.addf %64, %67 : vector<512x256xf32>
    %69 = vector.extract_strided_slice %68 {offsets = [0, 0], sizes = [512, 128], strides = [1, 1]} : vector<512x256xf32> to vector<512x128xf32>
    %70 = vector.extract_strided_slice %68 {offsets = [0, 128], sizes = [512, 128], strides = [1, 1]} : vector<512x256xf32> to vector<512x128xf32>
    %71 = math.tanh %69 : vector<512x128xf32>
    %72 = math.exp %71 : vector<512x128xf32>
    %73 = arith.mulf %24, %72 : vector<512x128xf32>
    %74 = arith.addf %73, %70 : vector<512x128xf32>
    %cst_47 = arith.constant dense<0.000000e+00> : vector<512xf32>
    %75 = vector.multi_reduction <add>, %71, %cst_47 [1] : vector<512x128xf32> to vector<512xf32>
    %76 = vector.shape_cast %75 : vector<512xf32> to vector<512x1xf32>
    %77 = arith.addf %52, %76 : vector<512x1xf32>
    %c3 = arith.constant 3 : index
    %c0_48 = arith.constant 0 : index
    %c0_49 = arith.constant 0 : index
    %78 = vector.load %arg2[%c3, %c0_48, %c0_49] : memref<4x128x128xf32, #tpu.memory_space<vmem>>, vector<1x128x128xf32>
    %79 = vector.shape_cast %78 : vector<1x128x128xf32> to vector<128x128xf32>
    %cst_50 = arith.constant dense<0.000000e+00> : vector<512x128xf32>
    %80 = tpu.matmul %74, %79, %cst_50 {dimension_numbers = #tpu.dot_dimension_numbers<[1], [0], [0], [1], [0, 0, 1, 1], [], []>} : vector<512x128xf32>, vector<128x128xf32>, vector<512x128xf32> -> vector<512x128xf32>
    %c3_51 = arith.constant 3 : index
    %c0_52 = arith.constant 0 : index
    %c0_53 = arith.constant 0 : index
    %81 = vector.load %arg3[%c3_51, %c0_52, %c0_53] : memref<4x1x128xf32, #tpu.memory_space<vmem>>, vector<1x1x128xf32>
    %82 = vector.shape_cast %81 : vector<1x1x128xf32> to vector<1x128xf32>
    %83 = vector.broadcast %82 : vector<1x128xf32> to vector<512x128xf32>
    %84 = arith.addf %80, %83 : vector<512x128xf32>
    %cst_54 = arith.constant 0.000000e+00 : f32
    %85 = vector.broadcast %cst_54 : f32 to vector<512x128xf32>
    %86 = arith.maximumf %84, %85 : vector<512x128xf32>
    %c3_55 = arith.constant 3 : index
    %c0_56 = arith.constant 0 : index
    %c0_57 = arith.constant 0 : index
    %87 = vector.load %arg4[%c3_55, %c0_56, %c0_57] : memref<4x128x256xf32, #tpu.memory_space<vmem>>, vector<1x128x256xf32>
    %88 = vector.shape_cast %87 : vector<1x128x256xf32> to vector<128x256xf32>
    %cst_58 = arith.constant dense<0.000000e+00> : vector<512x256xf32>
    %89 = tpu.matmul %86, %88, %cst_58 {dimension_numbers = #tpu.dot_dimension_numbers<[1], [0], [0], [1], [0, 0, 1, 1], [], []>} : vector<512x128xf32>, vector<128x256xf32>, vector<512x256xf32> -> vector<512x256xf32>
    %c3_59 = arith.constant 3 : index
    %c0_60 = arith.constant 0 : index
    %c0_61 = arith.constant 0 : index
    %90 = vector.load %arg5[%c3_59, %c0_60, %c0_61] : memref<4x1x256xf32, #tpu.memory_space<vmem>>, vector<1x1x256xf32>
    %91 = vector.shape_cast %90 : vector<1x1x256xf32> to vector<1x256xf32>
    %92 = vector.broadcast %91 : vector<1x256xf32> to vector<512x256xf32>
    %93 = arith.addf %89, %92 : vector<512x256xf32>
    %94 = vector.extract_strided_slice %93 {offsets = [0, 0], sizes = [512, 128], strides = [1, 1]} : vector<512x256xf32> to vector<512x128xf32>
    %95 = vector.extract_strided_slice %93 {offsets = [0, 128], sizes = [512, 128], strides = [1, 1]} : vector<512x256xf32> to vector<512x128xf32>
    %96 = math.tanh %94 : vector<512x128xf32>
    %97 = math.exp %96 : vector<512x128xf32>
    %98 = arith.mulf %49, %97 : vector<512x128xf32>
    %99 = arith.addf %98, %95 : vector<512x128xf32>
    %cst_62 = arith.constant dense<0.000000e+00> : vector<512xf32>
    %100 = vector.multi_reduction <add>, %96, %cst_62 [1] : vector<512x128xf32> to vector<512xf32>
    %101 = vector.shape_cast %100 : vector<512xf32> to vector<512x1xf32>
    %102 = arith.addf %77, %101 : vector<512x1xf32>
    %c0_63 = arith.constant 0 : index
    %c0_64 = arith.constant 0 : index
    %103 = vector.load %arg6[%c0_63, %c0_64] : memref<512x256xf32, #tpu.memory_space<vmem>>, vector<512x128xf32>
    tpu.vector_store %arg6[%c0_63, %c0_64], %99 {strides = array<i32>} : memref<512x256xf32, #tpu.memory_space<vmem>>, vector<512x128xf32>,
    %c0_65 = arith.constant 0 : index
    %c128_66 = arith.constant 128 : index
    %104 = vector.load %arg6[%c0_65, %c128_66] : memref<512x256xf32, #tpu.memory_space<vmem>>, vector<512x128xf32>
    tpu.vector_store %arg6[%c0_65, %c128_66], %74 {strides = array<i32>} : memref<512x256xf32, #tpu.memory_space<vmem>>, vector<512x128xf32>,
    %c0_67 = arith.constant 0 : index
    %c0_68 = arith.constant 0 : index
    %105 = vector.load %arg7[%c0_67, %c0_68] : memref<512x1xf32, #tpu.memory_space<vmem>>, vector<512x1xf32>
    tpu.vector_store %arg7[%c0_67, %c0_68], %102 {strides = array<i32>} : memref<512x1xf32, #tpu.memory_space<vmem>>, vector<512x1xf32>,
    return
  }
  func.func @transform_0(%arg0: i32) -> (i32, i32) {
    %c0_i32 = arith.constant 0 : i32
    %c0_i32_0 = arith.constant 0 : i32
    return %arg0, %c0_i32 : i32, i32
  }
  func.func @transform_1(%arg0: i32) -> (i32, i32, i32) {
    %c0_i32 = arith.constant 0 : i32
    %c0_i32_0 = arith.constant 0 : i32
    %c0_i32_1 = arith.constant 0 : i32
    %c0_i32_2 = arith.constant 0 : i32
    return %c0_i32, %c0_i32_0, %c0_i32_1 : i32, i32, i32
  }
  func.func @transform_2(%arg0: i32) -> (i32, i32, i32) {
    %c0_i32 = arith.constant 0 : i32
    %c0_i32_0 = arith.constant 0 : i32
    %c0_i32_1 = arith.constant 0 : i32
    %c0_i32_2 = arith.constant 0 : i32
    return %c0_i32, %c0_i32_0, %c0_i32_1 : i32, i32, i32
  }
  func.func @transform_3(%arg0: i32) -> (i32, i32, i32) {
    %c0_i32 = arith.constant 0 : i32
    %c0_i32_0 = arith.constant 0 : i32
    %c0_i32_1 = arith.constant 0 : i32
    %c0_i32_2 = arith.constant 0 : i32
    return %c0_i32, %c0_i32_0, %c0_i32_1 : i32, i32, i32
  }
  func.func @transform_4(%arg0: i32) -> (i32, i32, i32) {
    %c0_i32 = arith.constant 0 : i32
    %c0_i32_0 = arith.constant 0 : i32
    %c0_i32_1 = arith.constant 0 : i32
    %c0_i32_2 = arith.constant 0 : i32
    return %c0_i32, %c0_i32_0, %c0_i32_1 : i32, i32, i32
  }
  func.func @transform_5(%arg0: i32) -> (i32, i32) {
    %c0_i32 = arith.constant 0 : i32
    %c0_i32_0 = arith.constant 0 : i32
    return %arg0, %c0_i32 : i32, i32
  }
  func.func @transform_6(%arg0: i32) -> (i32, i32) {
    %c0_i32 = arith.constant 0 : i32
    %c0_i32_0 = arith.constant 0 : i32
    return %arg0, %c0_i32 : i32, i32
  }
}

</mosaic_0001>

<bundles_post_ra>
// kernel: tpu_custom_call.1
= control target key start
LH: loop header
LB: loop body
LE: loop exit
PB: predicated region body
PF: predicated region fallthrough
CT: control target
= control target key end

     0   :  { %12 = vsyncpa [#allocation3], 0  ;;  %s12166_s0 = inlined_call_operand.hbm [shape: f32[512,256], index: 0, kind: input, shape index: {}]   ;;  %s12167_s1 = inlined_call_operand.hbm [shape: f32[4,128,128], index: 1, kind: input, shape index: {}]   ;;  %s12168_s2 = inlined_call_operand.vmem [shape: f32[4,1,128], index: 2, kind: input, shape index: {}]   ;;  %s12169_s3 = inlined_call_operand.hbm [shape: f32[4,128,256], index: 3, kind: input, shape index: {}]   ;;  %s12170_s4 = inlined_call_operand.vmem [shape: f32[4,1,256], index: 4, kind: input, shape index: {}]   ;;  %s12171_s5 = inlined_call_operand.hbm [shape: f32[512,256], index: 5, kind: output, shape index: {0}]   ;;  %s12172_s6 = inlined_call_operand.vmem [shape: f32[512,1], index: 6, kind: output, shape index: {1}]  }
   0x1   :  { %13 = vsyncpa [#allocation6], 0 }
   0x2   :  { %14 = vsyncpa [#allocation4], 0  ;;  %s8616_s21 = smov [#allocation5]   ;;  %s8522_s25 = scalar_lea.hbm %s12167_s1, 8192 }
   0x3   :  { %s32_s22 = sshll.u32 %s8616_s21, 4  ;;  %p8523_p0 = scmp.ne.s32.totalorder %s12167_s1, %s8522_s25  ;;  %s33_s22 = int_to_ptr.vmem [resolvable:$true] %s32_s22 }
   0x4   :  { %p8526_p1 = scmp.lt.u32.totalorder %s8522_s25, %s12167_s1 }
   0x6   :  { %p8528_p2 = pnand %p8526_p1, %p8523_p0 }
   0x8   :  { %8531 = shalt.err (!%p8528_p2)
}
   0x9   :  { %s8532_s30 = scalar_lea.vmem %s33_s22, 8192  ;;  %p8537_p4 = scmp.lt.s32.totalorder %s33_s22, %s33_s22 }
   0xa   :  { %p8533_p3 = scmp.ne.s32.totalorder %s33_s22, %s8532_s30  ;;  %p8538_p5 = scmp.lt.s32.totalorder %s8532_s30, %s8532_s30 }
   0xc   :  { %p8539_p6 = por %p8538_p5, %p8537_p4 }
   0xe   :  { %p8540_p7 = pnand %p8539_p6, %p8533_p3 }
  0x10   :  { %8543 = shalt.err (!%p8540_p7)
}
  0x11   :  { %s8617_s7 = smov 128   ;;  %s8618_s8 = smov 8  }
  0x12   :  { %38 = dma.hbm_to_vmem [thread:$0]  %s12167_s1, 8192, %s33_s22, [#allocation6], %s8617_s7, %s8617_s7, %s8618_s8  }
  0x13   :  { %s8619_s11 = smov [#allocation2]   ;;  %s8544_s15 = scalar_lea.hbm %s12166_s0, 16384 }
  0x14   :  { %s20_s12 = sshll.u32 %s8619_s11, 4  ;;  %p8545_p8 = scmp.ne.s32.totalorder %s12166_s0, %s8544_s15  ;;  %s21_s12 = int_to_ptr.vmem [resolvable:$true] %s20_s12 }
  0x15   :  { %p8548_p9 = scmp.lt.u32.totalorder %s8544_s15, %s12166_s0 }
  0x17   :  { %p8550_p10 = pnand %p8548_p9, %p8545_p8 }
  0x19   :  { %8553 = shalt.err (!%p8550_p10)
}
  0x1a   :  { %s8554_s20 = scalar_lea.vmem %s21_s12, 16384  ;;  %p8559_p12 = scmp.lt.s32.totalorder %s21_s12, %s21_s12 }
  0x1b   :  { %p8555_p11 = scmp.ne.s32.totalorder %s21_s12, %s8554_s20  ;;  %p8560_p13 = scmp.lt.s32.totalorder %s8554_s20, %s8554_s20 }
  0x1d   :  { %p8561_p0 = por %p8560_p13, %p8559_p12 }
  0x1f   :  { %p8562_p1 = pnand %p8561_p0, %p8555_p11 }
  0x21   :  { %8565 = shalt.err (!%p8562_p1)
}
  0x22   :  { %s8620_s1 = smov 256   ;;  %s8621_s21 = smov 16  }
  0x23   :  { %26 = dma.hbm_to_vmem [thread:$0]  %s12166_s0, 16384, %s21_s12, [#allocation3], %s8620_s1, %s8620_s1, %s8621_s21  }
  0x24   :  { %s8622_s24 = smov [#allocation7]   ;;  %s8566_s28 = scalar_lea.hbm %s12169_s3, 16384 }
  0x25   :  { %s46_s25 = sshll.u32 %s8622_s24, 4  ;;  %p8567_p2 = scmp.ne.s32.totalorder %s12169_s3, %s8566_s28  ;;  %s47_s25 = int_to_ptr.vmem [resolvable:$true] %s46_s25 }
  0x26   :  { %p8570_p3 = scmp.lt.u32.totalorder %s8566_s28, %s12169_s3 }
  0x28   :  { %p8572_p4 = pnand %p8570_p3, %p8567_p2 }
  0x2a   :  { %8575 = shalt.err (!%p8572_p4)
}
  0x2b   :  { %s8576_s9 = scalar_lea.vmem %s47_s25, 16384  ;;  %p8581_p6 = scmp.lt.s32.totalorder %s47_s25, %s47_s25 }
  0x2c   :  { %p8577_p5 = scmp.ne.s32.totalorder %s47_s25, %s8576_s9  ;;  %p8582_p7 = scmp.lt.s32.totalorder %s8576_s9, %s8576_s9 }
  0x2e   :  { %p8583_p8 = por %p8582_p7, %p8581_p6 }
  0x30   :  { %p8584_p9 = pnand %p8583_p8, %p8577_p5 }
  0x32   :  { %8587 = shalt.err (!%p8584_p9)
}
  0x33   :  { %52 = dma.hbm_to_vmem [thread:$0]  %s12169_s3, 16384, %s47_s25, [#allocation6], %s8620_s1, %s8620_s1, %s8621_s21  }
  0x34   :  { %8610 = dma.done.wait [#allocation3], 16384  }
  0x35   :  { %8611 = vsyncadd [#allocation3], 4294950912 }
  0x36   :  { %8612 = dma.done.wait [#allocation6], 24576  }
  0x37   :  { %8613 = vsyncadd [#allocation6], 4294942720  ;;  %v192_v0 = vld [vmem:[#allocation5] sm:$0xff]  ;;  %v193_v1 = vld [vmem:[#allocation5 + $0x8] sm:$0xff]  ;;  %vm6240_vm0 = vcmask 7168   ;;  %s8624_s9 = smov [#allocation8]  }
  0x38   :  { %v194_v2 = vld [vmem:[#allocation5 + $0x10] sm:$0xff]  ;;  %v7169_v3 = vpack.c.bf16 %v193_v1, %v192_v0  ;;  %v195_v4 = vld [vmem:[#allocation5 + $0x18] sm:$0xff]  ;;  %v196_v6 = vld [vmem:[#allocation5 + $0x20] sm:$0xff]  ;;  %s6310_s0 = sshll.u32 %s8624_s9, 4  ;;  %s6311_s0 = int_to_ptr.vmem [resolvable:$true] %s6310_s0 }
  0x39   :  { %v7173_v5 = vpack.c.bf16 %v195_v4, %v194_v2  ;;  %v197_v7 = vld [vmem:[#allocation5 + $0x28] sm:$0xff]  ;;  %v64_v9 = vld [vmem:[#allocation2] sm:$0xff]  ;;  %v198_v10 = vld [vmem:[#allocation5 + $0x30] sm:$0xff]  ;;  %s8588_s11 = scalar_lea.vmem %s6311_s0, 16384  ;;  %p8593_p11 = scmp.lt.s32.totalorder %s6311_s0, %s6311_s0 }
  0x3a   :  { %7170 = vmatprep.subr.bf16.mxu1 %v7169_v3  ;;  %v7177_v8 = vpack.c.bf16 %v197_v7, %v196_v6  ;;  %v199_v11 = vld [vmem:[#allocation5 + $0x38] sm:$0xff]  ;;  %6689 = vmatprep.mubr.f32.mxu1 %v64_v9  ;;  %v200_v13 = vld [vmem:[#allocation5 + $0x40] sm:$0xff]  ;;  %v201_v14 = vld [vmem:[#allocation5 + $0x48] sm:$0xff]  ;;  %p8589_p10 = scmp.ne.s32.totalorder %s6311_s0, %s8588_s11  ;;  %p8594_p12 = scmp.lt.s32.totalorder %s8588_s11, %s8588_s11 }
  0x3b   :  { %7172 = vmatpush3.bf16.msra.mxu1 %v7169_v3  ;;  %v7181_v12 = vpack.c.bf16 %v199_v11, %v198_v10  ;;  %v7185_v15 = vpack.c.bf16 %v201_v14, %v200_v13  ;;  %v202_v16 = vld [vmem:[#allocation5 + $0x50] sm:$0xff]  ;;  %v203_v17 = vld [vmem:[#allocation5 + $0x58] sm:$0xff]  ;;  %v204_v19 = vld [vmem:[#allocation5 + $0x60] sm:$0xff] }
  0x3c   :  { %7174 = vmatprep.subr.bf16.mxu1 %v7173_v5  ;;  %v7189_v18 = vpack.c.bf16 %v203_v17, %v202_v16  ;;  %v205_v20 = vld [vmem:[#allocation5 + $0x68] sm:$0xff]  ;;  %v206_v22 = vld [vmem:[#allocation5 + $0x70] sm:$0xff]  ;;  %v207_v23 = vld [vmem:[#allocation5 + $0x78] sm:$0xff]  ;;  %p8595_p13 = por %p8594_p12, %p8593_p11 }
  0x3d   :  { %v7193_v21 = vpack.c.bf16 %v205_v20, %v204_v19  ;;  %v7197_v24 = vpack.c.bf16 %v207_v23, %v206_v22  ;;  %v665_v25 = vld [vmem:[#allocation7 + $0x8] sm:$0xff]  ;;  %v667_v26 = vld [vmem:[#allocation7 + $0x18] sm:$0xff]  ;;  %v664_v28 = vld [vmem:[#allocation7] sm:$0xff] }
  0x3e   :  { %v7201_v27 = vpack.c.bf16 %v667_v26, %v665_v25  ;;  %v666_v29 = vld [vmem:[#allocation7 + $0x10] sm:$0xff]  ;;  %v669_v30 = vld [vmem:[#allocation7 + $0x28] sm:$0xff]  ;;  %v671_v31 = vld [vmem:[#allocation7 + $0x38] sm:$0xff]  ;;  %p8596_p0 = pnand %p8595_p13, %p8589_p10 }
  0x3f   :  { %7176 = vmatpush3.bf16.msra.mxu1 %v7173_v5  ;;  %v65_v32 = vld [vmem:[#allocation2 + $0x10] sm:$0xff]  ;;  %v7203_v33 = vpack.c.bf16 %v666_v29, %v664_v28  ;;  %v66_v34 = vld [vmem:[#allocation2 + $0x20] sm:$0xff]  ;;  %v7205_v35 = vpack.c.bf16 %v671_v31, %v669_v30  ;;  %v673_v38 = vld [vmem:[#allocation7 + $0x48] sm:$0xff] }
  0x40   :  { %7178 = vmatprep.subr.bf16.mxu1 %v7177_v8  ;;  %v668_v36 = vld [vmem:[#allocation7 + $0x20] sm:$0xff]  ;;  %v670_v37 = vld [vmem:[#allocation7 + $0x30] sm:$0xff]  ;;  %v675_v39 = vld [vmem:[#allocation7 + $0x58] sm:$0xff] }
  0x41   :  { %v67_v40 = vld [vmem:[#allocation2 + $0x30] sm:$0xff]  ;;  %v7207_v41 = vpack.c.bf16 %v670_v37, %v668_v36  ;;  %v68_v42 = vld [vmem:[#allocation2 + $0x40] sm:$0xff]  ;;  %v7209_v43 = vpack.c.bf16 %v675_v39, %v673_v38  ;;  %v677_v46 = vld [vmem:[#allocation7 + $0x68] sm:$0xff] }
  0x42   :  { %v672_v44 = vld [vmem:[#allocation7 + $0x40] sm:$0xff]  ;;  %v674_v45 = vld [vmem:[#allocation7 + $0x50] sm:$0xff]  ;;  %v679_v47 = vld [vmem:[#allocation7 + $0x78] sm:$0xff] }
  0x43   :  { %7180 = vmatpush3.bf16.msra.mxu1 %v7177_v8  ;;  %v69_v48 = vld [vmem:[#allocation2 + $0x50] sm:$0xff]  ;;  %v7211_v49 = vpack.c.bf16 %v674_v45, %v672_v44  ;;  %v70_v50 = vld [vmem:[#allocation2 + $0x60] sm:$0xff]  ;;  %v7213_v51 = vpack.c.bf16 %v679_v47, %v677_v46  ;;  %v681_v54 = vld [vmem:[#allocation7 + $0x88] sm:$0xff] }
  0x44   :  { %7182 = vmatprep.subr.bf16.mxu1 %v7181_v12  ;;  %v676_v52 = vld [vmem:[#allocation7 + $0x60] sm:$0xff]  ;;  %v678_v53 = vld [vmem:[#allocation7 + $0x70] sm:$0xff]  ;;  %v683_v55 = vld [vmem:[#allocation7 + $0x98] sm:$0xff] }
  0x45   :  { %v71_v56 = vld [vmem:[#allocation2 + $0x70] sm:$0xff]  ;;  %v7215_v57 = vpack.c.bf16 %v678_v53, %v676_v52  ;;  %v72_v58 = vld [vmem:[#allocation2 + $0x80] sm:$0xff]  ;;  %v7217_v59 = vpack.c.bf16 %v683_v55, %v681_v54  ;;  %v685_v62 = vld [vmem:[#allocation7 + $0xa8] sm:$0xff] }
  0x46   :  { %v680_v60 = vld [vmem:[#allocation7 + $0x80] sm:$0xff]  ;;  %v682_v61 = vld [vmem:[#allocation7 + $0x90] sm:$0xff]  ;;  %v687_v63 = vld [vmem:[#allocation7 + $0xb8] sm:$0xff] }
  0x47   :  { %7184 = vmatpush3.bf16.msra.mxu1 %v7181_v12  ;;  %v73_v0 = vld [vmem:[#allocation2 + $0x90] sm:$0xff]  ;;  %v7219_v1 = vpack.c.bf16 %v682_v61, %v680_v60  ;;  %v74_v2 = vld [vmem:[#allocation2 + $0xa0] sm:$0xff]  ;;  %v7221_v3 = vpack.c.bf16 %v687_v63, %v685_v62  ;;  %v689_v6 = vld [vmem:[#allocation7 + $0xc8] sm:$0xff] }
  0x48   :  { %7186 = vmatprep.subr.bf16.mxu1 %v7185_v15  ;;  %v684_v4 = vld [vmem:[#allocation7 + $0xa0] sm:$0xff]  ;;  %v686_v5 = vld [vmem:[#allocation7 + $0xb0] sm:$0xff]  ;;  %v691_v7 = vld [vmem:[#allocation7 + $0xd8] sm:$0xff] }
  0x49   :  { %v75_v8 = vld [vmem:[#allocation2 + $0xb0] sm:$0xff]  ;;  %v7223_v9 = vpack.c.bf16 %v686_v5, %v684_v4  ;;  %v76_v10 = vld [vmem:[#allocation2 + $0xc0] sm:$0xff]  ;;  %v7225_v11 = vpack.c.bf16 %v691_v7, %v689_v6  ;;  %v693_v14 = vld [vmem:[#allocation7 + $0xe8] sm:$0xff] }
  0x4a   :  { %v688_v12 = vld [vmem:[#allocation7 + $0xc0] sm:$0xff]  ;;  %v690_v13 = vld [vmem:[#allocation7 + $0xd0] sm:$0xff] }
  0x4b   :  { %7188 = vmatpush3.bf16.msra.mxu1 %v7185_v15  ;;  %v695_v15 = vld [vmem:[#allocation7 + $0xf8] sm:$0xff]  ;;  %v77_v16 = vld [vmem:[#allocation2 + $0xd0] sm:$0xff]  ;;  %v7227_v17 = vpack.c.bf16 %v690_v13, %v688_v12  ;;  %v692_v20 = vld [vmem:[#allocation7 + $0xe0] sm:$0xff] }
  0x4c   :  { %7190 = vmatprep.subr.bf16.mxu1 %v7189_v18  ;;  %v7229_v19 = vpack.c.bf16 %v695_v15, %v693_v14  ;;  %v79_v22 = vld [vmem:[#allocation2 + $0xf0] sm:$0xff]  ;;  %v82_v26 = vld [vmem:[#allocation2 + $0x120] sm:$0xff] }
  0x4d   :  { %v81_v25 = vld [vmem:[#allocation2 + $0x110] sm:$0xff]  ;;  %v84_v28 = vld [vmem:[#allocation2 + $0x140] sm:$0xff] }
  0x4e   :  { %v85_v29 = vld [vmem:[#allocation2 + $0x150] sm:$0xff]  ;;  %v86_v30 = vld [vmem:[#allocation2 + $0x160] sm:$0xff] }
  0x4f   :  { %7192 = vmatpush3.bf16.msra.mxu1 %v7189_v18  ;;  %v78_v18 = vld [vmem:[#allocation2 + $0xe0] sm:$0xff]  ;;  %v87_v31 = vld [vmem:[#allocation2 + $0x170] sm:$0xff] }
  0x50   :  { %7194 = vmatprep.subr.bf16.mxu1 %v7193_v21  ;;  %v92_v36 = vld [vmem:[#allocation2 + $0x1c0] sm:$0xff]  ;;  %v93_v37 = vld [vmem:[#allocation2 + $0x1d0] sm:$0xff] }
  0x51   :  { %v94_v38 = vld [vmem:[#allocation2 + $0x1e0] sm:$0xff]  ;;  %v95_v39 = vld [vmem:[#allocation2 + $0x1f0] sm:$0xff] }
  0x52   :  { %v100_v44 = vld [vmem:[#allocation2 + $0x240] sm:$0xff]  ;;  %v101_v45 = vld [vmem:[#allocation2 + $0x250] sm:$0xff] }
  0x53   :  { %7196 = vmatpush3.bf16.msra.mxu1 %v7193_v21  ;;  %v694_v21 = vld [vmem:[#allocation7 + $0xf0] sm:$0xff]  ;;  %v102_v46 = vld [vmem:[#allocation2 + $0x260] sm:$0xff] }
  0x54   :  { %7198 = vmatprep.subr.bf16.mxu1 %v7197_v24  ;;  %v7231_v23 = vpack.c.bf16 %v694_v21, %v692_v20  ;;  %v103_v47 = vld [vmem:[#allocation2 + $0x270] sm:$0xff]  ;;  %v108_v52 = vld [vmem:[#allocation2 + $0x2c0] sm:$0xff] }
  0x55   :  { %v109_v53 = vld [vmem:[#allocation2 + $0x2d0] sm:$0xff]  ;;  %v110_v54 = vld [vmem:[#allocation2 + $0x2e0] sm:$0xff] }
  0x56   :  { %v111_v55 = vld [vmem:[#allocation2 + $0x2f0] sm:$0xff]  ;;  %v116_v60 = vld [vmem:[#allocation2 + $0x340] sm:$0xff] }
  0x57   :  { %7200 = vmatpush3.bf16.msra.mxu1 %v7197_v24  ;;  %v80_v24 = vld [vmem:[#allocation2 + $0x100] sm:$0xff]  ;;  %v117_v61 = vld [vmem:[#allocation2 + $0x350] sm:$0xff] }
  0x58   :  { %7202 = vmatprep.subr.bf16.mxu1 %v7201_v27  ;;  %v83_v27 = vld [vmem:[#allocation2 + $0x130] sm:$0xff]  ;;  %v118_v62 = vld [vmem:[#allocation2 + $0x360] sm:$0xff] }
  0x59   :  { %v119_v63 = vld [vmem:[#allocation2 + $0x370] sm:$0xff]  ;;  %v124_v4 = vld [vmem:[#allocation2 + $0x3c0] sm:$0xff] }
  0x5a   :  { %6690 = vmatmul.mubr.f32.vlgmr.msra.gmra.mrb[0].mxu1 %v65_v32  ;;  %v88_v32 = vld [vmem:[#allocation2 + $0x180] sm:$0xff]  ;;  %v125_v5 = vld [vmem:[#allocation2 + $0x3d0] sm:$0xff] }
  0x5b   :  { %6692 = vmatprep.mubr.f32.mxu1 %v66_v34  ;;  %7204 = vmatpush1.bf16.msra.mxu1 %v7203_v33  ;;  %v89_v33 = vld [vmem:[#allocation2 + $0x190] sm:$0xff]  ;;  %v90_v34 = vld [vmem:[#allocation2 + $0x1a0] sm:$0xff] }
  0x5c   :  { %7206 = vmatprep.subr.bf16.mxu1 %v7205_v35  ;;  %v91_v35 = vld [vmem:[#allocation2 + $0x1b0] sm:$0xff]  ;;  %v126_v6 = vld [vmem:[#allocation2 + $0x3e0] sm:$0xff] }
  0x5d   :  { %v127_v7 = vld [vmem:[#allocation2 + $0x3f0] sm:$0xff] }
  0x5e   :  { %6693 = vmatmul.mubr.f32.gmra.mrb[2].mxu1 %v67_v40  ;;  %v96_v40 = vld [vmem:[#allocation2 + $0x200] sm:$0xff] }
  0x5f   :  { %6695 = vmatprep.mubr.f32.mxu1 %v68_v42  ;;  %7208 = vmatpush1.bf16.msra.mxu1 %v7207_v41  ;;  %v97_v41 = vld [vmem:[#allocation2 + $0x210] sm:$0xff]  ;;  %v98_v42 = vld [vmem:[#allocation2 + $0x220] sm:$0xff] }
  0x60   :  { %7210 = vmatprep.subr.bf16.mxu1 %v7209_v43  ;;  %v99_v43 = vld [vmem:[#allocation2 + $0x230] sm:$0xff] }
  0x62   :  { %6696 = vmatmul.mubr.f32.gmra.mrb[4].mxu1 %v69_v48  ;;  %v104_v48 = vld [vmem:[#allocation2 + $0x280] sm:$0xff] }
  0x63   :  { %6698 = vmatprep.mubr.f32.mxu1 %v70_v50  ;;  %7212 = vmatpush1.bf16.msra.mxu1 %v7211_v49  ;;  %v105_v49 = vld [vmem:[#allocation2 + $0x290] sm:$0xff]  ;;  %v106_v50 = vld [vmem:[#allocation2 + $0x2a0] sm:$0xff] }
  0x64   :  { %7214 = vmatprep.subr.bf16.mxu1 %v7213_v51  ;;  %v107_v51 = vld [vmem:[#allocation2 + $0x2b0] sm:$0xff] }
  0x66   :  { %6699 = vmatmul.mubr.f32.gmra.mrb[6].mxu1 %v71_v56  ;;  %v112_v56 = vld [vmem:[#allocation2 + $0x300] sm:$0xff] }
  0x67   :  { %6701 = vmatprep.mubr.f32.mxu1 %v72_v58  ;;  %7216 = vmatpush1.bf16.msra.mxu1 %v7215_v57  ;;  %v113_v57 = vld [vmem:[#allocation2 + $0x310] sm:$0xff]  ;;  %v114_v58 = vld [vmem:[#allocation2 + $0x320] sm:$0xff] }
  0x68   :  { %7218 = vmatprep.subr.bf16.mxu1 %v7217_v59  ;;  %v115_v59 = vld [vmem:[#allocation2 + $0x330] sm:$0xff] }
  0x6a   :  { %6702 = vmatmul.mubr.f32.gmra.mrb[8].mxu1 %v73_v0  ;;  %v120_v0 = vld [vmem:[#allocation2 + $0x380] sm:$0xff] }
  0x6b   :  { %6704 = vmatprep.mubr.f32.mxu1 %v74_v2  ;;  %7220 = vmatpush1.bf16.msra.mxu1 %v7219_v1  ;;  %v121_v1 = vld [vmem:[#allocation2 + $0x390] sm:$0xff]  ;;  %v122_v2 = vld [vmem:[#allocation2 + $0x3a0] sm:$0xff] }
  0x6c   :  { %7222 = vmatprep.subr.bf16.mxu1 %v7221_v3  ;;  %v123_v3 = vld [vmem:[#allocation2 + $0x3b0] sm:$0xff] }
  0x6e   :  { %6705 = vmatmul.mubr.f32.gmra.mrb[10].mxu1 %v75_v8  ;;  %v12173_v8 = vmov 0.0  }
  0x6f   :  { %6707 = vmatprep.mubr.f32.mxu1 %v76_v10  ;;  %7224 = vmatpush1.bf16.msra.mxu1 %v7223_v9  ;;  %v8706_v9 = vld [vmem:[%s12168_s2] ss:$0 sm:$0xff] }
  0x70   :  { %7226 = vmatprep.subr.bf16.mxu1 %v7225_v11 }
  0x72   :  { %6708 = vmatmul.mubr.f32.gmra.mrb[12].mxu1 %v77_v16 }
  0x73   :  { %6710 = vmatprep.mubr.f32.mxu1 %v78_v18  ;;  %7228 = vmatpush1.bf16.msra.mxu1 %v7227_v17 }
  0x74   :  { %7230 = vmatprep.subr.bf16.mxu1 %v7229_v19 }
  0x76   :  { %6711 = vmatmul.mubr.f32.gmra.mrb[14].mxu1 %v79_v22 }
  0x77   :  { %6713 = vmatprep.mubr.f32.mxu1 %v80_v24  ;;  %7232 = vmatpush1.bf16.msra.mxu1 %v7231_v23 }
  0x7a   :  { %6714 = vmatmul.mubr.f32.gmra.mrb[16].mxu1 %v81_v25 }
  0x7b   :  { %6716 = vmatprep.mubr.f32.mxu1 %v82_v26 }
  0x7e   :  { %6717 = vmatmul.mubr.f32.gmra.mrb[18].mxu1 %v83_v27 }
  0x7f   :  { %6719 = vmatprep.mubr.f32.mxu1 %v84_v28 }
  0x82   :  { %6720 = vmatmul.mubr.f32.gmra.mrb[20].mxu1 %v85_v29 }
  0x83   :  { %6722 = vmatprep.mubr.f32.mxu1 %v86_v30 }
  0x86   :  { %6723 = vmatmul.mubr.f32.gmra.mrb[22].mxu1 %v87_v31 }
  0x87   :  { %6725 = vmatprep.mubr.f32.mxu1 %v88_v32 }
  0x8a   :  { %6726 = vmatmul.mubr.f32.gmra.mrb[24].mxu1 %v89_v33 }
  0x8b   :  { %6728 = vmatprep.mubr.f32.mxu1 %v90_v34 }
  0x8e   :  { %6729 = vmatmul.mubr.f32.gmra.mrb[26].mxu1 %v91_v35 }
  0x8f   :  { %6731 = vmatprep.mubr.f32.mxu1 %v92_v36 }
  0x92   :  { %6732 = vmatmul.mubr.f32.gmra.mrb[28].mxu1 %v93_v37 }
  0x93   :  { %6734 = vmatprep.mubr.f32.mxu1 %v94_v38 }
  0x96   :  { %6735 = vmatmul.mubr.f32.gmra.mrb[30].mxu1 %v95_v39 }
  0x97   :  { %6737 = vmatprep.mubr.f32.mxu1 %v96_v40 }
  0x9a   :  { %6738 = vmatmul.mubr.f32.gmra.mrb[32].mxu1 %v97_v41 }
  0x9b   :  { %6740 = vmatprep.mubr.f32.mxu1 %v98_v42 }
  0x9e   :  { %6741 = vmatmul.mubr.f32.gmra.mrb[34].mxu1 %v99_v43 }
  0x9f   :  { %6743 = vmatprep.mubr.f32.mxu1 %v100_v44 }
  0xa2   :  { %6744 = vmatmul.mubr.f32.gmra.mrb[36].mxu1 %v101_v45 }
  0xa3   :  { %6746 = vmatprep.mubr.f32.mxu1 %v102_v46 }
  0xa6   :  { %6747 = vmatmul.mubr.f32.gmra.mrb[38].mxu1 %v103_v47 }
  0xa7   :  { %6749 = vmatprep.mubr.f32.mxu1 %v104_v48 }
  0xaa   :  { %6750 = vmatmul.mubr.f32.gmra.mrb[40].mxu1 %v105_v49 }
  0xab   :  { %6752 = vmatprep.mubr.f32.mxu1 %v106_v50 }
  0xae   :  { %6753 = vmatmul.mubr.f32.gmra.mrb[42].mxu1 %v107_v51 }
  0xaf   :  { %6755 = vmatprep.mubr.f32.mxu1 %v108_v52 }
  0xb2   :  { %6756 = vmatmul.mubr.f32.gmra.mrb[44].mxu1 %v109_v53 }
  0xb3   :  { %6758 = vmatprep.mubr.f32.mxu1 %v110_v54 }
  0xb6   :  { %6759 = vmatmul.mubr.f32.gmra.mrb[46].mxu1 %v111_v55 }
  0xb7   :  { %6761 = vmatprep.mubr.f32.mxu1 %v112_v56 }
  0xba   :  { %6762 = vmatmul.mubr.f32.gmra.mrb[48].mxu1 %v113_v57 }
  0xbb   :  { %6764 = vmatprep.mubr.f32.mxu1 %v114_v58 }
  0xbe   :  { %6765 = vmatmul.mubr.f32.gmra.mrb[50].mxu1 %v115_v59 }
  0xbf   :  { %6767 = vmatprep.mubr.f32.mxu1 %v116_v60 }
  0xc2   :  { %6768 = vmatmul.mubr.f32.gmra.mrb[52].mxu1 %v117_v61 }
  0xc3   :  { %6770 = vmatprep.mubr.f32.mxu1 %v118_v62 }
  0xc6   :  { %6771 = vmatmul.mubr.f32.gmra.mrb[54].mxu1 %v119_v63 }
  0xc7   :  { %6773 = vmatprep.mubr.f32.mxu1 %v120_v0 }
  0xca   :  { %6774 = vmatmul.mubr.f32.gmra.mrb[56].mxu1 %v121_v1 }
  0xcb   :  { %6776 = vmatprep.mubr.f32.mxu1 %v122_v2 }
  0xce   :  { %6777 = vmatmul.mubr.f32.gmra.mrb[58].mxu1 %v123_v3 }
  0xcf   :  { %6779 = vmatprep.mubr.f32.mxu1 %v124_v4 }
  0xd2   :  { %6780 = vmatmul.mubr.f32.gmra.mrb[60].mxu1 %v125_v5 }
  0xd3   :  { %6782 = vmatprep.mubr.f32.mxu1 %v126_v6 }
  0xd6   :  { %6783 = vmatmul.mubr.f32.gmra.mrb[62].mxu1 %v127_v7 }
  0xd7   :  { %772 = vmatprep.mubr.f32.mxu1 %v12173_v8 }
 0x12d   :  { %v6691_v10 = vpop.f32.mrb[0].mxu1 }
 0x12e   :  { %v281_v11 = vpop.f32.mrb[1].mxu1  ;;  %v287_v13 = vadd.f32 %v6691_v10, %v8706_v9 }
 0x12f   :  { %v282_v12 = vadd.f32 %v8706_v9, %v281_v11 }
 0x130   :  { %v601_v18 = vmax.f32 %v287_v13, 0.0 }
 0x131   :  { %v600_v14 = vmax.f32 %v282_v12, 0.0  ;;  %v6694_v15 = vpop.f32.mrb[2].mxu1 }
 0x132   :  { %v291_v16 = vpop.f32.mrb[3].mxu1  ;;  %v297_v22 = vadd.f32 %v6694_v15, %v8706_v9 }
 0x133   :  { %773 = vmatmul.mubr.f32.vlgmr.msra.gmra.mrb[64].mxu1 %v600_v14  ;;  %v292_v17 = vadd.f32 %v8706_v9, %v291_v16 }
 0x134   :  { %778 = vmatprep.mubr.f32.mxu1 %v12173_v8  ;;  %v603_v26 = vmax.f32 %v297_v22, 0.0 }
 0x135   :  { %v6697_v19 = vpop.f32.mrb[4].mxu1  ;;  %v602_v21 = vmax.f32 %v292_v17, 0.0 }
 0x136   :  { %v301_v20 = vpop.f32.mrb[5].mxu1  ;;  %v307_v30 = vadd.f32 %v6697_v19, %v8706_v9 }
 0x137   :  { %779 = vmatmul.mubr.f32.gmra.mrb[66].mxu1 %v601_v18  ;;  %v302_v25 = vadd.f32 %v8706_v9, %v301_v20 }
 0x138   :  { %784 = vmatprep.mubr.f32.mxu1 %v12173_v8  ;;  %v605_v34 = vmax.f32 %v307_v30, 0.0 }
 0x139   :  { %v6700_v23 = vpop.f32.mrb[6].mxu1  ;;  %v604_v29 = vmax.f32 %v302_v25, 0.0 }
 0x13a   :  { %v311_v24 = vpop.f32.mrb[7].mxu1  ;;  %v317_v38 = vadd.f32 %v6700_v23, %v8706_v9 }
 0x13b   :  { %785 = vmatmul.mubr.f32.gmra.mrb[68].mxu1 %v602_v21  ;;  %v312_v33 = vadd.f32 %v8706_v9, %v311_v24 }
 0x13c   :  { %790 = vmatprep.mubr.f32.mxu1 %v12173_v8  ;;  %v607_v42 = vmax.f32 %v317_v38, 0.0 }
 0x13d   :  { %v6703_v27 = vpop.f32.mrb[8].mxu1  ;;  %v606_v37 = vmax.f32 %v312_v33, 0.0 }
 0x13e   :  { %v321_v28 = vpop.f32.mrb[9].mxu1  ;;  %v327_v46 = vadd.f32 %v6703_v27, %v8706_v9 }
 0x13f   :  { %791 = vmatmul.mubr.f32.gmra.mrb[70].mxu1 %v603_v26  ;;  %v322_v41 = vadd.f32 %v8706_v9, %v321_v28 }
 0x140   :  { %796 = vmatprep.mubr.f32.mxu1 %v12173_v8  ;;  %v609_v50 = vmax.f32 %v327_v46, 0.0  ;;  %v1672_v46 = vld [vmem:[#allocation5 + $0x90] sm:$0xff] }
 0x141   :  { %v6706_v31 = vpop.f32.mrb[10].mxu1  ;;  %v608_v45 = vmax.f32 %v322_v41, 0.0 }
 0x142   :  { %v331_v32 = vpop.f32.mrb[11].mxu1  ;;  %v337_v54 = vadd.f32 %v6706_v31, %v8706_v9 }
 0x143   :  { %797 = vmatmul.mubr.f32.gmra.mrb[72].mxu1 %v604_v29  ;;  %v332_v49 = vadd.f32 %v8706_v9, %v331_v32 }
 0x144   :  { %802 = vmatprep.mubr.f32.mxu1 %v12173_v8  ;;  %v611_v58 = vmax.f32 %v337_v54, 0.0  ;;  %v1675_v54 = vld [vmem:[#allocation5 + $0xa8] sm:$0xff] }
 0x145   :  { %v6709_v35 = vpop.f32.mrb[12].mxu1  ;;  %v610_v53 = vmax.f32 %v332_v49, 0.0 }
 0x146   :  { %v341_v36 = vpop.f32.mrb[13].mxu1  ;;  %v347_v62 = vadd.f32 %v6709_v35, %v8706_v9 }
 0x147   :  { %803 = vmatmul.mubr.f32.gmra.mrb[74].mxu1 %v605_v34  ;;  %v342_v57 = vadd.f32 %v8706_v9, %v341_v36 }
 0x148   :  { %808 = vmatprep.mubr.f32.mxu1 %v12173_v8  ;;  %v613_v2 = vmax.f32 %v347_v62, 0.0  ;;  %v1677_v62 = vld [vmem:[#allocation5 + $0xb8] sm:$0xff] }
 0x149   :  { %v6712_v39 = vpop.f32.mrb[14].mxu1  ;;  %v612_v61 = vmax.f32 %v342_v57, 0.0 }
 0x14a   :  { %v351_v40 = vpop.f32.mrb[15].mxu1  ;;  %v357_v6 = vadd.f32 %v6712_v39, %v8706_v9  ;;  %v1670_v39 = vld [vmem:[#allocation5 + $0x80] sm:$0xff] }
 0x14b   :  { %809 = vmatmul.mubr.f32.gmra.mrb[76].mxu1 %v606_v37  ;;  %v352_v1 = vadd.f32 %v8706_v9, %v351_v40  ;;  %v1671_v40 = vld [vmem:[#allocation5 + $0x88] sm:$0xff] }
 0x14c   :  { %814 = vmatprep.mubr.f32.mxu1 %v12173_v8  ;;  %v615_v12 = vmax.f32 %v357_v6, 0.0 }
 0x14d   :  { %v6715_v43 = vpop.f32.mrb[16].mxu1  ;;  %v614_v5 = vmax.f32 %v352_v1, 0.0 }
 0x14e   :  { %v361_v44 = vpop.f32.mrb[17].mxu1  ;;  %v367_v16 = vadd.f32 %v6715_v43, %v8706_v9 }
 0x14f   :  { %815 = vmatmul.mubr.f32.gmra.mrb[78].mxu1 %v607_v42  ;;  %v362_v11 = vadd.f32 %v8706_v9, %v361_v44  ;;  %v7233_v42 = vpack.c.bf16 %v1671_v40, %v1670_v39 }
 0x150   :  { %820 = vmatprep.mubr.f32.mxu1 %v12173_v8  ;;  %v617_v20 = vmax.f32 %v367_v16, 0.0 }
 0x151   :  { %v6718_v47 = vpop.f32.mrb[18].mxu1  ;;  %v616_v15 = vmax.f32 %v362_v11, 0.0  ;;  %7234 = vmatprep.subr.bf16.mxu0 %v7233_v42  ;;  %v1678_v11 = vld [vmem:[#allocation5 + $0xc0] sm:$0xff] }
 0x152   :  { %v371_v48 = vpop.f32.mrb[19].mxu1  ;;  %v377_v24 = vadd.f32 %v6718_v47, %v8706_v9  ;;  %7236 = vmatpush3.bf16.msra.mxu0 %v7233_v42  ;;  %v1673_v47 = vld [vmem:[#allocation5 + $0x98] sm:$0xff] }
 0x153   :  { %821 = vmatmul.mubr.f32.gmra.mrb[80].mxu1 %v608_v45  ;;  %v372_v19 = vadd.f32 %v8706_v9, %v371_v48  ;;  %v7237_v49 = vpack.c.bf16 %v1673_v47, %v1672_v46  ;;  %v1685_v46 = vld [vmem:[#allocation5 + $0xf8] sm:$0xff] }
 0x154   :  { %826 = vmatprep.mubr.f32.mxu1 %v12173_v8  ;;  %v619_v28 = vmax.f32 %v377_v24, 0.0  ;;  %v1681_v24 = vld [vmem:[#allocation5 + $0xd8] sm:$0xff] }
 0x155   :  { %v8728_v51 = vpop.f32.mrb[20].mxu1  ;;  %v618_v23 = vmax.f32 %v372_v19, 0.0  ;;  %7238 = vmatprep.subr.bf16.mxu0 %v7237_v49 }
 0x156   :  { %v381_v52 = vpop.f32.mrb[21].mxu1  ;;  %v387_v32 = vadd.f32 %v8728_v51, %v8706_v9  ;;  %7240 = vmatpush3.bf16.msra.mxu0 %v7237_v49 }
 0x157   :  { %827 = vmatmul.mubr.f32.gmra.mrb[82].mxu1 %v609_v50  ;;  %v382_v27 = vadd.f32 %v8706_v9, %v381_v52 }
 0x158   :  { %832 = vmatprep.mubr.f32.mxu1 %v12173_v8  ;;  %v621_v36 = vmax.f32 %v387_v32, 0.0 }
 0x159   :  { %v8732_v55 = vpop.f32.mrb[22].mxu1  ;;  %v620_v31 = vmax.f32 %v382_v27, 0.0 }
 0x15a   :  { %v391_v56 = vpop.f32.mrb[23].mxu1  ;;  %v397_v43 = vadd.f32 %v8732_v55, %v8706_v9 }
 0x15b   :  { %833 = vmatmul.mubr.f32.gmra.mrb[84].mxu1 %v610_v53  ;;  %v392_v35 = vadd.f32 %v8706_v9, %v391_v56  ;;  %v1674_v53 = vld [vmem:[#allocation5 + $0xa0] sm:$0xff] }
 0x15c   :  { %838 = vmatprep.mubr.f32.mxu1 %v12173_v8  ;;  %v623_v50 = vmax.f32 %v397_v43, 0.0  ;;  %v7241_v56 = vpack.c.bf16 %v1675_v54, %v1674_v53  ;;  %v1684_v43 = vld [vmem:[#allocation5 + $0xf0] sm:$0xff] }
 0x15d   :  { %v8736_v59 = vpop.f32.mrb[24].mxu1  ;;  %v622_v41 = vmax.f32 %v392_v35, 0.0  ;;  %v1682_v35 = vld [vmem:[#allocation5 + $0xe0] sm:$0xff] }
 0x15e   :  { %v8738_v60 = vpop.f32.mrb[25].mxu1  ;;  %v407_v57 = vadd.f32 %v8736_v59, %v8706_v9  ;;  %7242 = vmatprep.subr.bf16.mxu0 %v7241_v56 }
 0x15f   :  { %839 = vmatmul.mubr.f32.gmra.mrb[86].mxu1 %v611_v58  ;;  %v402_v48 = vadd.f32 %v8706_v9, %v8738_v60  ;;  %7244 = vmatpush3.bf16.msra.mxu0 %v7241_v56 }
 0x160   :  { %844 = vmatprep.mubr.f32.mxu1 %v12173_v8 }
 0x161   :  { %v8742_v63 = vpop.f32.mrb[26].mxu1  ;;  %v624_v55 = vmax.f32 %v402_v48, 0.0  ;;  %v7261_v48 = vpack.c.bf16 %v1685_v46, %v1684_v43 }
 0x162   :  { %v8744_v0 = vpop.f32.mrb[27].mxu1 }
 0x163   :  { %845 = vmatmul.mubr.f32.gmra.mrb[88].mxu1 %v612_v61  ;;  %v1676_v61 = vld [vmem:[#allocation5 + $0xb0] sm:$0xff]  ;;  %v412_v1 = vadd.f32 %v8706_v9, %v8744_v0  ;;  %v417_v0 = vadd.f32 %v8742_v63, %v8706_v9 }
 0x164   :  { %850 = vmatprep.mubr.f32.mxu1 %v12173_v8 }
 0x165   :  { %v8748_v3 = vpop.f32.mrb[28].mxu1 }
 0x166   :  { %v8750_v4 = vpop.f32.mrb[29].mxu1 }
 0x167   :  { %851 = vmatmul.mubr.f32.gmra.mrb[90].mxu1 %v613_v2  ;;  %v7245_v2 = vpack.c.bf16 %v1677_v62, %v1676_v61  ;;  %v422_v27 = vadd.f32 %v8706_v9, %v8750_v4  ;;  %v427_v4 = vadd.f32 %v8748_v3, %v8706_v9 }
 0x168   :  { %856 = vmatprep.mubr.f32.mxu1 %v12173_v8 }
 0x169   :  { %v8754_v7 = vpop.f32.mrb[30].mxu1  ;;  %7246 = vmatprep.subr.bf16.mxu0 %v7245_v2  ;;  %v628_v39 = vmax.f32 %v422_v27, 0.0  ;;  %v629_v49 = vmax.f32 %v427_v4, 0.0  ;;  %v698_v4 = vlaneseq }
 0x16a   :  { %v8756_v10 = vpop.f32.mrb[31].mxu1  ;;  %7248 = vmatpush3.bf16.msra.mxu0 %v7245_v2  ;;  %v437_v54 = vadd.f32 %v8754_v7, %v8706_v9 }
 0x16b   :  { %857 = vmatmul.mubr.f32.gmra.mrb[92].mxu1 %v614_v5  ;;  %v625_v5 = vmax.f32 %v407_v57, 0.0  ;;  %v432_v47 = vadd.f32 %v8706_v9, %v8756_v10  ;;  %v699_v46 = vshrl.u32 %v698_v4, 7 }
 0x16c   :  { %862 = vmatprep.mubr.f32.mxu1 %v12173_v8  ;;  %v631_v57 = vmax.f32 %v437_v54, 0.0 }
 0x16d   :  { %v8760_v13 = vpop.f32.mrb[32].mxu1  ;;  %v630_v53 = vmax.f32 %v432_v47, 0.0 }
 0x16e   :  { %v8762_v14 = vpop.f32.mrb[33].mxu1  ;;  %v447_v62 = vadd.f32 %v8760_v13, %v8706_v9 }
 0x16f   :  { %863 = vmatmul.mubr.f32.gmra.mrb[94].mxu1 %v615_v12  ;;  %v1679_v12 = vld [vmem:[#allocation5 + $0xc8] sm:$0xff]  ;;  %v442_v56 = vadd.f32 %v8706_v9, %v8762_v14 }
 0x170   :  { %868 = vmatprep.mubr.f32.mxu1 %v12173_v8  ;;  %v7249_v16 = vpack.c.bf16 %v1679_v12, %v1678_v11 }
 0x171   :  { %v8766_v17 = vpop.f32.mrb[34].mxu1  ;;  %v632_v61 = vmax.f32 %v442_v56, 0.0 }
 0x172   :  { %v8768_v18 = vpop.f32.mrb[35].mxu1  ;;  %7250 = vmatprep.subr.bf16.mxu0 %v7249_v16  ;;  %v457_v14 = vadd.f32 %v8766_v17, %v8706_v9 }
 0x173   :  { %869 = vmatmul.mubr.f32.gmra.mrb[96].mxu1 %v616_v15  ;;  %v626_v15 = vmax.f32 %v412_v1, 0.0  ;;  %7252 = vmatpush3.bf16.msra.mxu0 %v7249_v16  ;;  %v452_v7 = vadd.f32 %v8706_v9, %v8768_v18  ;;  %v633_v1 = vmax.f32 %v447_v62, 0.0 }
 0x174   :  { %874 = vmatprep.mubr.f32.mxu1 %v12173_v8  ;;  %v635_v13 = vmax.f32 %v457_v14, 0.0 }
 0x175   :  { %v8772_v21 = vpop.f32.mrb[36].mxu1  ;;  %v634_v2 = vmax.f32 %v452_v7, 0.0 }
 0x176   :  { %v8774_v22 = vpop.f32.mrb[37].mxu1  ;;  %v467_v18 = vadd.f32 %v8772_v21, %v8706_v9 }
 0x177   :  { %875 = vmatmul.mubr.f32.gmra.mrb[98].mxu1 %v617_v20 }
 0x178   :  { %880 = vmatprep.mubr.f32.mxu1 %v12173_v8  ;;  %v637_v17 = vmax.f32 %v467_v18, 0.0 }
 0x179   :  { %v8778_v25 = vpop.f32.mrb[38].mxu1 }
 0x17a   :  { %v8780_v26 = vpop.f32.mrb[39].mxu1 }
 0x17b   :  { %881 = vmatmul.mubr.f32.gmra.mrb[100].mxu1 %v618_v23  ;;  %v1680_v23 = vld [vmem:[#allocation5 + $0xd0] sm:$0xff]  ;;  %v472_v12 = vadd.f32 %v8706_v9, %v8780_v26 }
 0x17c   :  { %886 = vmatprep.mubr.f32.mxu1 %v12173_v8 }
 0x17d   :  { %v8784_v29 = vpop.f32.mrb[40].mxu1 }
 0x17e   :  { %v8786_v30 = vpop.f32.mrb[41].mxu1  ;;  %v487_v26 = vadd.f32 %v8784_v29, %v8706_v9 }
 0x17f   :  { %887 = vmatmul.mubr.f32.gmra.mrb[102].mxu1 %v619_v28  ;;  %v7253_v28 = vpack.c.bf16 %v1681_v24, %v1680_v23  ;;  %v482_v16 = vadd.f32 %v8706_v9, %v8786_v30 }
 0x180   :  { %892 = vmatprep.mubr.f32.mxu1 %v12173_v8 }
 0x181   :  { %v8791_v33 = vpop.f32.mrb[42].mxu1  ;;  %7254 = vmatprep.subr.bf16.mxu0 %v7253_v28 }
 0x182   :  { %v8793_v34 = vpop.f32.mrb[43].mxu1  ;;  %7256 = vmatpush3.bf16.msra.mxu0 %v7253_v28  ;;  %v497_v30 = vadd.f32 %v8791_v33, %v8706_v9 }
 0x183   :  { %893 = vmatmul.mubr.f32.gmra.mrb[104].mxu1 %v620_v31  ;;  %v627_v31 = vmax.f32 %v417_v0, 0.0  ;;  %v640_v0 = vmax.f32 %v482_v16, 0.0  ;;  %v492_v23 = vadd.f32 %v8706_v9, %v8793_v34 }
 0x184   :  { %898 = vmatprep.mubr.f32.mxu1 %v12173_v8  ;;  %v643_v29 = vmax.f32 %v497_v30, 0.0  ;;  %v8974_v30 = vsub.s32 1, %v699_v46 }
 0x185   :  { %v8797_v37 = vpop.f32.mrb[44].mxu1  ;;  %v642_v24 = vmax.f32 %v492_v23, 0.0 }
 0x186   :  { %v8799_v38 = vpop.f32.mrb[45].mxu1  ;;  %v507_v34 = vadd.f32 %v8797_v37, %v8706_v9 }
 0x187   :  { %899 = vmatmul.mubr.f32.gmra.mrb[106].mxu1 %v621_v36  ;;  %v1683_v36 = vld [vmem:[#allocation5 + $0xe8] sm:$0xff]  ;;  %v502_v27 = vadd.f32 %v8706_v9, %v8799_v38 }
 0x188   :  { %904 = vmatprep.mubr.f32.mxu1 %v12173_v8  ;;  %v7257_v40 = vpack.c.bf16 %v1683_v36, %v1682_v35 }
 0x189   :  { %v8804_v44 = vpop.f32.mrb[46].mxu1  ;;  %v644_v28 = vmax.f32 %v502_v27, 0.0 }
 0x18a   :  { %v8806_v45 = vpop.f32.mrb[47].mxu1  ;;  %7258 = vmatprep.subr.bf16.mxu0 %v7257_v40  ;;  %v517_v38 = vadd.f32 %v8804_v44, %v8706_v9 }
 0x18b   :  { %905 = vmatmul.mubr.f32.gmra.mrb[108].mxu1 %v622_v41  ;;  %7260 = vmatpush3.bf16.msra.mxu0 %v7257_v40  ;;  %v512_v33 = vadd.f32 %v8706_v9, %v8806_v45 }
 0x18c   :  { %910 = vmatprep.mubr.f32.mxu1 %v12173_v8  ;;  %7262 = vmatprep.subr.bf16.mxu0 %v7261_v48  ;;  %v647_v36 = vmax.f32 %v517_v38, 0.0 }
 0x18d   :  { %v8811_v51 = vpop.f32.mrb[48].mxu1  ;;  %v646_v35 = vmax.f32 %v512_v33, 0.0 }
 0x18e   :  { %v8813_v52 = vpop.f32.mrb[49].mxu1  ;;  %v527_v45 = vadd.f32 %v8811_v51, %v8706_v9 }
 0x18f   :  { %911 = vmatmul.mubr.f32.gmra.mrb[110].mxu1 %v623_v50  ;;  %7264 = vmatpush3.bf16.msra.mxu0 %v7261_v48  ;;  %v522_v37 = vadd.f32 %v8706_v9, %v8813_v52  ;;  %v8927_v48 = vsub.s32 0, %v699_v46 }
 0x190   :  { %916 = vmatprep.mubr.f32.mxu1 %v12173_v8  ;;  %v649_v40 = vmax.f32 %v527_v45, 0.0 }
 0x191   :  { %v8818_v58 = vpop.f32.mrb[50].mxu1 }
 0x192   :  { %v8820_v60 = vpop.f32.mrb[51].mxu1  ;;  %v537_v52 = vadd.f32 %v8818_v58, %v8706_v9 }
 0x193   :  { %917 = vmatmul.mubr.f32.gmra.mrb[112].mxu1 %v624_v55  ;;  %v532_v44 = vadd.f32 %v8706_v9, %v8820_v60  ;;  %v8933_v60 = vld [vmem:[%s12170_s4] sm:$0x3] }
 0x194   :  { %922 = vmatprep.mubr.f32.mxu1 %v12173_v8  ;;  %v651_v47 = vmax.f32 %v537_v52, 0.0 }
 0x195   :  { %v8825_v6 = vpop.f32.mrb[52].mxu1  ;;  %v650_v43 = vmax.f32 %v532_v44, 0.0 }
 0x196   :  { %v8827_v59 = vpop.f32.mrb[53].mxu1  ;;  %v547_v58 = vadd.f32 %v8825_v6, %v8706_v9 }
 0x197   :  { %923 = vmatmul.mubr.f32.gmra.mrb[114].mxu1 %v625_v5  ;;  %v462_v5 = vadd.f32 %v8706_v9, %v8774_v22  ;;  %v477_v22 = vadd.f32 %v8778_v25, %v8706_v9  ;;  %v641_v25 = vmax.f32 %v487_v26, 0.0  ;;  %v542_v51 = vadd.f32 %v8706_v9, %v8827_v59 }
 0x198   :  { %928 = vmatprep.mubr.f32.mxu1 %v12173_v8  ;;  %v653_v54 = vmax.f32 %v547_v58, 0.0 }
 0x199   :  { %v8832_v19 = vpop.f32.mrb[54].mxu1  ;;  %v636_v11 = vmax.f32 %v462_v5, 0.0  ;;  %v639_v21 = vmax.f32 %v477_v22, 0.0 }
 0x19a   :  { %v8834_v20 = vpop.f32.mrb[55].mxu1  ;;  %v557_v6 = vadd.f32 %v8832_v19, %v8706_v9 }
 0x19b   :  { %929 = vmatmul.mubr.f32.gmra.mrb[116].mxu1 %v626_v15  ;;  %v638_v15 = vmax.f32 %v472_v12, 0.0  ;;  %v552_v59 = vadd.f32 %v8706_v9, %v8834_v20 }
 0x19c   :  { %934 = vmatprep.mubr.f32.mxu1 %v12173_v8  ;;  %v655_v14 = vmax.f32 %v557_v6, 0.0 }
 0x19d   :  { %v8839_v32 = vpop.f32.mrb[56].mxu1  ;;  %v654_v62 = vmax.f32 %v552_v59, 0.0 }
 0x19e   :  { %v8841_v63 = vpop.f32.mrb[57].mxu1  ;;  %v567_v19 = vadd.f32 %v8839_v32, %v8706_v9 }
 0x19f   :  { %935 = vmatmul.mubr.f32.gmra.mrb[118].mxu1 %v627_v31  ;;  %v645_v31 = vmax.f32 %v507_v34, 0.0  ;;  %v562_v20 = vadd.f32 %v8706_v9, %v8841_v63 }
 0x1a0   :  { %940 = vmatprep.mubr.f32.mxu1 %v12173_v8 }
 0x1a1   :  { %v8846_v41 = vpop.f32.mrb[58].mxu1  ;;  %v656_v18 = vmax.f32 %v562_v20, 0.0 }
 0x1a2   :  { %v8848_v42 = vpop.f32.mrb[59].mxu1 }
 0x1a3   :  { %941 = vmatmul.mubr.f32.gmra.mrb[120].mxu1 %v628_v39  ;;  %v648_v39 = vmax.f32 %v522_v37, 0.0  ;;  %v572_v16 = vadd.f32 %v8706_v9, %v8848_v42  ;;  %v128_v37 = vld [vmem:[#allocation2 + $0x8] sm:$0xff] }
 0x1a4   :  { %946 = vmatprep.mubr.f32.mxu1 %v12173_v8 }
 0x1a5   :  { %v8853_v50 = vpop.f32.mrb[60].mxu1  ;;  %v658_v42 = vmax.f32 %v572_v16, 0.0 }
 0x1a6   :  { %v8855_v3 = vpop.f32.mrb[61].mxu1 }
 0x1a7   :  { %947 = vmatmul.mubr.f32.gmra.mrb[122].mxu1 %v629_v49  ;;  %v652_v49 = vmax.f32 %v542_v51, 0.0  ;;  %v129_v51 = vld [vmem:[#allocation2 + $0x18] sm:$0xff] }
 0x1a8   :  { %952 = vmatprep.mubr.f32.mxu1 %v12173_v8 }
 0x1a9   :  { %v8860_v55 = vpop.f32.mrb[62].mxu1 }
 0x1aa   :  { %v8862_v10 = vpop.f32.mrb[63].mxu1 }
 0x1ab   :  { %953 = vmatmul.mubr.f32.gmra.mrb[124].mxu1 %v630_v53  ;;  %v8939_v53 = vrot.slane %v8933_v60, %v8927_v48 }
 0x1ac   :  { %958 = vmatprep.mubr.f32.mxu1 %v12173_v8 }
 0x1af   :  { %959 = vmatmul.mubr.f32.gmra.mrb[126].mxu1 %v631_v57 }
 0x1b0   :  { %964 = vmatprep.mubr.f32.mxu1 %v12173_v8 }
 0x1b3   :  { %965 = vmatmul.mubr.f32.gmra.mrb[128].mxu1 %v632_v61 }
 0x1b4   :  { %970 = vmatprep.mubr.f32.mxu1 %v12173_v8 }
 0x1b7   :  { %971 = vmatmul.mubr.f32.gmra.mrb[130].mxu1 %v633_v1 }
 0x1b8   :  { %976 = vmatprep.mubr.f32.mxu1 %v12173_v8 }
 0x1bb   :  { %977 = vmatmul.mubr.f32.gmra.mrb[132].mxu1 %v634_v2 }
 0x1bc   :  { %982 = vmatprep.mubr.f32.mxu1 %v12173_v8 }
 0x1bf   :  { %983 = vmatmul.mubr.f32.gmra.mrb[134].mxu1 %v635_v13 }
 0x1c0   :  { %988 = vmatprep.mubr.f32.mxu1 %v12173_v8 }
 0x1c3   :  { %989 = vmatmul.mubr.f32.gmra.mrb[136].mxu1 %v636_v11 }
 0x1c4   :  { %994 = vmatprep.mubr.f32.mxu1 %v12173_v8 }
 0x1c7   :  { %995 = vmatmul.mubr.f32.gmra.mrb[138].mxu1 %v637_v17 }
 0x1c8   :  { %1000 = vmatprep.mubr.f32.mxu1 %v12173_v8 }
 0x1cb   :  { %1001 = vmatmul.mubr.f32.gmra.mrb[140].mxu1 %v638_v15 }
 0x1cc   :  { %1006 = vmatprep.mubr.f32.mxu1 %v12173_v8 }
 0x1cf   :  { %1007 = vmatmul.mubr.f32.gmra.mrb[142].mxu1 %v639_v21  ;;  %v657_v21 = vmax.f32 %v567_v19, 0.0 }
 0x1d0   :  { %1012 = vmatprep.mubr.f32.mxu1 %v12173_v8 }
 0x1d3   :  { %1013 = vmatmul.mubr.f32.gmra.mrb[144].mxu1 %v640_v0 }
 0x1d4   :  { %1018 = vmatprep.mubr.f32.mxu1 %v12173_v8 }
 0x1d7   :  { %1019 = vmatmul.mubr.f32.gmra.mrb[146].mxu1 %v641_v25 }
 0x1d8   :  { %1024 = vmatprep.mubr.f32.mxu1 %v12173_v8 }
 0x1db   :  { %1025 = vmatmul.mubr.f32.gmra.mrb[148].mxu1 %v642_v24  ;;  %v577_v24 = vadd.f32 %v8846_v41, %v8706_v9  ;;  %v8984_v41 = vrot.slane %v8933_v60, %v8974_v30 }
 0x1dc   :  { %1030 = vmatprep.mubr.f32.mxu1 %v12173_v8 }
 0x1dd   :  { %v659_v38 = vmax.f32 %v577_v24, 0.0 }
 0x1df   :  { %1031 = vmatmul.mubr.f32.gmra.mrb[150].mxu1 %v643_v29 }
 0x1e0   :  { %1036 = vmatprep.mubr.f32.mxu1 %v12173_v8 }
 0x1e3   :  { %1037 = vmatmul.mubr.f32.gmra.mrb[152].mxu1 %v644_v28 }
 0x1e4   :  { %1042 = vmatprep.mubr.f32.mxu1 %v12173_v8 }
 0x1e7   :  { %1043 = vmatmul.mubr.f32.gmra.mrb[154].mxu1 %v645_v31  ;;  %v582_v31 = vadd.f32 %v8706_v9, %v8855_v3 }
 0x1e8   :  { %1048 = vmatprep.mubr.f32.mxu1 %v12173_v8 }
 0x1e9   :  { %v660_v4 = vmax.f32 %v582_v31, 0.0 }
 0x1eb   :  { %1049 = vmatmul.mubr.f32.gmra.mrb[156].mxu1 %v646_v35 }
 0x1ec   :  { %1054 = vmatprep.mubr.f32.mxu1 %v12173_v8 }
 0x1ef   :  { %1055 = vmatmul.mubr.f32.gmra.mrb[158].mxu1 %v647_v36 }
 0x1f0   :  { %1060 = vmatprep.mubr.f32.mxu1 %v12173_v8 }
 0x1f3   :  { %1061 = vmatmul.mubr.f32.gmra.mrb[160].mxu1 %v648_v39 }
 0x1f4   :  { %1066 = vmatprep.mubr.f32.mxu1 %v12173_v8 }
 0x1f7   :  { %1067 = vmatmul.mubr.f32.gmra.mrb[162].mxu1 %v649_v40  ;;  %v587_v40 = vadd.f32 %v8853_v50, %v8706_v9 }
 0x1f8   :  { %1072 = vmatprep.mubr.f32.mxu1 %v12173_v8 }
 0x1fb   :  { %1073 = vmatmul.mubr.f32.gmra.mrb[164].mxu1 %v650_v43 }
 0x1fc   :  { %1078 = vmatprep.mubr.f32.mxu1 %v12173_v8 }
 0x1ff   :  { %1079 = vmatmul.mubr.f32.gmra.mrb[166].mxu1 %v651_v47 }
 0x200   :  { %1084 = vmatprep.mubr.f32.mxu1 %v12173_v8 }
 0x203   :  { %1085 = vmatmul.mubr.f32.gmra.mrb[168].mxu1 %v652_v49 }
 0x204   :  { %1090 = vmatprep.mubr.f32.mxu1 %v12173_v8 }
 0x206   :  { %v774_v56 = vpop.f32.mrb[64].mxu1 }
 0x207   :  { %v775_v57 = vadd.f32 %v774_v56, %v8939_v53  ;;  %v8945_v61 = vpop.f32.mrb[65].mxu1  ;;  %1091 = vmatmul.mubr.f32.gmra.mrb[170].mxu1 %v653_v54  ;;  %v661_v54 = vmax.f32 %v587_v40, 0.0  ;;  %v592_v56 = vadd.f32 %v8706_v9, %v8862_v10  ;;  %v597_v10 = vadd.f32 %v8860_v55, %v8706_v9 }
 0x208   :  { %1096 = vmatprep.mubr.f32.mxu1 %v12173_v8  ;;  %v777_v52 = vadd.f32 %v8945_v61, %v8984_v41 }
 0x209   :  { %7434 = vtanh.f32 %v775_v57  ;;  %v662_v19 = vmax.f32 %v592_v56, 0.0 }
 0x20a   :  { %v780_v7 = vpop.f32.mrb[66].mxu1 }
 0x20b   :  { %v781_v1 = vadd.f32 %v780_v7, %v8939_v53  ;;  %v8951_v2 = vpop.f32.mrb[67].mxu1  ;;  %1097 = vmatmul.mubr.f32.gmra.mrb[172].mxu1 %v654_v62  ;;  %v130_v62 = vld [vmem:[#allocation2 + $0x28] sm:$0xff] }
 0x20c   :  { %1102 = vmatprep.mubr.f32.mxu1 %v12173_v8  ;;  %v783_v57 = vadd.f32 %v8951_v2, %v8984_v41 }
 0x20d   :  { %7436 = vtanh.f32 %v781_v1 }
 0x20e   :  { %v786_v5 = vpop.f32.mrb[68].mxu1 }
 0x20f   :  { %v787_v13 = vadd.f32 %v786_v5, %v8939_v53  ;;  %v8957_v11 = vpop.f32.mrb[69].mxu1  ;;  %1103 = vmatmul.mubr.f32.gmra.mrb[174].mxu1 %v655_v14 }
 0x210   :  { %1108 = vmatprep.mubr.f32.mxu1 %v12173_v8 }
 0x211   :  { %7438 = vtanh.f32 %v787_v13  ;;  %v789_v13 = vadd.f32 %v8957_v11, %v8984_v41 }
 0x212   :  { %v792_v12 = vpop.f32.mrb[70].mxu1 }
 0x213   :  { %v7435_v17 = vpop.eup %7434  ;;  %v793_v15 = vadd.f32 %v792_v12, %v8939_v53  ;;  %v8963_v63 = vpop.f32.mrb[71].mxu1  ;;  %1109 = vmatmul.mubr.f32.gmra.mrb[176].mxu1 %v656_v18 }
 0x214   :  { %1477 = vadd.xlane.f32.xlu0 %v7435_v17  ;;  %1114 = vmatprep.mubr.f32.mxu1 %v12173_v8  ;;  %v1221_v22 = vmul.f32 1.442695, %v7435_v17  ;;  %v131_v17 = vld [vmem:[#allocation2 + $0x38] sm:$0xff]  ;;  %v795_v11 = vadd.f32 %v8963_v63, %v8984_v41 }
 0x215   :  { %7440 = vtanh.f32 %v793_v15 }
 0x216   :  { %v798_v0 = vpop.f32.mrb[72].mxu1  ;;  %7442 = vpow2.f32 %v1221_v22 }
 0x217   :  { %v7437_v32 = vpop.eup %7436  ;;  %v799_v26 = vadd.f32 %v798_v0, %v8939_v53  ;;  %v8969_v23 = vpop.f32.mrb[73].mxu1  ;;  %1115 = vmatmul.mubr.f32.gmra.mrb[178].mxu1 %v657_v21  ;;  %v663_v0 = vmax.f32 %v597_v10, 0.0 }
 0x218   :  { %v1223_v25 = vmul.f32 1.442695, %v7437_v32  ;;  %1479 = vadd.xlane.f32.xlu0 %v7437_v32  ;;  %1120 = vmatprep.mubr.f32.mxu1 %v12173_v8  ;;  %v801_v63 = vadd.f32 %v8969_v23, %v8984_v41 }
 0x219   :  { %7444 = vtanh.f32 %v799_v26 }
 0x21a   :  { %7446 = vpow2.f32 %v1223_v25  ;;  %v804_v27 = vpop.f32.mrb[74].mxu1  ;;  %v132_v25 = vld [vmem:[#allocation2 + $0x48] sm:$0xff] }
 0x21b   :  { %v7439_v29 = vpop.eup %7438  ;;  %v805_v28 = vadd.f32 %v804_v27, %v8939_v53  ;;  %v8977_v34 = vpop.f32.mrb[75].mxu1  ;;  %1121 = vmatmul.mubr.f32.gmra.mrb[180].mxu1 %v658_v42 }
 0x21c   :  { %v1225_v33 = vmul.f32 1.442695, %v7439_v29  ;;  %1481 = vadd.xlane.f32.xlu1 %v7439_v29  ;;  %1126 = vmatprep.mubr.f32.mxu1 %v12173_v8  ;;  %v807_v23 = vadd.f32 %v8977_v34, %v8984_v41 }
 0x21d   :  { %7448 = vtanh.f32 %v805_v28 }
 0x21e   :  { %7450 = vpow2.f32 %v1225_v33  ;;  %v810_v35 = vpop.f32.mrb[76].mxu1 }
 0x21f   :  { %v7441_v36 = vpop.eup %7440  ;;  %v811_v45 = vadd.f32 %v810_v35, %v8939_v53  ;;  %v8987_v39 = vpop.f32.mrb[77].mxu1  ;;  %1127 = vmatmul.mubr.f32.gmra.mrb[182].mxu1 %v659_v38  ;;  %v133_v35 = vld [vmem:[#allocation2 + $0x58] sm:$0xff] }
 0x220   :  { %v7443_v44 = vpop.eup %7442  ;;  %v1227_v3 = vmul.f32 1.442695, %v7441_v36  ;;  %1483 = vadd.xlane.f32.xlu1 %v7441_v36  ;;  %1132 = vmatprep.mubr.f32.mxu1 %v12173_v8  ;;  %v813_v34 = vadd.f32 %v8987_v39, %v8984_v41 }
 0x221   :  { %7452 = vtanh.f32 %v811_v45  ;;  %v1349_v43 = vmul.f32 %v7443_v44, %v128_v37 }
 0x222   :  { %7454 = vpow2.f32 %v1227_v3  ;;  %v816_v46 = vpop.f32.mrb[78].mxu1 }
 0x223   :  { %v7445_v47 = vpop.eup %7444  ;;  %v817_v60 = vadd.f32 %v816_v46, %v8939_v53  ;;  %v8995_v58 = vpop.f32.mrb[79].mxu1  ;;  %1133 = vmatmul.mubr.f32.gmra.mrb[184].mxu1 %v660_v4  ;;  %v8997_v50 = vadd.f32 %v1349_v43, %v777_v52  ;;  %v134_v43 = vld [vmem:[#allocation2 + $0x68] sm:$0xff] }
 0x224   :  { %v7447_v49 = vpop.eup %7446  ;;  %v1229_v59 = vmul.f32 1.442695, %v7445_v47  ;;  %1485 = vadd.xlane.f32.xlu0 %v7445_v47  ;;  %1138 = vmatprep.mubr.f32.mxu1 %v12173_v8  ;;  %v819_v39 = vadd.f32 %v8995_v58, %v8984_v41 }
 0x225   :  { %7456 = vtanh.f32 %v817_v60  ;;  %6817 = vmatprep.mubr.f32.mxu0 %v8997_v50  ;;  %v1350_v61 = vmul.f32 %v7447_v49, %v129_v51 }
 0x226   :  { %7458 = vpow2.f32 %v1229_v59  ;;  %v822_v6 = vpop.f32.mrb[80].mxu1 }
 0x227   :  { %v7449_v7 = vpop.eup %7448  ;;  %v823_v1 = vadd.f32 %v822_v6, %v8939_v53  ;;  %v9006_v20 = vpop.f32.mrb[81].mxu1  ;;  %1139 = vmatmul.mubr.f32.gmra.mrb[186].mxu1 %v661_v54  ;;  %v9008_v14 = vadd.f32 %v1350_v61, %v783_v57  ;;  %v135_v57 = vld [vmem:[#allocation2 + $0x78] sm:$0xff] }
 0x228   :  { %v7451_v5 = vpop.eup %7450  ;;  %v1231_v2 = vmul.f32 1.442695, %v7449_v7  ;;  %1487 = vadd.xlane.f32.xlu1 %v7449_v7  ;;  %1144 = vmatprep.mubr.f32.mxu1 %v12173_v8 }
 0x229   :  { %7460 = vtanh.f32 %v823_v1  ;;  %6818 = vmatmul.mubr.f32.vlgmr.msra.gmra.mrb[0].mxu0 %v9008_v14  ;;  %v1351_v18 = vmul.f32 %v7451_v5, %v130_v62 }
 0x22a   :  { %7462 = vpow2.f32 %v1231_v2  ;;  %v828_v12 = vpop.f32.mrb[82].mxu1 }
 0x22b   :  { %v7453_v15 = vpop.eup %7452  ;;  %v829_v22 = vadd.f32 %v828_v12, %v8939_v53  ;;  %v9017_v16 = vpop.f32.mrb[83].mxu1  ;;  %1145 = vmatmul.mubr.f32.gmra.mrb[188].mxu1 %v662_v19  ;;  %v9019_v9 = vadd.f32 %v1351_v18, %v789_v13  ;;  %v136_v13 = vld [vmem:[#allocation2 + $0x88] sm:$0xff] }
 0x22c   :  { %v7455_v55 = vpop.eup %7454  ;;  %v1233_v21 = vmul.f32 1.442695, %v7453_v15  ;;  %1489 = vadd.xlane.f32.xlu0 %v7453_v15  ;;  %1150 = vmatprep.mubr.f32.mxu1 %v12173_v8  ;;  %v2145_v15 = vld [vmem:[#allocation7 + $0x108] sm:$0xff] }
 0x22d   :  { %7464 = vtanh.f32 %v829_v22  ;;  %6820 = vmatprep.mubr.f32.mxu0 %v9019_v9  ;;  %v1352_v32 = vmul.f32 %v7455_v55, %v131_v17  ;;  %v2147_v22 = vld [vmem:[#allocation7 + $0x118] sm:$0xff]  ;;  %v2144_v55 = vld [vmem:[#allocation7 + $0x100] sm:$0xff] }
 0x22e   :  { %7466 = vpow2.f32 %v1233_v21  ;;  %v834_v26 = vpop.f32.mrb[84].mxu1  ;;  %v7265_v58 = vpack.c.bf16 %v2147_v22, %v2145_v15  ;;  %v2151_v15 = vld [vmem:[#allocation7 + $0x138] sm:$0xff]  ;;  %v2148_v22 = vld [vmem:[#allocation7 + $0x120] sm:$0xff] }
 0x22f   :  { %v7457_v24 = vpop.eup %7456  ;;  %v835_v42 = vadd.f32 %v834_v26, %v8939_v53  ;;  %v9026_v27 = vpop.f32.mrb[85].mxu1  ;;  %1151 = vmatmul.mubr.f32.gmra.mrb[190].mxu1 %v663_v0  ;;  %v9028_v29 = vadd.f32 %v1352_v32, %v795_v11  ;;  %v2146_v0 = vld [vmem:[#allocation7 + $0x110] sm:$0xff]  ;;  %v825_v32 = vadd.f32 %v9006_v20, %v8984_v41  ;;  %v831_v20 = vadd.f32 %v9017_v16, %v8984_v41 }
 0x230   :  { %v7459_v28 = vpop.eup %7458  ;;  %v1235_v33 = vmul.f32 1.442695, %v7457_v24  ;;  %1491 = vadd.xlane.f32.xlu1 %v7457_v24  ;;  %7266 = vmatprep.subr.bf16.mxu0 %v7265_v58  ;;  %v837_v16 = vadd.f32 %v9026_v27, %v8984_v41 }
 0x231   :  { %7468 = vtanh.f32 %v835_v42  ;;  %6821 = vmatmul.mubr.f32.gmra.mrb[2].mxu0 %v9028_v29  ;;  %v1353_v31 = vmul.f32 %v7459_v28, %v132_v25  ;;  %v7267_v25 = vpack.c.bf16 %v2146_v0, %v2144_v55  ;;  %v137_v42 = vld [vmem:[#allocation2 + $0x98] sm:$0xff] }
 0x232   :  { %7470 = vpow2.f32 %v1235_v33  ;;  %v840_v38 = vpop.f32.mrb[86].mxu1 }
 0x233   :  { %v7461_v37 = vpop.eup %7460  ;;  %v841_v36 = vadd.f32 %v840_v38, %v8939_v53  ;;  %v9034_v45 = vpop.f32.mrb[87].mxu1  ;;  %v9036_v44 = vadd.f32 %v1353_v31, %v801_v63  ;;  %7268 = vmatpush1.bf16.msra.mxu0 %v7267_v25  ;;  %v141_v25 = vld [vmem:[#allocation2 + $0xd8] sm:$0xff] }
 0x234   :  { %v7463_v40 = vpop.eup %7462  ;;  %v1237_v3 = vmul.f32 1.442695, %v7461_v37  ;;  %1493 = vadd.xlane.f32.xlu0 %v7461_v37  ;;  %v843_v27 = vadd.f32 %v9034_v45, %v8984_v41 }
 0x235   :  { %7472 = vtanh.f32 %v841_v36  ;;  %6823 = vmatprep.mubr.f32.mxu0 %v9036_v44  ;;  %v1354_v4 = vmul.f32 %v7463_v40, %v133_v35  ;;  %v138_v40 = vld [vmem:[#allocation2 + $0xa8] sm:$0xff] }
 0x236   :  { %7474 = vpow2.f32 %v1237_v3  ;;  %v846_v52 = vpop.f32.mrb[88].mxu1 }
 0x237   :  { %v7465_v46 = vpop.eup %7464  ;;  %v847_v51 = vadd.f32 %v846_v52, %v8939_v53  ;;  %v9042_v47 = vpop.f32.mrb[89].mxu1  ;;  %v9044_v60 = vadd.f32 %v1354_v4, %v807_v23 }
 0x238   :  { %v7467_v49 = vpop.eup %7466  ;;  %v1239_v59 = vmul.f32 1.442695, %v7465_v46  ;;  %1495 = vadd.xlane.f32.xlu1 %v7465_v46  ;;  %v849_v58 = vadd.f32 %v9042_v47, %v8984_v41 }
 0x239   :  { %7476 = vtanh.f32 %v847_v51  ;;  %6824 = vmatmul.mubr.f32.gmra.mrb[4].mxu0 %v9044_v60  ;;  %v1355_v54 = vmul.f32 %v7467_v49, %v134_v43 }
 0x23a   :  { %7478 = vpow2.f32 %v1239_v59  ;;  %v852_v56 = vpop.f32.mrb[90].mxu1  ;;  %v139_v59 = vld [vmem:[#allocation2 + $0xb8] sm:$0xff] }
 0x23b   :  { %v7469_v61 = vpop.eup %7468  ;;  %v853_v6 = vadd.f32 %v852_v56, %v8939_v53  ;;  %v9050_v62 = vpop.f32.mrb[91].mxu1  ;;  %v9052_v7 = vadd.f32 %v1355_v54, %v813_v34 }
 0x23c   :  { %v7471_v1 = vpop.eup %7470  ;;  %v1241_v5 = vmul.f32 1.442695, %v7469_v61  ;;  %1497 = vadd.xlane.f32.xlu0 %v7469_v61  ;;  %v855_v47 = vadd.f32 %v9050_v62, %v8984_v41 }
 0x23d   :  { %7480 = vtanh.f32 %v853_v6  ;;  %6826 = vmatprep.mubr.f32.mxu0 %v9052_v7  ;;  %v1356_v10 = vmul.f32 %v7471_v1, %v135_v57 }
 0x23e   :  { %7482 = vpow2.f32 %v1241_v5  ;;  %v858_v2 = vpop.f32.mrb[92].mxu1 }
 0x23f   :  { %v7473_v19 = vpop.eup %7472  ;;  %v859_v18 = vadd.f32 %v858_v2, %v8939_v53  ;;  %v9058_v12 = vpop.f32.mrb[93].mxu1  ;;  %v9060_v17 = vadd.f32 %v1356_v10, %v819_v39  ;;  %v140_v39 = vld [vmem:[#allocation2 + $0xc8] sm:$0xff] }
 0x240   :  { %v7475_v21 = vpop.eup %7474  ;;  %v1243_v11 = vmul.f32 1.442695, %v7473_v19  ;;  %1499 = vadd.xlane.f32.xlu1 %v7473_v19  ;;  %v861_v62 = vadd.f32 %v9058_v12, %v8984_v41 }
 0x241   :  { %7484 = vtanh.f32 %v859_v18  ;;  %6827 = vmatmul.mubr.f32.gmra.mrb[6].mxu0 %v9060_v17  ;;  %v1357_v26 = vmul.f32 %v7475_v21, %v136_v13  ;;  %v2149_v18 = vld [vmem:[#allocation7 + $0x128] sm:$0xff] }
 0x242   :  { %7486 = vpow2.f32 %v1243_v11  ;;  %v864_v24 = vpop.f32.mrb[94].mxu1  ;;  %v7269_v45 = vpack.c.bf16 %v2151_v15, %v2149_v18  ;;  %v2150_v11 = vld [vmem:[#allocation7 + $0x130] sm:$0xff] }
 0x243   :  { %v7477_v28 = vpop.eup %7476  ;;  %v865_v33 = vadd.f32 %v864_v24, %v8939_v53  ;;  %v9066_v63 = vpop.f32.mrb[95].mxu1  ;;  %v9068_v31 = vadd.f32 %v1357_v26, %v825_v32  ;;  %v7271_v32 = vpack.c.bf16 %v2150_v11, %v2148_v22 }
 0x244   :  { %v7479_v38 = vpop.eup %7478  ;;  %v1245_v35 = vmul.f32 1.442695, %v7477_v28  ;;  %1501 = vadd.xlane.f32.xlu0 %v7477_v28  ;;  %7270 = vmatprep.subr.bf16.mxu0 %v7269_v45  ;;  %v867_v12 = vadd.f32 %v9066_v63, %v8984_v41  ;;  %v2152_v45 = vld [vmem:[#allocation7 + $0x140] sm:$0xff] }
 0x245   :  { %7488 = vtanh.f32 %v865_v33  ;;  %6829 = vmatprep.mubr.f32.mxu0 %v9068_v31  ;;  %v1358_v37 = vmul.f32 %v7479_v38, %v137_v42  ;;  %7272 = vmatpush1.bf16.msra.mxu0 %v7271_v32 }
 0x246   :  { %7490 = vpow2.f32 %v1245_v35  ;;  %v870_v36 = vpop.f32.mrb[96].mxu1 }
 0x247   :  { %v7481_v3 = vpop.eup %7480  ;;  %v871_v23 = vadd.f32 %v870_v36, %v8939_v53  ;;  %v9074_v4 = vpop.f32.mrb[97].mxu1  ;;  %v9076_v52 = vadd.f32 %v1358_v37, %v831_v20  ;;  %v142_v36 = vld [vmem:[#allocation2 + $0xe8] sm:$0xff] }
 0x248   :  { %v7483_v43 = vpop.eup %7482  ;;  %v1247_v46 = vmul.f32 1.442695, %v7481_v3  ;;  %1503 = vadd.xlane.f32.xlu1 %v7481_v3  ;;  %v873_v32 = vadd.f32 %v9074_v4, %v8984_v41 }
 0x249   :  { %7492 = vtanh.f32 %v871_v23  ;;  %6830 = vmatmul.mubr.f32.gmra.mrb[8].mxu0 %v9076_v52  ;;  %v1359_v51 = vmul.f32 %v7483_v43, %v138_v40 }
 0x24a   :  { %7494 = vpow2.f32 %v1247_v46  ;;  %v876_v49 = vpop.f32.mrb[98].mxu1 }
 0x24b   :  { %v7485_v34 = vpop.eup %7484  ;;  %v877_v54 = vadd.f32 %v876_v49, %v8939_v53  ;;  %v9082_v56 = vpop.f32.mrb[99].mxu1  ;;  %v9084_v57 = vadd.f32 %v1359_v51, %v837_v16 }
 0x24c   :  { %v7487_v61 = vpop.eup %7486  ;;  %v1249_v6 = vmul.f32 1.442695, %v7485_v34  ;;  %1505 = vadd.xlane.f32.xlu0 %v7485_v34  ;;  %v879_v4 = vadd.f32 %v9082_v56, %v8984_v41 }
 0x24d   :  { %7496 = vtanh.f32 %v877_v54  ;;  %6832 = vmatprep.mubr.f32.mxu0 %v9084_v57  ;;  %v1360_v1 = vmul.f32 %v7487_v61, %v139_v59  ;;  %v143_v59 = vld [vmem:[#allocation2 + $0xf8] sm:$0xff] }
 0x24e   :  { %7498 = vpow2.f32 %v1249_v6  ;;  %v882_v5 = vpop.f32.mrb[100].mxu1 }
 0x24f   :  { %v7489_v10 = vpop.eup %7488  ;;  %v883_v2 = vadd.f32 %v882_v5, %v8939_v53  ;;  %v9090_v13 = vpop.f32.mrb[101].mxu1  ;;  %v9092_v19 = vadd.f32 %v1360_v1, %v843_v27 }
 0x250   :  { %v7491_v55 = vpop.eup %7490  ;;  %v1251_v21 = vmul.f32 1.442695, %v7489_v10  ;;  %1507 = vadd.xlane.f32.xlu1 %v7489_v10  ;;  %v144_v10 = vld [vmem:[#allocation2 + $0x108] sm:$0xff]  ;;  %v885_v56 = vadd.f32 %v9090_v13, %v8984_v41 }
 0x251   :  { %7500 = vtanh.f32 %v883_v2  ;;  %6833 = vmatmul.mubr.f32.gmra.mrb[10].mxu0 %v9092_v19  ;;  %v1361_v0 = vmul.f32 %v7491_v55, %v140_v39  ;;  %v2153_v55 = vld [vmem:[#allocation7 + $0x148] sm:$0xff] }
 0x252   :  { %7502 = vpow2.f32 %v1251_v21  ;;  %v888_v26 = vpop.f32.mrb[102].mxu1  ;;  %v2155_v21 = vld [vmem:[#allocation7 + $0x158] sm:$0xff] }
 0x253   :  { %v7493_v24 = vpop.eup %7492  ;;  %v889_v42 = vadd.f32 %v888_v26, %v8939_v53  ;;  %v9098_v28 = vpop.f32.mrb[103].mxu1  ;;  %v9100_v33 = vadd.f32 %v1361_v0, %v849_v58  ;;  %v7273_v63 = vpack.c.bf16 %v2155_v21, %v2153_v55  ;;  %v2154_v0 = vld [vmem:[#allocation7 + $0x150] sm:$0xff] }
 0x254   :  { %v7495_v38 = vpop.eup %7494  ;;  %v1253_v35 = vmul.f32 1.442695, %v7493_v24  ;;  %1509 = vadd.xlane.f32.xlu0 %v7493_v24  ;;  %v891_v13 = vadd.f32 %v9098_v28, %v8984_v41 }
 0x255   :  { %7504 = vtanh.f32 %v889_v42  ;;  %6835 = vmatprep.mubr.f32.mxu0 %v9100_v33  ;;  %v1362_v20 = vmul.f32 %v7495_v38, %v141_v25  ;;  %v7275_v25 = vpack.c.bf16 %v2154_v0, %v2152_v45  ;;  %v145_v42 = vld [vmem:[#allocation2 + $0x118] sm:$0xff]  ;;  %7274 = vmatprep.subr.bf16.mxu0 %v7273_v63  ;;  %v148_v45 = vld [vmem:[#allocation2 + $0x148] sm:$0xff] }
 0x256   :  { %7506 = vpow2.f32 %v1253_v35  ;;  %v894_v37 = vpop.f32.mrb[104].mxu1 }
 0x257   :  { %v7497_v40 = vpop.eup %7496  ;;  %v895_v3 = vadd.f32 %v894_v37, %v8939_v53  ;;  %v9106_v23 = vpop.f32.mrb[105].mxu1  ;;  %v9108_v43 = vadd.f32 %v1362_v20, %v855_v47  ;;  %7276 = vmatpush1.bf16.msra.mxu0 %v7275_v25  ;;  %v2156_v25 = vld [vmem:[#allocation7 + $0x160] sm:$0xff] }
 0x258   :  { %v7499_v46 = vpop.eup %7498  ;;  %v1255_v16 = vmul.f32 1.442695, %v7497_v40  ;;  %1511 = vadd.xlane.f32.xlu1 %v7497_v40 }
 0x259   :  { %7508 = vtanh.f32 %v895_v3  ;;  %6836 = vmatmul.mubr.f32.gmra.mrb[12].mxu0 %v9108_v43  ;;  %v1363_v51 = vmul.f32 %v7499_v46, %v142_v36  ;;  %v146_v46 = vld [vmem:[#allocation2 + $0x128] sm:$0xff] }
 0x25a   :  { %7510 = vpow2.f32 %v1255_v16  ;;  %v900_v49 = vpop.f32.mrb[106].mxu1 }
 0x25b   :  { %v7501_v34 = vpop.eup %7500  ;;  %v901_v54 = vadd.f32 %v900_v49, %v8939_v53  ;;  %v9114_v61 = vpop.f32.mrb[107].mxu1  ;;  %v9116_v6 = vadd.f32 %v1363_v51, %v861_v62 }
 0x25c   :  { %v7503_v27 = vpop.eup %7502  ;;  %v1257_v1 = vmul.f32 1.442695, %v7501_v34  ;;  %1513 = vadd.xlane.f32.xlu0 %v7501_v34 }
 0x25d   :  { %7512 = vtanh.f32 %v901_v54  ;;  %6838 = vmatprep.mubr.f32.mxu0 %v9116_v6  ;;  %v1364_v5 = vmul.f32 %v7503_v27, %v143_v59 }
 0x25e   :  { %7514 = vpow2.f32 %v1257_v1  ;;  %v906_v39 = vpop.f32.mrb[108].mxu1  ;;  %v147_v1 = vld [vmem:[#allocation2 + $0x138] sm:$0xff] }
 0x25f   :  { %v7505_v2 = vpop.eup %7504  ;;  %v907_v18 = vadd.f32 %v906_v39, %v8939_v53  ;;  %v9122_v15 = vpop.f32.mrb[109].mxu1  ;;  %v9124_v22 = vadd.f32 %v1364_v5, %v867_v12 }
 0x260   :  { %v7507_v11 = vpop.eup %7506  ;;  %v1259_v58 = vmul.f32 1.442695, %v7505_v2  ;;  %1515 = vadd.xlane.f32.xlu1 %v7505_v2 }
 0x261   :  { %7516 = vtanh.f32 %v907_v18  ;;  %6839 = vmatmul.mubr.f32.gmra.mrb[14].mxu0 %v9124_v22  ;;  %v1365_v26 = vmul.f32 %v7507_v11, %v144_v10 }
 0x262   :  { %7518 = vpow2.f32 %v1259_v58  ;;  %v912_v24 = vpop.f32.mrb[110].mxu1 }
 0x263   :  { %v7509_v38 = vpop.eup %7508  ;;  %v913_v35 = vadd.f32 %v912_v24, %v8939_v53  ;;  %v9130_v47 = vpop.f32.mrb[111].mxu1  ;;  %v9132_v20 = vadd.f32 %v1365_v26, %v873_v32  ;;  %v2157_v32 = vld [vmem:[#allocation7 + $0x168] sm:$0xff]  ;;  %v2159_v26 = vld [vmem:[#allocation7 + $0x178] sm:$0xff] }
 0x264   :  { %v7511_v37 = vpop.eup %7510  ;;  %v1261_v36 = vmul.f32 1.442695, %v7509_v38  ;;  %1517 = vadd.xlane.f32.xlu0 %v7509_v38  ;;  %v7277_v28 = vpack.c.bf16 %v2159_v26, %v2157_v32  ;;  %v2158_v38 = vld [vmem:[#allocation7 + $0x170] sm:$0xff] }
 0x265   :  { %7520 = vtanh.f32 %v913_v35  ;;  %6841 = vmatprep.mubr.f32.mxu0 %v9132_v20  ;;  %v1366_v40 = vmul.f32 %v7511_v37, %v145_v42  ;;  %v897_v35 = vadd.f32 %v9106_v23, %v8984_v41  ;;  %v903_v23 = vadd.f32 %v9114_v61, %v8984_v41 }
 0x266   :  { %7522 = vpow2.f32 %v1261_v36  ;;  %v918_v3 = vpop.f32.mrb[112].mxu1  ;;  %v7279_v36 = vpack.c.bf16 %v2158_v38, %v2156_v25  ;;  %7278 = vmatprep.subr.bf16.mxu0 %v7277_v28  ;;  %v909_v61 = vadd.f32 %v9122_v15, %v8984_v41  ;;  %v915_v15 = vadd.f32 %v9130_v47, %v8984_v41  ;;  %v152_v38 = vld [vmem:[#allocation2 + $0x188] sm:$0xff] }
 0x267   :  { %v7513_v16 = vpop.eup %7512  ;;  %v919_v62 = vadd.f32 %v918_v3, %v8939_v53  ;;  %v9138_v51 = vpop.f32.mrb[113].mxu1  ;;  %v9140_v49 = vadd.f32 %v1366_v40, %v879_v4  ;;  %v149_v40 = vld [vmem:[#allocation2 + $0x158] sm:$0xff] }
 0x268   :  { %v7515_v59 = vpop.eup %7514  ;;  %v1263_v34 = vmul.f32 1.442695, %v7513_v16  ;;  %1519 = vadd.xlane.f32.xlu1 %v7513_v16  ;;  %7280 = vmatpush1.bf16.msra.mxu0 %v7279_v36 }
 0x269   :  { %7524 = vtanh.f32 %v919_v62  ;;  %6842 = vmatmul.mubr.f32.gmra.mrb[16].mxu0 %v9140_v49  ;;  %v1367_v54 = vmul.f32 %v7515_v59, %v146_v46 }
 0x26a   :  { %7526 = vpow2.f32 %v1263_v34  ;;  %v924_v27 = vpop.f32.mrb[114].mxu1 }
 0x26b   :  { %v7517_v12 = vpop.eup %7516  ;;  %v925_v5 = vadd.f32 %v924_v27, %v8939_v53  ;;  %v9146_v39 = vpop.f32.mrb[115].mxu1  ;;  %v9148_v10 = vadd.f32 %v1367_v54, %v885_v56  ;;  %v150_v27 = vld [vmem:[#allocation2 + $0x168] sm:$0xff] }
 0x26c   :  { %v7519_v2 = vpop.eup %7518  ;;  %v1265_v18 = vmul.f32 1.442695, %v7517_v12  ;;  %1521 = vadd.xlane.f32.xlu0 %v7517_v12 }
 0x26d   :  { %7528 = vtanh.f32 %v925_v5  ;;  %6844 = vmatprep.mubr.f32.mxu0 %v9148_v10  ;;  %v1368_v55 = vmul.f32 %v7519_v2, %v147_v1 }
 0x26e   :  { %7530 = vpow2.f32 %v1265_v18  ;;  %v930_v21 = vpop.f32.mrb[116].mxu1 }
 0x26f   :  { %v7521_v11 = vpop.eup %7520  ;;  %v931_v58 = vadd.f32 %v930_v21, %v8939_v53  ;;  %v9154_v63 = vpop.f32.mrb[117].mxu1  ;;  %v9156_v0 = vadd.f32 %v1368_v55, %v891_v13 }
 0x270   :  { %v7523_v24 = vpop.eup %7522  ;;  %v1267_v42 = vmul.f32 1.442695, %v7521_v11  ;;  %1523 = vadd.xlane.f32.xlu1 %v7521_v11 }
 0x271   :  { %7532 = vtanh.f32 %v931_v58  ;;  %6845 = vmatmul.mubr.f32.gmra.mrb[18].mxu0 %v9156_v0  ;;  %v1369_v37 = vmul.f32 %v7523_v24, %v148_v45  ;;  %v151_v45 = vld [vmem:[#allocation2 + $0x178] sm:$0xff] }
 0x272   :  { %7534 = vpow2.f32 %v1267_v42  ;;  %v936_v4 = vpop.f32.mrb[118].mxu1 }
 0x273   :  { %v7525_v3 = vpop.eup %7524  ;;  %v937_v46 = vadd.f32 %v936_v4, %v8939_v53  ;;  %v9162_v16 = vpop.f32.mrb[119].mxu1  ;;  %v9164_v62 = vadd.f32 %v1369_v37, %v897_v35 }
 0x274   :  { %v7527_v59 = vpop.eup %7526  ;;  %v1269_v34 = vmul.f32 1.442695, %v7525_v3  ;;  %1525 = vadd.xlane.f32.xlu0 %v7525_v3  ;;  %v2163_v3 = vld [vmem:[#allocation7 + $0x198] sm:$0xff] }
 0x275   :  { %7536 = vtanh.f32 %v937_v46  ;;  %6847 = vmatprep.mubr.f32.mxu0 %v9164_v62  ;;  %v1370_v56 = vmul.f32 %v7527_v59, %v149_v40  ;;  %v2161_v40 = vld [vmem:[#allocation7 + $0x188] sm:$0xff]  ;;  %v2160_v46 = vld [vmem:[#allocation7 + $0x180] sm:$0xff] }
 0x276   :  { %7538 = vpow2.f32 %v1269_v34  ;;  %v942_v54 = vpop.f32.mrb[120].mxu1  ;;  %v7281_v47 = vpack.c.bf16 %v2163_v3, %v2161_v40  ;;  %v155_v3 = vld [vmem:[#allocation2 + $0x1b8] sm:$0xff] }
 0x277   :  { %v7529_v1 = vpop.eup %7528  ;;  %v943_v12 = vadd.f32 %v942_v54, %v8939_v53  ;;  %v9170_v5 = vpop.f32.mrb[121].mxu1  ;;  %v9172_v2 = vadd.f32 %v1370_v56, %v903_v23  ;;  %v2162_v23 = vld [vmem:[#allocation7 + $0x190] sm:$0xff]  ;;  %v921_v56 = vadd.f32 %v9138_v51, %v8984_v41  ;;  %v927_v51 = vadd.f32 %v9146_v39, %v8984_v41 }
 0x278   :  { %v7531_v18 = vpop.eup %7530  ;;  %v1271_v13 = vmul.f32 1.442695, %v7529_v1  ;;  %1527 = vadd.xlane.f32.xlu1 %v7529_v1  ;;  %7282 = vmatprep.subr.bf16.mxu0 %v7281_v47  ;;  %v933_v39 = vadd.f32 %v9154_v63, %v8984_v41  ;;  %v939_v63 = vadd.f32 %v9162_v16, %v8984_v41 }
 0x279   :  { %7540 = vtanh.f32 %v943_v12  ;;  %6848 = vmatmul.mubr.f32.gmra.mrb[20].mxu0 %v9172_v2  ;;  %v1371_v55 = vmul.f32 %v7531_v18, %v150_v27  ;;  %v7283_v27 = vpack.c.bf16 %v2162_v23, %v2160_v46  ;;  %v153_v12 = vld [vmem:[#allocation2 + $0x198] sm:$0xff] }
 0x27a   :  { %7542 = vpow2.f32 %v1271_v13  ;;  %v948_v21 = vpop.f32.mrb[122].mxu1 }
 0x27b   :  { %v7533_v11 = vpop.eup %7532  ;;  %v949_v58 = vadd.f32 %v948_v21, %v8939_v53  ;;  %v9178_v32 = vpop.f32.mrb[123].mxu1  ;;  %v9180_v26 = vadd.f32 %v1371_v55, %v909_v61  ;;  %7284 = vmatpush1.bf16.msra.mxu0 %v7283_v27 }
 0x27c   :  { %v7535_v25 = vpop.eup %7534  ;;  %v1273_v24 = vmul.f32 1.442695, %v7533_v11  ;;  %1529 = vadd.xlane.f32.xlu0 %v7533_v11 }
 0x27d   :  { %7544 = vtanh.f32 %v949_v58  ;;  %6850 = vmatprep.mubr.f32.mxu0 %v9180_v26  ;;  %v1372_v42 = vmul.f32 %v7535_v25, %v151_v45  ;;  %v154_v25 = vld [vmem:[#allocation2 + $0x1a8] sm:$0xff] }
 0x27e   :  { %7546 = vpow2.f32 %v1273_v24  ;;  %v954_v28 = vpop.f32.mrb[124].mxu1 }
 0x27f   :  { %v7537_v35 = vpop.eup %7536  ;;  %v955_v37 = vadd.f32 %v954_v28, %v8939_v53  ;;  %v9186_v36 = vpop.f32.mrb[125].mxu1  ;;  %v9188_v4 = vadd.f32 %v1372_v42, %v915_v15 }
 0x280   :  { %v7539_v59 = vpop.eup %7538  ;;  %v1275_v34 = vmul.f32 1.442695, %v7537_v35  ;;  %1531 = vadd.xlane.f32.xlu1 %v7537_v35 }
 0x281   :  { %7548 = vtanh.f32 %v955_v37  ;;  %6851 = vmatmul.mubr.f32.gmra.mrb[22].mxu0 %v9188_v4  ;;  %v1373_v54 = vmul.f32 %v7539_v59, %v152_v38 }
 0x282   :  { %7550 = vpow2.f32 %v1275_v34  ;;  %v960_v1 = vpop.f32.mrb[126].mxu1 }
 0x283   :  { %v7541_v18 = vpop.eup %7540  ;;  %v961_v13 = vadd.f32 %v960_v1, %v8939_v53  ;;  %v9194_v61 = vpop.f32.mrb[127].mxu1  ;;  %v9196_v55 = vadd.f32 %v1373_v54, %v921_v56  ;;  %v156_v1 = vld [vmem:[#allocation2 + $0x1c8] sm:$0xff] }
 0x284   :  { %v7543_v21 = vpop.eup %7542  ;;  %v1277_v45 = vmul.f32 1.442695, %v7541_v18  ;;  %1533 = vadd.xlane.f32.xlu0 %v7541_v18 }
 0x285   :  { %7552 = vtanh.f32 %v961_v13  ;;  %6853 = vmatprep.mubr.f32.mxu0 %v9196_v55  ;;  %v1374_v11 = vmul.f32 %v7543_v21, %v153_v12 }
 0x286   :  { %7554 = vpow2.f32 %v1277_v45  ;;  %v966_v58 = vpop.f32.mrb[128].mxu1  ;;  %v2165_v45 = vld [vmem:[#allocation7 + $0x1a8] sm:$0xff] }
 0x287   :  { %v7545_v24 = vpop.eup %7544  ;;  %v967_v15 = vadd.f32 %v966_v58, %v8939_v53  ;;  %v9202_v42 = vpop.f32.mrb[129].mxu1  ;;  %v9204_v28 = vadd.f32 %v1374_v11, %v927_v51  ;;  %v2167_v51 = vld [vmem:[#allocation7 + $0x1b8] sm:$0xff]  ;;  %v2164_v11 = vld [vmem:[#allocation7 + $0x1a0] sm:$0xff] }
 0x288   :  { %v7547_v38 = vpop.eup %7546  ;;  %v1279_v35 = vmul.f32 1.442695, %v7545_v24  ;;  %1535 = vadd.xlane.f32.xlu1 %v7545_v24  ;;  %v7285_v16 = vpack.c.bf16 %v2167_v51, %v2165_v45  ;;  %v2166_v24 = vld [vmem:[#allocation7 + $0x1b0] sm:$0xff] }
 0x289   :  { %7556 = vtanh.f32 %v967_v15  ;;  %6854 = vmatmul.mubr.f32.gmra.mrb[24].mxu0 %v9204_v28  ;;  %v1375_v37 = vmul.f32 %v7547_v38, %v154_v25  ;;  %v945_v15 = vadd.f32 %v9170_v5, %v8984_v41  ;;  %v951_v5 = vadd.f32 %v9178_v32, %v8984_v41 }
 0x28a   :  { %7558 = vpow2.f32 %v1279_v35  ;;  %v972_v40 = vpop.f32.mrb[130].mxu1  ;;  %v7287_v35 = vpack.c.bf16 %v2166_v24, %v2164_v11  ;;  %7286 = vmatprep.subr.bf16.mxu0 %v7285_v16  ;;  %v957_v32 = vadd.f32 %v9186_v36, %v8984_v41  ;;  %v159_v16 = vld [vmem:[#allocation2 + $0x1f8] sm:$0xff]  ;;  %v2169_v24 = vld [vmem:[#allocation7 + $0x1c8] sm:$0xff] }
 0x28b   :  { %v7549_v46 = vpop.eup %7548  ;;  %v973_v59 = vadd.f32 %v972_v40, %v8939_v53  ;;  %v9210_v34 = vpop.f32.mrb[131].mxu1  ;;  %v9212_v47 = vadd.f32 %v1375_v37, %v933_v39  ;;  %v157_v37 = vld [vmem:[#allocation2 + $0x1d8] sm:$0xff] }
 0x28c   :  { %v7551_v23 = vpop.eup %7550  ;;  %v1281_v56 = vmul.f32 1.442695, %v7549_v46  ;;  %1537 = vadd.xlane.f32.xlu0 %v7549_v46  ;;  %7288 = vmatpush1.bf16.msra.mxu0 %v7287_v35 }
 0x28d   :  { %7560 = vtanh.f32 %v973_v59  ;;  %6856 = vmatprep.mubr.f32.mxu0 %v9212_v47  ;;  %v1376_v54 = vmul.f32 %v7551_v23, %v155_v3 }
 0x28e   :  { %7562 = vpow2.f32 %v1281_v56  ;;  %v978_v27 = vpop.f32.mrb[132].mxu1 }
 0x28f   :  { %v7553_v12 = vpop.eup %7552  ;;  %v979_v18 = vadd.f32 %v978_v27, %v8939_v53  ;;  %v9218_v13 = vpop.f32.mrb[133].mxu1  ;;  %v9220_v21 = vadd.f32 %v1376_v54, %v939_v63  ;;  %v158_v27 = vld [vmem:[#allocation2 + $0x1e8] sm:$0xff] }
 0x290   :  { %v7555_v58 = vpop.eup %7554  ;;  %v1283_v25 = vmul.f32 1.442695, %v7553_v12  ;;  %1539 = vadd.xlane.f32.xlu1 %v7553_v12 }
 0x291   :  { %7564 = vtanh.f32 %v979_v18  ;;  %6857 = vmatmul.mubr.f32.gmra.mrb[26].mxu0 %v9220_v21  ;;  %v1377_v38 = vmul.f32 %v7555_v58, %v156_v1 }
 0x292   :  { %7566 = vpow2.f32 %v1283_v25  ;;  %v984_v39 = vpop.f32.mrb[134].mxu1 }
 0x293   :  { %v7557_v40 = vpop.eup %7556  ;;  %v985_v3 = vadd.f32 %v984_v39, %v8939_v53  ;;  %v9226_v46 = vpop.f32.mrb[135].mxu1  ;;  %v9228_v59 = vadd.f32 %v1377_v38, %v945_v15  ;;  %v2171_v15 = vld [vmem:[#allocation7 + $0x1d8] sm:$0xff] }
 0x294   :  { %v7559_v23 = vpop.eup %7558  ;;  %v1285_v56 = vmul.f32 1.442695, %v7557_v40  ;;  %1541 = vadd.xlane.f32.xlu0 %v7557_v40  ;;  %v7289_v40 = vpack.c.bf16 %v2171_v15, %v2169_v24  ;;  %v2174_v15 = vld [vmem:[#allocation7 + $0x1f0] sm:$0xff] }
 0x295   :  { %7568 = vtanh.f32 %v985_v3  ;;  %6859 = vmatprep.mubr.f32.mxu0 %v9228_v59  ;;  %v1378_v63 = vmul.f32 %v7559_v23, %v157_v37  ;;  %v2168_v3 = vld [vmem:[#allocation7 + $0x1c0] sm:$0xff]  ;;  %v2170_v23 = vld [vmem:[#allocation7 + $0x1d0] sm:$0xff] }
 0x296   :  { %7570 = vpow2.f32 %v1285_v56  ;;  %v990_v54 = vpop.f32.mrb[136].mxu1  ;;  %7290 = vmatprep.subr.bf16.mxu0 %v7289_v40  ;;  %v969_v40 = vadd.f32 %v9202_v42, %v8984_v41  ;;  %v975_v42 = vadd.f32 %v9210_v34, %v8984_v41  ;;  %v981_v34 = vadd.f32 %v9218_v13, %v8984_v41 }
 0x297   :  { %v7561_v1 = vpop.eup %7560  ;;  %v991_v12 = vadd.f32 %v990_v54, %v8939_v53  ;;  %v9234_v18 = vpop.f32.mrb[137].mxu1  ;;  %v9236_v45 = vadd.f32 %v1378_v63, %v951_v5  ;;  %v7291_v5 = vpack.c.bf16 %v2170_v23, %v2168_v3  ;;  %v963_v63 = vadd.f32 %v9194_v61, %v8984_v41  ;;  %v2172_v61 = vld [vmem:[#allocation7 + $0x1e0] sm:$0xff]  ;;  %v161_v23 = vld [vmem:[#allocation2 + $0x218] sm:$0xff] }
 0x298   :  { %v7563_v51 = vpop.eup %7562  ;;  %v1287_v11 = vmul.f32 1.442695, %v7561_v1  ;;  %1543 = vadd.xlane.f32.xlu1 %v7561_v1  ;;  %v987_v13 = vadd.f32 %v9226_v46, %v8984_v41  ;;  %v993_v46 = vadd.f32 %v9234_v18, %v8984_v41 }
 0x299   :  { %7572 = vtanh.f32 %v991_v12  ;;  %6860 = vmatmul.mubr.f32.gmra.mrb[28].mxu0 %v9236_v45  ;;  %v1379_v58 = vmul.f32 %v7563_v51, %v158_v27  ;;  %v160_v27 = vld [vmem:[#allocation2 + $0x208] sm:$0xff]  ;;  %v2175_v51 = vld [vmem:[#allocation7 + $0x1f8] sm:$0xff] }
 0x29a   :  { %7574 = vpow2.f32 %v1287_v11  ;;  %v996_v25 = vpop.f32.mrb[138].mxu1  ;;  %7292 = vmatpush1.bf16.msra.mxu0 %v7291_v5  ;;  %v2173_v12 = vld [vmem:[#allocation7 + $0x1e8] sm:$0xff] }
 0x29b   :  { %v7565_v38 = vpop.eup %7564  ;;  %v997_v35 = vadd.f32 %v996_v25, %v8939_v53  ;;  %v9242_v39 = vpop.f32.mrb[139].mxu1  ;;  %v9244_v37 = vadd.f32 %v1379_v58, %v957_v32  ;;  %v7293_v24 = vpack.c.bf16 %v2175_v51, %v2173_v12  ;;  %v162_v51 = vld [vmem:[#allocation2 + $0x228] sm:$0xff] }
 0x29c   :  { %v7567_v36 = vpop.eup %7566  ;;  %v1289_v56 = vmul.f32 1.442695, %v7565_v38  ;;  %1545 = vadd.xlane.f32.xlu0 %v7565_v38  ;;  %v999_v18 = vadd.f32 %v9242_v39, %v8984_v41 }
 0x29d   :  { %7576 = vtanh.f32 %v997_v35  ;;  %6862 = vmatprep.mubr.f32.mxu0 %v9244_v37  ;;  %v1380_v54 = vmul.f32 %v7567_v36, %v159_v16  ;;  %v7295_v16 = vpack.c.bf16 %v2174_v15, %v2172_v61  ;;  %7294 = vmatprep.subr.bf16.mxu0 %v7293_v24 }
 0x29e   :  { %7578 = vpow2.f32 %v1289_v56  ;;  %v1002_v1 = vpop.f32.mrb[140].mxu1 }
 0x29f   :  { %v7569_v11 = vpop.eup %7568  ;;  %v1003_v32 = vadd.f32 %v1002_v1, %v8939_v53  ;;  %v9250_v58 = vpop.f32.mrb[141].mxu1  ;;  %v9252_v25 = vadd.f32 %v1380_v54, %v963_v63  ;;  %7296 = vmatpush1.bf16.msra.mxu0 %v7295_v16 }
 0x2a0   :  { %v7571_v38 = vpop.eup %7570  ;;  %v1291_v35 = vmul.f32 1.442695, %v7569_v11  ;;  %1547 = vadd.xlane.f32.xlu1 %v7569_v11  ;;  %v1005_v39 = vadd.f32 %v9250_v58, %v8984_v41 }
 0x2a1   :  { %v1381_v3 = vmul.f32 %v7571_v38, %v160_v27  ;;  %7580 = vtanh.f32 %v1003_v32  ;;  %6863 = vmatmul.mubr.f32.gmra.mrb[30].mxu0 %v9252_v25 }
 0x2a2   :  { %7582 = vpow2.f32 %v1291_v35  ;;  %v1008_v36 = vpop.f32.mrb[142].mxu1 }
 0x2a3   :  { %v7573_v56 = vpop.eup %7572  ;;  %v9257_v5 = vadd.f32 %v1381_v3, %v969_v40  ;;  %v1009_v63 = vadd.f32 %v1008_v36, %v8939_v53  ;;  %v9260_v54 = vpop.f32.mrb[143].mxu1  ;;  %v163_v40 = vld [vmem:[#allocation2 + $0x238] sm:$0xff] }
 0x2a4   :  { %v7575_v1 = vpop.eup %7574  ;;  %v1293_v12 = vmul.f32 1.442695, %v7573_v56  ;;  %1549 = vadd.xlane.f32.xlu0 %v7573_v56  ;;  %v1011_v58 = vadd.f32 %v9260_v54, %v8984_v41 }
 0x2a5   :  { %v1382_v27 = vmul.f32 %v7575_v1, %v161_v23  ;;  %7584 = vtanh.f32 %v1009_v63  ;;  %6865 = vmatprep.mubr.f32.mxu0 %v9257_v5 }
 0x2a6   :  { %7586 = vpow2.f32 %v1293_v12  ;;  %v1014_v11 = vpop.f32.mrb[144].mxu1 }
 0x2a7   :  { %v7577_v32 = vpop.eup %7576  ;;  %v9265_v24 = vadd.f32 %v1382_v27, %v975_v42  ;;  %v1015_v61 = vadd.f32 %v1014_v11, %v8939_v53  ;;  %v9268_v15 = vpop.f32.mrb[145].mxu1  ;;  %v164_v27 = vld [vmem:[#allocation2 + $0x248] sm:$0xff] }
 0x2a8   :  { %v7579_v38 = vpop.eup %7578  ;;  %v1295_v35 = vmul.f32 1.442695, %v7577_v32  ;;  %1551 = vadd.xlane.f32.xlu1 %v7577_v32  ;;  %v1017_v54 = vadd.f32 %v9268_v15, %v8984_v41 }
 0x2a9   :  { %12270 = vst [vmem:[#allocation12_spill] sm:$0xff] %v9265_v24  ;;  %v1383_v16 = vmul.f32 %v7579_v38, %v162_v51  ;;  %7588 = vtanh.f32 %v1015_v61  ;;  %6866 = vmatmul.mubr.f32.gmra.mrb[32].mxu0 %v9265_v24 }
 0x2aa   :  { %7590 = vpow2.f32 %v1295_v35  ;;  %v1020_v3 = vpop.f32.mrb[146].mxu1 }
 0x2ab   :  { %v7581_v23 = vpop.eup %7580  ;;  %v9273_v36 = vadd.f32 %v1383_v16, %v981_v34  ;;  %v1021_v56 = vadd.f32 %v1020_v3, %v8939_v53  ;;  %v9276_v63 = vpop.f32.mrb[147].mxu1 }
 0x2ac   :  { %v7583_v1 = vpop.eup %7582  ;;  %v1297_v12 = vmul.f32 1.442695, %v7581_v23  ;;  %1553 = vadd.xlane.f32.xlu0 %v7581_v23  ;;  %v1023_v15 = vadd.f32 %v9276_v63, %v8984_v41 }
 0x2ad   :  { %12271 = vst [vmem:[#allocation13_spill] sm:$0xff] %v9273_v36  ;;  %v1384_v42 = vmul.f32 %v7583_v1, %v163_v40  ;;  %7592 = vtanh.f32 %v1021_v56  ;;  %6868 = vmatprep.mubr.f32.mxu0 %v9273_v36  ;;  %v165_v40 = vld [vmem:[#allocation2 + $0x258] sm:$0xff] }
 0x2ae   :  { %7594 = vpow2.f32 %v1297_v12  ;;  %v1026_v51 = vpop.f32.mrb[148].mxu1 }
 0x2af   :  { %v7585_v11 = vpop.eup %7584  ;;  %v9281_v32 = vadd.f32 %v1384_v42, %v987_v13  ;;  %v1027_v61 = vadd.f32 %v1026_v51, %v8939_v53  ;;  %v9284_v38 = vpop.f32.mrb[149].mxu1  ;;  %v166_v51 = vld [vmem:[#allocation2 + $0x268] sm:$0xff] }
 0x2b0   :  { %v7587_v35 = vpop.eup %7586  ;;  %v1299_v34 = vmul.f32 1.442695, %v7585_v11  ;;  %1555 = vadd.xlane.f32.xlu1 %v7585_v11  ;;  %v1029_v63 = vadd.f32 %v9284_v38, %v8984_v41 }
 0x2b1   :  { %12272 = vst [vmem:[#allocation14_spill] sm:$0xff] %v9281_v32  ;;  %v1385_v16 = vmul.f32 %v7587_v35, %v164_v27  ;;  %7596 = vtanh.f32 %v1027_v61  ;;  %6869 = vmatmul.mubr.f32.gmra.mrb[34].mxu0 %v9281_v32 }
 0x2b2   :  { %7598 = vpow2.f32 %v1299_v34  ;;  %v1032_v3 = vpop.f32.mrb[150].mxu1 }
 0x2b3   :  { %v7589_v23 = vpop.eup %7588  ;;  %v9289_v56 = vadd.f32 %v1385_v16, %v993_v46  ;;  %v1033_v1 = vadd.f32 %v1032_v3, %v8939_v53  ;;  %v9292_v12 = vpop.f32.mrb[151].mxu1 }
 0x2b4   :  { %v7591_v13 = vpop.eup %7590  ;;  %v1301_v42 = vmul.f32 1.442695, %v7589_v23  ;;  %1557 = vadd.xlane.f32.xlu0 %v7589_v23  ;;  %v167_v23 = vld [vmem:[#allocation2 + $0x278] sm:$0xff]  ;;  %v1035_v38 = vadd.f32 %v9292_v12, %v8984_v41 }
 0x2b5   :  { %12273 = vst [vmem:[#allocation15_spill] sm:$0xff] %v9289_v56  ;;  %v1386_v27 = vmul.f32 %v7591_v13, %v165_v40  ;;  %7600 = vtanh.f32 %v1033_v1  ;;  %6871 = vmatprep.mubr.f32.mxu0 %v9289_v56 }
 0x2b6   :  { %7602 = vpow2.f32 %v1301_v42  ;;  %v1038_v11 = vpop.f32.mrb[152].mxu1 }
 0x2b7   :  { %v7593_v61 = vpop.eup %7592  ;;  %v9297_v35 = vadd.f32 %v1386_v27, %v999_v18  ;;  %v1039_v34 = vadd.f32 %v1038_v11, %v8939_v53  ;;  %v9300_v46 = vpop.f32.mrb[153].mxu1 }
 0x2b8   :  { %v7595_v16 = vpop.eup %7594  ;;  %v1303_v3 = vmul.f32 1.442695, %v7593_v61  ;;  %1559 = vadd.xlane.f32.xlu1 %v7593_v61  ;;  %v3151_v61 = vld [vmem:[#allocation5 + $0x100] sm:$0xff]  ;;  %v1041_v12 = vadd.f32 %v9300_v46, %v8984_v41 }
 0x2b9   :  { %12274 = vst [vmem:[#allocation16_spill] sm:$0xff] %v9297_v35  ;;  %v1387_v40 = vmul.f32 %v7595_v16, %v166_v51  ;;  %7604 = vtanh.f32 %v1039_v34  ;;  %6872 = vmatmul.mubr.f32.gmra.mrb[36].mxu0 %v9297_v35  ;;  %v3152_v34 = vld [vmem:[#allocation5 + $0x108] sm:$0xff] }
 0x2ba   :  { %7606 = vpow2.f32 %v1303_v3  ;;  %v1044_v1 = vpop.f32.mrb[154].mxu1  ;;  %v168_v16 = vld [vmem:[#allocation2 + $0x288] sm:$0xff] }
 0x2bb   :  { %v7597_v13 = vpop.eup %7596  ;;  %v9305_v42 = vadd.f32 %v1387_v40, %v1005_v39  ;;  %v1045_v18 = vadd.f32 %v1044_v1, %v8939_v53  ;;  %v9308_v27 = vpop.f32.mrb[155].mxu1  ;;  %v7297_v39 = vpack.c.bf16 %v3152_v34, %v3151_v61 }
 0x2bc   :  { %v7599_v11 = vpop.eup %7598  ;;  %v1305_v8 = vmul.f32 1.442695, %v7597_v13  ;;  %1561 = vadd.xlane.f32.xlu0 %v7597_v13  ;;  %v1047_v46 = vadd.f32 %v9308_v27, %v8984_v41 }
 0x2bd   :  { %12275 = vst [vmem:[#allocation17_spill] sm:$0xff] %v9305_v42  ;;  %v1388_v51 = vmul.f32 %v7599_v11, %v167_v23  ;;  %7608 = vtanh.f32 %v1045_v18  ;;  %6874 = vmatprep.mubr.f32.mxu0 %v9305_v42  ;;  %7298 = vmatprep.subr.bf16.mxu1 %v7297_v39 }
 0x2be   :  { %7610 = vpow2.f32 %v1305_v8  ;;  %v1050_v3 = vpop.f32.mrb[156].mxu1  ;;  %7300 = vmatpush3.bf16.msra.mxu1 %v7297_v39  ;;  %v169_v8 = vld [vmem:[#allocation2 + $0x298] sm:$0xff] }
 0x2bf   :  { %v7601_v40 = vpop.eup %7600  ;;  %v9313_v1 = vadd.f32 %v1388_v51, %v1011_v58  ;;  %v1051_v35 = vadd.f32 %v1050_v3, %v8939_v53  ;;  %v9316_v56 = vpop.f32.mrb[157].mxu1 }
 0x2c0   :  { %v7603_v13 = vpop.eup %7602  ;;  %v1307_v32 = vmul.f32 1.442695, %v7601_v40  ;;  %1563 = vadd.xlane.f32.xlu1 %v7601_v40  ;;  %v1053_v27 = vadd.f32 %v9316_v56, %v8984_v41 }
 0x2c1   :  { %12276 = vst [vmem:[#allocation18_spill] sm:$0xff] %v9313_v1  ;;  %v1389_v23 = vmul.f32 %v7603_v13, %v168_v16  ;;  %7612 = vtanh.f32 %v1051_v35  ;;  %6875 = vmatmul.mubr.f32.gmra.mrb[38].mxu0 %v9313_v1  ;;  %v170_v16 = vld [vmem:[#allocation2 + $0x2a8] sm:$0xff] }
 0x2c2   :  { %7614 = vpow2.f32 %v1307_v32  ;;  %v1056_v18 = vpop.f32.mrb[158].mxu1 }
 0x2c3   :  { %v7605_v11 = vpop.eup %7604  ;;  %v9321_v58 = vadd.f32 %v1389_v23, %v1017_v54  ;;  %v1057_v51 = vadd.f32 %v1056_v18, %v8939_v53  ;;  %v9324_v61 = vpop.f32.mrb[159].mxu1 }
 0x2c4   :  { %v7607_v34 = vpop.eup %7606  ;;  %v1309_v3 = vmul.f32 1.442695, %v7605_v11  ;;  %1565 = vadd.xlane.f32.xlu0 %v7605_v11  ;;  %v171_v11 = vld [vmem:[#allocation2 + $0x2b8] sm:$0xff]  ;;  %v1059_v56 = vadd.f32 %v9324_v61, %v8984_v41 }
 0x2c5   :  { %12277 = vst [vmem:[#allocation19_spill] sm:$0xff] %v9321_v58  ;;  %v1390_v35 = vmul.f32 %v7607_v34, %v169_v8  ;;  %7616 = vtanh.f32 %v1057_v51  ;;  %6877 = vmatprep.mubr.f32.mxu0 %v9321_v58 }
 0x2c6   :  { %7618 = vpow2.f32 %v1309_v3  ;;  %v1062_v32 = vpop.f32.mrb[160].mxu1 }
 0x2c7   :  { %v7609_v39 = vpop.eup %7608  ;;  %v9329_v40 = vadd.f32 %v1390_v35, %v1023_v15  ;;  %v1063_v13 = vadd.f32 %v1062_v32, %v8939_v53  ;;  %v9332_v54 = vpop.f32.mrb[161].mxu1 }
 0x2c8   :  { %v7611_v23 = vpop.eup %7610  ;;  %v1311_v18 = vmul.f32 1.442695, %v7609_v39  ;;  %1567 = vadd.xlane.f32.xlu1 %v7609_v39  ;;  %v172_v39 = vld [vmem:[#allocation2 + $0x2c8] sm:$0xff]  ;;  %v1065_v61 = vadd.f32 %v9332_v54, %v8984_v41 }
 0x2c9   :  { %12278 = vst [vmem:[#allocation20_spill] sm:$0xff] %v9329_v40  ;;  %v1391_v8 = vmul.f32 %v7611_v23, %v170_v16  ;;  %7620 = vtanh.f32 %v1063_v13  ;;  %6878 = vmatmul.mubr.f32.gmra.mrb[40].mxu0 %v9329_v40 }
 0x2ca   :  { %7622 = vpow2.f32 %v1311_v18  ;;  %v1068_v51 = vpop.f32.mrb[162].mxu1 }
 0x2cb   :  { %v7613_v34 = vpop.eup %7612  ;;  %v9337_v3 = vadd.f32 %v1391_v8, %v1029_v63  ;;  %v1069_v15 = vadd.f32 %v1068_v51, %v8939_v53  ;;  %v9340_v35 = vpop.f32.mrb[163].mxu1 }
 0x2cc   :  { %v7615_v32 = vpop.eup %7614  ;;  %v1313_v58 = vmul.f32 1.442695, %v7613_v34  ;;  %1569 = vadd.xlane.f32.xlu0 %v7613_v34  ;;  %v173_v34 = vld [vmem:[#allocation2 + $0x2d8] sm:$0xff]  ;;  %v1071_v54 = vadd.f32 %v9340_v35, %v8984_v41 }
 0x2cd   :  { %12279 = vst [vmem:[#allocation21_spill] sm:$0xff] %v9337_v3  ;;  %v1392_v16 = vmul.f32 %v7615_v32, %v171_v11  ;;  %7624 = vtanh.f32 %v1069_v15  ;;  %6880 = vmatprep.mubr.f32.mxu0 %v9337_v3 }
 0x2ce   :  { %7626 = vpow2.f32 %v1313_v58  ;;  %v1074_v13 = vpop.f32.mrb[164].mxu1 }
 0x2cf   :  { %v7617_v23 = vpop.eup %7616  ;;  %v9345_v18 = vadd.f32 %v1392_v16, %v1035_v38  ;;  %v1075_v63 = vadd.f32 %v1074_v13, %v8939_v53  ;;  %v9348_v8 = vpop.f32.mrb[165].mxu1 }
 0x2d0   :  { %v7619_v51 = vpop.eup %7618  ;;  %v1315_v40 = vmul.f32 1.442695, %v7617_v23  ;;  %1571 = vadd.xlane.f32.xlu1 %v7617_v23  ;;  %v174_v23 = vld [vmem:[#allocation2 + $0x2e8] sm:$0xff]  ;;  %v1077_v35 = vadd.f32 %v9348_v8, %v8984_v41 }
 0x2d1   :  { %12280 = vst [vmem:[#allocation22_spill] sm:$0xff] %v9345_v18  ;;  %v1393_v11 = vmul.f32 %v7619_v51, %v172_v39  ;;  %7628 = vtanh.f32 %v1075_v63  ;;  %6881 = vmatmul.mubr.f32.gmra.mrb[42].mxu0 %v9345_v18 }
 0x2d2   :  { %7630 = vpow2.f32 %v1315_v40  ;;  %v1080_v58 = vpop.f32.mrb[166].mxu1 }
 0x2d3   :  { %v7621_v15 = vpop.eup %7620  ;;  %v9353_v32 = vadd.f32 %v1393_v11, %v1041_v12  ;;  %v1081_v38 = vadd.f32 %v1080_v58, %v8939_v53  ;;  %v9356_v16 = vpop.f32.mrb[167].mxu1 }
 0x2d4   :  { %v7623_v13 = vpop.eup %7622  ;;  %v1317_v3 = vmul.f32 1.442695, %v7621_v15  ;;  %1573 = vadd.xlane.f32.xlu0 %v7621_v15  ;;  %v175_v15 = vld [vmem:[#allocation2 + $0x2f8] sm:$0xff]  ;;  %v1083_v8 = vadd.f32 %v9356_v16, %v8984_v41 }
 0x2d5   :  { %12281 = vst [vmem:[#allocation23_spill] sm:$0xff] %v9353_v32  ;;  %v1394_v39 = vmul.f32 %v7623_v13, %v173_v34  ;;  %7632 = vtanh.f32 %v1081_v38  ;;  %6883 = vmatprep.mubr.f32.mxu0 %v9353_v32 }
 0x2d6   :  { %7634 = vpow2.f32 %v1317_v3  ;;  %v1086_v40 = vpop.f32.mrb[168].mxu1 }
 0x2d7   :  { %v7625_v63 = vpop.eup %7624  ;;  %v9361_v51 = vadd.f32 %v1394_v39, %v1047_v46  ;;  %v1087_v12 = vadd.f32 %v1086_v40, %v8939_v53  ;;  %v9364_v11 = vpop.f32.mrb[169].mxu1 }
 0x2d8   :  { %v7627_v58 = vpop.eup %7626  ;;  %v1319_v18 = vmul.f32 1.442695, %v7625_v63  ;;  %1575 = vadd.xlane.f32.xlu1 %v7625_v63  ;;  %v3153_v63 = vld [vmem:[#allocation5 + $0x110] sm:$0xff]  ;;  %v1089_v16 = vadd.f32 %v9364_v11, %v8984_v41 }
 0x2d9   :  { %12282 = vst [vmem:[#allocation24_spill] sm:$0xff] %v9361_v51  ;;  %v1395_v34 = vmul.f32 %v7627_v58, %v174_v23  ;;  %7636 = vtanh.f32 %v1087_v12  ;;  %6884 = vmatmul.mubr.f32.gmra.mrb[44].mxu0 %v9361_v51  ;;  %v176_v12 = vld [vmem:[#allocation2 + $0x308] sm:$0xff] }
 0x2da   :  { %7638 = vpow2.f32 %v1319_v18  ;;  %v1092_v3 = vpop.f32.mrb[170].mxu1  ;;  %v3154_v18 = vld [vmem:[#allocation5 + $0x118] sm:$0xff] }
 0x2db   :  { %v7629_v38 = vpop.eup %7628  ;;  %v9369_v13 = vadd.f32 %v1395_v34, %v1053_v27  ;;  %v1093_v46 = vadd.f32 %v1092_v3, %v8939_v53  ;;  %v9372_v39 = vpop.f32.mrb[171].mxu1  ;;  %v7301_v27 = vpack.c.bf16 %v3154_v18, %v3153_v63 }
 0x2dc   :  { %v7631_v40 = vpop.eup %7630  ;;  %v1321_v32 = vmul.f32 1.442695, %v7629_v38  ;;  %1577 = vadd.xlane.f32.xlu0 %v7629_v38  ;;  %v1095_v11 = vadd.f32 %v9372_v39, %v8984_v41 }
 0x2dd   :  { %12283 = vst [vmem:[#allocation25_spill] sm:$0xff] %v9369_v13  ;;  %v1396_v23 = vmul.f32 %v7631_v40, %v175_v15  ;;  %7640 = vtanh.f32 %v1093_v46  ;;  %6886 = vmatprep.mubr.f32.mxu0 %v9369_v13  ;;  %7302 = vmatprep.subr.bf16.mxu1 %v7301_v27 }
 0x2de   :  { %7642 = vpow2.f32 %v1321_v32  ;;  %v1098_v58 = vpop.f32.mrb[172].mxu1  ;;  %7304 = vmatpush3.bf16.msra.mxu1 %v7301_v27  ;;  %v177_v32 = vld [vmem:[#allocation2 + $0x318] sm:$0xff] }
 0x2df   :  { %v7633_v34 = vpop.eup %7632  ;;  %v9377_v3 = vadd.f32 %v1396_v23, %v1059_v56  ;;  %v1099_v51 = vadd.f32 %v1098_v58, %v8939_v53  ;;  %v9380_v1 = vpop.f32.mrb[173].mxu1 }
 0x2e0   :  { %v7635_v38 = vpop.eup %7634  ;;  %v1323_v42 = vmul.f32 1.442695, %v7633_v34  ;;  %1579 = vadd.xlane.f32.xlu1 %v7633_v34  ;;  %v1101_v39 = vadd.f32 %v9380_v1, %v8984_v41 }
 0x2e1   :  { %12284 = vst [vmem:[#allocation26_spill] sm:$0xff] %v9377_v3  ;;  %v1397_v15 = vmul.f32 %v7635_v38, %v176_v12  ;;  %7644 = vtanh.f32 %v1099_v51  ;;  %6887 = vmatmul.mubr.f32.gmra.mrb[46].mxu0 %v9377_v3  ;;  %v178_v12 = vld [vmem:[#allocation2 + $0x328] sm:$0xff] }
 0x2e2   :  { %7646 = vpow2.f32 %v1323_v42  ;;  %v1104_v46 = vpop.f32.mrb[174].mxu1 }
 0x2e3   :  { %v7637_v40 = vpop.eup %7636  ;;  %v9385_v56 = vadd.f32 %v1397_v15, %v1065_v61  ;;  %v1105_v23 = vadd.f32 %v1104_v46, %v8939_v53  ;;  %v9388_v63 = vpop.f32.mrb[175].mxu1 }
 0x2e4   :  { %v7639_v18 = vpop.eup %7638  ;;  %v1325_v58 = vmul.f32 1.442695, %v7637_v40  ;;  %1581 = vadd.xlane.f32.xlu0 %v7637_v40  ;;  %v179_v40 = vld [vmem:[#allocation2 + $0x338] sm:$0xff]  ;;  %v1107_v1 = vadd.f32 %v9388_v63, %v8984_v41 }
 0x2e5   :  { %12285 = vst [vmem:[#allocation27_spill] sm:$0xff] %v9385_v56  ;;  %v1398_v51 = vmul.f32 %v7639_v18, %v177_v32  ;;  %7648 = vtanh.f32 %v1105_v23  ;;  %6889 = vmatprep.mubr.f32.mxu0 %v9385_v56 }
 0x2e6   :  { %7650 = vpow2.f32 %v1325_v58  ;;  %v1110_v42 = vpop.f32.mrb[176].mxu1 }
 0x2e7   :  { %v7641_v27 = vpop.eup %7640  ;;  %v9393_v34 = vadd.f32 %v1398_v51, %v1071_v54  ;;  %v1111_v38 = vadd.f32 %v1110_v42, %v8939_v53  ;;  %v9396_v61 = vpop.f32.mrb[177].mxu1 }
 0x2e8   :  { %v7643_v15 = vpop.eup %7642  ;;  %v1327_v46 = vmul.f32 1.442695, %v7641_v27  ;;  %1583 = vadd.xlane.f32.xlu1 %v7641_v27  ;;  %v180_v27 = vld [vmem:[#allocation2 + $0x348] sm:$0xff] }
 0x2e9   :  { %12286 = vst [vmem:[#allocation28_spill] sm:$0xff] %v9393_v34  ;;  %v1399_v32 = vmul.f32 %v7643_v15, %v178_v12  ;;  %7652 = vtanh.f32 %v1111_v38  ;;  %6890 = vmatmul.mubr.f32.gmra.mrb[48].mxu0 %v9393_v34 }
 0x2ea   :  { %7654 = vpow2.f32 %v1327_v46  ;;  %v1116_v23 = vpop.f32.mrb[178].mxu1 }
 0x2eb   :  { %v7645_v18 = vpop.eup %7644  ;;  %v9401_v58 = vadd.f32 %v1399_v32, %v1077_v35  ;;  %v1117_v54 = vadd.f32 %v1116_v23, %v8939_v53  ;;  %v9404_v51 = vpop.f32.mrb[179].mxu1 }
 0x2ec   :  { %v7647_v42 = vpop.eup %7646  ;;  %v1329_v56 = vmul.f32 1.442695, %v7645_v18  ;;  %1585 = vadd.xlane.f32.xlu0 %v7645_v18  ;;  %v181_v18 = vld [vmem:[#allocation2 + $0x358] sm:$0xff] }
 0x2ed   :  { %12287 = vst [vmem:[#allocation29_spill] sm:$0xff] %v9401_v58  ;;  %v1400_v12 = vmul.f32 %v7647_v42, %v179_v40  ;;  %7656 = vtanh.f32 %v1117_v54  ;;  %6892 = vmatprep.mubr.f32.mxu0 %v9401_v58 }
 0x2ee   :  { %7658 = vpow2.f32 %v1329_v56  ;;  %v1122_v38 = vpop.f32.mrb[180].mxu1 }
 0x2ef   :  { %v7649_v15 = vpop.eup %7648  ;;  %v9409_v46 = vadd.f32 %v1400_v12, %v1083_v8  ;;  %v1123_v35 = vadd.f32 %v1122_v38, %v8939_v53  ;;  %v9412_v32 = vpop.f32.mrb[181].mxu1 }
 0x2f0   :  { %v7651_v23 = vpop.eup %7650  ;;  %v1331_v34 = vmul.f32 1.442695, %v7649_v15  ;;  %1587 = vadd.xlane.f32.xlu1 %v7649_v15  ;;  %v182_v15 = vld [vmem:[#allocation2 + $0x368] sm:$0xff] }
 0x2f1   :  { %12288 = vst [vmem:[#allocation30_spill] sm:$0xff] %v9409_v46  ;;  %v1401_v40 = vmul.f32 %v7651_v23, %v180_v27  ;;  %7660 = vtanh.f32 %v1123_v35  ;;  %6893 = vmatmul.mubr.f32.gmra.mrb[50].mxu0 %v9409_v46 }
 0x2f2   :  { %7662 = vpow2.f32 %v1331_v34  ;;  %v1128_v56 = vpop.f32.mrb[182].mxu1 }
 0x2f3   :  { %v7653_v54 = vpop.eup %7652  ;;  %v9417_v42 = vadd.f32 %v1401_v40, %v1089_v16  ;;  %v1129_v8 = vadd.f32 %v1128_v56, %v8939_v53  ;;  %v9420_v12 = vpop.f32.mrb[183].mxu1 }
 0x2f4   :  { %v7655_v38 = vpop.eup %7654  ;;  %v1333_v58 = vmul.f32 1.442695, %v7653_v54  ;;  %1589 = vadd.xlane.f32.xlu0 %v7653_v54  ;;  %v183_v54 = vld [vmem:[#allocation2 + $0x378] sm:$0xff] }
 0x2f5   :  { %12289 = vst [vmem:[#allocation31_spill] sm:$0xff] %v9417_v42  ;;  %v1402_v27 = vmul.f32 %v7655_v38, %v181_v18  ;;  %7664 = vtanh.f32 %v1129_v8  ;;  %6895 = vmatprep.mubr.f32.mxu0 %v9417_v42 }
 0x2f6   :  { %7666 = vpow2.f32 %v1333_v58  ;;  %v1134_v34 = vpop.f32.mrb[184].mxu1 }
 0x2f7   :  { %v7657_v35 = vpop.eup %7656  ;;  %v9425_v23 = vadd.f32 %v1402_v27, %v1095_v11  ;;  %v1135_v16 = vadd.f32 %v1134_v34, %v8939_v53  ;;  %v9428_v40 = vpop.f32.mrb[185].mxu1 }
 0x2f8   :  { %v7659_v56 = vpop.eup %7658  ;;  %v1335_v46 = vmul.f32 1.442695, %v7657_v35  ;;  %1591 = vadd.xlane.f32.xlu1 %v7657_v35 }
 0x2f9   :  { %12290 = vst [vmem:[#allocation32_spill] sm:$0xff] %v9425_v23  ;;  %v1403_v18 = vmul.f32 %v7659_v56, %v182_v15  ;;  %7668 = vtanh.f32 %v1135_v16  ;;  %6896 = vmatmul.mubr.f32.gmra.mrb[52].mxu0 %v9425_v23  ;;  %v3156_v56 = vld [vmem:[#allocation5 + $0x128] sm:$0xff] }
 0x2fa   :  { %7670 = vpow2.f32 %v1335_v46  ;;  %v1140_v58 = vpop.f32.mrb[186].mxu1  ;;  %v3155_v46 = vld [vmem:[#allocation5 + $0x120] sm:$0xff] }
 0x2fb   :  { %v7661_v8 = vpop.eup %7660  ;;  %v9433_v38 = vadd.f32 %v1403_v18, %v1101_v39  ;;  %v1141_v11 = vadd.f32 %v1140_v58, %v8939_v53  ;;  %v9436_v27 = vpop.f32.mrb[187].mxu1  ;;  %v184_v39 = vld [vmem:[#allocation2 + $0x388] sm:$0xff]  ;;  %v7305_v58 = vpack.c.bf16 %v3156_v56, %v3155_v46 }
 0x2fc   :  { %v7663_v34 = vpop.eup %7662  ;;  %v1337_v42 = vmul.f32 1.442695, %v7661_v8  ;;  %1593 = vadd.xlane.f32.xlu0 %v7661_v8  ;;  %v9438_v35 = vpop.f32.mrb[0].mxu0 }
 0x2fd   :  { %12291 = vst [vmem:[#allocation33_spill] sm:$0xff] %v9433_v38  ;;  %v1404_v15 = vmul.f32 %v7663_v34, %v183_v54  ;;  %7672 = vtanh.f32 %v1141_v11  ;;  %v9442_v16 = vpop.f32.mrb[1].mxu0  ;;  %6898 = vmatprep.mubr.f32.mxu0 %v9433_v38  ;;  %7306 = vmatprep.subr.bf16.mxu1 %v7305_v58  ;;  %v1113_v11 = vadd.f32 %v9396_v61, %v8984_v41 }
 0x2fe   :  { %7674 = vpow2.f32 %v1337_v42  ;;  %v1146_v18 = vpop.f32.mrb[188].mxu1  ;;  %7308 = vmatpush3.bf16.msra.mxu1 %v7305_v58  ;;  %v185_v42 = vld [vmem:[#allocation2 + $0x398] sm:$0xff]  ;;  %v1119_v61 = vadd.f32 %v9404_v51, %v8984_v41 }
 0x2ff   :  { %v7665_v23 = vpop.eup %7664  ;;  %v9445_v3 = vadd.f32 %v1404_v15, %v1107_v1  ;;  %v1147_v8 = vadd.f32 %v1146_v18, %v8939_v53  ;;  %v9448_v13 = vpop.f32.mrb[189].mxu1  ;;  %v187_v51 = vld [vmem:[#allocation2 + $0x3b8] sm:$0xff] }
 0x300   :  { %v7667_v63 = vpop.eup %7666  ;;  %v1339_v54 = vmul.f32 1.442695, %v7665_v23  ;;  %1595 = vadd.xlane.f32.xlu1 %v7665_v23 }
 0x301   :  { %12292 = vst [vmem:[#allocation34_spill] sm:$0xff] %v9445_v3  ;;  %v1405_v34 = vmul.f32 %v7667_v63, %v184_v39  ;;  %7676 = vtanh.f32 %v1147_v8  ;;  %6899 = vmatmul.mubr.f32.gmra.mrb[54].mxu0 %v9445_v3  ;;  %v186_v8 = vld [vmem:[#allocation2 + $0x3a8] sm:$0xff] }
 0x302   :  { %7678 = vpow2.f32 %v1339_v54  ;;  %v1152_v1 = vpop.f32.mrb[190].mxu1 }
 0x303   :  { %v7669_v15 = vpop.eup %7668  ;;  %v9453_v46 = vadd.f32 %v1405_v34, %v1113_v11  ;;  %v1153_v56 = vadd.f32 %v1152_v1, %v8939_v53  ;;  %v1154_v18 = vpop.f32.mrb[191].mxu1  ;;  %v1125_v34 = vadd.f32 %v9412_v32, %v8984_v41  ;;  %v188_v32 = vld [vmem:[#allocation2 + $0x3c8] sm:$0xff] }
 0x304   :  { %v7671_v38 = vpop.eup %7670  ;;  %v1341_v23 = vmul.f32 1.442695, %v7669_v15  ;;  %1597 = vadd.xlane.f32.xlu0 %v7669_v15  ;;  %v9456_v36 = vpop.f32.mrb[2].mxu0 }
 0x305   :  { %12293 = vst [vmem:[#allocation35_spill] sm:$0xff] %v9453_v46  ;;  %v1406_v39 = vmul.f32 %v7671_v38, %v185_v42  ;;  %7680 = vtanh.f32 %v1153_v56  ;;  %v9460_v58 = vpop.f32.mrb[3].mxu0  ;;  %6901 = vmatprep.mubr.f32.mxu0 %v9453_v46 }
 0x306   :  { %7682 = vpow2.f32 %v1341_v23 }
 0x307   :  { %v7673_v63 = vpop.eup %7672  ;;  %v9463_v54 = vadd.f32 %v1406_v39, %v1119_v61  ;;  %v1131_v61 = vadd.f32 %v9420_v12, %v8984_v41 }
 0x308   :  { %v7675_v53 = vpop.eup %7674  ;;  %v1343_v11 = vmul.f32 1.442695, %v7673_v63  ;;  %1599 = vadd.xlane.f32.xlu1 %v7673_v63 }
 0x309   :  { %12294 = vst [vmem:[#allocation36_spill] sm:$0xff] %v9463_v54  ;;  %v1407_v1 = vmul.f32 %v7675_v53, %v186_v8  ;;  %6902 = vmatmul.mubr.f32.gmra.mrb[56].mxu0 %v9463_v54  ;;  %v189_v54 = vld [vmem:[#allocation2 + $0x3d8] sm:$0xff] }
 0x30a   :  { %7684 = vpow2.f32 %v1343_v11 }
 0x30b   :  { %v7677_v38 = vpop.eup %7676  ;;  %v9468_v42 = vadd.f32 %v1407_v1, %v1125_v34  ;;  %v1137_v1 = vadd.f32 %v9428_v40, %v8984_v41 }
 0x30c   :  { %v7679_v15 = vpop.eup %7678  ;;  %v1345_v56 = vmul.f32 1.442695, %v7677_v38  ;;  %1601 = vadd.xlane.f32.xlu0 %v7677_v38  ;;  %v9470_v23 = vpop.f32.mrb[4].mxu0 }
 0x30d   :  { %12295 = vst [vmem:[#allocation37_spill] sm:$0xff] %v9468_v42  ;;  %v1408_v39 = vmul.f32 %v7679_v15, %v187_v51  ;;  %v1780_v63 = vpop.f32.mrb[5].mxu0  ;;  %6904 = vmatprep.mubr.f32.mxu0 %v9468_v42 }
 0x30e   :  { %7686 = vpow2.f32 %v1345_v56  ;;  %v1143_v56 = vadd.f32 %v9436_v27, %v8984_v41  ;;  %v9495_v27 = vld [vmem:[%s12168_s2 + $0x1] ss:$0 sm:$0xff] }
 0x30f   :  { %v7681_v8 = vpop.eup %7680  ;;  %v9475_v53 = vadd.f32 %v1408_v39, %v1131_v61 }
 0x310   :  { %v7683_v11 = vpop.eup %7682  ;;  %v1347_v34 = vmul.f32 1.442695, %v7681_v8  ;;  %1603 = vadd.xlane.f32.xlu1 %v7681_v8  ;;  %v190_v8 = vld [vmem:[#allocation2 + $0x3e8] sm:$0xff] }
 0x311   :  { %12296 = vst [vmem:[#allocation38_spill] sm:$0xff] %v9475_v53  ;;  %v1409_v38 = vmul.f32 %v7683_v11, %v188_v32  ;;  %6905 = vmatmul.mubr.f32.gmra.mrb[58].mxu0 %v9475_v53  ;;  %v1149_v32 = vadd.f32 %v9448_v13, %v8984_v41  ;;  %v3157_v13 = vld [vmem:[#allocation5 + $0x130] sm:$0xff] }
 0x312   :  { %7688 = vpow2.f32 %v1347_v34  ;;  %v191_v34 = vld [vmem:[#allocation2 + $0x3f8] sm:$0xff] }
 0x313   :  { %v9480_v12 = vadd.f32 %v1409_v38, %v1137_v1 }
 0x314   :  { %v7685_v51 = vpop.eup %7684  ;;  %v6828_v15 = vpop.f32.mrb[6].mxu0 }
 0x315   :  { %12297 = vst [vmem:[#allocation39_spill] sm:$0xff] %v9480_v12  ;;  %v1410_v61 = vmul.f32 %v7685_v51, %v189_v54  ;;  %v1790_v39 = vpop.f32.mrb[7].mxu0  ;;  %6907 = vmatprep.mubr.f32.mxu0 %v9480_v12  ;;  %v1155_v51 = vadd.f32 %v1154_v18, %v8984_v41  ;;  %v1766_v41 = vadd.f32 %v9438_v35, %v9495_v27 }
 0x316   :  { %v1781_v35 = vadd.f32 %v9495_v27, %v1780_v63  ;;  %v1796_v63 = vadd.f32 %v6828_v15, %v9495_v27 }
 0x317   :  { %v9485_v42 = vadd.f32 %v1410_v61, %v1143_v56 }
 0x318   :  { %v7687_v40 = vpop.eup %7686 }
 0x319   :  { %12298 = vst [vmem:[#allocation40_spill] sm:$0xff] %v9485_v42  ;;  %v1411_v11 = vmul.f32 %v7687_v40, %v190_v8  ;;  %6908 = vmatmul.mubr.f32.gmra.mrb[60].mxu0 %v9485_v42  ;;  %v3158_v8 = vld [vmem:[#allocation5 + $0x138] sm:$0xff]  ;;  %v12301_v42 = vmov 0.0  }
 0x31a   :  { %v7309_v40 = vpack.c.bf16 %v3158_v8, %v3157_v13 }
 0x31b   :  { %v9490_v1 = vadd.f32 %v1411_v11, %v1149_v32  ;;  %v1761_v32 = vadd.f32 %v9495_v27, %v9442_v16  ;;  %v1771_v16 = vadd.f32 %v9495_v27, %v9460_v58  ;;  %v1786_v58 = vadd.f32 %v9470_v23, %v9495_v27  ;;  %v3159_v23 = vld [vmem:[#allocation5 + $0x140] sm:$0xff] }
 0x31c   :  { %v7689_v38 = vpop.eup %7688  ;;  %v6831_v54 = vpop.f32.mrb[8].mxu0  ;;  %7310 = vmatprep.subr.bf16.mxu1 %v7309_v40 }
 0x31d   :  { %12299 = vst [vmem:[#allocation41_spill] sm:$0xff] %v9490_v1  ;;  %v1412_v56 = vmul.f32 %v7689_v38, %v191_v34  ;;  %v1800_v61 = vpop.f32.mrb[9].mxu0  ;;  %6910 = vmatprep.mubr.f32.mxu0 %v9490_v1  ;;  %7312 = vmatpush3.bf16.msra.mxu1 %v7309_v40  ;;  %v2079_v18 = vmax.f32 %v1761_v32, 0.0  ;;  %v2081_v13 = vmax.f32 %v1771_v16, 0.0  ;;  %v2084_v16 = vmax.f32 %v1786_v58, 0.0 }
 0x31f   :  { %v9501_v11 = vadd.f32 %v1412_v56, %v1155_v51  ;;  %v2080_v51 = vmax.f32 %v1766_v41, 0.0  ;;  %v1776_v56 = vadd.f32 %v9456_v36, %v9495_v27  ;;  %v2083_v41 = vmax.f32 %v1781_v35, 0.0  ;;  %v3160_v35 = vld [vmem:[#allocation5 + $0x148] sm:$0xff] }
 0x320   :  { %v1791_v36 = vadd.f32 %v9495_v27, %v1790_v39  ;;  %v7313_v1 = vpack.c.bf16 %v3160_v35, %v3159_v23  ;;  %v1806_v39 = vadd.f32 %v6831_v54, %v9495_v27 }
 0x321   :  { %12300 = vst [vmem:[#allocation42_spill] sm:$0xff] %v9501_v11  ;;  %6911 = vmatmul.mubr.f32.gmra.mrb[62].mxu0 %v9501_v11  ;;  %v2082_v32 = vmax.f32 %v1776_v56, 0.0  ;;  %v2086_v11 = vmax.f32 %v1796_v63, 0.0 }
 0x322   :  { %2253 = vmatprep.mubr.f32.mxu0 %v12301_v42  ;;  %v2085_v56 = vmax.f32 %v1791_v36, 0.0  ;;  %7314 = vmatprep.subr.bf16.mxu1 %v7313_v1 }
 0x323   :  { %7316 = vmatpush3.bf16.msra.mxu1 %v7313_v1 }
 0x324   :  { %v6834_v34 = vpop.f32.mrb[10].mxu0 }
 0x325   :  { %v1810_v38 = vpop.f32.mrb[11].mxu0  ;;  %2254 = vmatmul.mubr.f32.vlgmr.msra.gmra.mrb[64].mxu0 %v2079_v18 }
 0x326   :  { %2259 = vmatprep.mubr.f32.mxu0 %v12301_v42 }
 0x329   :  { %2260 = vmatmul.mubr.f32.gmra.mrb[66].mxu0 %v2080_v51 }
 0x32a   :  { %2265 = vmatprep.mubr.f32.mxu0 %v12301_v42 }
 0x32c   :  { %v6837_v8 = vpop.f32.mrb[12].mxu0 }
 0x32d   :  { %v1820_v40 = vpop.f32.mrb[13].mxu0  ;;  %2266 = vmatmul.mubr.f32.gmra.mrb[68].mxu0 %v2081_v13 }
 0x32e   :  { %2271 = vmatprep.mubr.f32.mxu0 %v12301_v42  ;;  %v1821_v1 = vadd.f32 %v9495_v27, %v1820_v40 }
 0x330   :  { %v2091_v35 = vmax.f32 %v1821_v1, 0.0 }
 0x331   :  { %2272 = vmatmul.mubr.f32.gmra.mrb[70].mxu0 %v2082_v32 }
 0x332   :  { %2277 = vmatprep.mubr.f32.mxu0 %v12301_v42 }
 0x334   :  { %v6840_v18 = vpop.f32.mrb[14].mxu0 }
 0x335   :  { %v1830_v51 = vpop.f32.mrb[15].mxu0  ;;  %2278 = vmatmul.mubr.f32.gmra.mrb[72].mxu0 %v2083_v41  ;;  %v1801_v41 = vadd.f32 %v9495_v27, %v1800_v61  ;;  %v1816_v61 = vadd.f32 %v6834_v34, %v9495_v27  ;;  %v1836_v40 = vadd.f32 %v6840_v18, %v9495_v27 }
 0x336   :  { %2283 = vmatprep.mubr.f32.mxu0 %v12301_v42  ;;  %v1831_v34 = vadd.f32 %v9495_v27, %v1830_v51 }
 0x337   :  { %v2087_v15 = vmax.f32 %v1801_v41, 0.0  ;;  %v2090_v54 = vmax.f32 %v1816_v61, 0.0 }
 0x339   :  { %2284 = vmatmul.mubr.f32.gmra.mrb[74].mxu0 %v2084_v16  ;;  %v1811_v16 = vadd.f32 %v9495_v27, %v1810_v38  ;;  %v1826_v38 = vadd.f32 %v6837_v8, %v9495_v27  ;;  %v3161_v8 = vld [vmem:[#allocation5 + $0x150] sm:$0xff] }
 0x33a   :  { %2289 = vmatprep.mubr.f32.mxu0 %v12301_v42 }
 0x33c   :  { %v6843_v13 = vpop.f32.mrb[16].mxu0 }
 0x33d   :  { %v1840_v32 = vpop.f32.mrb[17].mxu0  ;;  %2290 = vmatmul.mubr.f32.gmra.mrb[76].mxu0 %v2085_v56  ;;  %v2088_v56 = vmax.f32 %v1806_v39, 0.0  ;;  %v1846_v51 = vadd.f32 %v6843_v13, %v9495_v27 }
 0x33e   :  { %2295 = vmatprep.mubr.f32.mxu0 %v12301_v42  ;;  %v1841_v1 = vadd.f32 %v9495_v27, %v1840_v32 }
 0x340   :  { %v2095_v18 = vmax.f32 %v1841_v1, 0.0 }
 0x341   :  { %2296 = vmatmul.mubr.f32.gmra.mrb[78].mxu0 %v2086_v11  ;;  %v2089_v11 = vmax.f32 %v1811_v16, 0.0  ;;  %v2093_v16 = vmax.f32 %v1831_v34, 0.0 }
 0x342   :  { %2301 = vmatprep.mubr.f32.mxu0 %v12301_v42 }
 0x344   :  { %v6846_v58 = vpop.f32.mrb[18].mxu0 }
 0x345   :  { %v1850_v36 = vpop.f32.mrb[19].mxu0  ;;  %2302 = vmatmul.mubr.f32.gmra.mrb[80].mxu0 %v2087_v15  ;;  %v2092_v15 = vmax.f32 %v1826_v38, 0.0  ;;  %v1856_v32 = vadd.f32 %v6846_v58, %v9495_v27 }
 0x346   :  { %2307 = vmatprep.mubr.f32.mxu0 %v12301_v42 }
 0x347   :  { %v2098_v1 = vmax.f32 %v1856_v32, 0.0 }
 0x349   :  { %2308 = vmatmul.mubr.f32.gmra.mrb[82].mxu0 %v2088_v56 }
 0x34a   :  { %2313 = vmatprep.mubr.f32.mxu0 %v12301_v42 }
 0x34c   :  { %v6849_v63 = vpop.f32.mrb[20].mxu0 }
 0x34d   :  { %v1860_v23 = vpop.f32.mrb[21].mxu0  ;;  %2314 = vmatmul.mubr.f32.gmra.mrb[84].mxu0 %v2089_v11  ;;  %v3162_v11 = vld [vmem:[#allocation5 + $0x158] sm:$0xff] }
 0x34e   :  { %2319 = vmatprep.mubr.f32.mxu0 %v12301_v42  ;;  %v1861_v13 = vadd.f32 %v9495_v27, %v1860_v23 }
 0x351   :  { %2320 = vmatmul.mubr.f32.gmra.mrb[86].mxu0 %v2090_v54  ;;  %v2094_v54 = vmax.f32 %v1836_v40, 0.0 }
 0x352   :  { %2325 = vmatprep.mubr.f32.mxu0 %v12301_v42 }
 0x354   :  { %v6852_v41 = vpop.f32.mrb[22].mxu0 }
 0x355   :  { %v1870_v39 = vpop.f32.mrb[23].mxu0  ;;  %2326 = vmatmul.mubr.f32.gmra.mrb[88].mxu0 %v2091_v35  ;;  %v7317_v35 = vpack.c.bf16 %v3162_v11, %v3161_v8  ;;  %v1876_v23 = vadd.f32 %v6852_v41, %v9495_v27 }
 0x356   :  { %2331 = vmatprep.mubr.f32.mxu0 %v12301_v42  ;;  %v1871_v58 = vadd.f32 %v9495_v27, %v1870_v39 }
 0x357   :  { %7318 = vmatprep.subr.bf16.mxu1 %v7317_v35 }
 0x358   :  { %7320 = vmatpush3.bf16.msra.mxu1 %v7317_v35 }
 0x359   :  { %2332 = vmatmul.mubr.f32.gmra.mrb[90].mxu0 %v2092_v15  ;;  %v1851_v15 = vadd.f32 %v9495_v27, %v1850_v36  ;;  %v1866_v36 = vadd.f32 %v6849_v63, %v9495_v27 }
 0x35a   :  { %2337 = vmatprep.mubr.f32.mxu0 %v12301_v42 }
 0x35b   :  { %v2097_v40 = vmax.f32 %v1851_v15, 0.0  ;;  %v2101_v15 = vmax.f32 %v1871_v58, 0.0 }
 0x35c   :  { %v6855_v56 = vpop.f32.mrb[24].mxu0 }
 0x35d   :  { %v1880_v61 = vpop.f32.mrb[25].mxu0  ;;  %2338 = vmatmul.mubr.f32.gmra.mrb[92].mxu0 %v2093_v16  ;;  %v2096_v16 = vmax.f32 %v1846_v51, 0.0  ;;  %v1886_v39 = vadd.f32 %v6855_v56, %v9495_v27 }
 0x35e   :  { %2343 = vmatprep.mubr.f32.mxu0 %v12301_v42  ;;  %v1881_v63 = vadd.f32 %v9495_v27, %v1880_v61 }
 0x361   :  { %2344 = vmatmul.mubr.f32.gmra.mrb[94].mxu0 %v2094_v54  ;;  %v2099_v54 = vmax.f32 %v1861_v13, 0.0  ;;  %v2103_v13 = vmax.f32 %v1881_v63, 0.0  ;;  %v3163_v63 = vld [vmem:[#allocation5 + $0x160] sm:$0xff] }
 0x362   :  { %2349 = vmatprep.mubr.f32.mxu0 %v12301_v42 }
 0x364   :  { %v6858_v38 = vpop.f32.mrb[26].mxu0 }
 0x365   :  { %v1890_v34 = vpop.f32.mrb[27].mxu0  ;;  %2350 = vmatmul.mubr.f32.gmra.mrb[96].mxu0 %v2095_v18  ;;  %v2100_v18 = vmax.f32 %v1866_v36, 0.0  ;;  %v1896_v61 = vadd.f32 %v6858_v38, %v9495_v27 }
 0x366   :  { %2355 = vmatprep.mubr.f32.mxu0 %v12301_v42  ;;  %v1891_v41 = vadd.f32 %v9495_v27, %v1890_v34 }
 0x368   :  { %v2105_v58 = vmax.f32 %v1891_v41, 0.0  ;;  %v3165_v41 = vld [vmem:[#allocation5 + $0x170] sm:$0xff] }
 0x369   :  { %2356 = vmatmul.mubr.f32.gmra.mrb[98].mxu0 %v2096_v16 }
 0x36a   :  { %2361 = vmatprep.mubr.f32.mxu0 %v12301_v42 }
 0x36c   :  { %v6861_v8 = vpop.f32.mrb[28].mxu0 }
 0x36d   :  { %v1900_v11 = vpop.f32.mrb[29].mxu0  ;;  %2362 = vmatmul.mubr.f32.gmra.mrb[100].mxu0 %v2097_v40  ;;  %v2102_v40 = vmax.f32 %v1876_v23, 0.0  ;;  %v1906_v34 = vadd.f32 %v6861_v8, %v9495_v27 }
 0x36e   :  { %2367 = vmatprep.mubr.f32.mxu0 %v12301_v42  ;;  %v1901_v56 = vadd.f32 %v9495_v27, %v1900_v11 }
 0x371   :  { %2368 = vmatmul.mubr.f32.gmra.mrb[102].mxu0 %v2098_v1 }
 0x372   :  { %2373 = vmatprep.mubr.f32.mxu0 %v12301_v42 }
 0x374   :  { %v6864_v35 = vpop.f32.mrb[30].mxu0 }
 0x375   :  { %v1910_v51 = vpop.f32.mrb[31].mxu0  ;;  %2374 = vmatmul.mubr.f32.gmra.mrb[104].mxu0 %v2099_v54  ;;  %v2104_v54 = vmax.f32 %v1886_v39, 0.0  ;;  %v2107_v39 = vmax.f32 %v1901_v56, 0.0  ;;  %v1916_v8 = vadd.f32 %v6864_v35, %v9495_v27 }
 0x376   :  { %2379 = vmatprep.mubr.f32.mxu0 %v12301_v42  ;;  %v1911_v11 = vadd.f32 %v9495_v27, %v1910_v51 }
 0x378   :  { %v2109_v56 = vmax.f32 %v1911_v11, 0.0 }
 0x379   :  { %2380 = vmatmul.mubr.f32.gmra.mrb[106].mxu0 %v2100_v18 }
 0x37a   :  { %2385 = vmatprep.mubr.f32.mxu0 %v12301_v42 }
 0x37c   :  { %v6867_v16 = vpop.f32.mrb[32].mxu0 }
 0x37d   :  { %v1920_v32 = vpop.f32.mrb[33].mxu0  ;;  %2386 = vmatmul.mubr.f32.gmra.mrb[108].mxu0 %v2101_v15  ;;  %v2106_v15 = vmax.f32 %v1896_v61, 0.0  ;;  %v2108_v61 = vmax.f32 %v1906_v34, 0.0  ;;  %v1926_v51 = vadd.f32 %v6867_v16, %v9495_v27 }
 0x37e   :  { %2391 = vmatprep.mubr.f32.mxu0 %v12301_v42 }
 0x381   :  { %2392 = vmatmul.mubr.f32.gmra.mrb[110].mxu0 %v2102_v40  ;;  %v3164_v40 = vld [vmem:[#allocation5 + $0x168] sm:$0xff] }
 0x382   :  { %2397 = vmatprep.mubr.f32.mxu0 %v12301_v42 }
 0x384   :  { %v6870_v1 = vpop.f32.mrb[34].mxu0 }
 0x385   :  { %v1930_v36 = vpop.f32.mrb[35].mxu0  ;;  %2398 = vmatmul.mubr.f32.gmra.mrb[112].mxu0 %v2103_v13  ;;  %v7321_v13 = vpack.c.bf16 %v3164_v40, %v3163_v63  ;;  %v1921_v40 = vadd.f32 %v9495_v27, %v1920_v32  ;;  %v1936_v32 = vadd.f32 %v6870_v1, %v9495_v27 }
 0x386   :  { %2403 = vmatprep.mubr.f32.mxu0 %v12301_v42  ;;  %v1931_v35 = vadd.f32 %v9495_v27, %v1930_v36 }
 0x387   :  { %7322 = vmatprep.subr.bf16.mxu1 %v7321_v13 }
 0x388   :  { %7324 = vmatpush3.bf16.msra.mxu1 %v7321_v13  ;;  %v2110_v13 = vmax.f32 %v1916_v8, 0.0  ;;  %v2114_v8 = vmax.f32 %v1936_v32, 0.0 }
 0x389   :  { %2404 = vmatmul.mubr.f32.gmra.mrb[114].mxu0 %v2104_v54  ;;  %v3166_v54 = vld [vmem:[#allocation5 + $0x178] sm:$0xff] }
 0x38a   :  { %2409 = vmatprep.mubr.f32.mxu0 %v12301_v42  ;;  %v7325_v12 = vpack.c.bf16 %v3166_v54, %v3165_v41  ;;  %v2112_v41 = vmax.f32 %v1926_v51, 0.0  ;;  %v2113_v54 = vmax.f32 %v1931_v35, 0.0 }
 0x38c   :  { %v6873_v18 = vpop.f32.mrb[36].mxu0  ;;  %7326 = vmatprep.subr.bf16.mxu1 %v7325_v12 }
 0x38d   :  { %v1940_v23 = vpop.f32.mrb[37].mxu0  ;;  %2410 = vmatmul.mubr.f32.gmra.mrb[116].mxu0 %v2105_v58  ;;  %7328 = vmatpush3.bf16.msra.mxu1 %v7325_v12  ;;  %v2111_v12 = vmax.f32 %v1921_v40, 0.0  ;;  %v1946_v36 = vadd.f32 %v6873_v18, %v9495_v27 }
 0x38e   :  { %2415 = vmatprep.mubr.f32.mxu0 %v12301_v42  ;;  %v1941_v16 = vadd.f32 %v9495_v27, %v1940_v23 }
 0x38f   :  { %v2116_v51 = vmax.f32 %v1946_v36, 0.0 }
 0x391   :  { %2416 = vmatmul.mubr.f32.gmra.mrb[118].mxu0 %v2106_v15 }
 0x392   :  { %2421 = vmatprep.mubr.f32.mxu0 %v12301_v42 }
 0x394   :  { %v6876_v38 = vpop.f32.mrb[38].mxu0 }
 0x395   :  { %v1950_v58 = vpop.f32.mrb[39].mxu0  ;;  %2422 = vmatmul.mubr.f32.gmra.mrb[120].mxu0 %v2107_v39  ;;  %v1956_v23 = vadd.f32 %v6876_v38, %v9495_v27 }
 0x396   :  { %2427 = vmatprep.mubr.f32.mxu0 %v12301_v42  ;;  %v1951_v1 = vadd.f32 %v9495_v27, %v1950_v58 }
 0x397   :  { %v2118_v32 = vmax.f32 %v1956_v23, 0.0 }
 0x399   :  { %2428 = vmatmul.mubr.f32.gmra.mrb[122].mxu0 %v2108_v61 }
 0x39a   :  { %2433 = vmatprep.mubr.f32.mxu0 %v12301_v42 }
 0x39c   :  { %v6879_v15 = vpop.f32.mrb[40].mxu0 }
 0x39d   :  { %v1960_v63 = vpop.f32.mrb[41].mxu0  ;;  %2434 = vmatmul.mubr.f32.gmra.mrb[124].mxu0 %v2109_v56  ;;  %v2115_v56 = vmax.f32 %v1941_v16, 0.0  ;;  %v1966_v58 = vadd.f32 %v6879_v15, %v9495_v27 }
 0x39e   :  { %2439 = vmatprep.mubr.f32.mxu0 %v12301_v42  ;;  %v1961_v18 = vadd.f32 %v9495_v27, %v1960_v63 }
 0x39f   :  { %v2120_v36 = vmax.f32 %v1966_v58, 0.0 }
 0x3a1   :  { %2440 = vmatmul.mubr.f32.gmra.mrb[126].mxu0 %v2110_v13 }
 0x3a2   :  { %2445 = vmatprep.mubr.f32.mxu0 %v12301_v42 }
 0x3a4   :  { %v6882_v34 = vpop.f32.mrb[42].mxu0 }
 0x3a5   :  { %v1970_v39 = vpop.f32.mrb[43].mxu0  ;;  %2446 = vmatmul.mubr.f32.gmra.mrb[128].mxu0 %v2111_v12  ;;  %v2117_v12 = vmax.f32 %v1951_v1, 0.0  ;;  %v1976_v63 = vadd.f32 %v6882_v34, %v9495_v27 }
 0x3a6   :  { %2451 = vmatprep.mubr.f32.mxu0 %v12301_v42  ;;  %v1971_v38 = vadd.f32 %v9495_v27, %v1970_v39 }
 0x3a7   :  { %v2122_v23 = vmax.f32 %v1976_v63, 0.0 }
 0x3a9   :  { %2452 = vmatmul.mubr.f32.gmra.mrb[130].mxu0 %v2112_v41 }
 0x3aa   :  { %2457 = vmatprep.mubr.f32.mxu0 %v12301_v42 }
 0x3ac   :  { %v6885_v11 = vpop.f32.mrb[44].mxu0 }
 0x3ad   :  { %v1980_v61 = vpop.f32.mrb[45].mxu0  ;;  %2458 = vmatmul.mubr.f32.gmra.mrb[132].mxu0 %v2113_v54  ;;  %v2119_v54 = vmax.f32 %v1961_v18, 0.0  ;;  %v1986_v39 = vadd.f32 %v6885_v11, %v9495_v27 }
 0x3ae   :  { %2463 = vmatprep.mubr.f32.mxu0 %v12301_v42  ;;  %v1981_v15 = vadd.f32 %v9495_v27, %v1980_v61 }
 0x3af   :  { %v2124_v58 = vmax.f32 %v1986_v39, 0.0 }
 0x3b1   :  { %2464 = vmatmul.mubr.f32.gmra.mrb[134].mxu0 %v2114_v8 }
 0x3b2   :  { %2469 = vmatprep.mubr.f32.mxu0 %v12301_v42 }
 0x3b4   :  { %v6888_v40 = vpop.f32.mrb[46].mxu0 }
 0x3b5   :  { %v1990_v13 = vpop.f32.mrb[47].mxu0  ;;  %2470 = vmatmul.mubr.f32.gmra.mrb[136].mxu0 %v2115_v56  ;;  %v2121_v56 = vmax.f32 %v1971_v38, 0.0  ;;  %v1996_v61 = vadd.f32 %v6888_v40, %v9495_v27 }
 0x3b6   :  { %2475 = vmatprep.mubr.f32.mxu0 %v12301_v42  ;;  %v1991_v34 = vadd.f32 %v9495_v27, %v1990_v13 }
 0x3b7   :  { %v2126_v63 = vmax.f32 %v1996_v61, 0.0 }
 0x3b9   :  { %2476 = vmatmul.mubr.f32.gmra.mrb[138].mxu0 %v2116_v51 }
 0x3ba   :  { %2481 = vmatprep.mubr.f32.mxu0 %v12301_v42 }
 0x3bc   :  { %v6891_v35 = vpop.f32.mrb[48].mxu0 }
 0x3bd   :  { %v2000_v41 = vpop.f32.mrb[49].mxu0  ;;  %2482 = vmatmul.mubr.f32.gmra.mrb[140].mxu0 %v2117_v12  ;;  %v2123_v12 = vmax.f32 %v1981_v15, 0.0  ;;  %v2006_v13 = vadd.f32 %v6891_v35, %v9495_v27 }
 0x3be   :  { %2487 = vmatprep.mubr.f32.mxu0 %v12301_v42  ;;  %v2001_v11 = vadd.f32 %v9495_v27, %v2000_v41 }
 0x3bf   :  { %v2128_v39 = vmax.f32 %v2006_v13, 0.0 }
 0x3c1   :  { %2488 = vmatmul.mubr.f32.gmra.mrb[142].mxu0 %v2118_v32 }
 0x3c2   :  { %2493 = vmatprep.mubr.f32.mxu0 %v12301_v42 }
 0x3c4   :  { %v6894_v16 = vpop.f32.mrb[50].mxu0 }
 0x3c5   :  { %v2010_v8 = vpop.f32.mrb[51].mxu0  ;;  %2494 = vmatmul.mubr.f32.gmra.mrb[144].mxu0 %v2119_v54  ;;  %v2125_v54 = vmax.f32 %v1991_v34, 0.0  ;;  %v2016_v41 = vadd.f32 %v6894_v16, %v9495_v27 }
 0x3c6   :  { %2499 = vmatprep.mubr.f32.mxu0 %v12301_v42  ;;  %v2011_v40 = vadd.f32 %v9495_v27, %v2010_v8  ;;  %v9622_v8 = vld [vmem:[%s12170_s4 + $0x2] sm:$0x3] }
 0x3c7   :  { %v2130_v61 = vmax.f32 %v2016_v41, 0.0 }
 0x3c9   :  { %2500 = vmatmul.mubr.f32.gmra.mrb[146].mxu0 %v2120_v36 }
 0x3ca   :  { %2505 = vmatprep.mubr.f32.mxu0 %v12301_v42 }
 0x3cc   :  { %v6897_v1 = vpop.f32.mrb[52].mxu0 }
 0x3cd   :  { %v2020_v51 = vpop.f32.mrb[53].mxu0  ;;  %2506 = vmatmul.mubr.f32.gmra.mrb[148].mxu0 %v2121_v56  ;;  %v2127_v56 = vmax.f32 %v2001_v11, 0.0  ;;  %v2026_v16 = vadd.f32 %v6897_v1, %v9495_v27 }
 0x3ce   :  { %2511 = vmatprep.mubr.f32.mxu0 %v12301_v42  ;;  %v2021_v35 = vadd.f32 %v9495_v27, %v2020_v51  ;;  %v9631_v51 = vrot.slane %v9622_v8, %v8927_v48 }
 0x3d1   :  { %2512 = vmatmul.mubr.f32.gmra.mrb[150].mxu0 %v2122_v23 }
 0x3d2   :  { %2517 = vmatprep.mubr.f32.mxu0 %v12301_v42 }
 0x3d4   :  { %v6900_v18 = vpop.f32.mrb[54].mxu0 }
 0x3d5   :  { %v2030_v32 = vpop.f32.mrb[55].mxu0  ;;  %2518 = vmatmul.mubr.f32.gmra.mrb[152].mxu0 %v2123_v12  ;;  %v2129_v12 = vmax.f32 %v2011_v40, 0.0  ;;  %v2036_v1 = vadd.f32 %v6900_v18, %v9495_v27 }
 0x3d6   :  { %2523 = vmatprep.mubr.f32.mxu0 %v12301_v42  ;;  %v2031_v13 = vadd.f32 %v9495_v27, %v2030_v32 }
 0x3d9   :  { %2524 = vmatmul.mubr.f32.gmra.mrb[154].mxu0 %v2124_v58 }
 0x3da   :  { %2529 = vmatprep.mubr.f32.mxu0 %v12301_v42 }
 0x3dc   :  { %v6903_v38 = vpop.f32.mrb[56].mxu0 }
 0x3dd   :  { %v2040_v36 = vpop.f32.mrb[57].mxu0  ;;  %2530 = vmatmul.mubr.f32.gmra.mrb[156].mxu0 %v2125_v54  ;;  %v2131_v54 = vmax.f32 %v2021_v35, 0.0  ;;  %v2046_v18 = vadd.f32 %v6903_v38, %v9495_v27 }
 0x3de   :  { %2535 = vmatprep.mubr.f32.mxu0 %v12301_v42  ;;  %v2041_v32 = vadd.f32 %v9495_v27, %v2040_v36 }
 0x3e1   :  { %2536 = vmatmul.mubr.f32.gmra.mrb[158].mxu0 %v2126_v63 }
 0x3e2   :  { %2541 = vmatprep.mubr.f32.mxu0 %v12301_v42 }
 0x3e4   :  { %v9606_v15 = vpop.f32.mrb[58].mxu0 }
 0x3e5   :  { %v2050_v23 = vpop.f32.mrb[59].mxu0  ;;  %2542 = vmatmul.mubr.f32.gmra.mrb[160].mxu0 %v2127_v56  ;;  %v2132_v56 = vmax.f32 %v2026_v16, 0.0  ;;  %v2134_v16 = vmax.f32 %v2036_v1, 0.0 }
 0x3e6   :  { %2547 = vmatprep.mubr.f32.mxu0 %v12301_v42  ;;  %v2051_v1 = vadd.f32 %v9495_v27, %v2050_v23 }
 0x3e9   :  { %2548 = vmatmul.mubr.f32.gmra.mrb[162].mxu0 %v2128_v39 }
 0x3ea   :  { %2553 = vmatprep.mubr.f32.mxu0 %v12301_v42 }
 0x3ec   :  { %v9612_v34 = vpop.f32.mrb[60].mxu0 }
 0x3ed   :  { %v9614_v58 = vpop.f32.mrb[61].mxu0  ;;  %2554 = vmatmul.mubr.f32.gmra.mrb[164].mxu0 %v2129_v12  ;;  %v2133_v12 = vmax.f32 %v2031_v13, 0.0  ;;  %v2135_v13 = vmax.f32 %v2041_v32, 0.0 }
 0x3ee   :  { %2559 = vmatprep.mubr.f32.mxu0 %v12301_v42 }
 0x3f1   :  { %2560 = vmatmul.mubr.f32.gmra.mrb[166].mxu0 %v2130_v61 }
 0x3f2   :  { %2565 = vmatprep.mubr.f32.mxu0 %v12301_v42 }
 0x3f4   :  { %v9625_v11 = vpop.f32.mrb[62].mxu0 }
 0x3f5   :  { %v9627_v63 = vpop.f32.mrb[63].mxu0  ;;  %2566 = vmatmul.mubr.f32.gmra.mrb[168].mxu0 %v2131_v54 }
 0x3f6   :  { %2571 = vmatprep.mubr.f32.mxu0 %v12301_v42 }
 0x3f8   :  { %v2255_v40 = vpop.f32.mrb[64].mxu0 }
 0x3f9   :  { %v2256_v39 = vadd.f32 %v2255_v40, %v9631_v51  ;;  %v9636_v41 = vpop.f32.mrb[65].mxu0  ;;  %2572 = vmatmul.mubr.f32.gmra.mrb[170].mxu0 %v2132_v56 }
 0x3fa   :  { %2577 = vmatprep.mubr.f32.mxu0 %v12301_v42 }
 0x3fb   :  { %7690 = vtanh.f32 %v2256_v39 }
 0x3fc   :  { %v2261_v35 = vpop.f32.mrb[66].mxu0 }
 0x3fd   :  { %v2262_v61 = vadd.f32 %v2261_v35, %v9631_v51  ;;  %v9641_v54 = vpop.f32.mrb[67].mxu0  ;;  %2578 = vmatmul.mubr.f32.gmra.mrb[172].mxu0 %v2133_v12 }
 0x3fe   :  { %2583 = vmatprep.mubr.f32.mxu0 %v12301_v42 }
 0x3ff   :  { %7692 = vtanh.f32 %v2262_v61  ;;  %v2136_v61 = vmax.f32 %v2046_v18, 0.0 }
 0x400   :  { %v2267_v40 = vpop.f32.mrb[68].mxu0 }
 0x401   :  { %v2268_v56 = vadd.f32 %v2267_v40, %v9631_v51  ;;  %v9646_v53 = vpop.f32.mrb[69].mxu0  ;;  %2584 = vmatmul.mubr.f32.gmra.mrb[174].mxu0 %v2134_v16 }
 0x402   :  { %2589 = vmatprep.mubr.f32.mxu0 %v12301_v42 }
 0x403   :  { %7694 = vtanh.f32 %v2268_v56 }
 0x404   :  { %v2273_v39 = vpop.f32.mrb[70].mxu0 }
 0x405   :  { %v7691_v12 = vpop.eup %7690  ;;  %v2274_v35 = vadd.f32 %v2273_v39, %v9631_v51  ;;  %v9651_v46 = vpop.f32.mrb[71].mxu0  ;;  %2590 = vmatmul.mubr.f32.gmra.mrb[176].mxu0 %v2135_v13  ;;  %v2056_v13 = vadd.f32 %v9606_v15, %v9495_v27  ;;  %v2137_v39 = vmax.f32 %v2051_v1, 0.0  ;;  %v9669_v15 = vrot.slane %v9622_v8, %v8974_v30 }
 0x406   :  { %v2702_v36 = vmul.f32 1.442695, %v7691_v12  ;;  %2958 = vadd.xlane.f32.xlu0 %v7691_v12  ;;  %2595 = vmatprep.mubr.f32.mxu0 %v12301_v42 }
 0x407   :  { %7696 = vtanh.f32 %v2274_v35  ;;  %v2138_v1 = vmax.f32 %v2056_v13, 0.0  ;;  %v8458_v13 = vld [vmem:[#allocation2] sm:$0xff] }
 0x408   :  { %7698 = vpow2.f32 %v2702_v36  ;;  %v2279_v16 = vpop.f32.mrb[72].mxu0 }
 0x409   :  { %v7693_v38 = vpop.eup %7692  ;;  %v2280_v32 = vadd.f32 %v2279_v16, %v9631_v51  ;;  %v9656_v40 = vpop.f32.mrb[73].mxu0  ;;  %2596 = vmatmul.mubr.f32.gmra.mrb[178].mxu0 %v2136_v61  ;;  %v2061_v61 = vadd.f32 %v9495_v27, %v9614_v58  ;;  %v2258_v58 = vadd.f32 %v9636_v41, %v9669_v15 }
 0x40a   :  { %v2704_v56 = vmul.f32 1.442695, %v7693_v38  ;;  %2960 = vadd.xlane.f32.xlu1 %v7693_v38  ;;  %2601 = vmatprep.mubr.f32.mxu0 %v12301_v42 }
 0x40b   :  { %7700 = vtanh.f32 %v2280_v32  ;;  %v2139_v8 = vmax.f32 %v2061_v61, 0.0  ;;  %v2071_v61 = vadd.f32 %v9495_v27, %v9627_v63  ;;  %v2076_v63 = vadd.f32 %v9625_v11, %v9495_v27 }
 0x40c   :  { %7702 = vpow2.f32 %v2704_v56  ;;  %v2285_v23 = vpop.f32.mrb[74].mxu0 }
 0x40d   :  { %v7695_v18 = vpop.eup %7694  ;;  %v2286_v12 = vadd.f32 %v2285_v23, %v9631_v51  ;;  %v9662_v35 = vpop.f32.mrb[75].mxu0  ;;  %2602 = vmatmul.mubr.f32.gmra.mrb[180].mxu0 %v2137_v39  ;;  %v2066_v23 = vadd.f32 %v9612_v34, %v9495_v27 }
 0x40e   :  { %v2706_v36 = vmul.f32 1.442695, %v7695_v18  ;;  %2962 = vadd.xlane.f32.xlu0 %v7695_v18  ;;  %2607 = vmatprep.mubr.f32.mxu0 %v12301_v42 }
 0x40f   :  { %7704 = vtanh.f32 %v2286_v12  ;;  %v2140_v41 = vmax.f32 %v2066_v23, 0.0 }
 0x410   :  { %7706 = vpow2.f32 %v2706_v36  ;;  %v2291_v16 = vpop.f32.mrb[76].mxu0 }
 0x411   :  { %v7697_v38 = vpop.eup %7696  ;;  %v2292_v32 = vadd.f32 %v2291_v16, %v9631_v51  ;;  %v9672_v56 = vpop.f32.mrb[77].mxu0  ;;  %2608 = vmatmul.mubr.f32.gmra.mrb[182].mxu0 %v2138_v1 }
 0x412   :  { %v7699_v39 = vpop.eup %7698  ;;  %v2708_v18 = vmul.f32 1.442695, %v7697_v38  ;;  %2964 = vadd.xlane.f32.xlu1 %v7697_v38  ;;  %2613 = vmatprep.mubr.f32.mxu0 %v12301_v42 }
 0x413   :  { %7708 = vtanh.f32 %v2292_v32  ;;  %v2830_v12 = vmul.f32 %v8458_v13, %v7699_v39  ;;  %v2264_v32 = vadd.f32 %v9641_v54, %v9669_v15  ;;  %v8459_v39 = vld [vmem:[#allocation2 + $0x10] sm:$0xff] }
 0x414   :  { %7710 = vpow2.f32 %v2708_v18  ;;  %v2297_v36 = vpop.f32.mrb[78].mxu0 }
 0x415   :  { %v7701_v16 = vpop.eup %7700  ;;  %v2298_v1 = vadd.f32 %v2297_v36, %v9631_v51  ;;  %v9680_v3 = vpop.f32.mrb[79].mxu0  ;;  %2614 = vmatmul.mubr.f32.gmra.mrb[184].mxu0 %v2139_v8  ;;  %v9682_v34 = vadd.f32 %v2830_v12, %v2258_v58 }
 0x416   :  { %v7703_v38 = vpop.eup %7702  ;;  %v2710_v24 = vmul.f32 1.442695, %v7701_v16  ;;  %2966 = vadd.xlane.f32.xlu0 %v7701_v16  ;;  %2619 = vmatprep.mubr.f32.mxu0 %v12301_v42  ;;  %v2141_v16 = vmax.f32 %v2071_v61, 0.0  ;;  %v2142_v61 = vmax.f32 %v2076_v63, 0.0  ;;  %v8462_v63 = vld [vmem:[#allocation2 + $0x40] sm:$0xff] }
 0x417   :  { %12302 = vst [vmem:[#allocation43_spill] sm:$0xff] %v9682_v34  ;;  %v2831_v18 = vmul.f32 %v8459_v39, %v7703_v38  ;;  %7712 = vtanh.f32 %v2298_v1  ;;  %6945 = vmatprep.mubr.f32.mxu1 %v9682_v34  ;;  %v8460_v1 = vld [vmem:[#allocation2 + $0x20] sm:$0xff] }
 0x418   :  { %7714 = vpow2.f32 %v2710_v24  ;;  %v2303_v58 = vpop.f32.mrb[80].mxu0  ;;  %v2270_v24 = vadd.f32 %v9646_v53, %v9669_v15  ;;  %v2276_v53 = vadd.f32 %v9651_v46, %v9669_v15  ;;  %v2282_v46 = vadd.f32 %v9656_v40, %v9669_v15 }
 0x419   :  { %v7705_v8 = vpop.eup %7704  ;;  %v9690_v13 = vadd.f32 %v2831_v18, %v2264_v32  ;;  %v2304_v12 = vadd.f32 %v2303_v58, %v9631_v51  ;;  %v9693_v36 = vpop.f32.mrb[81].mxu0  ;;  %2620 = vmatmul.mubr.f32.gmra.mrb[186].mxu0 %v2140_v41  ;;  %v2288_v40 = vadd.f32 %v9662_v35, %v9669_v15  ;;  %v2294_v35 = vadd.f32 %v9672_v56, %v9669_v15 }
 0x41a   :  { %v7707_v23 = vpop.eup %7706  ;;  %v2712_v54 = vmul.f32 1.442695, %v7705_v8  ;;  %2968 = vadd.xlane.f32.xlu1 %v7705_v8  ;;  %2625 = vmatprep.mubr.f32.mxu0 %v12301_v42  ;;  %v8461_v8 = vld [vmem:[#allocation2 + $0x30] sm:$0xff]  ;;  %v2300_v56 = vadd.f32 %v9680_v3, %v9669_v15 }
 0x41b   :  { %12303 = vst [vmem:[#allocation44_spill] sm:$0xff] %v9690_v13  ;;  %7716 = vtanh.f32 %v2304_v12  ;;  %6946 = vmatmul.mubr.f32.vlgmr.msra.gmra.mrb[192].mxu1 %v9690_v13  ;;  %v2832_v38 = vmul.f32 %v8460_v1, %v7707_v23 }
 0x41c   :  { %7718 = vpow2.f32 %v2712_v54  ;;  %v2309_v32 = vpop.f32.mrb[82].mxu0 }
 0x41d   :  { %v7709_v41 = vpop.eup %7708  ;;  %v2310_v39 = vadd.f32 %v2309_v32, %v9631_v51  ;;  %v9702_v18 = vpop.f32.mrb[83].mxu0  ;;  %2626 = vmatmul.mubr.f32.gmra.mrb[188].mxu0 %v2141_v16  ;;  %v9704_v27 = vadd.f32 %v2832_v38, %v2270_v24 }
 0x41e   :  { %v7711_v11 = vpop.eup %7710  ;;  %v2714_v58 = vmul.f32 1.442695, %v7709_v41  ;;  %2970 = vadd.xlane.f32.xlu0 %v7709_v41  ;;  %2631 = vmatprep.mubr.f32.mxu0 %v12301_v42 }
 0x41f   :  { %12304 = vst [vmem:[#allocation45_spill] sm:$0xff] %v9704_v27  ;;  %7720 = vtanh.f32 %v2310_v39  ;;  %6948 = vmatprep.mubr.f32.mxu1 %v9704_v27  ;;  %v2833_v12 = vmul.f32 %v8461_v8, %v7711_v11 }
 0x420   :  { %7722 = vpow2.f32 %v2714_v58  ;;  %v2315_v23 = vpop.f32.mrb[84].mxu0 }
 0x421   :  { %v7713_v54 = vpop.eup %7712  ;;  %v2316_v24 = vadd.f32 %v2315_v23, %v9631_v51  ;;  %v9711_v16 = vpop.f32.mrb[85].mxu0  ;;  %2632 = vmatmul.mubr.f32.gmra.mrb[190].mxu0 %v2142_v61  ;;  %v9713_v1 = vadd.f32 %v2833_v12, %v2276_v53  ;;  %v8463_v23 = vld [vmem:[#allocation2 + $0x50] sm:$0xff] }
 0x422   :  { %v7715_v38 = vpop.eup %7714  ;;  %v2716_v32 = vmul.f32 1.442695, %v7713_v54  ;;  %2972 = vadd.xlane.f32.xlu1 %v7713_v54 }
 0x423   :  { %12305 = vst [vmem:[#allocation46_spill] sm:$0xff] %v9713_v1  ;;  %7724 = vtanh.f32 %v2316_v24  ;;  %6949 = vmatmul.mubr.f32.gmra.mrb[194].mxu1 %v9713_v1  ;;  %v2834_v41 = vmul.f32 %v8462_v63, %v7715_v38 }
 0x424   :  { %7726 = vpow2.f32 %v2716_v32  ;;  %v2321_v39 = vpop.f32.mrb[86].mxu0 }
 0x425   :  { %v7717_v11 = vpop.eup %7716  ;;  %v2322_v58 = vadd.f32 %v2321_v39, %v9631_v51  ;;  %v9719_v8 = vpop.f32.mrb[87].mxu0  ;;  %v9721_v53 = vadd.f32 %v2834_v41, %v2282_v46 }
 0x426   :  { %v7719_v61 = vpop.eup %7718  ;;  %v2718_v12 = vmul.f32 1.442695, %v7717_v11  ;;  %2974 = vadd.xlane.f32.xlu0 %v7717_v11  ;;  %v8464_v11 = vld [vmem:[#allocation2 + $0x60] sm:$0xff] }
 0x427   :  { %12306 = vst [vmem:[#allocation47_spill] sm:$0xff] %v9721_v53  ;;  %7728 = vtanh.f32 %v2322_v58  ;;  %6951 = vmatprep.mubr.f32.mxu1 %v9721_v53  ;;  %v2835_v54 = vmul.f32 %v8463_v23, %v7719_v61 }
 0x428   :  { %7730 = vpow2.f32 %v2718_v12  ;;  %v2327_v24 = vpop.f32.mrb[88].mxu0 }
 0x429   :  { %v7721_v38 = vpop.eup %7720  ;;  %v2328_v32 = vadd.f32 %v2327_v24, %v9631_v51  ;;  %v9727_v63 = vpop.f32.mrb[89].mxu0  ;;  %v9729_v46 = vadd.f32 %v2835_v54, %v2288_v40 }
 0x42a   :  { %v7723_v41 = vpop.eup %7722  ;;  %v2720_v39 = vmul.f32 1.442695, %v7721_v38  ;;  %2976 = vadd.xlane.f32.xlu1 %v7721_v38  ;;  %v8465_v38 = vld [vmem:[#allocation2 + $0x70] sm:$0xff] }
 0x42b   :  { %12307 = vst [vmem:[#allocation48_spill] sm:$0xff] %v9729_v46  ;;  %7732 = vtanh.f32 %v2328_v32  ;;  %6952 = vmatmul.mubr.f32.gmra.mrb[196].mxu1 %v9729_v46  ;;  %v2836_v58 = vmul.f32 %v8464_v11, %v7723_v41  ;;  %v3628_v46 = vld [vmem:[#allocation7 + $0x218] sm:$0xff] }
 0x42c   :  { %7734 = vpow2.f32 %v2720_v39  ;;  %v2333_v61 = vpop.f32.mrb[90].mxu0 }
 0x42d   :  { %v7725_v12 = vpop.eup %7724  ;;  %v2334_v23 = vadd.f32 %v2333_v61, %v9631_v51  ;;  %v9735_v24 = vpop.f32.mrb[91].mxu0  ;;  %v9737_v40 = vadd.f32 %v2836_v58, %v2294_v35  ;;  %v3626_v58 = vld [vmem:[#allocation7 + $0x208] sm:$0xff] }
 0x42e   :  { %v7727_v54 = vpop.eup %7726  ;;  %v2722_v53 = vmul.f32 1.442695, %v7725_v12  ;;  %2978 = vadd.xlane.f32.xlu0 %v7725_v12  ;;  %v3625_v12 = vld [vmem:[#allocation7 + $0x200] sm:$0xff]  ;;  %v7329_v3 = vpack.c.bf16 %v3628_v46, %v3626_v58 }
 0x42f   :  { %12308 = vst [vmem:[#allocation49_spill] sm:$0xff] %v9737_v40  ;;  %7736 = vtanh.f32 %v2334_v23  ;;  %6954 = vmatprep.mubr.f32.mxu1 %v9737_v40  ;;  %v2837_v32 = vmul.f32 %v8465_v38, %v7727_v54  ;;  %v3627_v23 = vld [vmem:[#allocation7 + $0x210] sm:$0xff]  ;;  %v2306_v54 = vadd.f32 %v9693_v36, %v9669_v15  ;;  %v2312_v36 = vadd.f32 %v9702_v18, %v9669_v15 }
 0x430   :  { %7738 = vpow2.f32 %v2722_v53  ;;  %v2339_v41 = vpop.f32.mrb[92].mxu0  ;;  %v8466_v53 = vld [vmem:[#allocation2 + $0x80] sm:$0xff]  ;;  %7330 = vmatprep.subr.bf16.mxu1 %v7329_v3  ;;  %v2318_v18 = vadd.f32 %v9711_v16, %v9669_v15  ;;  %v2324_v16 = vadd.f32 %v9719_v8, %v9669_v15 }
 0x431   :  { %v7729_v39 = vpop.eup %7728  ;;  %v2340_v11 = vadd.f32 %v2339_v41, %v9631_v51  ;;  %v9743_v61 = vpop.f32.mrb[93].mxu0  ;;  %v9745_v35 = vadd.f32 %v2837_v32, %v2300_v56  ;;  %v7331_v41 = vpack.c.bf16 %v3627_v23, %v3625_v12 }
 0x432   :  { %v7731_v1 = vpop.eup %7730  ;;  %v2724_v27 = vmul.f32 1.442695, %v7729_v39  ;;  %2980 = vadd.xlane.f32.xlu1 %v7729_v39 }
 0x433   :  { %12309 = vst [vmem:[#allocation50_spill] sm:$0xff] %v9745_v35  ;;  %7740 = vtanh.f32 %v2340_v11  ;;  %6955 = vmatmul.mubr.f32.gmra.mrb[198].mxu1 %v9745_v35  ;;  %v2838_v38 = vmul.f32 %v8466_v53, %v7731_v1 }
 0x434   :  { %7742 = vpow2.f32 %v2724_v27  ;;  %v2345_v56 = vpop.f32.mrb[94].mxu0  ;;  %7332 = vmatpush1.bf16.msra.mxu1 %v7331_v41  ;;  %v8467_v27 = vld [vmem:[#allocation2 + $0x90] sm:$0xff] }
 0x435   :  { %v7733_v32 = vpop.eup %7732  ;;  %v2346_v40 = vadd.f32 %v2345_v56, %v9631_v51  ;;  %v9751_v13 = vpop.f32.mrb[95].mxu0  ;;  %v9753_v39 = vadd.f32 %v2838_v38, %v2306_v54 }
 0x436   :  { %v7735_v46 = vpop.eup %7734  ;;  %v2726_v58 = vmul.f32 1.442695, %v7733_v32  ;;  %2982 = vadd.xlane.f32.xlu0 %v7733_v32 }
 0x437   :  { %12310 = vst [vmem:[#allocation51_spill] sm:$0xff] %v9753_v39  ;;  %7744 = vtanh.f32 %v2346_v40  ;;  %6957 = vmatprep.mubr.f32.mxu1 %v9753_v39  ;;  %v2839_v1 = vmul.f32 %v8467_v27, %v7735_v46  ;;  %v8468_v40 = vld [vmem:[#allocation2 + $0xa0] sm:$0xff] }
 0x438   :  { %7746 = vpow2.f32 %v2726_v58  ;;  %v2351_v11 = vpop.f32.mrb[96].mxu0 }
 0x439   :  { %v7737_v12 = vpop.eup %7736  ;;  %v2352_v3 = vadd.f32 %v2351_v11, %v9631_v51  ;;  %v9759_v23 = vpop.f32.mrb[97].mxu0  ;;  %v9761_v54 = vadd.f32 %v2839_v1, %v2312_v36  ;;  %v8469_v11 = vld [vmem:[#allocation2 + $0xb0] sm:$0xff] }
 0x43a   :  { %v7739_v53 = vpop.eup %7738  ;;  %v2728_v38 = vmul.f32 1.442695, %v7737_v12  ;;  %2984 = vadd.xlane.f32.xlu1 %v7737_v12 }
 0x43b   :  { %12311 = vst [vmem:[#allocation52_spill] sm:$0xff] %v9761_v54  ;;  %7748 = vtanh.f32 %v2352_v3  ;;  %6958 = vmatmul.mubr.f32.gmra.mrb[200].mxu1 %v9761_v54  ;;  %v2840_v41 = vmul.f32 %v8468_v40, %v7739_v53 }
 0x43c   :  { %7750 = vpow2.f32 %v2728_v38  ;;  %v2357_v56 = vpop.f32.mrb[98].mxu0 }
 0x43d   :  { %v7741_v32 = vpop.eup %7740  ;;  %v2358_v46 = vadd.f32 %v2357_v56, %v9631_v51  ;;  %v9767_v58 = vpop.f32.mrb[99].mxu0  ;;  %v9769_v36 = vadd.f32 %v2840_v41, %v2318_v18  ;;  %v3630_v41 = vld [vmem:[#allocation7 + $0x228] sm:$0xff]  ;;  %v3632_v56 = vld [vmem:[#allocation7 + $0x238] sm:$0xff] }
 0x43e   :  { %v7743_v27 = vpop.eup %7742  ;;  %v2730_v1 = vmul.f32 1.442695, %v7741_v32  ;;  %2986 = vadd.xlane.f32.xlu0 %v7741_v32  ;;  %v3629_v32 = vld [vmem:[#allocation7 + $0x220] sm:$0xff]  ;;  %v7333_v8 = vpack.c.bf16 %v3632_v56, %v3630_v41 }
 0x43f   :  { %12312 = vst [vmem:[#allocation53_spill] sm:$0xff] %v9769_v36  ;;  %7752 = vtanh.f32 %v2358_v46  ;;  %6960 = vmatprep.mubr.f32.mxu1 %v9769_v36  ;;  %v2841_v12 = vmul.f32 %v8469_v11, %v7743_v27  ;;  %v3631_v46 = vld [vmem:[#allocation7 + $0x230] sm:$0xff]  ;;  %v2330_v27 = vadd.f32 %v9727_v63, %v9669_v15  ;;  %v2336_v63 = vadd.f32 %v9735_v24, %v9669_v15 }
 0x440   :  { %7754 = vpow2.f32 %v2730_v1  ;;  %v2363_v3 = vpop.f32.mrb[100].mxu0  ;;  %v8470_v1 = vld [vmem:[#allocation2 + $0xc0] sm:$0xff]  ;;  %7334 = vmatprep.subr.bf16.mxu1 %v7333_v8  ;;  %v2342_v24 = vadd.f32 %v9743_v61, %v9669_v15  ;;  %v2348_v61 = vadd.f32 %v9751_v13, %v9669_v15 }
 0x441   :  { %v7745_v53 = vpop.eup %7744  ;;  %v2364_v38 = vadd.f32 %v2363_v3, %v9631_v51  ;;  %v9775_v40 = vpop.f32.mrb[101].mxu0  ;;  %v9777_v18 = vadd.f32 %v2841_v12, %v2324_v16  ;;  %v7335_v3 = vpack.c.bf16 %v3631_v46, %v3629_v32 }
 0x442   :  { %v7747_v54 = vpop.eup %7746  ;;  %v2732_v39 = vmul.f32 1.442695, %v7745_v53  ;;  %2988 = vadd.xlane.f32.xlu1 %v7745_v53 }
 0x443   :  { %12313 = vst [vmem:[#allocation54_spill] sm:$0xff] %v9777_v18  ;;  %7756 = vtanh.f32 %v2364_v38  ;;  %6961 = vmatmul.mubr.f32.gmra.mrb[202].mxu1 %v9777_v18  ;;  %v2842_v11 = vmul.f32 %v8470_v1, %v7747_v54 }
 0x444   :  { %7758 = vpow2.f32 %v2732_v39  ;;  %v2369_v16 = vpop.f32.mrb[102].mxu0  ;;  %7336 = vmatpush1.bf16.msra.mxu1 %v7335_v3  ;;  %v8471_v39 = vld [vmem:[#allocation2 + $0xd0] sm:$0xff] }
 0x445   :  { %v7749_v12 = vpop.eup %7748  ;;  %v2370_v36 = vadd.f32 %v2369_v16, %v9631_v51  ;;  %v9783_v35 = vpop.f32.mrb[103].mxu0  ;;  %v9785_v53 = vadd.f32 %v2842_v11, %v2330_v27 }
 0x446   :  { %v7751_v41 = vpop.eup %7750  ;;  %v2734_v56 = vmul.f32 1.442695, %v7749_v12  ;;  %2990 = vadd.xlane.f32.xlu0 %v7749_v12 }
 0x447   :  { %12314 = vst [vmem:[#allocation55_spill] sm:$0xff] %v9785_v53  ;;  %7760 = vtanh.f32 %v2370_v36  ;;  %6963 = vmatprep.mubr.f32.mxu1 %v9785_v53  ;;  %v2843_v54 = vmul.f32 %v8471_v39, %v7751_v41  ;;  %v8472_v36 = vld [vmem:[#allocation2 + $0xe0] sm:$0xff] }
 0x448   :  { %7762 = vpow2.f32 %v2734_v56  ;;  %v2375_v38 = vpop.f32.mrb[104].mxu0 }
 0x449   :  { %v7753_v32 = vpop.eup %7752  ;;  %v2376_v8 = vadd.f32 %v2375_v38, %v9631_v51  ;;  %v9791_v46 = vpop.f32.mrb[105].mxu0  ;;  %v9793_v27 = vadd.f32 %v2843_v54, %v2336_v63  ;;  %v8473_v38 = vld [vmem:[#allocation2 + $0xf0] sm:$0xff] }
 0x44a   :  { %v7755_v1 = vpop.eup %7754  ;;  %v2736_v11 = vmul.f32 1.442695, %v7753_v32  ;;  %2992 = vadd.xlane.f32.xlu1 %v7753_v32 }
 0x44b   :  { %12315 = vst [vmem:[#allocation56_spill] sm:$0xff] %v9793_v27  ;;  %7764 = vtanh.f32 %v2376_v8  ;;  %6964 = vmatmul.mubr.f32.gmra.mrb[204].mxu1 %v9793_v27  ;;  %v2844_v3 = vmul.f32 %v8472_v36, %v7755_v1 }
 0x44c   :  { %7766 = vpow2.f32 %v2736_v11  ;;  %v2381_v16 = vpop.f32.mrb[106].mxu0 }
 0x44d   :  { %v7757_v12 = vpop.eup %7756  ;;  %v2382_v41 = vadd.f32 %v2381_v16, %v9631_v51  ;;  %v9799_v56 = vpop.f32.mrb[107].mxu0  ;;  %v9801_v63 = vadd.f32 %v2844_v3, %v2342_v24  ;;  %v3634_v3 = vld [vmem:[#allocation7 + $0x248] sm:$0xff]  ;;  %v3636_v16 = vld [vmem:[#allocation7 + $0x258] sm:$0xff] }
 0x44e   :  { %v7759_v39 = vpop.eup %7758  ;;  %v2738_v54 = vmul.f32 1.442695, %v7757_v12  ;;  %2994 = vadd.xlane.f32.xlu0 %v7757_v12  ;;  %v3633_v12 = vld [vmem:[#allocation7 + $0x240] sm:$0xff]  ;;  %v7337_v13 = vpack.c.bf16 %v3636_v16, %v3634_v3 }
 0x44f   :  { %12316 = vst [vmem:[#allocation57_spill] sm:$0xff] %v9801_v63  ;;  %7768 = vtanh.f32 %v2382_v41  ;;  %6966 = vmatprep.mubr.f32.mxu1 %v9801_v63  ;;  %v2845_v32 = vmul.f32 %v8473_v38, %v7759_v39  ;;  %v3635_v41 = vld [vmem:[#allocation7 + $0x250] sm:$0xff]  ;;  %v2354_v39 = vadd.f32 %v9759_v23, %v9669_v15  ;;  %v2360_v23 = vadd.f32 %v9767_v58, %v9669_v15 }
 0x450   :  { %7770 = vpow2.f32 %v2738_v54  ;;  %v2387_v8 = vpop.f32.mrb[108].mxu0  ;;  %v8474_v54 = vld [vmem:[#allocation2 + $0x100] sm:$0xff]  ;;  %7338 = vmatprep.subr.bf16.mxu1 %v7337_v13  ;;  %v2366_v58 = vadd.f32 %v9775_v40, %v9669_v15  ;;  %v2372_v40 = vadd.f32 %v9783_v35, %v9669_v15 }
 0x451   :  { %v7761_v1 = vpop.eup %7760  ;;  %v2388_v11 = vadd.f32 %v2387_v8, %v9631_v51  ;;  %v9807_v36 = vpop.f32.mrb[109].mxu0  ;;  %v9809_v24 = vadd.f32 %v2845_v32, %v2348_v61  ;;  %v7339_v8 = vpack.c.bf16 %v3635_v41, %v3633_v12 }
 0x452   :  { %v7763_v27 = vpop.eup %7762  ;;  %v2740_v53 = vmul.f32 1.442695, %v7761_v1  ;;  %2996 = vadd.xlane.f32.xlu1 %v7761_v1 }
 0x453   :  { %12317 = vst [vmem:[#allocation58_spill] sm:$0xff] %v9809_v24  ;;  %7772 = vtanh.f32 %v2388_v11  ;;  %6967 = vmatmul.mubr.f32.gmra.mrb[206].mxu1 %v9809_v24  ;;  %v2846_v38 = vmul.f32 %v8474_v54, %v7763_v27 }
 0x454   :  { %7774 = vpow2.f32 %v2740_v53  ;;  %v2393_v61 = vpop.f32.mrb[110].mxu0  ;;  %7340 = vmatpush1.bf16.msra.mxu1 %v7339_v8  ;;  %v8475_v53 = vld [vmem:[#allocation2 + $0x110] sm:$0xff] }
 0x455   :  { %v7765_v32 = vpop.eup %7764  ;;  %v2394_v63 = vadd.f32 %v2393_v61, %v9631_v51  ;;  %v9815_v18 = vpop.f32.mrb[111].mxu0  ;;  %v9817_v1 = vadd.f32 %v2846_v38, %v2354_v39 }
 0x456   :  { %v7767_v3 = vpop.eup %7766  ;;  %v2742_v16 = vmul.f32 1.442695, %v7765_v32  ;;  %2998 = vadd.xlane.f32.xlu0 %v7765_v32 }
 0x457   :  { %12318 = vst [vmem:[#allocation59_spill] sm:$0xff] %v9817_v1  ;;  %7776 = vtanh.f32 %v2394_v63  ;;  %6969 = vmatprep.mubr.f32.mxu1 %v9817_v1  ;;  %v2847_v27 = vmul.f32 %v8475_v53, %v7767_v3  ;;  %v8476_v63 = vld [vmem:[#allocation2 + $0x120] sm:$0xff] }
 0x458   :  { %7778 = vpow2.f32 %v2742_v16  ;;  %v2399_v11 = vpop.f32.mrb[112].mxu0 }
 0x459   :  { %v7769_v12 = vpop.eup %7768  ;;  %v2400_v13 = vadd.f32 %v2399_v11, %v9631_v51  ;;  %v9823_v41 = vpop.f32.mrb[113].mxu0  ;;  %v9825_v39 = vadd.f32 %v2847_v27, %v2360_v23  ;;  %v8477_v11 = vld [vmem:[#allocation2 + $0x130] sm:$0xff] }
 0x45a   :  { %v7771_v54 = vpop.eup %7770  ;;  %v2744_v38 = vmul.f32 1.442695, %v7769_v12  ;;  %3000 = vadd.xlane.f32.xlu1 %v7769_v12 }
 0x45b   :  { %12319 = vst [vmem:[#allocation60_spill] sm:$0xff] %v9825_v39  ;;  %7780 = vtanh.f32 %v2400_v13  ;;  %6970 = vmatmul.mubr.f32.gmra.mrb[208].mxu1 %v9825_v39  ;;  %v2848_v8 = vmul.f32 %v8476_v63, %v7771_v54 }
 0x45c   :  { %7782 = vpow2.f32 %v2744_v38  ;;  %v2405_v61 = vpop.f32.mrb[114].mxu0 }
 0x45d   :  { %v7773_v32 = vpop.eup %7772  ;;  %v2406_v3 = vadd.f32 %v2405_v61, %v9631_v51  ;;  %v9831_v16 = vpop.f32.mrb[115].mxu0  ;;  %v9833_v23 = vadd.f32 %v2848_v8, %v2366_v58  ;;  %v3638_v8 = vld [vmem:[#allocation7 + $0x268] sm:$0xff]  ;;  %v3640_v61 = vld [vmem:[#allocation7 + $0x278] sm:$0xff] }
 0x45e   :  { %v7775_v53 = vpop.eup %7774  ;;  %v2746_v27 = vmul.f32 1.442695, %v7773_v32  ;;  %3002 = vadd.xlane.f32.xlu0 %v7773_v32  ;;  %v3637_v32 = vld [vmem:[#allocation7 + $0x260] sm:$0xff]  ;;  %v7341_v35 = vpack.c.bf16 %v3640_v61, %v3638_v8 }
 0x45f   :  { %12320 = vst [vmem:[#allocation61_spill] sm:$0xff] %v9833_v23  ;;  %7784 = vtanh.f32 %v2406_v3  ;;  %6972 = vmatprep.mubr.f32.mxu1 %v9833_v23  ;;  %v2849_v12 = vmul.f32 %v8477_v11, %v7775_v53  ;;  %v3639_v3 = vld [vmem:[#allocation7 + $0x270] sm:$0xff]  ;;  %v2378_v53 = vadd.f32 %v9791_v46, %v9669_v15  ;;  %v2384_v46 = vadd.f32 %v9799_v56, %v9669_v15 }
 0x460   :  { %7786 = vpow2.f32 %v2746_v27  ;;  %v2411_v13 = vpop.f32.mrb[116].mxu0  ;;  %v8478_v27 = vld [vmem:[#allocation2 + $0x140] sm:$0xff]  ;;  %7342 = vmatprep.subr.bf16.mxu1 %v7341_v35  ;;  %v2390_v56 = vadd.f32 %v9807_v36, %v9669_v15  ;;  %v2396_v36 = vadd.f32 %v9815_v18, %v9669_v15 }
 0x461   :  { %v7777_v54 = vpop.eup %7776  ;;  %v2412_v38 = vadd.f32 %v2411_v13, %v9631_v51  ;;  %v9839_v63 = vpop.f32.mrb[117].mxu0  ;;  %v9841_v58 = vadd.f32 %v2849_v12, %v2372_v40  ;;  %v7343_v13 = vpack.c.bf16 %v3639_v3, %v3637_v32 }
 0x462   :  { %v7779_v39 = vpop.eup %7778  ;;  %v2748_v1 = vmul.f32 1.442695, %v7777_v54  ;;  %3004 = vadd.xlane.f32.xlu1 %v7777_v54 }
 0x463   :  { %12321 = vst [vmem:[#allocation62_spill] sm:$0xff] %v9841_v58  ;;  %7788 = vtanh.f32 %v2412_v38  ;;  %6973 = vmatmul.mubr.f32.gmra.mrb[210].mxu1 %v9841_v58  ;;  %v2850_v11 = vmul.f32 %v8478_v27, %v7779_v39 }
 0x464   :  { %7790 = vpow2.f32 %v2748_v1  ;;  %v2417_v40 = vpop.f32.mrb[118].mxu0  ;;  %7344 = vmatpush1.bf16.msra.mxu1 %v7343_v13  ;;  %v8479_v1 = vld [vmem:[#allocation2 + $0x150] sm:$0xff] }
 0x465   :  { %v7781_v12 = vpop.eup %7780  ;;  %v2418_v23 = vadd.f32 %v2417_v40, %v9631_v51  ;;  %v9847_v24 = vpop.f32.mrb[119].mxu0  ;;  %v9849_v54 = vadd.f32 %v2850_v11, %v2378_v53 }
 0x466   :  { %v7783_v8 = vpop.eup %7782  ;;  %v2750_v61 = vmul.f32 1.442695, %v7781_v12  ;;  %3006 = vadd.xlane.f32.xlu0 %v7781_v12 }
 0x467   :  { %12322 = vst [vmem:[#allocation63_spill] sm:$0xff] %v9849_v54  ;;  %7792 = vtanh.f32 %v2418_v23  ;;  %6975 = vmatprep.mubr.f32.mxu1 %v9849_v54  ;;  %v2851_v39 = vmul.f32 %v8479_v1, %v7783_v8  ;;  %v8480_v23 = vld [vmem:[#allocation2 + $0x160] sm:$0xff] }
 0x468   :  { %7794 = vpow2.f32 %v2750_v61  ;;  %v2423_v38 = vpop.f32.mrb[120].mxu0 }
 0x469   :  { %v7785_v32 = vpop.eup %7784  ;;  %v2424_v35 = vadd.f32 %v2423_v38, %v9631_v51  ;;  %v9855_v3 = vpop.f32.mrb[121].mxu0  ;;  %v9857_v53 = vadd.f32 %v2851_v39, %v2384_v46  ;;  %v8481_v38 = vld [vmem:[#allocation2 + $0x170] sm:$0xff] }
 0x46a   :  { %v7787_v27 = vpop.eup %7786  ;;  %v2752_v11 = vmul.f32 1.442695, %v7785_v32  ;;  %3008 = vadd.xlane.f32.xlu1 %v7785_v32 }
 0x46b   :  { %12323 = vst [vmem:[#allocation64_spill] sm:$0xff] %v9857_v53  ;;  %7796 = vtanh.f32 %v2424_v35  ;;  %6976 = vmatmul.mubr.f32.gmra.mrb[212].mxu1 %v9857_v53  ;;  %v2852_v13 = vmul.f32 %v8480_v23, %v7787_v27 }
 0x46c   :  { %7798 = vpow2.f32 %v2752_v11  ;;  %v2429_v40 = vpop.f32.mrb[122].mxu0 }
 0x46d   :  { %v7789_v12 = vpop.eup %7788  ;;  %v2430_v8 = vadd.f32 %v2429_v40, %v9631_v51  ;;  %v9863_v61 = vpop.f32.mrb[123].mxu0  ;;  %v9865_v46 = vadd.f32 %v2852_v13, %v2390_v56  ;;  %v3642_v13 = vld [vmem:[#allocation7 + $0x288] sm:$0xff]  ;;  %v3644_v40 = vld [vmem:[#allocation7 + $0x298] sm:$0xff] }
 0x46e   :  { %v7791_v1 = vpop.eup %7790  ;;  %v2754_v39 = vmul.f32 1.442695, %v7789_v12  ;;  %3010 = vadd.xlane.f32.xlu0 %v7789_v12  ;;  %v3641_v12 = vld [vmem:[#allocation7 + $0x280] sm:$0xff]  ;;  %v7345_v18 = vpack.c.bf16 %v3644_v40, %v3642_v13 }
 0x46f   :  { %12324 = vst [vmem:[#allocation65_spill] sm:$0xff] %v9865_v46  ;;  %7800 = vtanh.f32 %v2430_v8  ;;  %6978 = vmatprep.mubr.f32.mxu1 %v9865_v46  ;;  %v2853_v32 = vmul.f32 %v8481_v38, %v7791_v1  ;;  %v3643_v8 = vld [vmem:[#allocation7 + $0x290] sm:$0xff]  ;;  %v2402_v1 = vadd.f32 %v9823_v41, %v9669_v15  ;;  %v2408_v41 = vadd.f32 %v9831_v16, %v9669_v15 }
 0x470   :  { %7802 = vpow2.f32 %v2754_v39  ;;  %v2435_v35 = vpop.f32.mrb[124].mxu0  ;;  %v8482_v39 = vld [vmem:[#allocation2 + $0x180] sm:$0xff]  ;;  %7346 = vmatprep.subr.bf16.mxu1 %v7345_v18  ;;  %v2414_v16 = vadd.f32 %v9839_v63, %v9669_v15  ;;  %v2420_v63 = vadd.f32 %v9847_v24, %v9669_v15 }
 0x471   :  { %v7793_v27 = vpop.eup %7792  ;;  %v2436_v11 = vadd.f32 %v2435_v35, %v9631_v51  ;;  %v9871_v23 = vpop.f32.mrb[125].mxu0  ;;  %v9873_v56 = vadd.f32 %v2853_v32, %v2396_v36  ;;  %v7347_v35 = vpack.c.bf16 %v3643_v8, %v3641_v12 }
 0x472   :  { %v7795_v53 = vpop.eup %7794  ;;  %v2756_v54 = vmul.f32 1.442695, %v7793_v27  ;;  %3012 = vadd.xlane.f32.xlu1 %v7793_v27 }
 0x473   :  { %12325 = vst [vmem:[#allocation66_spill] sm:$0xff] %v9873_v56  ;;  %7804 = vtanh.f32 %v2436_v11  ;;  %6979 = vmatmul.mubr.f32.gmra.mrb[214].mxu1 %v9873_v56  ;;  %v2854_v38 = vmul.f32 %v8482_v39, %v7795_v53 }
 0x474   :  { %7806 = vpow2.f32 %v2756_v54  ;;  %v2441_v36 = vpop.f32.mrb[126].mxu0  ;;  %7348 = vmatpush1.bf16.msra.mxu1 %v7347_v35  ;;  %v8483_v54 = vld [vmem:[#allocation2 + $0x190] sm:$0xff] }
 0x475   :  { %v7797_v32 = vpop.eup %7796  ;;  %v2442_v46 = vadd.f32 %v2441_v36, %v9631_v51  ;;  %v9879_v58 = vpop.f32.mrb[127].mxu0  ;;  %v9881_v27 = vadd.f32 %v2854_v38, %v2402_v1 }
 0x476   :  { %v7799_v13 = vpop.eup %7798  ;;  %v2758_v40 = vmul.f32 1.442695, %v7797_v32  ;;  %3014 = vadd.xlane.f32.xlu0 %v7797_v32 }
 0x477   :  { %12326 = vst [vmem:[#allocation67_spill] sm:$0xff] %v9881_v27  ;;  %7808 = vtanh.f32 %v2442_v46  ;;  %6981 = vmatprep.mubr.f32.mxu1 %v9881_v27  ;;  %v2855_v53 = vmul.f32 %v8483_v54, %v7799_v13  ;;  %v8484_v46 = vld [vmem:[#allocation2 + $0x1a0] sm:$0xff] }
 0x478   :  { %7810 = vpow2.f32 %v2758_v40  ;;  %v2447_v11 = vpop.f32.mrb[128].mxu0 }
 0x479   :  { %v7801_v12 = vpop.eup %7800  ;;  %v2448_v18 = vadd.f32 %v2447_v11, %v9631_v51  ;;  %v9887_v8 = vpop.f32.mrb[129].mxu0  ;;  %v9889_v1 = vadd.f32 %v2855_v53, %v2408_v41  ;;  %v8485_v11 = vld [vmem:[#allocation2 + $0x1b0] sm:$0xff] }
 0x47a   :  { %v7803_v39 = vpop.eup %7802  ;;  %v2760_v38 = vmul.f32 1.442695, %v7801_v12  ;;  %3016 = vadd.xlane.f32.xlu1 %v7801_v12 }
 0x47b   :  { %12327 = vst [vmem:[#allocation68_spill] sm:$0xff] %v9889_v1  ;;  %7812 = vtanh.f32 %v2448_v18  ;;  %6982 = vmatmul.mubr.f32.gmra.mrb[216].mxu1 %v9889_v1  ;;  %v2856_v35 = vmul.f32 %v8484_v46, %v7803_v39 }
 0x47c   :  { %7814 = vpow2.f32 %v2760_v38  ;;  %v2453_v36 = vpop.f32.mrb[130].mxu0 }
 0x47d   :  { %v7805_v32 = vpop.eup %7804  ;;  %v2454_v13 = vadd.f32 %v2453_v36, %v9631_v51  ;;  %v9895_v40 = vpop.f32.mrb[131].mxu0  ;;  %v9897_v41 = vadd.f32 %v2856_v35, %v2414_v16  ;;  %v3646_v35 = vld [vmem:[#allocation7 + $0x2a8] sm:$0xff]  ;;  %v3648_v36 = vld [vmem:[#allocation7 + $0x2b8] sm:$0xff] }
 0x47e   :  { %v7807_v54 = vpop.eup %7806  ;;  %v2762_v53 = vmul.f32 1.442695, %v7805_v32  ;;  %3018 = vadd.xlane.f32.xlu0 %v7805_v32  ;;  %v3645_v32 = vld [vmem:[#allocation7 + $0x2a0] sm:$0xff]  ;;  %v7349_v24 = vpack.c.bf16 %v3648_v36, %v3646_v35 }
 0x47f   :  { %12328 = vst [vmem:[#allocation69_spill] sm:$0xff] %v9897_v41  ;;  %7816 = vtanh.f32 %v2454_v13  ;;  %6984 = vmatprep.mubr.f32.mxu1 %v9897_v41  ;;  %v2857_v12 = vmul.f32 %v8485_v11, %v7807_v54  ;;  %v3647_v13 = vld [vmem:[#allocation7 + $0x2b0] sm:$0xff]  ;;  %v2426_v54 = vadd.f32 %v9855_v3, %v9669_v15  ;;  %v2432_v3 = vadd.f32 %v9863_v61, %v9669_v15 }
 0x480   :  { %7818 = vpow2.f32 %v2762_v53  ;;  %v2459_v18 = vpop.f32.mrb[132].mxu0  ;;  %v8486_v53 = vld [vmem:[#allocation2 + $0x1c0] sm:$0xff]  ;;  %7350 = vmatprep.subr.bf16.mxu1 %v7349_v24  ;;  %v2438_v61 = vadd.f32 %v9871_v23, %v9669_v15 }
 0x481   :  { %v7809_v39 = vpop.eup %7808  ;;  %v2460_v38 = vadd.f32 %v2459_v18, %v9631_v51  ;;  %v9903_v46 = vpop.f32.mrb[133].mxu0  ;;  %v9905_v16 = vadd.f32 %v2857_v12, %v2420_v63  ;;  %v7351_v18 = vpack.c.bf16 %v3647_v13, %v3645_v32 }
 0x482   :  { %v7811_v1 = vpop.eup %7810  ;;  %v2764_v27 = vmul.f32 1.442695, %v7809_v39  ;;  %3020 = vadd.xlane.f32.xlu1 %v7809_v39 }
 0x483   :  { %12329 = vst [vmem:[#allocation70_spill] sm:$0xff] %v9905_v16  ;;  %7820 = vtanh.f32 %v2460_v38  ;;  %6985 = vmatmul.mubr.f32.gmra.mrb[218].mxu1 %v9905_v16  ;;  %v2858_v11 = vmul.f32 %v8486_v53, %v7811_v1 }
 0x484   :  { %7822 = vpow2.f32 %v2764_v27  ;;  %v2465_v63 = vpop.f32.mrb[134].mxu0  ;;  %7352 = vmatpush1.bf16.msra.mxu1 %v7351_v18  ;;  %v8487_v27 = vld [vmem:[#allocation2 + $0x1d0] sm:$0xff] }
 0x485   :  { %v7813_v12 = vpop.eup %7812  ;;  %v2466_v41 = vadd.f32 %v2465_v63, %v9631_v51  ;;  %v9911_v56 = vpop.f32.mrb[135].mxu0  ;;  %v9913_v39 = vadd.f32 %v2858_v11, %v2426_v54 }
 0x486   :  { %v7815_v35 = vpop.eup %7814  ;;  %v2766_v36 = vmul.f32 1.442695, %v7813_v12  ;;  %3022 = vadd.xlane.f32.xlu0 %v7813_v12  ;;  %v3650_v12 = vld [vmem:[#allocation7 + $0x2c8] sm:$0xff] }
 0x487   :  { %12330 = vst [vmem:[#allocation71_spill] sm:$0xff] %v9913_v39  ;;  %7824 = vtanh.f32 %v2466_v41  ;;  %6987 = vmatprep.mubr.f32.mxu1 %v9913_v39  ;;  %v2859_v1 = vmul.f32 %v8487_v27, %v7815_v35  ;;  %v8488_v41 = vld [vmem:[#allocation2 + $0x1e0] sm:$0xff]  ;;  %v3652_v35 = vld [vmem:[#allocation7 + $0x2d8] sm:$0xff]  ;;  %v3651_v39 = vld [vmem:[#allocation7 + $0x2d0] sm:$0xff] }
 0x488   :  { %7826 = vpow2.f32 %v2766_v36  ;;  %v2471_v38 = vpop.f32.mrb[136].mxu0 }
 0x489   :  { %v7817_v32 = vpop.eup %7816  ;;  %v2472_v24 = vadd.f32 %v2471_v38, %v9631_v51  ;;  %v9919_v13 = vpop.f32.mrb[137].mxu0  ;;  %v9921_v54 = vadd.f32 %v2859_v1, %v2432_v3  ;;  %v7353_v38 = vpack.c.bf16 %v3652_v35, %v3650_v12  ;;  %v3656_v12 = vld [vmem:[#allocation7 + $0x2f8] sm:$0xff] }
 0x48a   :  { %v7819_v53 = vpop.eup %7818  ;;  %v2768_v11 = vmul.f32 1.442695, %v7817_v32  ;;  %3024 = vadd.xlane.f32.xlu1 %v7817_v32  ;;  %v3649_v32 = vld [vmem:[#allocation7 + $0x2c0] sm:$0xff] }
 0x48b   :  { %12331 = vst [vmem:[#allocation72_spill] sm:$0xff] %v9921_v54  ;;  %7828 = vtanh.f32 %v2472_v24  ;;  %6988 = vmatmul.mubr.f32.gmra.mrb[220].mxu1 %v9921_v54  ;;  %v2860_v18 = vmul.f32 %v8488_v41, %v7819_v53  ;;  %v9931_v24 = vpop.xlane.xlu0 %1477  ;;  %v7355_v53 = vpack.c.bf16 %v3651_v39, %v3649_v32  ;;  %v8489_v41 = vld [vmem:[#allocation2 + $0x1f0] sm:$0xff]  ;;  %7354 = vmatprep.subr.bf16.mxu1 %v7353_v38 }
 0x48c   :  { %7830 = vpow2.f32 %v2768_v11  ;;  %v2477_v63 = vpop.f32.mrb[138].mxu0  ;;  %12333 = vst [vmem:[#allocation74_spill] sm:$0xff] %v9931_v24  ;;  %v2444_v11 = vadd.f32 %v9879_v58, %v9669_v15  ;;  %v3653_v58 = vld [vmem:[#allocation7 + $0x2e0] sm:$0xff]  ;;  %v2450_v38 = vadd.f32 %v9887_v8, %v9669_v15 }
 0x48d   :  { %v7821_v36 = vpop.eup %7820  ;;  %v2478_v27 = vadd.f32 %v2477_v63, %v9631_v51  ;;  %v9927_v3 = vpop.f32.mrb[139].mxu0  ;;  %v9929_v1 = vadd.f32 %v2860_v18, %v2438_v61  ;;  %7356 = vmatpush1.bf16.msra.mxu1 %v7355_v53  ;;  %v3654_v18 = vld [vmem:[#allocation7 + $0x2e8] sm:$0xff]  ;;  %v8490_v53 = vld [vmem:[#allocation2 + $0x200] sm:$0xff] }
 0x48e   :  { %v7823_v23 = vpop.eup %7822  ;;  %v2770_v54 = vmul.f32 1.442695, %v7821_v36  ;;  %3026 = vadd.xlane.f32.xlu0 %v7821_v36  ;;  %v7357_v36 = vpack.c.bf16 %v3656_v12, %v3654_v18 }
 0x48f   :  { %12332 = vst [vmem:[#allocation73_spill] sm:$0xff] %v9929_v1  ;;  %7832 = vtanh.f32 %v2478_v27  ;;  %6990 = vmatprep.mubr.f32.mxu1 %v9929_v1  ;;  %v2861_v63 = vmul.f32 %v8489_v41, %v7823_v23  ;;  %v3655_v27 = vld [vmem:[#allocation7 + $0x2f0] sm:$0xff]  ;;  %v9941_v1 = vpop.xlane.xlu1 %1481 }
 0x490   :  { %7834 = vpow2.f32 %v2770_v54  ;;  %v2483_v61 = vpop.f32.mrb[140].mxu0  ;;  %12335 = vst [vmem:[#allocation76_spill] sm:$0xff] %v9941_v1  ;;  %v7359_v54 = vpack.c.bf16 %v3655_v27, %v3653_v58  ;;  %7358 = vmatprep.subr.bf16.mxu1 %v7357_v36  ;;  %v9951_v58 = vpop.xlane.xlu0 %1479  ;;  %v8491_v27 = vld [vmem:[#allocation2 + $0x210] sm:$0xff] }
 0x491   :  { %v7825_v35 = vpop.eup %7824  ;;  %v2484_v24 = vadd.f32 %v2483_v61, %v9631_v51  ;;  %v9937_v16 = vpop.f32.mrb[141].mxu0  ;;  %v9939_v39 = vadd.f32 %v2861_v63, %v2444_v11  ;;  %12337 = vst [vmem:[#allocation78_spill] sm:$0xff] %v9951_v58 }
 0x492   :  { %v7827_v32 = vpop.eup %7826  ;;  %v2772_v23 = vmul.f32 1.442695, %v7825_v35  ;;  %3028 = vadd.xlane.f32.xlu1 %v7825_v35  ;;  %7360 = vmatpush1.bf16.msra.mxu1 %v7359_v54 }
 0x493   :  { %12334 = vst [vmem:[#allocation75_spill] sm:$0xff] %v9939_v39  ;;  %v2862_v41 = vmul.f32 %v8490_v53, %v7827_v32  ;;  %7836 = vtanh.f32 %v2484_v24  ;;  %6991 = vmatmul.mubr.f32.gmra.mrb[222].mxu1 %v9939_v39  ;;  %v2456_v24 = vadd.f32 %v9895_v40, %v9669_v15  ;;  %v2462_v40 = vadd.f32 %v9903_v46, %v9669_v15 }
 0x494   :  { %7838 = vpow2.f32 %v2772_v23  ;;  %v2489_v11 = vpop.f32.mrb[142].mxu0  ;;  %v9971_v1 = vpop.xlane.xlu0 %1485  ;;  %v2468_v46 = vadd.f32 %v9911_v56, %v9669_v15  ;;  %v2474_v56 = vadd.f32 %v9919_v13, %v9669_v15  ;;  %v2480_v13 = vadd.f32 %v9927_v3, %v9669_v15 }
 0x495   :  { %v7829_v63 = vpop.eup %7828  ;;  %v9946_v61 = vadd.f32 %v2862_v41, %v2450_v38  ;;  %v2490_v18 = vadd.f32 %v2489_v11, %v9631_v51  ;;  %v9949_v12 = vpop.f32.mrb[143].mxu0  ;;  %12341 = vst [vmem:[#allocation82_spill] sm:$0xff] %v9971_v1  ;;  %v2486_v3 = vadd.f32 %v9937_v16, %v9669_v15 }
 0x496   :  { %v7831_v35 = vpop.eup %7830  ;;  %v2774_v8 = vmul.f32 1.442695, %v7829_v63  ;;  %3030 = vadd.xlane.f32.xlu0 %v7829_v63  ;;  %v9961_v11 = vpop.xlane.xlu1 %1483  ;;  %v2492_v16 = vadd.f32 %v9949_v12, %v9669_v15 }
 0x497   :  { %12336 = vst [vmem:[#allocation77_spill] sm:$0xff] %v9946_v61  ;;  %v2863_v36 = vmul.f32 %v8491_v27, %v7831_v35  ;;  %7840 = vtanh.f32 %v2490_v18  ;;  %6993 = vmatprep.mubr.f32.mxu1 %v9946_v61  ;;  %12339 = vst [vmem:[#allocation80_spill] sm:$0xff] %v9961_v11  ;;  %v8492_v18 = vld [vmem:[#allocation2 + $0x220] sm:$0xff] }
 0x498   :  { %7842 = vpow2.f32 %v2774_v8  ;;  %v2495_v32 = vpop.f32.mrb[144].mxu0 }
 0x499   :  { %v7833_v23 = vpop.eup %7832  ;;  %v9956_v54 = vadd.f32 %v2863_v36, %v2456_v24  ;;  %v2496_v38 = vadd.f32 %v2495_v32, %v9631_v51  ;;  %v9959_v53 = vpop.f32.mrb[145].mxu0 }
 0x49a   :  { %v7835_v41 = vpop.eup %7834  ;;  %v2776_v63 = vmul.f32 1.442695, %v7833_v23  ;;  %3032 = vadd.xlane.f32.xlu1 %v7833_v23 }
 0x49b   :  { %12338 = vst [vmem:[#allocation79_spill] sm:$0xff] %v9956_v54  ;;  %v2864_v35 = vmul.f32 %v8492_v18, %v7835_v41  ;;  %7844 = vtanh.f32 %v2496_v38  ;;  %6994 = vmatmul.mubr.f32.gmra.mrb[224].mxu1 %v9956_v54  ;;  %v8493_v38 = vld [vmem:[#allocation2 + $0x230] sm:$0xff]  ;;  %v9981_v54 = vpop.xlane.xlu1 %1487 }
 0x49c   :  { %7846 = vpow2.f32 %v2776_v63  ;;  %v2501_v8 = vpop.f32.mrb[146].mxu0  ;;  %12343 = vst [vmem:[#allocation84_spill] sm:$0xff] %v9981_v54 }
 0x49d   :  { %v7837_v24 = vpop.eup %7836  ;;  %v9966_v27 = vadd.f32 %v2864_v35, %v2462_v40  ;;  %v2502_v36 = vadd.f32 %v2501_v8, %v9631_v51  ;;  %v9969_v32 = vpop.f32.mrb[147].mxu0 }
 0x49e   :  { %v7839_v11 = vpop.eup %7838  ;;  %v2778_v23 = vmul.f32 1.442695, %v7837_v24  ;;  %3034 = vadd.xlane.f32.xlu0 %v7837_v24 }
 0x49f   :  { %12340 = vst [vmem:[#allocation81_spill] sm:$0xff] %v9966_v27  ;;  %v2865_v41 = vmul.f32 %v8493_v38, %v7839_v11  ;;  %7848 = vtanh.f32 %v2502_v36  ;;  %6996 = vmatprep.mubr.f32.mxu1 %v9966_v27  ;;  %v8494_v11 = vld [vmem:[#allocation2 + $0x240] sm:$0xff]  ;;  %v9991_v27 = vpop.xlane.xlu0 %1489 }
 0x4a0   :  { %7850 = vpow2.f32 %v2778_v23  ;;  %v2507_v63 = vpop.f32.mrb[148].mxu0  ;;  %12345 = vst [vmem:[#allocation86_spill] sm:$0xff] %v9991_v27 }
 0x4a1   :  { %v7841_v40 = vpop.eup %7840  ;;  %v9976_v18 = vadd.f32 %v2865_v41, %v2468_v46  ;;  %v2508_v35 = vadd.f32 %v2507_v63, %v9631_v51  ;;  %v9979_v8 = vpop.f32.mrb[149].mxu0 }
 0x4a2   :  { %v7843_v1 = vpop.eup %7842  ;;  %v2780_v24 = vmul.f32 1.442695, %v7841_v40  ;;  %3036 = vadd.xlane.f32.xlu1 %v7841_v40 }
 0x4a3   :  { %12342 = vst [vmem:[#allocation83_spill] sm:$0xff] %v9976_v18  ;;  %v2866_v36 = vmul.f32 %v8494_v11, %v7843_v1  ;;  %7852 = vtanh.f32 %v2508_v35  ;;  %6997 = vmatmul.mubr.f32.gmra.mrb[226].mxu1 %v9976_v18  ;;  %v8495_v1 = vld [vmem:[#allocation2 + $0x250] sm:$0xff]  ;;  %v10001_v18 = vpop.xlane.xlu1 %1491 }
 0x4a4   :  { %7854 = vpow2.f32 %v2780_v24  ;;  %v2513_v23 = vpop.f32.mrb[150].mxu0  ;;  %12347 = vst [vmem:[#allocation88_spill] sm:$0xff] %v10001_v18 }
 0x4a5   :  { %v7845_v46 = vpop.eup %7844  ;;  %v9986_v38 = vadd.f32 %v2866_v36, %v2474_v56  ;;  %v2514_v41 = vadd.f32 %v2513_v23, %v9631_v51  ;;  %v9989_v63 = vpop.f32.mrb[151].mxu0 }
 0x4a6   :  { %v7847_v54 = vpop.eup %7846  ;;  %v2782_v40 = vmul.f32 1.442695, %v7845_v46  ;;  %3038 = vadd.xlane.f32.xlu0 %v7845_v46 }
 0x4a7   :  { %12344 = vst [vmem:[#allocation85_spill] sm:$0xff] %v9986_v38  ;;  %v2867_v35 = vmul.f32 %v8495_v1, %v7847_v54  ;;  %7856 = vtanh.f32 %v2514_v41  ;;  %6999 = vmatprep.mubr.f32.mxu1 %v9986_v38  ;;  %v8496_v54 = vld [vmem:[#allocation2 + $0x260] sm:$0xff]  ;;  %v10011_v38 = vpop.xlane.xlu0 %1493  ;;  %v10021_v58 = vpop.xlane.xlu1 %1495 }
 0x4a8   :  { %7858 = vpow2.f32 %v2782_v40  ;;  %v2519_v24 = vpop.f32.mrb[152].mxu0  ;;  %12349 = vst [vmem:[#allocation90_spill] sm:$0xff] %v10011_v38  ;;  %v4632_v38 = vld [vmem:[#allocation5 + $0x180] sm:$0xff]  ;;  %12351 = vst [vmem:[#allocation92_spill] sm:$0xff] %v10021_v58 }
 0x4a9   :  { %v7849_v56 = vpop.eup %7848  ;;  %v9996_v11 = vadd.f32 %v2867_v35, %v2480_v13  ;;  %v2520_v36 = vadd.f32 %v2519_v24, %v9631_v51  ;;  %v9999_v23 = vpop.f32.mrb[153].mxu0 }
 0x4aa   :  { %v7851_v27 = vpop.eup %7850  ;;  %v2784_v46 = vmul.f32 1.442695, %v7849_v56  ;;  %3040 = vadd.xlane.f32.xlu1 %v7849_v56 }
 0x4ab   :  { %12346 = vst [vmem:[#allocation87_spill] sm:$0xff] %v9996_v11  ;;  %v2868_v41 = vmul.f32 %v8496_v54, %v7851_v27  ;;  %7860 = vtanh.f32 %v2520_v36  ;;  %7000 = vmatmul.mubr.f32.gmra.mrb[228].mxu1 %v9996_v11  ;;  %v8497_v27 = vld [vmem:[#allocation2 + $0x270] sm:$0xff]  ;;  %v4633_v11 = vld [vmem:[#allocation5 + $0x188] sm:$0xff] }
 0x4ac   :  { %7862 = vpow2.f32 %v2784_v46  ;;  %v2525_v40 = vpop.f32.mrb[154].mxu0 }
 0x4ad   :  { %v7853_v13 = vpop.eup %7852  ;;  %v10006_v1 = vadd.f32 %v2868_v41, %v2486_v3  ;;  %v2526_v35 = vadd.f32 %v2525_v40, %v9631_v51  ;;  %v10009_v24 = vpop.f32.mrb[155].mxu0 }
 0x4ae   :  { %v7855_v18 = vpop.eup %7854  ;;  %v2786_v56 = vmul.f32 1.442695, %v7853_v13  ;;  %3042 = vadd.xlane.f32.xlu0 %v7853_v13 }
 0x4af   :  { %12348 = vst [vmem:[#allocation89_spill] sm:$0xff] %v10006_v1  ;;  %v2869_v36 = vmul.f32 %v8497_v27, %v7855_v18  ;;  %7864 = vtanh.f32 %v2526_v35  ;;  %7002 = vmatprep.mubr.f32.mxu1 %v10006_v1  ;;  %v7361_v18 = vpack.c.bf16 %v4633_v11, %v4632_v38  ;;  %v2498_v35 = vadd.f32 %v9959_v53, %v9669_v15  ;;  %v10031_v11 = vpop.xlane.xlu0 %1497 }
 0x4b0   :  { %7866 = vpow2.f32 %v2786_v56  ;;  %v2531_v46 = vpop.f32.mrb[156].mxu0  ;;  %v8498_v56 = vld [vmem:[#allocation2 + $0x280] sm:$0xff]  ;;  %12353 = vst [vmem:[#allocation94_spill] sm:$0xff] %v10031_v11  ;;  %v10041_v11 = vpop.xlane.xlu1 %1499 }
 0x4b1   :  { %v7857_v3 = vpop.eup %7856  ;;  %v10016_v54 = vadd.f32 %v2869_v36, %v2492_v16  ;;  %v2532_v41 = vadd.f32 %v2531_v46, %v9631_v51  ;;  %v10019_v40 = vpop.f32.mrb[157].mxu0  ;;  %7362 = vmatprep.subr.bf16.mxu0 %v7361_v18  ;;  %12355 = vst [vmem:[#allocation96_spill] sm:$0xff] %v10041_v11 }
 0x4b2   :  { %v7859_v13 = vpop.eup %7858  ;;  %v2788_v12 = vmul.f32 1.442695, %v7857_v3  ;;  %3044 = vadd.xlane.f32.xlu1 %v7857_v3  ;;  %7364 = vmatpush3.bf16.msra.mxu0 %v7361_v18  ;;  %v2504_v3 = vadd.f32 %v9969_v32, %v9669_v15  ;;  %v2510_v32 = vadd.f32 %v9979_v8, %v9669_v15  ;;  %v2516_v8 = vadd.f32 %v9989_v63, %v9669_v15 }
 0x4b3   :  { %12350 = vst [vmem:[#allocation91_spill] sm:$0xff] %v10016_v54  ;;  %v2870_v27 = vmul.f32 %v8498_v56, %v7859_v13  ;;  %7868 = vtanh.f32 %v2532_v41  ;;  %7003 = vmatmul.mubr.f32.gmra.mrb[230].mxu1 %v10016_v54  ;;  %v8499_v41 = vld [vmem:[#allocation2 + $0x290] sm:$0xff]  ;;  %v2522_v63 = vadd.f32 %v9999_v23, %v9669_v15  ;;  %v2528_v23 = vadd.f32 %v10009_v24, %v9669_v15 }
 0x4b4   :  { %7870 = vpow2.f32 %v2788_v12  ;;  %v2537_v16 = vpop.f32.mrb[158].mxu0  ;;  %v2534_v24 = vadd.f32 %v10019_v40, %v9669_v15 }
 0x4b5   :  { %v7861_v36 = vpop.eup %7860  ;;  %v10026_v46 = vadd.f32 %v2870_v27, %v2498_v35  ;;  %v2538_v1 = vadd.f32 %v2537_v16, %v9631_v51  ;;  %v10029_v58 = vpop.f32.mrb[159].mxu0 }
 0x4b6   :  { %v7863_v38 = vpop.eup %7862  ;;  %v2790_v53 = vmul.f32 1.442695, %v7861_v36  ;;  %3046 = vadd.xlane.f32.xlu0 %v7861_v36  ;;  %v2540_v40 = vadd.f32 %v10029_v58, %v9669_v15 }
 0x4b7   :  { %12352 = vst [vmem:[#allocation93_spill] sm:$0xff] %v10026_v46  ;;  %v2871_v13 = vmul.f32 %v8499_v41, %v7863_v38  ;;  %7872 = vtanh.f32 %v2538_v1  ;;  %7005 = vmatprep.mubr.f32.mxu1 %v10026_v46  ;;  %v8500_v1 = vld [vmem:[#allocation2 + $0x2a0] sm:$0xff]  ;;  %v10051_v46 = vpop.xlane.xlu0 %1501 }
 0x4b8   :  { %7874 = vpow2.f32 %v2790_v53  ;;  %v2543_v12 = vpop.f32.mrb[160].mxu0  ;;  %12357 = vst [vmem:[#allocation98_spill] sm:$0xff] %v10051_v46 }
 0x4b9   :  { %v7865_v35 = vpop.eup %7864  ;;  %v10036_v56 = vadd.f32 %v2871_v13, %v2504_v3  ;;  %v2544_v18 = vadd.f32 %v2543_v12, %v9631_v51  ;;  %v10039_v27 = vpop.f32.mrb[161].mxu0 }
 0x4ba   :  { %v7867_v16 = vpop.eup %7866  ;;  %v2792_v36 = vmul.f32 1.442695, %v7865_v35  ;;  %3048 = vadd.xlane.f32.xlu1 %v7865_v35 }
 0x4bb   :  { %12354 = vst [vmem:[#allocation95_spill] sm:$0xff] %v10036_v56  ;;  %v2872_v38 = vmul.f32 %v8500_v1, %v7867_v16  ;;  %7876 = vtanh.f32 %v2544_v18  ;;  %7006 = vmatmul.mubr.f32.gmra.mrb[232].mxu1 %v10036_v56  ;;  %v8501_v18 = vld [vmem:[#allocation2 + $0x2b0] sm:$0xff]  ;;  %v10061_v56 = vpop.xlane.xlu1 %1503 }
 0x4bc   :  { %7878 = vpow2.f32 %v2792_v36  ;;  %v2549_v53 = vpop.f32.mrb[162].mxu0  ;;  %12359 = vst [vmem:[#allocation100_spill] sm:$0xff] %v10061_v56 }
 0x4bd   :  { %v7869_v3 = vpop.eup %7868  ;;  %v10046_v41 = vadd.f32 %v2872_v38, %v2510_v32  ;;  %v2550_v13 = vadd.f32 %v2549_v53, %v9631_v51  ;;  %v10049_v12 = vpop.f32.mrb[163].mxu0 }
 0x4be   :  { %v7871_v11 = vpop.eup %7870  ;;  %v2794_v35 = vmul.f32 1.442695, %v7869_v3  ;;  %3050 = vadd.xlane.f32.xlu0 %v7869_v3 }
 0x4bf   :  { %12356 = vst [vmem:[#allocation97_spill] sm:$0xff] %v10046_v41  ;;  %v2873_v16 = vmul.f32 %v8501_v18, %v7871_v11  ;;  %7880 = vtanh.f32 %v2550_v13  ;;  %7008 = vmatprep.mubr.f32.mxu1 %v10046_v41  ;;  %v8502_v11 = vld [vmem:[#allocation2 + $0x2c0] sm:$0xff]  ;;  %v10071_v41 = vpop.xlane.xlu0 %1505 }
 0x4c0   :  { %7882 = vpow2.f32 %v2794_v35  ;;  %v2555_v36 = vpop.f32.mrb[164].mxu0  ;;  %12361 = vst [vmem:[#allocation102_spill] sm:$0xff] %v10071_v41 }
 0x4c1   :  { %v7873_v32 = vpop.eup %7872  ;;  %v10056_v1 = vadd.f32 %v2873_v16, %v2516_v8  ;;  %v2556_v38 = vadd.f32 %v2555_v36, %v9631_v51  ;;  %v10059_v53 = vpop.f32.mrb[165].mxu0 }
 0x4c2   :  { %v7875_v46 = vpop.eup %7874  ;;  %v2796_v3 = vmul.f32 1.442695, %v7873_v32  ;;  %3052 = vadd.xlane.f32.xlu1 %v7873_v32 }
 0x4c3   :  { %12358 = vst [vmem:[#allocation99_spill] sm:$0xff] %v10056_v1  ;;  %v2874_v13 = vmul.f32 %v8502_v11, %v7875_v46  ;;  %7884 = vtanh.f32 %v2556_v38  ;;  %7009 = vmatmul.mubr.f32.gmra.mrb[234].mxu1 %v10056_v1  ;;  %v8503_v46 = vld [vmem:[#allocation2 + $0x2d0] sm:$0xff]  ;;  %v10081_v1 = vpop.xlane.xlu1 %1507 }
 0x4c4   :  { %7886 = vpow2.f32 %v2796_v3  ;;  %v2561_v35 = vpop.f32.mrb[166].mxu0  ;;  %12363 = vst [vmem:[#allocation104_spill] sm:$0xff] %v10081_v1 }
 0x4c5   :  { %v7877_v8 = vpop.eup %7876  ;;  %v10066_v18 = vadd.f32 %v2874_v13, %v2522_v63  ;;  %v2562_v16 = vadd.f32 %v2561_v35, %v9631_v51  ;;  %v10069_v36 = vpop.f32.mrb[167].mxu0 }
 0x4c6   :  { %v7879_v56 = vpop.eup %7878  ;;  %v2798_v32 = vmul.f32 1.442695, %v7877_v8  ;;  %3054 = vadd.xlane.f32.xlu0 %v7877_v8 }
 0x4c7   :  { %12360 = vst [vmem:[#allocation101_spill] sm:$0xff] %v10066_v18  ;;  %v2875_v38 = vmul.f32 %v8503_v46, %v7879_v56  ;;  %7888 = vtanh.f32 %v2562_v16  ;;  %7011 = vmatprep.mubr.f32.mxu1 %v10066_v18  ;;  %v8504_v56 = vld [vmem:[#allocation2 + $0x2e0] sm:$0xff]  ;;  %v10091_v18 = vpop.xlane.xlu0 %1509  ;;  %v10101_v54 = vpop.xlane.xlu1 %1511 }
 0x4c8   :  { %7890 = vpow2.f32 %v2798_v32  ;;  %v2567_v3 = vpop.f32.mrb[168].mxu0  ;;  %12365 = vst [vmem:[#allocation106_spill] sm:$0xff] %v10091_v18  ;;  %v4634_v18 = vld [vmem:[#allocation5 + $0x190] sm:$0xff]  ;;  %12367 = vst [vmem:[#allocation108_spill] sm:$0xff] %v10101_v54 }
 0x4c9   :  { %v7881_v63 = vpop.eup %7880  ;;  %v10076_v11 = vadd.f32 %v2875_v38, %v2528_v23  ;;  %v2568_v13 = vadd.f32 %v2567_v3, %v9631_v51  ;;  %v10079_v35 = vpop.f32.mrb[169].mxu0 }
 0x4ca   :  { %v7883_v41 = vpop.eup %7882  ;;  %v2800_v8 = vmul.f32 1.442695, %v7881_v63  ;;  %3056 = vadd.xlane.f32.xlu1 %v7881_v63 }
 0x4cb   :  { %12362 = vst [vmem:[#allocation103_spill] sm:$0xff] %v10076_v11  ;;  %v2876_v16 = vmul.f32 %v8504_v56, %v7883_v41  ;;  %7892 = vtanh.f32 %v2568_v13  ;;  %7012 = vmatmul.mubr.f32.gmra.mrb[236].mxu1 %v10076_v11  ;;  %v8505_v41 = vld [vmem:[#allocation2 + $0x2f0] sm:$0xff]  ;;  %v4635_v11 = vld [vmem:[#allocation5 + $0x198] sm:$0xff] }
 0x4cc   :  { %7894 = vpow2.f32 %v2800_v8  ;;  %v2573_v32 = vpop.f32.mrb[170].mxu0 }
 0x4cd   :  { %v7885_v23 = vpop.eup %7884  ;;  %v10086_v46 = vadd.f32 %v2876_v16, %v2534_v24  ;;  %v2574_v38 = vadd.f32 %v2573_v32, %v9631_v51  ;;  %v10089_v3 = vpop.f32.mrb[171].mxu0 }
 0x4ce   :  { %v7887_v1 = vpop.eup %7886  ;;  %v2802_v63 = vmul.f32 1.442695, %v7885_v23  ;;  %3058 = vadd.xlane.f32.xlu0 %v7885_v23 }
 0x4cf   :  { %12364 = vst [vmem:[#allocation105_spill] sm:$0xff] %v10086_v46  ;;  %v2877_v13 = vmul.f32 %v8505_v41, %v7887_v1  ;;  %7896 = vtanh.f32 %v2574_v38  ;;  %7014 = vmatprep.mubr.f32.mxu1 %v10086_v46  ;;  %v7365_v1 = vpack.c.bf16 %v4635_v11, %v4634_v18  ;;  %v2546_v38 = vadd.f32 %v10039_v27, %v9669_v15  ;;  %v10111_v11 = vpop.xlane.xlu0 %1513 }
 0x4d0   :  { %7898 = vpow2.f32 %v2802_v63  ;;  %v2579_v8 = vpop.f32.mrb[172].mxu0  ;;  %v8506_v63 = vld [vmem:[#allocation2 + $0x300] sm:$0xff]  ;;  %12369 = vst [vmem:[#allocation110_spill] sm:$0xff] %v10111_v11  ;;  %v10121_v11 = vpop.xlane.xlu1 %1515 }
 0x4d1   :  { %v7889_v24 = vpop.eup %7888  ;;  %v10096_v56 = vadd.f32 %v2877_v13, %v2540_v40  ;;  %v2580_v16 = vadd.f32 %v2579_v8, %v9631_v51  ;;  %v10099_v32 = vpop.f32.mrb[173].mxu0  ;;  %7366 = vmatprep.subr.bf16.mxu0 %v7365_v1  ;;  %12371 = vst [vmem:[#allocation112_spill] sm:$0xff] %v10121_v11 }
 0x4d2   :  { %v7891_v23 = vpop.eup %7890  ;;  %v2804_v58 = vmul.f32 1.442695, %v7889_v24  ;;  %3060 = vadd.xlane.f32.xlu1 %v7889_v24  ;;  %7368 = vmatpush3.bf16.msra.mxu0 %v7365_v1  ;;  %v2552_v24 = vadd.f32 %v10049_v12, %v9669_v15  ;;  %v2558_v12 = vadd.f32 %v10059_v53, %v9669_v15  ;;  %v2564_v53 = vadd.f32 %v10069_v36, %v9669_v15 }
 0x4d3   :  { %12366 = vst [vmem:[#allocation107_spill] sm:$0xff] %v10096_v56  ;;  %v2878_v41 = vmul.f32 %v8506_v63, %v7891_v23  ;;  %7900 = vtanh.f32 %v2580_v16  ;;  %7015 = vmatmul.mubr.f32.gmra.mrb[238].mxu1 %v10096_v56  ;;  %v8507_v16 = vld [vmem:[#allocation2 + $0x310] sm:$0xff]  ;;  %v2570_v36 = vadd.f32 %v10079_v35, %v9669_v15  ;;  %v2576_v35 = vadd.f32 %v10089_v3, %v9669_v15  ;;  %v4637_v56 = vld [vmem:[#allocation5 + $0x1a8] sm:$0xff] }
 0x4d4   :  { %7902 = vpow2.f32 %v2804_v58  ;;  %v2585_v40 = vpop.f32.mrb[174].mxu0  ;;  %v2582_v3 = vadd.f32 %v10099_v32, %v9669_v15 }
 0x4d5   :  { %v7893_v13 = vpop.eup %7892  ;;  %v10106_v8 = vadd.f32 %v2878_v41, %v2546_v38  ;;  %v2586_v46 = vadd.f32 %v2585_v40, %v9631_v51  ;;  %v10109_v54 = vpop.f32.mrb[175].mxu0 }
 0x4d6   :  { %v7895_v18 = vpop.eup %7894  ;;  %v2806_v27 = vmul.f32 1.442695, %v7893_v13  ;;  %3062 = vadd.xlane.f32.xlu0 %v7893_v13 }
 0x4d7   :  { %12368 = vst [vmem:[#allocation109_spill] sm:$0xff] %v10106_v8  ;;  %v2879_v23 = vmul.f32 %v8507_v16, %v7895_v18  ;;  %7904 = vtanh.f32 %v2586_v46  ;;  %7017 = vmatprep.mubr.f32.mxu1 %v10106_v8  ;;  %v8508_v46 = vld [vmem:[#allocation2 + $0x320] sm:$0xff]  ;;  %v10131_v8 = vpop.xlane.xlu0 %1517 }
 0x4d8   :  { %7906 = vpow2.f32 %v2806_v27  ;;  %v2591_v58 = vpop.f32.mrb[176].mxu0  ;;  %12373 = vst [vmem:[#allocation114_spill] sm:$0xff] %v10131_v8 }
 0x4d9   :  { %v7897_v38 = vpop.eup %7896  ;;  %v10116_v63 = vadd.f32 %v2879_v23, %v2552_v24  ;;  %v2592_v1 = vadd.f32 %v2591_v58, %v9631_v51  ;;  %v10119_v41 = vpop.f32.mrb[177].mxu0 }
 0x4da   :  { %v7899_v40 = vpop.eup %7898  ;;  %v2808_v13 = vmul.f32 1.442695, %v7897_v38  ;;  %3064 = vadd.xlane.f32.xlu1 %v7897_v38 }
 0x4db   :  { %12370 = vst [vmem:[#allocation111_spill] sm:$0xff] %v10116_v63  ;;  %v2880_v18 = vmul.f32 %v8508_v46, %v7899_v40  ;;  %7908 = vtanh.f32 %v2592_v1  ;;  %7018 = vmatmul.mubr.f32.gmra.mrb[240].mxu1 %v10116_v63  ;;  %v8509_v1 = vld [vmem:[#allocation2 + $0x330] sm:$0xff]  ;;  %v10141_v63 = vpop.xlane.xlu1 %1519 }
 0x4dc   :  { %7910 = vpow2.f32 %v2808_v13  ;;  %v2597_v27 = vpop.f32.mrb[178].mxu0  ;;  %12375 = vst [vmem:[#allocation116_spill] sm:$0xff] %v10141_v63 }
 0x4dd   :  { %v7901_v24 = vpop.eup %7900  ;;  %v10126_v16 = vadd.f32 %v2880_v18, %v2558_v12  ;;  %v2598_v23 = vadd.f32 %v2597_v27, %v9631_v51  ;;  %v10129_v58 = vpop.f32.mrb[179].mxu0 }
 0x4de   :  { %v7903_v11 = vpop.eup %7902  ;;  %v2810_v38 = vmul.f32 1.442695, %v7901_v24  ;;  %3066 = vadd.xlane.f32.xlu0 %v7901_v24 }
 0x4df   :  { %12372 = vst [vmem:[#allocation113_spill] sm:$0xff] %v10126_v16  ;;  %v2881_v40 = vmul.f32 %v8509_v1, %v7903_v11  ;;  %7912 = vtanh.f32 %v2598_v23  ;;  %7020 = vmatprep.mubr.f32.mxu1 %v10126_v16  ;;  %v8510_v11 = vld [vmem:[#allocation2 + $0x340] sm:$0xff]  ;;  %v10151_v16 = vpop.xlane.xlu0 %1521 }
 0x4e0   :  { %7914 = vpow2.f32 %v2810_v38  ;;  %v2603_v13 = vpop.f32.mrb[180].mxu0  ;;  %12377 = vst [vmem:[#allocation118_spill] sm:$0xff] %v10151_v16 }
 0x4e1   :  { %v7905_v12 = vpop.eup %7904  ;;  %v10136_v46 = vadd.f32 %v2881_v40, %v2564_v53  ;;  %v2604_v18 = vadd.f32 %v2603_v13, %v9631_v51  ;;  %v10139_v27 = vpop.f32.mrb[181].mxu0 }
 0x4e2   :  { %v7907_v8 = vpop.eup %7906  ;;  %v2812_v24 = vmul.f32 1.442695, %v7905_v12  ;;  %3068 = vadd.xlane.f32.xlu1 %v7905_v12 }
 0x4e3   :  { %12374 = vst [vmem:[#allocation115_spill] sm:$0xff] %v10136_v46  ;;  %v2882_v23 = vmul.f32 %v8510_v11, %v7907_v8  ;;  %7916 = vtanh.f32 %v2604_v18  ;;  %7021 = vmatmul.mubr.f32.gmra.mrb[242].mxu1 %v10136_v46  ;;  %v8511_v8 = vld [vmem:[#allocation2 + $0x350] sm:$0xff]  ;;  %v10161_v46 = vpop.xlane.xlu1 %1523 }
 0x4e4   :  { %7918 = vpow2.f32 %v2812_v24  ;;  %v2609_v38 = vpop.f32.mrb[182].mxu0  ;;  %12379 = vst [vmem:[#allocation120_spill] sm:$0xff] %v10161_v46 }
 0x4e5   :  { %v7909_v53 = vpop.eup %7908  ;;  %v10146_v1 = vadd.f32 %v2882_v23, %v2570_v36  ;;  %v2610_v40 = vadd.f32 %v2609_v38, %v9631_v51  ;;  %v10149_v13 = vpop.f32.mrb[183].mxu0 }
 0x4e6   :  { %v7911_v63 = vpop.eup %7910  ;;  %v2814_v12 = vmul.f32 1.442695, %v7909_v53  ;;  %3070 = vadd.xlane.f32.xlu0 %v7909_v53 }
 0x4e7   :  { %12376 = vst [vmem:[#allocation117_spill] sm:$0xff] %v10146_v1  ;;  %v2883_v18 = vmul.f32 %v8511_v8, %v7911_v63  ;;  %7920 = vtanh.f32 %v2610_v40  ;;  %7023 = vmatprep.mubr.f32.mxu1 %v10146_v1  ;;  %v8512_v63 = vld [vmem:[#allocation2 + $0x360] sm:$0xff]  ;;  %v10171_v1 = vpop.xlane.xlu0 %1525 }
 0x4e8   :  { %7922 = vpow2.f32 %v2814_v12  ;;  %v2615_v24 = vpop.f32.mrb[184].mxu0  ;;  %12381 = vst [vmem:[#allocation122_spill] sm:$0xff] %v10171_v1 }
 0x4e9   :  { %v7913_v36 = vpop.eup %7912  ;;  %v10156_v11 = vadd.f32 %v2883_v18, %v2576_v35  ;;  %v2616_v23 = vadd.f32 %v2615_v24, %v9631_v51  ;;  %v10159_v38 = vpop.f32.mrb[185].mxu0 }
 0x4ea   :  { %v7915_v16 = vpop.eup %7914  ;;  %v2816_v53 = vmul.f32 1.442695, %v7913_v36  ;;  %3072 = vadd.xlane.f32.xlu1 %v7913_v36 }
 0x4eb   :  { %12378 = vst [vmem:[#allocation119_spill] sm:$0xff] %v10156_v11  ;;  %v2884_v40 = vmul.f32 %v8512_v63, %v7915_v16  ;;  %7924 = vtanh.f32 %v2616_v23  ;;  %7024 = vmatmul.mubr.f32.gmra.mrb[244].mxu1 %v10156_v11  ;;  %v2588_v16 = vadd.f32 %v10109_v54, %v9669_v15  ;;  %v8513_v23 = vld [vmem:[#allocation2 + $0x370] sm:$0xff]  ;;  %v4636_v11 = vld [vmem:[#allocation5 + $0x1a0] sm:$0xff]  ;;  %v10185_v54 = vpop.xlane.xlu1 %1527 }
 0x4ec   :  { %7926 = vpow2.f32 %v2816_v53  ;;  %v2621_v12 = vpop.f32.mrb[186].mxu0  ;;  %12383 = vst [vmem:[#allocation124_spill] sm:$0xff] %v10185_v54 }
 0x4ed   :  { %v7917_v35 = vpop.eup %7916  ;;  %v10166_v8 = vadd.f32 %v2884_v40, %v2582_v3  ;;  %v2622_v18 = vadd.f32 %v2621_v12, %v9631_v51  ;;  %v10169_v24 = vpop.f32.mrb[187].mxu0 }
 0x4ee   :  { %v7919_v46 = vpop.eup %7918  ;;  %v2818_v36 = vmul.f32 1.442695, %v7917_v35  ;;  %3074 = vadd.xlane.f32.xlu0 %v7917_v35  ;;  %v10173_v32 = vpop.f32.mrb[192].mxu1 }
 0x4ef   :  { %12380 = vst [vmem:[#allocation121_spill] sm:$0xff] %v10166_v8  ;;  %v2885_v53 = vmul.f32 %v8513_v23, %v7919_v46  ;;  %7928 = vtanh.f32 %v2622_v18  ;;  %v10177_v63 = vpop.f32.mrb[193].mxu1  ;;  %7026 = vmatprep.mubr.f32.mxu1 %v10166_v8  ;;  %v7369_v18 = vpack.c.bf16 %v4637_v56, %v4636_v11  ;;  %v2594_v23 = vadd.f32 %v10119_v41, %v9669_v15  ;;  %v10195_v11 = vpop.xlane.xlu0 %1529 }
 0x4f0   :  { %7930 = vpow2.f32 %v2818_v36  ;;  %v2627_v3 = vpop.f32.mrb[188].mxu0  ;;  %v8514_v36 = vld [vmem:[#allocation2 + $0x380] sm:$0xff]  ;;  %12385 = vst [vmem:[#allocation126_spill] sm:$0xff] %v10195_v11 }
 0x4f1   :  { %v7921_v40 = vpop.eup %7920  ;;  %v10180_v12 = vadd.f32 %v2885_v53, %v2588_v16  ;;  %v2628_v1 = vadd.f32 %v2627_v3, %v9631_v51  ;;  %v10183_v35 = vpop.f32.mrb[189].mxu0  ;;  %7370 = vmatprep.subr.bf16.mxu0 %v7369_v18 }
 0x4f2   :  { %v7923_v61 = vpop.eup %7922  ;;  %v2820_v46 = vmul.f32 1.442695, %v7921_v40  ;;  %3076 = vadd.xlane.f32.xlu1 %v7921_v40  ;;  %7372 = vmatpush3.bf16.msra.mxu0 %v7369_v18  ;;  %v8515_v40 = vld [vmem:[#allocation2 + $0x390] sm:$0xff] }
 0x4f3   :  { %12382 = vst [vmem:[#allocation123_spill] sm:$0xff] %v10180_v12  ;;  %v2886_v8 = vmul.f32 %v8514_v36, %v7923_v61  ;;  %7932 = vtanh.f32 %v2628_v1  ;;  %7027 = vmatmul.mubr.f32.gmra.mrb[246].mxu1 %v10180_v12  ;;  %v2600_v1 = vadd.f32 %v10129_v58, %v9669_v15  ;;  %v10206_v36 = vpop.xlane.xlu1 %1531  ;;  %v8516_v58 = vld [vmem:[#allocation2 + $0x3a0] sm:$0xff] }
 0x4f4   :  { %7934 = vpow2.f32 %v2820_v46  ;;  %v2633_v16 = vpop.f32.mrb[190].mxu0  ;;  %12387 = vst [vmem:[#allocation128_spill] sm:$0xff] %v10206_v36  ;;  %v8517_v36 = vld [vmem:[#allocation2 + $0x3b0] sm:$0xff] }
 0x4f5   :  { %v7925_v53 = vpop.eup %7924  ;;  %v10190_v3 = vadd.f32 %v2886_v8, %v2594_v23  ;;  %v2634_v39 = vadd.f32 %v2633_v16, %v9631_v51  ;;  %v10193_v54 = vpop.f32.mrb[191].mxu0 }
 0x4f6   :  { %v7927_v56 = vpop.eup %7926  ;;  %v2822_v41 = vmul.f32 1.442695, %v7925_v53  ;;  %3078 = vadd.xlane.f32.xlu0 %v7925_v53  ;;  %v10197_v61 = vpop.f32.mrb[194].mxu1  ;;  %v2606_v53 = vadd.f32 %v10139_v27, %v9669_v15 }
 0x4f7   :  { %12384 = vst [vmem:[#allocation125_spill] sm:$0xff] %v10190_v3  ;;  %v2887_v46 = vmul.f32 %v8515_v40, %v7927_v56  ;;  %7936 = vtanh.f32 %v2634_v39  ;;  %v10201_v8 = vpop.f32.mrb[195].mxu1  ;;  %7029 = vmatprep.mubr.f32.mxu1 %v10190_v3  ;;  %v10213_v40 = vpop.xlane.xlu0 %1533 }
 0x4f8   :  { %7938 = vpow2.f32 %v2822_v41  ;;  %12389 = vst [vmem:[#allocation130_spill] sm:$0xff] %v10213_v40  ;;  %v8518_v40 = vld [vmem:[#allocation2 + $0x3c0] sm:$0xff] }
 0x4f9   :  { %v7929_v51 = vpop.eup %7928  ;;  %v10204_v18 = vadd.f32 %v2887_v46, %v2600_v1 }
 0x4fa   :  { %v7931_v23 = vpop.eup %7930  ;;  %v2824_v16 = vmul.f32 1.442695, %v7929_v51  ;;  %3080 = vadd.xlane.f32.xlu1 %v7929_v51  ;;  %v2612_v51 = vadd.f32 %v10149_v13, %v9669_v15 }
 0x4fb   :  { %12386 = vst [vmem:[#allocation127_spill] sm:$0xff] %v10204_v18  ;;  %v2888_v11 = vmul.f32 %v8516_v58, %v7931_v23  ;;  %7030 = vmatmul.mubr.f32.gmra.mrb[248].mxu1 %v10204_v18 }
 0x4fc   :  { %7940 = vpow2.f32 %v2824_v16 }
 0x4fd   :  { %v7933_v39 = vpop.eup %7932  ;;  %v10211_v56 = vadd.f32 %v2888_v11, %v2606_v53  ;;  %v10224_v53 = vpop.xlane.xlu1 %1535 }
 0x4fe   :  { %v7935_v41 = vpop.eup %7934  ;;  %v2826_v1 = vmul.f32 1.442695, %v7933_v39  ;;  %3082 = vadd.xlane.f32.xlu0 %v7933_v39  ;;  %v10215_v46 = vpop.f32.mrb[196].mxu1  ;;  %12391 = vst [vmem:[#allocation132_spill] sm:$0xff] %v10224_v53  ;;  %v2618_v39 = vadd.f32 %v10159_v38, %v9669_v15 }
 0x4ff   :  { %12388 = vst [vmem:[#allocation129_spill] sm:$0xff] %v10211_v56  ;;  %v2889_v27 = vmul.f32 %v8517_v36, %v7935_v41  ;;  %v10219_v3 = vpop.f32.mrb[197].mxu1  ;;  %7032 = vmatprep.mubr.f32.mxu1 %v10211_v56 }
 0x500   :  { %7942 = vpow2.f32 %v2826_v1 }
 0x501   :  { %v7937_v23 = vpop.eup %7936  ;;  %v10222_v11 = vadd.f32 %v2889_v27, %v2612_v51  ;;  %v2624_v51 = vadd.f32 %v10169_v24, %v9669_v15  ;;  %v8519_v27 = vld [vmem:[#allocation2 + $0x3d0] sm:$0xff]  ;;  %v10244_v24 = vld [vmem:[%s12168_s2 + $0x2] ss:$0 sm:$0xff] }
 0x502   :  { %v7939_v16 = vpop.eup %7938  ;;  %v2828_v58 = vmul.f32 1.442695, %v7937_v23  ;;  %3084 = vadd.xlane.f32.xlu1 %v7937_v23 }
 0x503   :  { %12390 = vst [vmem:[#allocation131_spill] sm:$0xff] %v10222_v11  ;;  %v2890_v13 = vmul.f32 %v8518_v40, %v7939_v16  ;;  %7033 = vmatmul.mubr.f32.gmra.mrb[250].mxu1 %v10222_v11  ;;  %v2630_v40 = vadd.f32 %v10183_v35, %v9669_v15  ;;  %v8520_v16 = vld [vmem:[#allocation2 + $0x3e0] sm:$0xff]  ;;  %v3242_v35 = vadd.f32 %v10244_v24, %v10177_v63 }
 0x504   :  { %7944 = vpow2.f32 %v2828_v58 }
 0x505   :  { %v10229_v36 = vadd.f32 %v2890_v13, %v2618_v39 }
 0x506   :  { %v7941_v41 = vpop.eup %7940  ;;  %v6956_v1 = vpop.f32.mrb[198].mxu1 }
 0x507   :  { %12392 = vst [vmem:[#allocation133_spill] sm:$0xff] %v10229_v36  ;;  %v2891_v56 = vmul.f32 %v8519_v27, %v7941_v41  ;;  %v3271_v53 = vpop.f32.mrb[199].mxu1  ;;  %7035 = vmatprep.mubr.f32.mxu1 %v10229_v36 }
 0x509   :  { %v10234_v23 = vadd.f32 %v2891_v56, %v2624_v51  ;;  %v2636_v56 = vadd.f32 %v10193_v54, %v9669_v15  ;;  %v8521_v51 = vld [vmem:[#allocation2 + $0x3f0] sm:$0xff]  ;;  %v3247_v15 = vadd.f32 %v10173_v32, %v10244_v24  ;;  %v3560_v54 = vmax.f32 %v3242_v35, 0.0 }
 0x50a   :  { %v7943_v38 = vpop.eup %7942 }
 0x50b   :  { %12393 = vst [vmem:[#allocation134_spill] sm:$0xff] %v10234_v23  ;;  %v2892_v58 = vmul.f32 %v8520_v16, %v7943_v38  ;;  %7036 = vmatmul.mubr.f32.gmra.mrb[252].mxu1 %v10234_v23  ;;  %v4639_v16 = vld [vmem:[#allocation5 + $0x1b8] sm:$0xff]  ;;  %v3561_v63 = vmax.f32 %v3247_v15, 0.0 }
 0x50d   :  { %v10239_v39 = vadd.f32 %v2892_v58, %v2630_v40  ;;  %v4638_v40 = vld [vmem:[#allocation5 + $0x1b0] sm:$0xff] }
 0x50e   :  { %v7945_v13 = vpop.eup %7944  ;;  %v6959_v41 = vpop.f32.mrb[200].mxu1  ;;  %v7373_v58 = vpack.c.bf16 %v4639_v16, %v4638_v40 }
 0x50f   :  { %12394 = vst [vmem:[#allocation135_spill] sm:$0xff] %v10239_v39  ;;  %v2893_v27 = vmul.f32 %v8521_v51, %v7945_v13  ;;  %v3281_v36 = vpop.f32.mrb[201].mxu1  ;;  %7038 = vmatprep.mubr.f32.mxu1 %v10239_v39  ;;  %v4647_v39 = vld [vmem:[#allocation5 + $0x1f8] sm:$0xff] }
 0x510   :  { %7374 = vmatprep.subr.bf16.mxu0 %v7373_v58 }
 0x511   :  { %v10251_v38 = vadd.f32 %v2893_v27, %v2636_v56  ;;  %7376 = vmatpush3.bf16.msra.mxu0 %v7373_v58  ;;  %v3252_v56 = vadd.f32 %v10244_v24, %v10201_v8  ;;  %v3257_v27 = vadd.f32 %v10197_v61, %v10244_v24  ;;  %v3262_v58 = vadd.f32 %v10244_v24, %v10219_v3 }
 0x512   :  { %v3267_v8 = vadd.f32 %v10215_v46, %v10244_v24  ;;  %v3277_v3 = vadd.f32 %v6956_v1, %v10244_v24 }
 0x513   :  { %12395 = vst [vmem:[#allocation136_spill] sm:$0xff] %v10251_v38  ;;  %7039 = vmatmul.mubr.f32.gmra.mrb[254].mxu1 %v10251_v38  ;;  %v3562_v40 = vmax.f32 %v3252_v56, 0.0  ;;  %v3563_v35 = vmax.f32 %v3257_v27, 0.0  ;;  %v3564_v15 = vmax.f32 %v3262_v58, 0.0  ;;  %v3272_v56 = vadd.f32 %v10244_v24, %v3271_v53  ;;  %v4641_v38 = vld [vmem:[#allocation5 + $0x1c8] sm:$0xff] }
 0x514   :  { %3734 = vmatprep.mubr.f32.mxu1 %v12301_v42  ;;  %v3565_v61 = vmax.f32 %v3267_v8, 0.0  ;;  %v3567_v46 = vmax.f32 %v3277_v3, 0.0  ;;  %v3282_v58 = vadd.f32 %v10244_v24, %v3281_v36  ;;  %v3287_v53 = vadd.f32 %v6959_v41, %v10244_v24 }
 0x515   :  { %v3566_v27 = vmax.f32 %v3272_v56, 0.0 }
 0x516   :  { %v6962_v13 = vpop.f32.mrb[202].mxu1 }
 0x517   :  { %v3291_v51 = vpop.f32.mrb[203].mxu1  ;;  %3735 = vmatmul.mubr.f32.vlgmr.msra.gmra.mrb[0].mxu1 %v3560_v54  ;;  %v3297_v36 = vadd.f32 %v6962_v13, %v10244_v24 }
 0x518   :  { %3740 = vmatprep.mubr.f32.mxu1 %v12301_v42  ;;  %v3292_v3 = vadd.f32 %v10244_v24, %v3291_v51 }
 0x519   :  { %v3571_v41 = vmax.f32 %v3297_v36, 0.0 }
 0x51b   :  { %3741 = vmatmul.mubr.f32.gmra.mrb[2].mxu1 %v3561_v63 }
 0x51c   :  { %3746 = vmatprep.mubr.f32.mxu1 %v12301_v42 }
 0x51e   :  { %v6965_v16 = vpop.f32.mrb[204].mxu1 }
 0x51f   :  { %v3301_v32 = vpop.f32.mrb[205].mxu1  ;;  %3747 = vmatmul.mubr.f32.gmra.mrb[4].mxu1 %v3562_v40 }
 0x520   :  { %3752 = vmatprep.mubr.f32.mxu1 %v12301_v42 }
 0x523   :  { %3753 = vmatmul.mubr.f32.gmra.mrb[6].mxu1 %v3563_v35 }
 0x524   :  { %3758 = vmatprep.mubr.f32.mxu1 %v12301_v42 }
 0x526   :  { %v6968_v54 = vpop.f32.mrb[206].mxu1 }
 0x527   :  { %v3311_v63 = vpop.f32.mrb[207].mxu1  ;;  %3759 = vmatmul.mubr.f32.gmra.mrb[8].mxu1 %v3564_v15  ;;  %v4640_v15 = vld [vmem:[#allocation5 + $0x1c0] sm:$0xff] }
 0x528   :  { %3764 = vmatprep.mubr.f32.mxu1 %v12301_v42  ;;  %v7377_v8 = vpack.c.bf16 %v4641_v38, %v4640_v15  ;;  %v3570_v38 = vmax.f32 %v3292_v3, 0.0  ;;  %v3317_v3 = vadd.f32 %v6968_v54, %v10244_v24 }
 0x52a   :  { %7378 = vmatprep.subr.bf16.mxu0 %v7377_v8 }
 0x52b   :  { %3765 = vmatmul.mubr.f32.gmra.mrb[10].mxu1 %v3565_v61  ;;  %v3568_v61 = vmax.f32 %v3282_v58, 0.0  ;;  %7380 = vmatpush3.bf16.msra.mxu0 %v7377_v8  ;;  %v3302_v58 = vadd.f32 %v10244_v24, %v3301_v32  ;;  %v3307_v8 = vadd.f32 %v6965_v16, %v10244_v24  ;;  %v3575_v16 = vmax.f32 %v3317_v3, 0.0 }
 0x52c   :  { %3770 = vmatprep.mubr.f32.mxu1 %v12301_v42 }
 0x52d   :  { %v3572_v51 = vmax.f32 %v3302_v58, 0.0  ;;  %v3573_v13 = vmax.f32 %v3307_v8, 0.0  ;;  %v4642_v58 = vld [vmem:[#allocation5 + $0x1d0] sm:$0xff] }
 0x52e   :  { %v6971_v40 = vpop.f32.mrb[208].mxu1 }
 0x52f   :  { %v3321_v35 = vpop.f32.mrb[209].mxu1  ;;  %3771 = vmatmul.mubr.f32.gmra.mrb[12].mxu1 %v3566_v27  ;;  %v3569_v27 = vmax.f32 %v3287_v53, 0.0 }
 0x530   :  { %3776 = vmatprep.mubr.f32.mxu1 %v12301_v42 }
 0x533   :  { %3777 = vmatmul.mubr.f32.gmra.mrb[14].mxu1 %v3567_v46 }
 0x534   :  { %3782 = vmatprep.mubr.f32.mxu1 %v12301_v42 }
 0x536   :  { %v6974_v1 = vpop.f32.mrb[210].mxu1 }
 0x537   :  { %v3331_v56 = vpop.f32.mrb[211].mxu1  ;;  %3783 = vmatmul.mubr.f32.gmra.mrb[16].mxu1 %v3568_v61 }
 0x538   :  { %3788 = vmatprep.mubr.f32.mxu1 %v12301_v42  ;;  %v3332_v3 = vadd.f32 %v10244_v24, %v3331_v56 }
 0x53b   :  { %3789 = vmatmul.mubr.f32.gmra.mrb[18].mxu1 %v3569_v27  ;;  %v3312_v27 = vadd.f32 %v10244_v24, %v3311_v63  ;;  %v3327_v63 = vadd.f32 %v6971_v40, %v10244_v24 }
 0x53c   :  { %3794 = vmatprep.mubr.f32.mxu1 %v12301_v42 }
 0x53d   :  { %v3574_v32 = vmax.f32 %v3312_v27, 0.0 }
 0x53e   :  { %v6977_v46 = vpop.f32.mrb[212].mxu1 }
 0x53f   :  { %v3341_v15 = vpop.f32.mrb[213].mxu1  ;;  %3795 = vmatmul.mubr.f32.gmra.mrb[20].mxu1 %v3570_v38 }
 0x540   :  { %3800 = vmatprep.mubr.f32.mxu1 %v12301_v42 }
 0x543   :  { %3801 = vmatmul.mubr.f32.gmra.mrb[22].mxu1 %v3571_v41  ;;  %v3322_v41 = vadd.f32 %v10244_v24, %v3321_v35  ;;  %v3337_v35 = vadd.f32 %v6974_v1, %v10244_v24 }
 0x544   :  { %3806 = vmatprep.mubr.f32.mxu1 %v12301_v42 }
 0x545   :  { %v3579_v40 = vmax.f32 %v3337_v35, 0.0 }
 0x546   :  { %v6980_v53 = vpop.f32.mrb[214].mxu1 }
 0x547   :  { %v3351_v61 = vpop.f32.mrb[215].mxu1  ;;  %3807 = vmatmul.mubr.f32.gmra.mrb[24].mxu1 %v3572_v51  ;;  %v4643_v51 = vld [vmem:[#allocation5 + $0x1d8] sm:$0xff] }
 0x548   :  { %3812 = vmatprep.mubr.f32.mxu1 %v12301_v42  ;;  %v7381_v8 = vpack.c.bf16 %v4643_v51, %v4642_v58 }
 0x54a   :  { %7382 = vmatprep.subr.bf16.mxu0 %v7381_v8 }
 0x54b   :  { %3813 = vmatmul.mubr.f32.gmra.mrb[26].mxu1 %v3573_v13  ;;  %v3576_v13 = vmax.f32 %v3322_v41, 0.0  ;;  %7384 = vmatpush3.bf16.msra.mxu0 %v7381_v8  ;;  %v3342_v41 = vadd.f32 %v10244_v24, %v3341_v15  ;;  %v3347_v8 = vadd.f32 %v6977_v46, %v10244_v24 }
 0x54c   :  { %3818 = vmatprep.mubr.f32.mxu1 %v12301_v42 }
 0x54d   :  { %v3580_v56 = vmax.f32 %v3342_v41, 0.0  ;;  %v3581_v1 = vmax.f32 %v3347_v8, 0.0 }
 0x54e   :  { %v6983_v36 = vpop.f32.mrb[216].mxu1 }
 0x54f   :  { %v3361_v38 = vpop.f32.mrb[217].mxu1  ;;  %3819 = vmatmul.mubr.f32.gmra.mrb[28].mxu1 %v3574_v32  ;;  %v3577_v32 = vmax.f32 %v3327_v63, 0.0  ;;  %v3367_v41 = vadd.f32 %v6983_v36, %v10244_v24 }
 0x550   :  { %3824 = vmatprep.mubr.f32.mxu1 %v12301_v42 }
 0x553   :  { %3825 = vmatmul.mubr.f32.gmra.mrb[30].mxu1 %v3575_v16  ;;  %v3578_v16 = vmax.f32 %v3332_v3, 0.0  ;;  %v3357_v3 = vadd.f32 %v6980_v53, %v10244_v24  ;;  %v3585_v53 = vmax.f32 %v3367_v41, 0.0 }
 0x554   :  { %3830 = vmatprep.mubr.f32.mxu1 %v12301_v42 }
 0x555   :  { %v3583_v46 = vmax.f32 %v3357_v3, 0.0 }
 0x556   :  { %v6986_v54 = vpop.f32.mrb[218].mxu1 }
 0x557   :  { %v3371_v27 = vpop.f32.mrb[219].mxu1  ;;  %3831 = vmatmul.mubr.f32.gmra.mrb[32].mxu1 %v3576_v13 }
 0x558   :  { %3836 = vmatprep.mubr.f32.mxu1 %v12301_v42 }
 0x55b   :  { %3837 = vmatmul.mubr.f32.gmra.mrb[34].mxu1 %v3577_v32  ;;  %v3352_v32 = vadd.f32 %v10244_v24, %v3351_v61 }
 0x55c   :  { %3842 = vmatprep.mubr.f32.mxu1 %v12301_v42 }
 0x55d   :  { %v3582_v15 = vmax.f32 %v3352_v32, 0.0  ;;  %v3377_v32 = vadd.f32 %v6986_v54, %v10244_v24 }
 0x55e   :  { %v6989_v58 = vpop.f32.mrb[220].mxu1 }
 0x55f   :  { %v3381_v51 = vpop.f32.mrb[221].mxu1  ;;  %3843 = vmatmul.mubr.f32.gmra.mrb[36].mxu1 %v3578_v16  ;;  %v3587_v36 = vmax.f32 %v3377_v32, 0.0 }
 0x560   :  { %3848 = vmatprep.mubr.f32.mxu1 %v12301_v42 }
 0x563   :  { %3849 = vmatmul.mubr.f32.gmra.mrb[38].mxu1 %v3579_v40  ;;  %v3362_v40 = vadd.f32 %v10244_v24, %v3361_v38 }
 0x564   :  { %3854 = vmatprep.mubr.f32.mxu1 %v12301_v42 }
 0x565   :  { %v3584_v61 = vmax.f32 %v3362_v40, 0.0  ;;  %v4644_v40 = vld [vmem:[#allocation5 + $0x1e0] sm:$0xff] }
 0x566   :  { %v6992_v63 = vpop.f32.mrb[222].mxu1 }
 0x567   :  { %v3391_v13 = vpop.f32.mrb[223].mxu1  ;;  %3855 = vmatmul.mubr.f32.gmra.mrb[40].mxu1 %v3580_v56 }
 0x568   :  { %3860 = vmatprep.mubr.f32.mxu1 %v12301_v42  ;;  %v3392_v32 = vadd.f32 %v10244_v24, %v3391_v13 }
 0x56b   :  { %3861 = vmatmul.mubr.f32.gmra.mrb[42].mxu1 %v3581_v1  ;;  %v3372_v1 = vadd.f32 %v10244_v24, %v3371_v27  ;;  %v3387_v27 = vadd.f32 %v6989_v58, %v10244_v24  ;;  %v3397_v58 = vadd.f32 %v6992_v63, %v10244_v24 }
 0x56c   :  { %3866 = vmatprep.mubr.f32.mxu1 %v12301_v42 }
 0x56d   :  { %v3586_v38 = vmax.f32 %v3372_v1, 0.0  ;;  %v4646_v1 = vld [vmem:[#allocation5 + $0x1f0] sm:$0xff] }
 0x56e   :  { %v6995_v35 = vpop.f32.mrb[224].mxu1  ;;  %v7389_v23 = vpack.c.bf16 %v4647_v39, %v4646_v1 }
 0x56f   :  { %v3401_v16 = vpop.f32.mrb[225].mxu1  ;;  %3867 = vmatmul.mubr.f32.gmra.mrb[44].mxu1 %v3582_v15  ;;  %v3407_v13 = vadd.f32 %v6995_v35, %v10244_v24 }
 0x570   :  { %3872 = vmatprep.mubr.f32.mxu1 %v12301_v42  ;;  %v3402_v39 = vadd.f32 %v10244_v24, %v3401_v16 }
 0x571   :  { %v3593_v63 = vmax.f32 %v3407_v13, 0.0 }
 0x573   :  { %3873 = vmatmul.mubr.f32.gmra.mrb[46].mxu1 %v3583_v46  ;;  %v3382_v46 = vadd.f32 %v10244_v24, %v3381_v51  ;;  %v3589_v51 = vmax.f32 %v3387_v27, 0.0 }
 0x574   :  { %3878 = vmatprep.mubr.f32.mxu1 %v12301_v42 }
 0x576   :  { %v6998_v8 = vpop.f32.mrb[226].mxu1 }
 0x577   :  { %v3411_v56 = vpop.f32.mrb[227].mxu1  ;;  %3879 = vmatmul.mubr.f32.gmra.mrb[48].mxu1 %v3584_v61  ;;  %v4645_v61 = vld [vmem:[#allocation5 + $0x1e8] sm:$0xff]  ;;  %v3417_v1 = vadd.f32 %v6998_v8, %v10244_v24 }
 0x578   :  { %3884 = vmatprep.mubr.f32.mxu1 %v12301_v42  ;;  %v7385_v41 = vpack.c.bf16 %v4645_v61, %v4644_v40  ;;  %v3591_v61 = vmax.f32 %v3397_v58, 0.0 }
 0x579   :  { %v3595_v35 = vmax.f32 %v3417_v1, 0.0 }
 0x57a   :  { %7386 = vmatprep.subr.bf16.mxu0 %v7385_v41 }
 0x57b   :  { %3885 = vmatmul.mubr.f32.gmra.mrb[50].mxu1 %v3585_v53  ;;  %v3588_v53 = vmax.f32 %v3382_v46, 0.0  ;;  %7388 = vmatpush3.bf16.msra.mxu0 %v7385_v41 }
 0x57c   :  { %3890 = vmatprep.mubr.f32.mxu1 %v12301_v42  ;;  %7390 = vmatprep.subr.bf16.mxu0 %v7389_v23 }
 0x57e   :  { %v7001_v3 = vpop.f32.mrb[228].mxu1 }
 0x57f   :  { %v3421_v15 = vpop.f32.mrb[229].mxu1  ;;  %3891 = vmatmul.mubr.f32.gmra.mrb[52].mxu1 %v3586_v38  ;;  %7392 = vmatpush3.bf16.msra.mxu0 %v7389_v23  ;;  %v3592_v23 = vmax.f32 %v3402_v39, 0.0 }
 0x580   :  { %3896 = vmatprep.mubr.f32.mxu1 %v12301_v42  ;;  %v3422_v58 = vadd.f32 %v10244_v24, %v3421_v15 }
 0x583   :  { %3897 = vmatmul.mubr.f32.gmra.mrb[54].mxu1 %v3587_v36  ;;  %v3590_v36 = vmax.f32 %v3392_v32, 0.0 }
 0x584   :  { %3902 = vmatprep.mubr.f32.mxu1 %v12301_v42 }
 0x586   :  { %v7004_v54 = vpop.f32.mrb[230].mxu1 }
 0x587   :  { %v3431_v38 = vpop.f32.mrb[231].mxu1  ;;  %3903 = vmatmul.mubr.f32.gmra.mrb[56].mxu1 %v3588_v53  ;;  %v3412_v53 = vadd.f32 %v10244_v24, %v3411_v56  ;;  %v3596_v56 = vmax.f32 %v3422_v58, 0.0 }
 0x588   :  { %3908 = vmatprep.mubr.f32.mxu1 %v12301_v42  ;;  %v3432_v13 = vadd.f32 %v10244_v24, %v3431_v38 }
 0x589   :  { %v3594_v16 = vmax.f32 %v3412_v53, 0.0 }
 0x58a   :  { %v3598_v15 = vmax.f32 %v3432_v13, 0.0 }
 0x58b   :  { %3909 = vmatmul.mubr.f32.gmra.mrb[58].mxu1 %v3589_v51 }
 0x58c   :  { %3914 = vmatprep.mubr.f32.mxu1 %v12301_v42 }
 0x58e   :  { %v7007_v46 = vpop.f32.mrb[232].mxu1 }
 0x58f   :  { %v3441_v40 = vpop.f32.mrb[233].mxu1  ;;  %3915 = vmatmul.mubr.f32.gmra.mrb[60].mxu1 %v3590_v36  ;;  %v3427_v36 = vadd.f32 %v7001_v3, %v10244_v24 }
 0x590   :  { %3920 = vmatprep.mubr.f32.mxu1 %v12301_v42  ;;  %v3442_v1 = vadd.f32 %v10244_v24, %v3441_v40 }
 0x591   :  { %v3597_v8 = vmax.f32 %v3427_v36, 0.0 }
 0x592   :  { %v3600_v38 = vmax.f32 %v3442_v1, 0.0 }
 0x593   :  { %3921 = vmatmul.mubr.f32.gmra.mrb[62].mxu1 %v3591_v61 }
 0x594   :  { %3926 = vmatprep.mubr.f32.mxu1 %v12301_v42 }
 0x596   :  { %v7010_v41 = vpop.f32.mrb[234].mxu1 }
 0x597   :  { %v3451_v27 = vpop.f32.mrb[235].mxu1  ;;  %3927 = vmatmul.mubr.f32.gmra.mrb[64].mxu1 %v3592_v23  ;;  %v3437_v23 = vadd.f32 %v7004_v54, %v10244_v24 }
 0x598   :  { %3932 = vmatprep.mubr.f32.mxu1 %v12301_v42  ;;  %v3452_v36 = vadd.f32 %v10244_v24, %v3451_v27 }
 0x599   :  { %v3599_v3 = vmax.f32 %v3437_v23, 0.0 }
 0x59a   :  { %v3602_v40 = vmax.f32 %v3452_v36, 0.0 }
 0x59b   :  { %3933 = vmatmul.mubr.f32.gmra.mrb[66].mxu1 %v3593_v63 }
 0x59c   :  { %3938 = vmatprep.mubr.f32.mxu1 %v12301_v42 }
 0x59e   :  { %v7013_v51 = vpop.f32.mrb[236].mxu1 }
 0x59f   :  { %v3461_v32 = vpop.f32.mrb[237].mxu1  ;;  %3939 = vmatmul.mubr.f32.gmra.mrb[68].mxu1 %v3594_v16  ;;  %v3447_v16 = vadd.f32 %v7007_v46, %v10244_v24 }
 0x5a0   :  { %3944 = vmatprep.mubr.f32.mxu1 %v12301_v42  ;;  %v3462_v23 = vadd.f32 %v10244_v24, %v3461_v32 }
 0x5a1   :  { %v3601_v54 = vmax.f32 %v3447_v16, 0.0 }
 0x5a2   :  { %v3604_v27 = vmax.f32 %v3462_v23, 0.0 }
 0x5a3   :  { %3945 = vmatmul.mubr.f32.gmra.mrb[70].mxu1 %v3595_v35 }
 0x5a4   :  { %3950 = vmatprep.mubr.f32.mxu1 %v12301_v42 }
 0x5a6   :  { %v7016_v61 = vpop.f32.mrb[238].mxu1 }
 0x5a7   :  { %v3471_v39 = vpop.f32.mrb[239].mxu1  ;;  %3951 = vmatmul.mubr.f32.gmra.mrb[72].mxu1 %v3596_v56  ;;  %v3457_v56 = vadd.f32 %v7010_v41, %v10244_v24 }
 0x5a8   :  { %3956 = vmatprep.mubr.f32.mxu1 %v12301_v42  ;;  %v3472_v16 = vadd.f32 %v10244_v24, %v3471_v39 }
 0x5a9   :  { %v3603_v46 = vmax.f32 %v3457_v56, 0.0 }
 0x5aa   :  { %v3606_v32 = vmax.f32 %v3472_v16, 0.0 }
 0x5ab   :  { %3957 = vmatmul.mubr.f32.gmra.mrb[74].mxu1 %v3597_v8 }
 0x5ac   :  { %3962 = vmatprep.mubr.f32.mxu1 %v12301_v42 }
 0x5ae   :  { %v7019_v63 = vpop.f32.mrb[240].mxu1 }
 0x5af   :  { %v3481_v53 = vpop.f32.mrb[241].mxu1  ;;  %3963 = vmatmul.mubr.f32.gmra.mrb[76].mxu1 %v3598_v15  ;;  %v3467_v15 = vadd.f32 %v7013_v51, %v10244_v24 }
 0x5b0   :  { %3968 = vmatprep.mubr.f32.mxu1 %v12301_v42  ;;  %v3482_v56 = vadd.f32 %v10244_v24, %v3481_v53 }
 0x5b1   :  { %v3605_v41 = vmax.f32 %v3467_v15, 0.0 }
 0x5b2   :  { %v3608_v39 = vmax.f32 %v3482_v56, 0.0 }
 0x5b3   :  { %3969 = vmatmul.mubr.f32.gmra.mrb[78].mxu1 %v3599_v3 }
 0x5b4   :  { %3974 = vmatprep.mubr.f32.mxu1 %v12301_v42 }
 0x5b6   :  { %v7022_v35 = vpop.f32.mrb[242].mxu1 }
 0x5b7   :  { %v3491_v58 = vpop.f32.mrb[243].mxu1  ;;  %3975 = vmatmul.mubr.f32.gmra.mrb[80].mxu1 %v3600_v38  ;;  %v3477_v38 = vadd.f32 %v7016_v61, %v10244_v24  ;;  %v3497_v53 = vadd.f32 %v7022_v35, %v10244_v24 }
 0x5b8   :  { %3980 = vmatprep.mubr.f32.mxu1 %v12301_v42  ;;  %v3492_v15 = vadd.f32 %v10244_v24, %v3491_v58  ;;  %v10373_v58 = vld [vmem:[%s12170_s4 + $0x4] sm:$0x3] }
 0x5b9   :  { %v3607_v51 = vmax.f32 %v3477_v38, 0.0 }
 0x5bb   :  { %3981 = vmatmul.mubr.f32.gmra.mrb[82].mxu1 %v3601_v54 }
 0x5bc   :  { %3986 = vmatprep.mubr.f32.mxu1 %v12301_v42 }
 0x5be   :  { %v7025_v8 = vpop.f32.mrb[244].mxu1 }
 0x5bf   :  { %v3501_v13 = vpop.f32.mrb[245].mxu1  ;;  %3987 = vmatmul.mubr.f32.gmra.mrb[84].mxu1 %v3602_v40  ;;  %v3487_v40 = vadd.f32 %v7019_v63, %v10244_v24  ;;  %v3611_v63 = vmax.f32 %v3497_v53, 0.0  ;;  %v3507_v35 = vadd.f32 %v7025_v8, %v10244_v24 }
 0x5c0   :  { %3992 = vmatprep.mubr.f32.mxu1 %v12301_v42  ;;  %v3502_v38 = vadd.f32 %v10244_v24, %v3501_v13 }
 0x5c1   :  { %v3609_v61 = vmax.f32 %v3487_v40, 0.0  ;;  %v10382_v40 = vrot.slane %v10373_v58, %v8927_v48  ;;  %v3613_v13 = vmax.f32 %v3507_v35, 0.0 }
 0x5c3   :  { %3993 = vmatmul.mubr.f32.gmra.mrb[86].mxu1 %v3603_v46 }
 0x5c4   :  { %3998 = vmatprep.mubr.f32.mxu1 %v12301_v42 }
 0x5c6   :  { %v7028_v3 = vpop.f32.mrb[246].mxu1 }
 0x5c7   :  { %v3511_v1 = vpop.f32.mrb[247].mxu1  ;;  %3999 = vmatmul.mubr.f32.gmra.mrb[88].mxu1 %v3604_v27  ;;  %v3610_v27 = vmax.f32 %v3492_v15, 0.0  ;;  %v3517_v8 = vadd.f32 %v7028_v3, %v10244_v24 }
 0x5c8   :  { %4004 = vmatprep.mubr.f32.mxu1 %v12301_v42 }
 0x5cb   :  { %4005 = vmatmul.mubr.f32.gmra.mrb[90].mxu1 %v3605_v41 }
 0x5cc   :  { %4010 = vmatprep.mubr.f32.mxu1 %v12301_v42 }
 0x5ce   :  { %v7031_v54 = vpop.f32.mrb[248].mxu1 }
 0x5cf   :  { %v3521_v36 = vpop.f32.mrb[249].mxu1  ;;  %4011 = vmatmul.mubr.f32.gmra.mrb[92].mxu1 %v3606_v32  ;;  %v3612_v32 = vmax.f32 %v3502_v38, 0.0  ;;  %v3527_v3 = vadd.f32 %v7031_v54, %v10244_v24 }
 0x5d0   :  { %4016 = vmatprep.mubr.f32.mxu1 %v12301_v42  ;;  %v3522_v35 = vadd.f32 %v10244_v24, %v3521_v36  ;;  %v10404_v36 = vpop.xlane.xlu0 %1537 }
 0x5d1   :  { %12396 = vst [vmem:[#allocation137_spill] sm:$0xff] %v10404_v36 }
 0x5d3   :  { %4017 = vmatmul.mubr.f32.gmra.mrb[94].mxu1 %v3607_v51 }
 0x5d4   :  { %4022 = vmatprep.mubr.f32.mxu1 %v12301_v42 }
 0x5d6   :  { %v10357_v46 = vpop.f32.mrb[250].mxu1 }
 0x5d7   :  { %v3531_v23 = vpop.f32.mrb[251].mxu1  ;;  %4023 = vmatmul.mubr.f32.gmra.mrb[96].mxu1 %v3608_v39  ;;  %v3512_v39 = vadd.f32 %v10244_v24, %v3511_v1  ;;  %v3615_v1 = vmax.f32 %v3517_v8, 0.0 }
 0x5d8   :  { %4028 = vmatprep.mubr.f32.mxu1 %v12301_v42 }
 0x5db   :  { %4029 = vmatmul.mubr.f32.gmra.mrb[98].mxu1 %v3609_v61 }
 0x5dc   :  { %4034 = vmatprep.mubr.f32.mxu1 %v12301_v42 }
 0x5de   :  { %v10363_v41 = vpop.f32.mrb[252].mxu1 }
 0x5df   :  { %v10365_v16 = vpop.f32.mrb[253].mxu1  ;;  %4035 = vmatmul.mubr.f32.gmra.mrb[100].mxu1 %v3610_v27  ;;  %v3614_v27 = vmax.f32 %v3512_v39, 0.0  ;;  %v3616_v39 = vmax.f32 %v3522_v35, 0.0 }
 0x5e0   :  { %4040 = vmatprep.mubr.f32.mxu1 %v12301_v42 }
 0x5e3   :  { %4041 = vmatmul.mubr.f32.gmra.mrb[102].mxu1 %v3611_v63 }
 0x5e4   :  { %4046 = vmatprep.mubr.f32.mxu1 %v12301_v42 }
 0x5e6   :  { %v10376_v51 = vpop.f32.mrb[254].mxu1 }
 0x5e7   :  { %v10378_v56 = vpop.f32.mrb[255].mxu1  ;;  %4047 = vmatmul.mubr.f32.gmra.mrb[104].mxu1 %v3612_v32 }
 0x5e8   :  { %4052 = vmatprep.mubr.f32.mxu1 %v12301_v42 }
 0x5ea   :  { %v3736_v61 = vpop.f32.mrb[0].mxu1 }
 0x5eb   :  { %v3737_v15 = vadd.f32 %v3736_v61, %v10382_v40  ;;  %v10387_v53 = vpop.f32.mrb[1].mxu1  ;;  %4053 = vmatmul.mubr.f32.gmra.mrb[106].mxu1 %v3613_v13 }
 0x5ec   :  { %4058 = vmatprep.mubr.f32.mxu1 %v12301_v42 }
 0x5ed   :  { %7946 = vtanh.f32 %v3737_v15 }
 0x5ee   :  { %v3742_v63 = vpop.f32.mrb[2].mxu1 }
 0x5ef   :  { %v3743_v38 = vadd.f32 %v3742_v63, %v10382_v40  ;;  %v10392_v32 = vpop.f32.mrb[3].mxu1  ;;  %4059 = vmatmul.mubr.f32.gmra.mrb[108].mxu1 %v3614_v27 }
 0x5f0   :  { %4064 = vmatprep.mubr.f32.mxu1 %v12301_v42 }
 0x5f1   :  { %7948 = vtanh.f32 %v3743_v38 }
 0x5f2   :  { %v3748_v61 = vpop.f32.mrb[4].mxu1 }
 0x5f3   :  { %v3749_v13 = vadd.f32 %v3748_v61, %v10382_v40  ;;  %v10397_v11 = vpop.f32.mrb[5].mxu1  ;;  %4065 = vmatmul.mubr.f32.gmra.mrb[110].mxu1 %v3615_v1  ;;  %v3617_v1 = vmax.f32 %v3527_v3, 0.0  ;;  %v3532_v61 = vadd.f32 %v10244_v24, %v3531_v23  ;;  %v3537_v3 = vadd.f32 %v10357_v46, %v10244_v24 }
 0x5f4   :  { %4070 = vmatprep.mubr.f32.mxu1 %v12301_v42  ;;  %v3542_v46 = vadd.f32 %v10244_v24, %v10365_v16 }
 0x5f5   :  { %7950 = vtanh.f32 %v3749_v13 }
 0x5f6   :  { %v3754_v15 = vpop.f32.mrb[6].mxu1 }
 0x5f7   :  { %v7947_v27 = vpop.eup %7946  ;;  %v3755_v63 = vadd.f32 %v3754_v15, %v10382_v40  ;;  %v10402_v8 = vpop.f32.mrb[7].mxu1  ;;  %4071 = vmatmul.mubr.f32.gmra.mrb[112].mxu1 %v3616_v39 }
 0x5f8   :  { %v4183_v38 = vmul.f32 1.442695, %v7947_v27  ;;  %4439 = vadd.xlane.f32.xlu0 %v7947_v27  ;;  %4076 = vmatprep.mubr.f32.mxu1 %v12301_v42  ;;  %v10411_v15 = vpop.xlane.xlu1 %1539  ;;  %v3618_v27 = vmax.f32 %v3532_v61, 0.0  ;;  %v10426_v61 = vrot.slane %v10373_v58, %v8974_v30  ;;  %v3620_v58 = vmax.f32 %v3542_v46, 0.0 }
 0x5f9   :  { %7952 = vtanh.f32 %v3755_v63  ;;  %12397 = vst [vmem:[#allocation138_spill] sm:$0xff] %v10411_v15 }
 0x5fa   :  { %7954 = vpow2.f32 %v4183_v38  ;;  %v3760_v54 = vpop.f32.mrb[8].mxu1 }
 0x5fb   :  { %v7949_v35 = vpop.eup %7948  ;;  %v3761_v13 = vadd.f32 %v3760_v54, %v10382_v40  ;;  %v10409_v18 = vpop.f32.mrb[9].mxu1  ;;  %4077 = vmatmul.mubr.f32.gmra.mrb[114].mxu1 %v3617_v1 }
 0x5fc   :  { %v4185_v39 = vmul.f32 1.442695, %v7949_v35  ;;  %4441 = vadd.xlane.f32.xlu1 %v7949_v35  ;;  %4082 = vmatprep.mubr.f32.mxu1 %v12301_v42  ;;  %v10419_v1 = vpop.xlane.xlu0 %1541  ;;  %v3619_v35 = vmax.f32 %v3537_v3, 0.0  ;;  %v3547_v3 = vadd.f32 %v10363_v41, %v10244_v24 }
 0x5fd   :  { %7956 = vtanh.f32 %v3761_v13  ;;  %12398 = vst [vmem:[#allocation139_spill] sm:$0xff] %v10419_v1  ;;  %v10431_v1 = vpop.xlane.xlu1 %1543 }
 0x5fe   :  { %7958 = vpow2.f32 %v4185_v39  ;;  %v3766_v23 = vpop.f32.mrb[10].mxu1  ;;  %12399 = vst [vmem:[#allocation140_spill] sm:$0xff] %v10431_v1  ;;  %v3621_v34 = vmax.f32 %v3547_v3, 0.0 }
 0x5ff   :  { %v7951_v63 = vpop.eup %7950  ;;  %v3767_v38 = vadd.f32 %v3766_v23, %v10382_v40  ;;  %v10417_v54 = vpop.f32.mrb[11].mxu1  ;;  %4083 = vmatmul.mubr.f32.gmra.mrb[116].mxu1 %v3618_v27 }
 0x600   :  { %v4187_v15 = vmul.f32 1.442695, %v7951_v63  ;;  %4443 = vadd.xlane.f32.xlu0 %v7951_v63  ;;  %4088 = vmatprep.mubr.f32.mxu1 %v12301_v42 }
 0x601   :  { %7960 = vtanh.f32 %v3767_v38 }
 0x602   :  { %7962 = vpow2.f32 %v4187_v15  ;;  %v3772_v13 = vpop.f32.mrb[12].mxu1  ;;  %v3739_v15 = vadd.f32 %v10387_v53, %v10426_v61  ;;  %v3745_v53 = vadd.f32 %v10392_v32, %v10426_v61 }
 0x603   :  { %v7953_v39 = vpop.eup %7952  ;;  %v3773_v27 = vadd.f32 %v3772_v13, %v10382_v40  ;;  %v10429_v23 = vpop.f32.mrb[13].mxu1  ;;  %4089 = vmatmul.mubr.f32.gmra.mrb[118].mxu1 %v3619_v35 }
 0x604   :  { %v7955_v63 = vpop.eup %7954  ;;  %v4189_v16 = vmul.f32 1.442695, %v7953_v39  ;;  %4445 = vadd.xlane.f32.xlu1 %v7953_v39  ;;  %4094 = vmatprep.mubr.f32.mxu1 %v12301_v42  ;;  %v10442_v39 = vpop.xlane.xlu0 %1545 }
 0x605   :  { %v4311_v38 = vmul.f32 %v7955_v63, %v8997_v50  ;;  %7964 = vtanh.f32 %v3773_v27  ;;  %12400 = vst [vmem:[#allocation141_spill] sm:$0xff] %v10442_v39  ;;  %v3552_v50 = vadd.f32 %v10244_v24, %v10378_v56  ;;  %v3557_v56 = vadd.f32 %v10376_v51, %v10244_v24 }
 0x606   :  { %7966 = vpow2.f32 %v4189_v16  ;;  %v3778_v13 = vpop.f32.mrb[14].mxu1 }
 0x607   :  { %v7957_v35 = vpop.eup %7956  ;;  %v4375_v36 = vadd.f32 %v4311_v38, %v3739_v15  ;;  %v3779_v1 = vadd.f32 %v3778_v13, %v10382_v40  ;;  %v10440_v12 = vpop.f32.mrb[15].mxu1  ;;  %4095 = vmatmul.mubr.f32.gmra.mrb[120].mxu1 %v3620_v58 }
 0x608   :  { %v7959_v41 = vpop.eup %7958  ;;  %v4191_v46 = vmul.f32 1.442695, %v7957_v35  ;;  %4447 = vadd.xlane.f32.xlu0 %v7957_v35  ;;  %4100 = vmatprep.mubr.f32.mxu1 %v12301_v42  ;;  %v10453_v13 = vpop.xlane.xlu1 %1547 }
 0x609   :  { %6176 = vst [vmem:[#allocation8 + $0x8] sm:$0xff] %v4375_v36  ;;  %v4312_v27 = vmul.f32 %v7959_v41, %v9008_v14  ;;  %7968 = vtanh.f32 %v3779_v1  ;;  %7073 = vmatprep.mubr.f32.mxu0 %v4375_v36  ;;  %12401 = vst [vmem:[#allocation142_spill] sm:$0xff] %v10453_v13  ;;  %v3622_v14 = vmax.f32 %v3552_v50, 0.0  ;;  %v3751_v36 = vadd.f32 %v10397_v11, %v10426_v61 }
 0x60a   :  { %7970 = vpow2.f32 %v4191_v46  ;;  %v3784_v63 = vpop.f32.mrb[16].mxu1  ;;  %v3623_v11 = vmax.f32 %v3557_v56, 0.0 }
 0x60b   :  { %v7961_v16 = vpop.eup %7960  ;;  %v4376_v58 = vadd.f32 %v4312_v27, %v3745_v53  ;;  %v3785_v3 = vadd.f32 %v3784_v63, %v10382_v40  ;;  %v10451_v15 = vpop.f32.mrb[17].mxu1  ;;  %4101 = vmatmul.mubr.f32.gmra.mrb[122].mxu1 %v3621_v34 }
 0x60c   :  { %v7963_v38 = vpop.eup %7962  ;;  %v4193_v32 = vmul.f32 1.442695, %v7961_v16  ;;  %4449 = vadd.xlane.f32.xlu1 %v7961_v16  ;;  %4106 = vmatprep.mubr.f32.mxu1 %v12301_v42  ;;  %v10464_v53 = vpop.xlane.xlu0 %1549 }
 0x60d   :  { %6177 = vst [vmem:[#allocation8 + $0x18] sm:$0xff] %v4376_v58  ;;  %v4313_v1 = vmul.f32 %v7963_v38, %v9019_v9  ;;  %7972 = vtanh.f32 %v3785_v3  ;;  %7074 = vmatmul.mubr.f32.vlgmr.msra.gmra.mrb[192].mxu0 %v4376_v58  ;;  %12402 = vst [vmem:[#allocation143_spill] sm:$0xff] %v10464_v53  ;;  %v3757_v9 = vadd.f32 %v10402_v8, %v10426_v61 }
 0x60e   :  { %7974 = vpow2.f32 %v4193_v32  ;;  %v3790_v34 = vpop.f32.mrb[18].mxu1 }
 0x60f   :  { %v7965_v35 = vpop.eup %7964  ;;  %v4377_v41 = vadd.f32 %v4313_v1, %v3751_v36  ;;  %v3791_v46 = vadd.f32 %v3790_v34, %v10382_v40  ;;  %v10462_v24 = vpop.f32.mrb[19].mxu1  ;;  %4107 = vmatmul.mubr.f32.gmra.mrb[124].mxu1 %v3622_v14 }
 0x610   :  { %v7967_v51 = vpop.eup %7966  ;;  %v4195_v50 = vmul.f32 1.442695, %v7965_v35  ;;  %4451 = vadd.xlane.f32.xlu0 %v7965_v35  ;;  %4112 = vmatprep.mubr.f32.mxu1 %v12301_v42  ;;  %v10473_v14 = vpop.xlane.xlu1 %1551 }
 0x611   :  { %6178 = vst [vmem:[#allocation8 + $0x28] sm:$0xff] %v4377_v41  ;;  %v4314_v27 = vmul.f32 %v7967_v51, %v9028_v29  ;;  %7976 = vtanh.f32 %v3791_v46  ;;  %7076 = vmatprep.mubr.f32.mxu0 %v4377_v41  ;;  %12403 = vst [vmem:[#allocation144_spill] sm:$0xff] %v10473_v14  ;;  %v3763_v29 = vadd.f32 %v10409_v18, %v10426_v61  ;;  %v10481_v51 = vpop.xlane.xlu0 %1553 }
 0x612   :  { %7978 = vpow2.f32 %v4195_v50  ;;  %v3796_v63 = vpop.f32.mrb[20].mxu1  ;;  %12404 = vst [vmem:[#allocation145_spill] sm:$0xff] %v10481_v51  ;;  %v3769_v18 = vadd.f32 %v10417_v54, %v10426_v61  ;;  %v3775_v54 = vadd.f32 %v10429_v23, %v10426_v61  ;;  %v3781_v23 = vadd.f32 %v10440_v12, %v10426_v61 }
 0x613   :  { %v7969_v16 = vpop.eup %7968  ;;  %v4378_v58 = vadd.f32 %v4314_v27, %v3757_v9  ;;  %v3797_v3 = vadd.f32 %v3796_v63, %v10382_v40  ;;  %v10471_v38 = vpop.f32.mrb[21].mxu1  ;;  %4113 = vmatmul.mubr.f32.gmra.mrb[126].mxu1 %v3623_v11  ;;  %v3787_v12 = vadd.f32 %v10451_v15, %v10426_v61 }
 0x614   :  { %v7971_v32 = vpop.eup %7970  ;;  %v4197_v56 = vmul.f32 1.442695, %v7969_v16  ;;  %4453 = vadd.xlane.f32.xlu1 %v7969_v16 }
 0x615   :  { %6179 = vst [vmem:[#allocation8 + $0x38] sm:$0xff] %v4378_v58  ;;  %v4315_v8 = vmul.f32 %v7971_v32, %v9036_v44  ;;  %7980 = vtanh.f32 %v3797_v3  ;;  %7077 = vmatmul.mubr.f32.gmra.mrb[194].mxu0 %v4378_v58  ;;  %v10489_v3 = vpop.xlane.xlu1 %1555 }
 0x616   :  { %7982 = vpow2.f32 %v4197_v56  ;;  %v3802_v36 = vpop.f32.mrb[22].mxu1  ;;  %12405 = vst [vmem:[#allocation146_spill] sm:$0xff] %v10489_v3 }
 0x617   :  { %v7973_v1 = vpop.eup %7972  ;;  %v4379_v34 = vadd.f32 %v4315_v8, %v3763_v29  ;;  %v3803_v35 = vadd.f32 %v3802_v36, %v10382_v40  ;;  %v10479_v41 = vpop.f32.mrb[23].mxu1 }
 0x618   :  { %v7975_v46 = vpop.eup %7974  ;;  %v4199_v50 = vmul.f32 1.442695, %v7973_v1  ;;  %4455 = vadd.xlane.f32.xlu0 %v7973_v1 }
 0x619   :  { %6180 = vst [vmem:[#allocation8 + $0x48] sm:$0xff] %v4379_v34  ;;  %v4316_v44 = vmul.f32 %v7975_v46, %v9044_v60  ;;  %7984 = vtanh.f32 %v3803_v35  ;;  %7079 = vmatprep.mubr.f32.mxu0 %v4379_v34  ;;  %v10497_v35 = vpop.xlane.xlu0 %1557 }
 0x61a   :  { %7986 = vpow2.f32 %v4199_v50  ;;  %v3808_v11 = vpop.f32.mrb[24].mxu1  ;;  %12406 = vst [vmem:[#allocation147_spill] sm:$0xff] %v10497_v35 }
 0x61b   :  { %v7977_v9 = vpop.eup %7976  ;;  %v4380_v27 = vadd.f32 %v4316_v44, %v3769_v18  ;;  %v3809_v63 = vadd.f32 %v3808_v11, %v10382_v40  ;;  %v10487_v16 = vpop.f32.mrb[25].mxu1 }
 0x61c   :  { %v7979_v58 = vpop.eup %7978  ;;  %v4201_v32 = vmul.f32 1.442695, %v7977_v9  ;;  %4457 = vadd.xlane.f32.xlu1 %v7977_v9 }
 0x61d   :  { %6181 = vst [vmem:[#allocation8 + $0x58] sm:$0xff] %v4380_v27  ;;  %v4317_v60 = vmul.f32 %v7979_v58, %v9052_v7  ;;  %7988 = vtanh.f32 %v3809_v63  ;;  %7080 = vmatmul.mubr.f32.gmra.mrb[196].mxu0 %v4380_v27  ;;  %v10505_v63 = vpop.xlane.xlu1 %1559  ;;  %v10513_v15 = vpop.xlane.xlu0 %1561 }
 0x61e   :  { %7990 = vpow2.f32 %v4201_v32  ;;  %v3814_v56 = vpop.f32.mrb[26].mxu1  ;;  %12407 = vst [vmem:[#allocation148_spill] sm:$0xff] %v10505_v63  ;;  %v5107_v32 = vld [vmem:[#allocation7 + $0x308] sm:$0xff]  ;;  %12408 = vst [vmem:[#allocation149_spill] sm:$0xff] %v10513_v15 }
 0x61f   :  { %v7981_v29 = vpop.eup %7980  ;;  %v4381_v8 = vadd.f32 %v4317_v60, %v3775_v54  ;;  %v3815_v36 = vadd.f32 %v3814_v56, %v10382_v40  ;;  %v10495_v1 = vpop.f32.mrb[27].mxu1  ;;  %v5109_v54 = vld [vmem:[#allocation7 + $0x318] sm:$0xff]  ;;  %v5106_v60 = vld [vmem:[#allocation7 + $0x300] sm:$0xff] }
 0x620   :  { %v7983_v34 = vpop.eup %7982  ;;  %v4203_v46 = vmul.f32 1.442695, %v7981_v29  ;;  %4459 = vadd.xlane.f32.xlu0 %v7981_v29  ;;  %v7393_v29 = vpack.c.bf16 %v5109_v54, %v5107_v32 }
 0x621   :  { %6182 = vst [vmem:[#allocation8 + $0x68] sm:$0xff] %v4381_v8  ;;  %v4318_v7 = vmul.f32 %v7983_v34, %v9060_v17  ;;  %7992 = vtanh.f32 %v3815_v36  ;;  %7082 = vmatprep.mubr.f32.mxu0 %v4381_v8  ;;  %v5108_v8 = vld [vmem:[#allocation7 + $0x310] sm:$0xff]  ;;  %v10521_v54 = vpop.xlane.xlu1 %1563 }
 0x622   :  { %7994 = vpow2.f32 %v4203_v46  ;;  %v3820_v50 = vpop.f32.mrb[28].mxu1  ;;  %7394 = vmatprep.subr.bf16.mxu0 %v7393_v29  ;;  %12409 = vst [vmem:[#allocation150_spill] sm:$0xff] %v10521_v54 }
 0x623   :  { %v7985_v18 = vpop.eup %7984  ;;  %v4382_v44 = vadd.f32 %v4318_v7, %v3781_v23  ;;  %v3821_v11 = vadd.f32 %v3820_v50, %v10382_v40  ;;  %v10503_v9 = vpop.f32.mrb[29].mxu1  ;;  %v7395_v7 = vpack.c.bf16 %v5108_v8, %v5106_v60 }
 0x624   :  { %v7987_v27 = vpop.eup %7986  ;;  %v4205_v58 = vmul.f32 1.442695, %v7985_v18  ;;  %4461 = vadd.xlane.f32.xlu1 %v7985_v18  ;;  %v3793_v18 = vadd.f32 %v10462_v24, %v10426_v61 }
 0x625   :  { %6183 = vst [vmem:[#allocation8 + $0x78] sm:$0xff] %v4382_v44  ;;  %v4319_v17 = vmul.f32 %v7987_v27, %v9068_v31  ;;  %7996 = vtanh.f32 %v3821_v11  ;;  %7083 = vmatmul.mubr.f32.gmra.mrb[198].mxu0 %v4382_v44 }
 0x626   :  { %7998 = vpow2.f32 %v4205_v58  ;;  %v3826_v56 = vpop.f32.mrb[30].mxu1  ;;  %7396 = vmatpush1.bf16.msra.mxu0 %v7395_v7  ;;  %v10529_v7 = vpop.xlane.xlu0 %1565 }
 0x627   :  { %v7989_v36 = vpop.eup %7988  ;;  %v4383_v34 = vadd.f32 %v4319_v17, %v3787_v12  ;;  %v3827_v46 = vadd.f32 %v3826_v56, %v10382_v40  ;;  %v10511_v23 = vpop.f32.mrb[31].mxu1  ;;  %12410 = vst [vmem:[#allocation151_spill] sm:$0xff] %v10529_v7 }
 0x628   :  { %v7991_v50 = vpop.eup %7990  ;;  %v4207_v31 = vmul.f32 1.442695, %v7989_v36  ;;  %4463 = vadd.xlane.f32.xlu0 %v7989_v36 }
 0x629   :  { %6184 = vst [vmem:[#allocation8 + $0x88] sm:$0xff] %v4383_v34  ;;  %v4320_v44 = vmul.f32 %v7991_v50, %v9076_v52  ;;  %8000 = vtanh.f32 %v3827_v46  ;;  %7085 = vmatprep.mubr.f32.mxu0 %v4383_v34  ;;  %v3799_v52 = vadd.f32 %v10471_v38, %v10426_v61  ;;  %v3805_v38 = vadd.f32 %v10479_v41, %v10426_v61 }
 0x62a   :  { %8002 = vpow2.f32 %v4207_v31  ;;  %v3832_v11 = vpop.f32.mrb[32].mxu1  ;;  %v3811_v41 = vadd.f32 %v10487_v16, %v10426_v61  ;;  %v10545_v16 = vpop.xlane.xlu0 %1569 }
 0x62b   :  { %v7993_v27 = vpop.eup %7992  ;;  %v4384_v58 = vadd.f32 %v4320_v44, %v3793_v18  ;;  %v3833_v12 = vadd.f32 %v3832_v11, %v10382_v40  ;;  %v10519_v17 = vpop.f32.mrb[33].mxu1  ;;  %12412 = vst [vmem:[#allocation153_spill] sm:$0xff] %v10545_v16 }
 0x62c   :  { %v7995_v32 = vpop.eup %7994  ;;  %v4209_v60 = vmul.f32 1.442695, %v7993_v27  ;;  %4465 = vadd.xlane.f32.xlu1 %v7993_v27 }
 0x62d   :  { %6185 = vst [vmem:[#allocation8 + $0x98] sm:$0xff] %v4384_v58  ;;  %v4321_v24 = vmul.f32 %v7995_v32, %v9084_v57  ;;  %8004 = vtanh.f32 %v3833_v12  ;;  %7086 = vmatmul.mubr.f32.gmra.mrb[200].mxu0 %v4384_v58  ;;  %v10537_v12 = vpop.xlane.xlu1 %1567 }
 0x62e   :  { %8006 = vpow2.f32 %v4209_v60  ;;  %v3838_v56 = vpop.f32.mrb[34].mxu1  ;;  %12411 = vst [vmem:[#allocation152_spill] sm:$0xff] %v10537_v12  ;;  %v5111_v60 = vld [vmem:[#allocation7 + $0x328] sm:$0xff] }
 0x62f   :  { %v7997_v29 = vpop.eup %7996  ;;  %v4385_v8 = vadd.f32 %v4321_v24, %v3799_v52  ;;  %v3839_v36 = vadd.f32 %v3838_v56, %v10382_v40  ;;  %v10527_v34 = vpop.f32.mrb[35].mxu1  ;;  %v5113_v52 = vld [vmem:[#allocation7 + $0x338] sm:$0xff]  ;;  %v5110_v24 = vld [vmem:[#allocation7 + $0x320] sm:$0xff] }
 0x630   :  { %v7999_v46 = vpop.eup %7998  ;;  %v4211_v50 = vmul.f32 1.442695, %v7997_v29  ;;  %4467 = vadd.xlane.f32.xlu0 %v7997_v29  ;;  %v7397_v29 = vpack.c.bf16 %v5113_v52, %v5111_v60 }
 0x631   :  { %6186 = vst [vmem:[#allocation8 + $0xa8] sm:$0xff] %v4385_v8  ;;  %v4322_v57 = vmul.f32 %v7999_v46, %v9092_v19  ;;  %8008 = vtanh.f32 %v3839_v36  ;;  %7088 = vmatprep.mubr.f32.mxu0 %v4385_v8  ;;  %v5112_v8 = vld [vmem:[#allocation7 + $0x330] sm:$0xff]  ;;  %v10553_v52 = vpop.xlane.xlu1 %1571 }
 0x632   :  { %8010 = vpow2.f32 %v4211_v50  ;;  %v3844_v31 = vpop.f32.mrb[36].mxu1  ;;  %7398 = vmatprep.subr.bf16.mxu0 %v7397_v29  ;;  %12413 = vst [vmem:[#allocation154_spill] sm:$0xff] %v10553_v52 }
 0x633   :  { %v8001_v18 = vpop.eup %8000  ;;  %v4386_v44 = vadd.f32 %v4322_v57, %v3805_v38  ;;  %v3845_v11 = vadd.f32 %v3844_v31, %v10382_v40  ;;  %v10535_v27 = vpop.f32.mrb[37].mxu1  ;;  %v7399_v57 = vpack.c.bf16 %v5112_v8, %v5110_v24 }
 0x634   :  { %v8003_v58 = vpop.eup %8002  ;;  %v4213_v32 = vmul.f32 1.442695, %v8001_v18  ;;  %4469 = vadd.xlane.f32.xlu1 %v8001_v18  ;;  %v3817_v18 = vadd.f32 %v10495_v1, %v10426_v61 }
 0x635   :  { %6187 = vst [vmem:[#allocation8 + $0xb8] sm:$0xff] %v4386_v44  ;;  %v4323_v19 = vmul.f32 %v8003_v58, %v9100_v33  ;;  %8012 = vtanh.f32 %v3845_v11  ;;  %7089 = vmatmul.mubr.f32.gmra.mrb[202].mxu0 %v4386_v44 }
 0x636   :  { %8014 = vpow2.f32 %v4213_v32  ;;  %v3850_v56 = vpop.f32.mrb[38].mxu1  ;;  %7400 = vmatpush1.bf16.msra.mxu0 %v7399_v57  ;;  %v10561_v57 = vpop.xlane.xlu0 %1573 }
 0x637   :  { %v8005_v36 = vpop.eup %8004  ;;  %v4387_v46 = vadd.f32 %v4323_v19, %v3811_v41  ;;  %v3851_v50 = vadd.f32 %v3850_v56, %v10382_v40  ;;  %v10543_v38 = vpop.f32.mrb[39].mxu1  ;;  %12414 = vst [vmem:[#allocation155_spill] sm:$0xff] %v10561_v57 }
 0x638   :  { %v8007_v31 = vpop.eup %8006  ;;  %v4215_v33 = vmul.f32 1.442695, %v8005_v36  ;;  %4471 = vadd.xlane.f32.xlu0 %v8005_v36 }
 0x639   :  { %6188 = vst [vmem:[#allocation8 + $0xc8] sm:$0xff] %v4387_v46  ;;  %v4324_v44 = vmul.f32 %v8007_v31, %v9108_v43  ;;  %8016 = vtanh.f32 %v3851_v50  ;;  %7091 = vmatprep.mubr.f32.mxu0 %v4387_v46  ;;  %v3823_v43 = vadd.f32 %v10503_v9, %v10426_v61  ;;  %v3829_v9 = vadd.f32 %v10511_v23, %v10426_v61 }
 0x63a   :  { %8018 = vpow2.f32 %v4215_v33  ;;  %v3856_v11 = vpop.f32.mrb[40].mxu1  ;;  %v3835_v23 = vadd.f32 %v10519_v17, %v10426_v61  ;;  %v10577_v17 = vpop.xlane.xlu0 %1577 }
 0x63b   :  { %v8009_v58 = vpop.eup %8008  ;;  %v4388_v32 = vadd.f32 %v4324_v44, %v3817_v18  ;;  %v3857_v41 = vadd.f32 %v3856_v11, %v10382_v40  ;;  %v10551_v19 = vpop.f32.mrb[41].mxu1  ;;  %12416 = vst [vmem:[#allocation157_spill] sm:$0xff] %v10577_v17 }
 0x63c   :  { %v8011_v60 = vpop.eup %8010  ;;  %v4217_v24 = vmul.f32 1.442695, %v8009_v58  ;;  %4473 = vadd.xlane.f32.xlu1 %v8009_v58 }
 0x63d   :  { %6189 = vst [vmem:[#allocation8 + $0xd8] sm:$0xff] %v4388_v32  ;;  %v4325_v1 = vmul.f32 %v8011_v60, %v9116_v6  ;;  %8020 = vtanh.f32 %v3857_v41  ;;  %7092 = vmatmul.mubr.f32.gmra.mrb[204].mxu0 %v4388_v32  ;;  %v10569_v41 = vpop.xlane.xlu1 %1575 }
 0x63e   :  { %8022 = vpow2.f32 %v4217_v24  ;;  %v3862_v56 = vpop.f32.mrb[42].mxu1  ;;  %12415 = vst [vmem:[#allocation156_spill] sm:$0xff] %v10569_v41  ;;  %v5115_v24 = vld [vmem:[#allocation7 + $0x348] sm:$0xff] }
 0x63f   :  { %v8013_v29 = vpop.eup %8012  ;;  %v4389_v8 = vadd.f32 %v4325_v1, %v3823_v43  ;;  %v3863_v36 = vadd.f32 %v3862_v56, %v10382_v40  ;;  %v10559_v46 = vpop.f32.mrb[43].mxu1  ;;  %v5117_v43 = vld [vmem:[#allocation7 + $0x358] sm:$0xff]  ;;  %v5114_v1 = vld [vmem:[#allocation7 + $0x340] sm:$0xff] }
 0x640   :  { %v8015_v50 = vpop.eup %8014  ;;  %v4219_v31 = vmul.f32 1.442695, %v8013_v29  ;;  %4475 = vadd.xlane.f32.xlu0 %v8013_v29  ;;  %v7401_v29 = vpack.c.bf16 %v5117_v43, %v5115_v24 }
 0x641   :  { %6190 = vst [vmem:[#allocation8 + $0xe8] sm:$0xff] %v4389_v8  ;;  %v4326_v6 = vmul.f32 %v8015_v50, %v9124_v22  ;;  %8024 = vtanh.f32 %v3863_v36  ;;  %7094 = vmatprep.mubr.f32.mxu0 %v4389_v8  ;;  %v5116_v8 = vld [vmem:[#allocation7 + $0x350] sm:$0xff]  ;;  %v10585_v43 = vpop.xlane.xlu1 %1579 }
 0x642   :  { %8026 = vpow2.f32 %v4219_v31  ;;  %v3868_v33 = vpop.f32.mrb[44].mxu1  ;;  %7402 = vmatprep.subr.bf16.mxu0 %v7401_v29  ;;  %12417 = vst [vmem:[#allocation158_spill] sm:$0xff] %v10585_v43 }
 0x643   :  { %v8017_v18 = vpop.eup %8016  ;;  %v4390_v44 = vadd.f32 %v4326_v6, %v3829_v9  ;;  %v3869_v11 = vadd.f32 %v3868_v33, %v10382_v40  ;;  %v10567_v58 = vpop.f32.mrb[45].mxu1  ;;  %v7403_v6 = vpack.c.bf16 %v5116_v8, %v5114_v1 }
 0x644   :  { %v8019_v32 = vpop.eup %8018  ;;  %v4221_v60 = vmul.f32 1.442695, %v8017_v18  ;;  %4477 = vadd.xlane.f32.xlu1 %v8017_v18  ;;  %v3841_v18 = vadd.f32 %v10527_v34, %v10426_v61 }
 0x645   :  { %6191 = vst [vmem:[#allocation8 + $0xf8] sm:$0xff] %v4390_v44  ;;  %v4327_v22 = vmul.f32 %v8019_v32, %v9132_v20  ;;  %8028 = vtanh.f32 %v3869_v11  ;;  %7095 = vmatmul.mubr.f32.gmra.mrb[206].mxu0 %v4390_v44 }
 0x646   :  { %8030 = vpow2.f32 %v4221_v60  ;;  %v3874_v56 = vpop.f32.mrb[46].mxu1  ;;  %7404 = vmatpush1.bf16.msra.mxu0 %v7403_v6  ;;  %v10593_v6 = vpop.xlane.xlu0 %1581 }
 0x647   :  { %v8021_v36 = vpop.eup %8020  ;;  %v4391_v50 = vadd.f32 %v4327_v22, %v3835_v23  ;;  %v3875_v31 = vadd.f32 %v3874_v56, %v10382_v40  ;;  %v10575_v9 = vpop.f32.mrb[47].mxu1  ;;  %12418 = vst [vmem:[#allocation159_spill] sm:$0xff] %v10593_v6 }
 0x648   :  { %v8023_v33 = vpop.eup %8022  ;;  %v4223_v20 = vmul.f32 1.442695, %v8021_v36  ;;  %4479 = vadd.xlane.f32.xlu0 %v8021_v36 }
 0x649   :  { %6192 = vst [vmem:[#allocation8 + $0x108] sm:$0xff] %v4391_v50  ;;  %v4328_v44 = vmul.f32 %v8023_v33, %v9140_v49  ;;  %8032 = vtanh.f32 %v3875_v31  ;;  %7097 = vmatprep.mubr.f32.mxu0 %v4391_v50  ;;  %v3847_v49 = vadd.f32 %v10535_v27, %v10426_v61  ;;  %v3853_v27 = vadd.f32 %v10543_v38, %v10426_v61 }
 0x64a   :  { %8034 = vpow2.f32 %v4223_v20  ;;  %v3880_v11 = vpop.f32.mrb[48].mxu1  ;;  %v3859_v38 = vadd.f32 %v10551_v19, %v10426_v61  ;;  %v10609_v19 = vpop.xlane.xlu0 %1585 }
 0x64b   :  { %v8025_v32 = vpop.eup %8024  ;;  %v4392_v60 = vadd.f32 %v4328_v44, %v3841_v18  ;;  %v3881_v23 = vadd.f32 %v3880_v11, %v10382_v40  ;;  %v10583_v22 = vpop.f32.mrb[49].mxu1  ;;  %12420 = vst [vmem:[#allocation161_spill] sm:$0xff] %v10609_v19 }
 0x64c   :  { %v8027_v24 = vpop.eup %8026  ;;  %v4225_v1 = vmul.f32 1.442695, %v8025_v32  ;;  %4481 = vadd.xlane.f32.xlu1 %v8025_v32 }
 0x64d   :  { %6193 = vst [vmem:[#allocation8 + $0x118] sm:$0xff] %v4392_v60  ;;  %v4329_v34 = vmul.f32 %v8027_v24, %v9148_v10  ;;  %8036 = vtanh.f32 %v3881_v23  ;;  %7098 = vmatmul.mubr.f32.gmra.mrb[208].mxu0 %v4392_v60  ;;  %v10601_v23 = vpop.xlane.xlu1 %1583 }
 0x64e   :  { %8038 = vpow2.f32 %v4225_v1  ;;  %v3886_v56 = vpop.f32.mrb[50].mxu1  ;;  %12419 = vst [vmem:[#allocation160_spill] sm:$0xff] %v10601_v23  ;;  %v5119_v1 = vld [vmem:[#allocation7 + $0x368] sm:$0xff] }
 0x64f   :  { %v8029_v29 = vpop.eup %8028  ;;  %v4393_v8 = vadd.f32 %v4329_v34, %v3847_v49  ;;  %v3887_v36 = vadd.f32 %v3886_v56, %v10382_v40  ;;  %v10591_v50 = vpop.f32.mrb[51].mxu1  ;;  %v5121_v49 = vld [vmem:[#allocation7 + $0x378] sm:$0xff]  ;;  %v5118_v34 = vld [vmem:[#allocation7 + $0x360] sm:$0xff] }
 0x650   :  { %v8031_v31 = vpop.eup %8030  ;;  %v4227_v33 = vmul.f32 1.442695, %v8029_v29  ;;  %4483 = vadd.xlane.f32.xlu0 %v8029_v29  ;;  %v7405_v29 = vpack.c.bf16 %v5121_v49, %v5119_v1 }
 0x651   :  { %6194 = vst [vmem:[#allocation8 + $0x128] sm:$0xff] %v4393_v8  ;;  %v4330_v10 = vmul.f32 %v8031_v31, %v9156_v0  ;;  %8040 = vtanh.f32 %v3887_v36  ;;  %7100 = vmatprep.mubr.f32.mxu0 %v4393_v8  ;;  %v5120_v8 = vld [vmem:[#allocation7 + $0x370] sm:$0xff]  ;;  %v10617_v49 = vpop.xlane.xlu1 %1587 }
 0x652   :  { %8042 = vpow2.f32 %v4227_v33  ;;  %v3892_v20 = vpop.f32.mrb[52].mxu1  ;;  %7406 = vmatprep.subr.bf16.mxu0 %v7405_v29  ;;  %12421 = vst [vmem:[#allocation162_spill] sm:$0xff] %v10617_v49 }
 0x653   :  { %v8033_v18 = vpop.eup %8032  ;;  %v4394_v44 = vadd.f32 %v4330_v10, %v3853_v27  ;;  %v3893_v11 = vadd.f32 %v3892_v20, %v10382_v40  ;;  %v10599_v32 = vpop.f32.mrb[53].mxu1  ;;  %v7407_v10 = vpack.c.bf16 %v5120_v8, %v5118_v34 }
 0x654   :  { %v8035_v60 = vpop.eup %8034  ;;  %v4229_v24 = vmul.f32 1.442695, %v8033_v18  ;;  %4485 = vadd.xlane.f32.xlu1 %v8033_v18  ;;  %v3865_v18 = vadd.f32 %v10559_v46, %v10426_v61 }
 0x655   :  { %6195 = vst [vmem:[#allocation8 + $0x138] sm:$0xff] %v4394_v44  ;;  %v4331_v0 = vmul.f32 %v8035_v60, %v9164_v62  ;;  %8044 = vtanh.f32 %v3893_v11  ;;  %7101 = vmatmul.mubr.f32.gmra.mrb[210].mxu0 %v4394_v44 }
 0x656   :  { %8046 = vpow2.f32 %v4229_v24  ;;  %v3898_v56 = vpop.f32.mrb[54].mxu1  ;;  %7408 = vmatpush1.bf16.msra.mxu0 %v7407_v10  ;;  %v10625_v10 = vpop.xlane.xlu0 %1589 }
 0x657   :  { %v8037_v36 = vpop.eup %8036  ;;  %v4395_v31 = vadd.f32 %v4331_v0, %v3859_v38  ;;  %v3899_v33 = vadd.f32 %v3898_v56, %v10382_v40  ;;  %v10607_v27 = vpop.f32.mrb[55].mxu1  ;;  %12422 = vst [vmem:[#allocation163_spill] sm:$0xff] %v10625_v10 }
 0x658   :  { %v8039_v20 = vpop.eup %8038  ;;  %v4231_v62 = vmul.f32 1.442695, %v8037_v36  ;;  %4487 = vadd.xlane.f32.xlu0 %v8037_v36 }
 0x659   :  { %6196 = vst [vmem:[#allocation8 + $0x148] sm:$0xff] %v4395_v31  ;;  %v4332_v44 = vmul.f32 %v8039_v20, %v9172_v2  ;;  %8048 = vtanh.f32 %v3899_v33  ;;  %7103 = vmatprep.mubr.f32.mxu0 %v4395_v31  ;;  %v3871_v2 = vadd.f32 %v10567_v58, %v10426_v61  ;;  %v3877_v58 = vadd.f32 %v10575_v9, %v10426_v61 }
 0x65a   :  { %8050 = vpow2.f32 %v4231_v62  ;;  %v3904_v11 = vpop.f32.mrb[56].mxu1  ;;  %v3883_v9 = vadd.f32 %v10583_v22, %v10426_v61  ;;  %v10641_v22 = vpop.xlane.xlu0 %1593 }
 0x65b   :  { %v8041_v60 = vpop.eup %8040  ;;  %v4396_v24 = vadd.f32 %v4332_v44, %v3865_v18  ;;  %v3905_v38 = vadd.f32 %v3904_v11, %v10382_v40  ;;  %v10615_v0 = vpop.f32.mrb[57].mxu1  ;;  %12424 = vst [vmem:[#allocation165_spill] sm:$0xff] %v10641_v22 }
 0x65c   :  { %v8043_v1 = vpop.eup %8042  ;;  %v4233_v34 = vmul.f32 1.442695, %v8041_v60  ;;  %4489 = vadd.xlane.f32.xlu1 %v8041_v60 }
 0x65d   :  { %6197 = vst [vmem:[#allocation8 + $0x158] sm:$0xff] %v4396_v24  ;;  %v4333_v46 = vmul.f32 %v8043_v1, %v9180_v26  ;;  %8052 = vtanh.f32 %v3905_v38  ;;  %7104 = vmatmul.mubr.f32.gmra.mrb[212].mxu0 %v4396_v24  ;;  %v10633_v38 = vpop.xlane.xlu1 %1591 }
 0x65e   :  { %8054 = vpow2.f32 %v4233_v34  ;;  %v3910_v56 = vpop.f32.mrb[58].mxu1  ;;  %12423 = vst [vmem:[#allocation164_spill] sm:$0xff] %v10633_v38  ;;  %v5123_v34 = vld [vmem:[#allocation7 + $0x388] sm:$0xff] }
 0x65f   :  { %v8045_v29 = vpop.eup %8044  ;;  %v4397_v8 = vadd.f32 %v4333_v46, %v3871_v2  ;;  %v3911_v36 = vadd.f32 %v3910_v56, %v10382_v40  ;;  %v10623_v31 = vpop.f32.mrb[59].mxu1  ;;  %v5125_v2 = vld [vmem:[#allocation7 + $0x398] sm:$0xff]  ;;  %v5122_v46 = vld [vmem:[#allocation7 + $0x380] sm:$0xff] }
 0x660   :  { %v8047_v33 = vpop.eup %8046  ;;  %v4235_v20 = vmul.f32 1.442695, %v8045_v29  ;;  %4491 = vadd.xlane.f32.xlu0 %v8045_v29  ;;  %v7409_v29 = vpack.c.bf16 %v5125_v2, %v5123_v34 }
 0x661   :  { %6198 = vst [vmem:[#allocation8 + $0x168] sm:$0xff] %v4397_v8  ;;  %v4334_v26 = vmul.f32 %v8047_v33, %v9188_v4  ;;  %8056 = vtanh.f32 %v3911_v36  ;;  %7106 = vmatprep.mubr.f32.mxu0 %v4397_v8  ;;  %v5124_v8 = vld [vmem:[#allocation7 + $0x390] sm:$0xff]  ;;  %v10649_v2 = vpop.xlane.xlu1 %1595 }
 0x662   :  { %8058 = vpow2.f32 %v4235_v20  ;;  %v3916_v62 = vpop.f32.mrb[60].mxu1  ;;  %7410 = vmatprep.subr.bf16.mxu0 %v7409_v29  ;;  %12425 = vst [vmem:[#allocation166_spill] sm:$0xff] %v10649_v2 }
 0x663   :  { %v8049_v18 = vpop.eup %8048  ;;  %v4398_v44 = vadd.f32 %v4334_v26, %v3877_v58  ;;  %v3917_v11 = vadd.f32 %v3916_v62, %v10382_v40  ;;  %v10631_v60 = vpop.f32.mrb[61].mxu1  ;;  %v7411_v26 = vpack.c.bf16 %v5124_v8, %v5122_v46 }
 0x664   :  { %v8051_v24 = vpop.eup %8050  ;;  %v4237_v1 = vmul.f32 1.442695, %v8049_v18  ;;  %4493 = vadd.xlane.f32.xlu1 %v8049_v18  ;;  %v3889_v18 = vadd.f32 %v10591_v50, %v10426_v61 }
 0x665   :  { %6199 = vst [vmem:[#allocation8 + $0x178] sm:$0xff] %v4398_v44  ;;  %v4335_v4 = vmul.f32 %v8051_v24, %v9196_v55  ;;  %8060 = vtanh.f32 %v3917_v11  ;;  %7107 = vmatmul.mubr.f32.gmra.mrb[214].mxu0 %v4398_v44 }
 0x666   :  { %8062 = vpow2.f32 %v4237_v1  ;;  %v3922_v56 = vpop.f32.mrb[62].mxu1  ;;  %7412 = vmatpush1.bf16.msra.mxu0 %v7411_v26  ;;  %v10657_v26 = vpop.xlane.xlu0 %1597 }
 0x667   :  { %v8053_v36 = vpop.eup %8052  ;;  %v4399_v33 = vadd.f32 %v4335_v4, %v3883_v9  ;;  %v3923_v20 = vadd.f32 %v3922_v56, %v10382_v40  ;;  %v10639_v58 = vpop.f32.mrb[63].mxu1  ;;  %12426 = vst [vmem:[#allocation167_spill] sm:$0xff] %v10657_v26 }
 0x668   :  { %v8055_v62 = vpop.eup %8054  ;;  %v4239_v55 = vmul.f32 1.442695, %v8053_v36  ;;  %4495 = vadd.xlane.f32.xlu0 %v8053_v36 }
 0x669   :  { %6200 = vst [vmem:[#allocation8 + $0x188] sm:$0xff] %v4399_v33  ;;  %v4336_v44 = vmul.f32 %v8055_v62, %v9204_v28  ;;  %8064 = vtanh.f32 %v3923_v20  ;;  %7109 = vmatprep.mubr.f32.mxu0 %v4399_v33  ;;  %v3895_v28 = vadd.f32 %v10599_v32, %v10426_v61  ;;  %v3901_v32 = vadd.f32 %v10607_v27, %v10426_v61 }
 0x66a   :  { %8066 = vpow2.f32 %v4239_v55  ;;  %v3928_v11 = vpop.f32.mrb[64].mxu1  ;;  %v3907_v27 = vadd.f32 %v10615_v0, %v10426_v61  ;;  %v10673_v0 = vpop.xlane.xlu0 %1601 }
 0x66b   :  { %v8057_v24 = vpop.eup %8056  ;;  %v4400_v1 = vadd.f32 %v4336_v44, %v3889_v18  ;;  %v3929_v9 = vadd.f32 %v3928_v11, %v10382_v40  ;;  %v10647_v4 = vpop.f32.mrb[65].mxu1  ;;  %12428 = vst [vmem:[#allocation169_spill] sm:$0xff] %v10673_v0 }
 0x66c   :  { %v8059_v34 = vpop.eup %8058  ;;  %v4241_v46 = vmul.f32 1.442695, %v8057_v24  ;;  %4497 = vadd.xlane.f32.xlu1 %v8057_v24 }
 0x66d   :  { %6201 = vst [vmem:[#allocation8 + $0x198] sm:$0xff] %v4400_v1  ;;  %v4337_v50 = vmul.f32 %v8059_v34, %v9212_v47  ;;  %8068 = vtanh.f32 %v3929_v9  ;;  %7110 = vmatmul.mubr.f32.gmra.mrb[216].mxu0 %v4400_v1  ;;  %v10665_v9 = vpop.xlane.xlu1 %1599 }
 0x66e   :  { %8070 = vpow2.f32 %v4241_v46  ;;  %v3934_v56 = vpop.f32.mrb[66].mxu1  ;;  %12427 = vst [vmem:[#allocation168_spill] sm:$0xff] %v10665_v9  ;;  %v5127_v46 = vld [vmem:[#allocation7 + $0x3a8] sm:$0xff] }
 0x66f   :  { %v8061_v29 = vpop.eup %8060  ;;  %v4401_v8 = vadd.f32 %v4337_v50, %v3895_v28  ;;  %v3935_v36 = vadd.f32 %v3934_v56, %v10382_v40  ;;  %v10655_v33 = vpop.f32.mrb[67].mxu1  ;;  %v5129_v28 = vld [vmem:[#allocation7 + $0x3b8] sm:$0xff]  ;;  %v5126_v50 = vld [vmem:[#allocation7 + $0x3a0] sm:$0xff] }
 0x670   :  { %v8063_v20 = vpop.eup %8062  ;;  %v4243_v62 = vmul.f32 1.442695, %v8061_v29  ;;  %4499 = vadd.xlane.f32.xlu0 %v8061_v29  ;;  %v7413_v29 = vpack.c.bf16 %v5129_v28, %v5127_v46 }
 0x671   :  { %6202 = vst [vmem:[#allocation8 + $0x1a8] sm:$0xff] %v4401_v8  ;;  %v4338_v47 = vmul.f32 %v8063_v20, %v9220_v21  ;;  %8072 = vtanh.f32 %v3935_v36  ;;  %7112 = vmatprep.mubr.f32.mxu0 %v4401_v8  ;;  %v5128_v8 = vld [vmem:[#allocation7 + $0x3b0] sm:$0xff]  ;;  %v10681_v28 = vpop.xlane.xlu1 %1603 }
 0x672   :  { %8074 = vpow2.f32 %v4243_v62  ;;  %v3940_v55 = vpop.f32.mrb[68].mxu1  ;;  %7414 = vmatprep.subr.bf16.mxu0 %v7413_v29  ;;  %12429 = vst [vmem:[#allocation170_spill] sm:$0xff] %v10681_v28  ;;  %v5131_v29 = vld [vmem:[#allocation7 + $0x3c8] sm:$0xff] }
 0x673   :  { %v8065_v18 = vpop.eup %8064  ;;  %v4402_v44 = vadd.f32 %v4338_v47, %v3901_v32  ;;  %v3941_v11 = vadd.f32 %v3940_v55, %v10382_v40  ;;  %v10663_v24 = vpop.f32.mrb[69].mxu1  ;;  %v7415_v47 = vpack.c.bf16 %v5128_v8, %v5126_v50  ;;  %v5133_v8 = vld [vmem:[#allocation7 + $0x3d8] sm:$0xff] }
 0x674   :  { %v8067_v1 = vpop.eup %8066  ;;  %v4245_v34 = vmul.f32 1.442695, %v8065_v18  ;;  %4501 = vadd.xlane.f32.xlu1 %v8065_v18  ;;  %v3913_v18 = vadd.f32 %v10623_v31, %v10426_v61 }
 0x675   :  { %6203 = vst [vmem:[#allocation8 + $0x1b8] sm:$0xff] %v4402_v44  ;;  %v4339_v21 = vmul.f32 %v8067_v1, %v9228_v59  ;;  %8076 = vtanh.f32 %v3941_v11  ;;  %7113 = vmatmul.mubr.f32.gmra.mrb[218].mxu0 %v4402_v44 }
 0x676   :  { %8078 = vpow2.f32 %v4245_v34  ;;  %v3946_v56 = vpop.f32.mrb[70].mxu1  ;;  %7416 = vmatpush1.bf16.msra.mxu0 %v7415_v47 }
 0x677   :  { %v8069_v36 = vpop.eup %8068  ;;  %v4403_v20 = vadd.f32 %v4339_v21, %v3907_v27  ;;  %v3947_v62 = vadd.f32 %v3946_v56, %v10382_v40  ;;  %v10671_v32 = vpop.f32.mrb[71].mxu1 }
 0x678   :  { %v8071_v55 = vpop.eup %8070  ;;  %v4247_v59 = vmul.f32 1.442695, %v8069_v36  ;;  %4503 = vadd.xlane.f32.xlu0 %v8069_v36 }
 0x679   :  { %6204 = vst [vmem:[#allocation8 + $0x1c8] sm:$0xff] %v4403_v20  ;;  %v4340_v44 = vmul.f32 %v8071_v55, %v9236_v45  ;;  %8080 = vtanh.f32 %v3947_v62  ;;  %7115 = vmatprep.mubr.f32.mxu0 %v4403_v20  ;;  %v3919_v45 = vadd.f32 %v10631_v60, %v10426_v61  ;;  %v7417_v55 = vpack.c.bf16 %v5133_v8, %v5131_v29 }
 0x67a   :  { %8082 = vpow2.f32 %v4247_v59  ;;  %v3952_v11 = vpop.f32.mrb[72].mxu1  ;;  %v5130_v59 = vld [vmem:[#allocation7 + $0x3c0] sm:$0xff] }
 0x67b   :  { %v8073_v1 = vpop.eup %8072  ;;  %v4404_v34 = vadd.f32 %v4340_v44, %v3913_v18  ;;  %v3953_v27 = vadd.f32 %v3952_v11, %v10382_v40  ;;  %v10679_v21 = vpop.f32.mrb[73].mxu1  ;;  %v5132_v18 = vld [vmem:[#allocation7 + $0x3d0] sm:$0xff]  ;;  %7418 = vmatprep.subr.bf16.mxu0 %v7417_v55 }
 0x67c   :  { %v8075_v46 = vpop.eup %8074  ;;  %v4249_v50 = vmul.f32 1.442695, %v8073_v1  ;;  %4505 = vadd.xlane.f32.xlu1 %v8073_v1  ;;  %v10689_v11 = vpop.xlane.xlu0 %2958  ;;  %v3925_v1 = vadd.f32 %v10639_v58, %v10426_v61 }
 0x67d   :  { %6205 = vst [vmem:[#allocation8 + $0x1d8] sm:$0xff] %v4404_v34  ;;  %v4341_v31 = vmul.f32 %v8075_v46, %v9244_v37  ;;  %8084 = vtanh.f32 %v3953_v27  ;;  %7116 = vmatmul.mubr.f32.gmra.mrb[220].mxu0 %v4404_v34  ;;  %v7419_v37 = vpack.c.bf16 %v5132_v18, %v5130_v59  ;;  %v5135_v46 = vld [vmem:[#allocation7 + $0x3e8] sm:$0xff]  ;;  %v5136_v59 = vld [vmem:[#allocation7 + $0x3f0] sm:$0xff]  ;;  %v10697_v18 = vpop.xlane.xlu1 %2960 }
 0x67e   :  { %8086 = vpow2.f32 %v4249_v50  ;;  %v3958_v56 = vpop.f32.mrb[74].mxu1  ;;  %v5137_v50 = vld [vmem:[#allocation7 + $0x3f8] sm:$0xff] }
 0x67f   :  { %v8077_v36 = vpop.eup %8076  ;;  %v4405_v20 = vadd.f32 %v4341_v31, %v3919_v45  ;;  %v3959_v62 = vadd.f32 %v3958_v56, %v10382_v40  ;;  %v10687_v47 = vpop.f32.mrb[75].mxu1  ;;  %7420 = vmatpush1.bf16.msra.mxu0 %v7419_v37  ;;  %v7421_v8 = vpack.c.bf16 %v5137_v50, %v5135_v46 }
 0x680   :  { %v8079_v44 = vpop.eup %8078  ;;  %v4251_v60 = vmul.f32 1.442695, %v8077_v36  ;;  %4507 = vadd.xlane.f32.xlu0 %v8077_v36  ;;  %v5134_v36 = vld [vmem:[#allocation7 + $0x3e0] sm:$0xff]  ;;  %v10705_v46 = vpop.xlane.xlu0 %2962 }
 0x681   :  { %6206 = vst [vmem:[#allocation8 + $0x1e8] sm:$0xff] %v4405_v20  ;;  %v4342_v34 = vmul.f32 %v8079_v44, %v9252_v25  ;;  %8088 = vtanh.f32 %v3959_v62  ;;  %7118 = vmatprep.mubr.f32.mxu0 %v4405_v20  ;;  %v7423_v20 = vpack.c.bf16 %v5136_v59, %v5134_v36  ;;  %v3931_v62 = vadd.f32 %v10647_v4, %v10426_v61  ;;  %v12430_v4 = vld [vmem:[#allocation12_spill] sm:$0xff] }
 0x682   :  { %8090 = vpow2.f32 %v4251_v60  ;;  %v3964_v27 = vpop.f32.mrb[76].mxu1  ;;  %7422 = vmatprep.subr.bf16.mxu0 %v7421_v8 }
 0x683   :  { %v8081_v45 = vpop.eup %8080  ;;  %v4406_v31 = vadd.f32 %v4342_v34, %v3925_v1  ;;  %v3965_v56 = vadd.f32 %v3964_v27, %v10382_v40  ;;  %v10695_v29 = vpop.f32.mrb[77].mxu1  ;;  %7424 = vmatpush1.bf16.msra.mxu0 %v7423_v20 }
 0x684   :  { %v8083_v58 = vpop.eup %8082  ;;  %v4253_v25 = vmul.f32 1.442695, %v8081_v45  ;;  %4509 = vadd.xlane.f32.xlu1 %v8081_v45 }
 0x685   :  { %6207 = vst [vmem:[#allocation8 + $0x1f8] sm:$0xff] %v4406_v31  ;;  %v4343_v55 = vmul.f32 %v8083_v58, %v9257_v5  ;;  %8092 = vtanh.f32 %v3965_v56  ;;  %7119 = vmatmul.mubr.f32.gmra.mrb[222].mxu0 %v4406_v31  ;;  %v3937_v5 = vadd.f32 %v10655_v33, %v10426_v61  ;;  %v3943_v33 = vadd.f32 %v10663_v24, %v10426_v61 }
 0x686   :  { %8094 = vpow2.f32 %v4253_v25  ;;  %v3970_v44 = vpop.f32.mrb[78].mxu1  ;;  %v10713_v25 = vpop.xlane.xlu1 %2964  ;;  %v3949_v24 = vadd.f32 %v10671_v32, %v10426_v61  ;;  %v3955_v32 = vadd.f32 %v10679_v21, %v10426_v61  ;;  %v3961_v21 = vadd.f32 %v10687_v47, %v10426_v61 }
 0x687   :  { %v8085_v60 = vpop.eup %8084  ;;  %v4407_v37 = vadd.f32 %v4343_v55, %v3931_v62  ;;  %v3971_v1 = vadd.f32 %v3970_v44, %v10382_v40  ;;  %v10703_v34 = vpop.f32.mrb[79].mxu1  ;;  %v12431_v62 = vld [vmem:[#allocation13_spill] sm:$0xff]  ;;  %v3967_v47 = vadd.f32 %v10695_v29, %v10426_v61 }
 0x688   :  { %v8087_v27 = vpop.eup %8086  ;;  %v4255_v50 = vmul.f32 1.442695, %v8085_v60  ;;  %4511 = vadd.xlane.f32.xlu0 %v8085_v60  ;;  %v3973_v29 = vadd.f32 %v10703_v34, %v10426_v61 }
 0x689   :  { %6208 = vst [vmem:[#allocation8 + $0x208] sm:$0xff] %v4407_v37  ;;  %v4344_v45 = vmul.f32 %v8087_v27, %v12430_v4  ;;  %8096 = vtanh.f32 %v3971_v1  ;;  %7121 = vmatprep.mubr.f32.mxu0 %v4407_v37 }
 0x68a   :  { %8098 = vpow2.f32 %v4255_v50  ;;  %v3976_v31 = vpop.f32.mrb[80].mxu1 }
 0x68b   :  { %v8089_v56 = vpop.eup %8088  ;;  %v4408_v8 = vadd.f32 %v4344_v45, %v3937_v5  ;;  %v3977_v36 = vadd.f32 %v3976_v31, %v10382_v40  ;;  %v10711_v59 = vpop.f32.mrb[81].mxu1  ;;  %v12432_v45 = vld [vmem:[#allocation14_spill] sm:$0xff] }
 0x68c   :  { %v8091_v58 = vpop.eup %8090  ;;  %v4257_v20 = vmul.f32 1.442695, %v8089_v56  ;;  %4513 = vadd.xlane.f32.xlu1 %v8089_v56  ;;  %v10721_v5 = vpop.xlane.xlu0 %2966  ;;  %v3979_v34 = vadd.f32 %v10711_v59, %v10426_v61 }
 0x68d   :  { %6209 = vst [vmem:[#allocation8 + $0x218] sm:$0xff] %v4408_v8  ;;  %v4345_v55 = vmul.f32 %v8091_v58, %v12431_v62  ;;  %8100 = vtanh.f32 %v3977_v36  ;;  %7122 = vmatmul.mubr.f32.gmra.mrb[224].mxu0 %v4408_v8  ;;  %v10729_v62 = vpop.xlane.xlu1 %2968 }
 0x68e   :  { %8102 = vpow2.f32 %v4257_v20  ;;  %v3982_v44 = vpop.f32.mrb[82].mxu1 }
 0x68f   :  { %v8093_v60 = vpop.eup %8092  ;;  %v4409_v37 = vadd.f32 %v4345_v55, %v3943_v33  ;;  %v3983_v1 = vadd.f32 %v3982_v44, %v10382_v40  ;;  %v10719_v27 = vpop.f32.mrb[83].mxu1  ;;  %v12433_v44 = vld [vmem:[#allocation15_spill] sm:$0xff] }
 0x690   :  { %v8095_v50 = vpop.eup %8094  ;;  %v4259_v4 = vmul.f32 1.442695, %v8093_v60  ;;  %4515 = vadd.xlane.f32.xlu0 %v8093_v60  ;;  %v3985_v59 = vadd.f32 %v10719_v27, %v10426_v61 }
 0x691   :  { %6210 = vst [vmem:[#allocation8 + $0x228] sm:$0xff] %v4409_v37  ;;  %v4346_v31 = vmul.f32 %v8095_v50, %v12432_v45  ;;  %8104 = vtanh.f32 %v3983_v1  ;;  %7124 = vmatprep.mubr.f32.mxu0 %v4409_v37 }
 0x692   :  { %8106 = vpow2.f32 %v4259_v4  ;;  %v3988_v56 = vpop.f32.mrb[84].mxu1 }
 0x693   :  { %v8097_v8 = vpop.eup %8096  ;;  %v4410_v36 = vadd.f32 %v4346_v31, %v3949_v24  ;;  %v3989_v58 = vadd.f32 %v3988_v56, %v10382_v40  ;;  %v10727_v20 = vpop.f32.mrb[85].mxu1 }
 0x694   :  { %v8099_v33 = vpop.eup %8098  ;;  %v4261_v55 = vmul.f32 1.442695, %v8097_v8  ;;  %4517 = vadd.xlane.f32.xlu1 %v8097_v8  ;;  %v10737_v31 = vpop.xlane.xlu0 %2970  ;;  %v12434_v8 = vld [vmem:[#allocation16_spill] sm:$0xff]  ;;  %v3991_v27 = vadd.f32 %v10727_v20, %v10426_v61 }
 0x695   :  { %6211 = vst [vmem:[#allocation8 + $0x238] sm:$0xff] %v4410_v36  ;;  %v4347_v60 = vmul.f32 %v8099_v33, %v12433_v44  ;;  %8108 = vtanh.f32 %v3989_v58  ;;  %7125 = vmatmul.mubr.f32.gmra.mrb[226].mxu0 %v4410_v36 }
 0x696   :  { %8110 = vpow2.f32 %v4261_v55  ;;  %v3994_v37 = vpop.f32.mrb[86].mxu1 }
 0x697   :  { %v8101_v1 = vpop.eup %8100  ;;  %v4411_v50 = vadd.f32 %v4347_v60, %v3955_v32  ;;  %v3995_v4 = vadd.f32 %v3994_v37, %v10382_v40  ;;  %v10735_v24 = vpop.f32.mrb[87].mxu1 }
 0x698   :  { %v8103_v45 = vpop.eup %8102  ;;  %v4263_v56 = vmul.f32 1.442695, %v8101_v1  ;;  %4519 = vadd.xlane.f32.xlu0 %v8101_v1  ;;  %v10745_v37 = vpop.xlane.xlu1 %2972  ;;  %v3997_v20 = vadd.f32 %v10735_v24, %v10426_v61 }
 0x699   :  { %6212 = vst [vmem:[#allocation8 + $0x248] sm:$0xff] %v4411_v50  ;;  %v4348_v58 = vmul.f32 %v8103_v45, %v12434_v8  ;;  %8112 = vtanh.f32 %v3995_v4  ;;  %7127 = vmatprep.mubr.f32.mxu0 %v4411_v50  ;;  %v12435_v45 = vld [vmem:[#allocation17_spill] sm:$0xff]  ;;  %v10753_v28 = vpop.xlane.xlu0 %2974 }
 0x69a   :  { %8114 = vpow2.f32 %v4263_v56  ;;  %v4000_v36 = vpop.f32.mrb[88].mxu1 }
 0x69b   :  { %v8105_v33 = vpop.eup %8104  ;;  %v4412_v55 = vadd.f32 %v4348_v58, %v3961_v21  ;;  %v4001_v32 = vadd.f32 %v4000_v36, %v10382_v40  ;;  %v10743_v44 = vpop.f32.mrb[89].mxu1 }
 0x69c   :  { %v8107_v60 = vpop.eup %8106  ;;  %v4265_v1 = vmul.f32 1.442695, %v8105_v33  ;;  %4521 = vadd.xlane.f32.xlu1 %v8105_v33  ;;  %v10761_v0 = vpop.xlane.xlu1 %2976  ;;  %v4003_v24 = vadd.f32 %v10743_v44, %v10426_v61 }
 0x69d   :  { %6213 = vst [vmem:[#allocation8 + $0x258] sm:$0xff] %v4412_v55  ;;  %v4349_v4 = vmul.f32 %v8107_v60, %v12435_v45  ;;  %8116 = vtanh.f32 %v4001_v32  ;;  %7128 = vmatmul.mubr.f32.gmra.mrb[228].mxu0 %v4412_v55  ;;  %v12436_v60 = vld [vmem:[#allocation18_spill] sm:$0xff]  ;;  %v10769_v9 = vpop.xlane.xlu0 %2978 }
 0x69e   :  { %8118 = vpow2.f32 %v4265_v1  ;;  %v4006_v50 = vpop.f32.mrb[90].mxu1 }
 0x69f   :  { %v8109_v56 = vpop.eup %8108  ;;  %v4413_v21 = vadd.f32 %v4349_v4, %v3967_v47  ;;  %v4007_v8 = vadd.f32 %v4006_v50, %v10382_v40  ;;  %v10751_v58 = vpop.f32.mrb[91].mxu1 }
 0x6a0   :  { %v8111_v36 = vpop.eup %8110  ;;  %v4267_v33 = vmul.f32 1.442695, %v8109_v56  ;;  %4523 = vadd.xlane.f32.xlu0 %v8109_v56  ;;  %v10777_v26 = vpop.xlane.xlu1 %2980  ;;  %v4009_v44 = vadd.f32 %v10751_v58, %v10426_v61 }
 0x6a1   :  { %6214 = vst [vmem:[#allocation8 + $0x268] sm:$0xff] %v4413_v21  ;;  %v4350_v32 = vmul.f32 %v8111_v36, %v12436_v60  ;;  %8120 = vtanh.f32 %v4007_v8  ;;  %7130 = vmatprep.mubr.f32.mxu0 %v4413_v21  ;;  %v12437_v36 = vld [vmem:[#allocation19_spill] sm:$0xff]  ;;  %v10785_v2 = vpop.xlane.xlu0 %2982 }
 0x6a2   :  { %8122 = vpow2.f32 %v4267_v33  ;;  %v4012_v55 = vpop.f32.mrb[92].mxu1 }
 0x6a3   :  { %v8113_v1 = vpop.eup %8112  ;;  %v4414_v47 = vadd.f32 %v4350_v32, %v3973_v29  ;;  %v4013_v45 = vadd.f32 %v4012_v55, %v10382_v40  ;;  %v10759_v4 = vpop.f32.mrb[93].mxu1 }
 0x6a4   :  { %v8115_v50 = vpop.eup %8114  ;;  %v4269_v56 = vmul.f32 1.442695, %v8113_v1  ;;  %4525 = vadd.xlane.f32.xlu1 %v8113_v1  ;;  %v10793_v22 = vpop.xlane.xlu1 %2984  ;;  %v4015_v58 = vadd.f32 %v10759_v4, %v10426_v61 }
 0x6a5   :  { %6215 = vst [vmem:[#allocation8 + $0x278] sm:$0xff] %v4414_v47  ;;  %v4351_v8 = vmul.f32 %v8115_v50, %v12437_v36  ;;  %8124 = vtanh.f32 %v4013_v45  ;;  %7131 = vmatmul.mubr.f32.gmra.mrb[230].mxu0 %v4414_v47  ;;  %v12438_v50 = vld [vmem:[#allocation20_spill] sm:$0xff]  ;;  %v10801_v38 = vpop.xlane.xlu0 %2986 }
 0x6a6   :  { %8126 = vpow2.f32 %v4269_v56  ;;  %v4018_v21 = vpop.f32.mrb[94].mxu1 }
 0x6a7   :  { %v8117_v33 = vpop.eup %8116  ;;  %v4415_v29 = vadd.f32 %v4351_v8, %v3979_v34  ;;  %v4019_v60 = vadd.f32 %v4018_v21, %v10382_v40  ;;  %v10767_v32 = vpop.f32.mrb[95].mxu1 }
 0x6a8   :  { %v8119_v55 = vpop.eup %8118  ;;  %v4271_v1 = vmul.f32 1.442695, %v8117_v33  ;;  %4527 = vadd.xlane.f32.xlu0 %v8117_v33  ;;  %v10809_v10 = vpop.xlane.xlu1 %2988  ;;  %v4021_v4 = vadd.f32 %v10767_v32, %v10426_v61 }
 0x6a9   :  { %6216 = vst [vmem:[#allocation8 + $0x288] sm:$0xff] %v4415_v29  ;;  %v4352_v45 = vmul.f32 %v8119_v55, %v12438_v50  ;;  %8128 = vtanh.f32 %v4019_v60  ;;  %7133 = vmatprep.mubr.f32.mxu0 %v4415_v29  ;;  %v12439_v55 = vld [vmem:[#allocation21_spill] sm:$0xff]  ;;  %v10817_v49 = vpop.xlane.xlu0 %2990 }
 0x6aa   :  { %8130 = vpow2.f32 %v4271_v1  ;;  %v4024_v47 = vpop.f32.mrb[96].mxu1 }
 0x6ab   :  { %v8121_v56 = vpop.eup %8120  ;;  %v4416_v34 = vadd.f32 %v4352_v45, %v3985_v59  ;;  %v4025_v36 = vadd.f32 %v4024_v47, %v10382_v40  ;;  %v10775_v8 = vpop.f32.mrb[97].mxu1 }
 0x6ac   :  { %v8123_v21 = vpop.eup %8122  ;;  %v4273_v33 = vmul.f32 1.442695, %v8121_v56  ;;  %4529 = vadd.xlane.f32.xlu1 %v8121_v56  ;;  %v10825_v19 = vpop.xlane.xlu1 %2992  ;;  %v4027_v32 = vadd.f32 %v10775_v8, %v10426_v61 }
 0x6ad   :  { %6217 = vst [vmem:[#allocation8 + $0x298] sm:$0xff] %v4416_v34  ;;  %v4353_v60 = vmul.f32 %v8123_v21, %v12439_v55  ;;  %8132 = vtanh.f32 %v4025_v36  ;;  %7134 = vmatmul.mubr.f32.gmra.mrb[232].mxu0 %v4416_v34  ;;  %v12440_v21 = vld [vmem:[#allocation22_spill] sm:$0xff]  ;;  %v10833_v23 = vpop.xlane.xlu0 %2994 }
 0x6ae   :  { %8134 = vpow2.f32 %v4273_v33  ;;  %v4030_v29 = vpop.f32.mrb[98].mxu1 }
 0x6af   :  { %v8125_v1 = vpop.eup %8124  ;;  %v4417_v59 = vadd.f32 %v4353_v60, %v3991_v27  ;;  %v4031_v50 = vadd.f32 %v4030_v29, %v10382_v40  ;;  %v10783_v45 = vpop.f32.mrb[99].mxu1 }
 0x6b0   :  { %v8127_v47 = vpop.eup %8126  ;;  %v4275_v56 = vmul.f32 1.442695, %v8125_v1  ;;  %4531 = vadd.xlane.f32.xlu0 %v8125_v1  ;;  %v4033_v8 = vadd.f32 %v10783_v45, %v10426_v61  ;;  %v10841_v6 = vpop.xlane.xlu1 %2996 }
 0x6b1   :  { %6218 = vst [vmem:[#allocation8 + $0x2a8] sm:$0xff] %v4417_v59  ;;  %v4354_v36 = vmul.f32 %v8127_v47, %v12440_v21  ;;  %8136 = vtanh.f32 %v4031_v50  ;;  %7136 = vmatprep.mubr.f32.mxu0 %v4417_v59  ;;  %v12441_v47 = vld [vmem:[#allocation23_spill] sm:$0xff]  ;;  %v10849_v43 = vpop.xlane.xlu0 %2998 }
 0x6b2   :  { %8138 = vpow2.f32 %v4275_v56  ;;  %v4036_v34 = vpop.f32.mrb[100].mxu1  ;;  %12448 = vst [vmem:[#allocation12_spill] sm:$0xff] %v10849_v43 }
 0x6b3   :  { %v8129_v33 = vpop.eup %8128  ;;  %v4418_v27 = vadd.f32 %v4354_v36, %v3997_v20  ;;  %v4037_v55 = vadd.f32 %v4036_v34, %v10382_v40  ;;  %v10791_v60 = vpop.f32.mrb[101].mxu1 }
 0x6b4   :  { %v8131_v29 = vpop.eup %8130  ;;  %v4277_v1 = vmul.f32 1.442695, %v8129_v33  ;;  %4533 = vadd.xlane.f32.xlu1 %v8129_v33  ;;  %v4039_v45 = vadd.f32 %v10791_v60, %v10426_v61  ;;  %v10857_v17 = vpop.xlane.xlu1 %3000 }
 0x6b5   :  { %6219 = vst [vmem:[#allocation8 + $0x2b8] sm:$0xff] %v4418_v27  ;;  %v4355_v50 = vmul.f32 %v8131_v29, %v12441_v47  ;;  %8140 = vtanh.f32 %v4037_v55  ;;  %7137 = vmatmul.mubr.f32.gmra.mrb[234].mxu0 %v4418_v27  ;;  %v12442_v29 = vld [vmem:[#allocation24_spill] sm:$0xff]  ;;  %12450 = vst [vmem:[#allocation13_spill] sm:$0xff] %v10857_v17  ;;  %v10865_v41 = vpop.xlane.xlu0 %3002 }
 0x6b6   :  { %8142 = vpow2.f32 %v4277_v1  ;;  %v4042_v59 = vpop.f32.mrb[102].mxu1  ;;  %12452 = vst [vmem:[#allocation14_spill] sm:$0xff] %v10865_v41 }
 0x6b7   :  { %v8133_v56 = vpop.eup %8132  ;;  %v4419_v20 = vadd.f32 %v4355_v50, %v4003_v24  ;;  %v4043_v21 = vadd.f32 %v4042_v59, %v10382_v40  ;;  %v10799_v36 = vpop.f32.mrb[103].mxu1 }
 0x6b8   :  { %v8135_v34 = vpop.eup %8134  ;;  %v4279_v33 = vmul.f32 1.442695, %v8133_v56  ;;  %4535 = vadd.xlane.f32.xlu0 %v8133_v56  ;;  %v4045_v60 = vadd.f32 %v10799_v36, %v10426_v61  ;;  %v10873_v57 = vpop.xlane.xlu1 %3004 }
 0x6b9   :  { %6220 = vst [vmem:[#allocation8 + $0x2c8] sm:$0xff] %v4419_v20  ;;  %v4356_v55 = vmul.f32 %v8135_v34, %v12442_v29  ;;  %8144 = vtanh.f32 %v4043_v21  ;;  %7139 = vmatprep.mubr.f32.mxu0 %v4419_v20  ;;  %v12443_v34 = vld [vmem:[#allocation25_spill] sm:$0xff]  ;;  %12454 = vst [vmem:[#allocation15_spill] sm:$0xff] %v10873_v57  ;;  %v10881_v52 = vpop.xlane.xlu0 %3006 }
 0x6ba   :  { %8146 = vpow2.f32 %v4279_v33  ;;  %v4048_v27 = vpop.f32.mrb[104].mxu1  ;;  %12456 = vst [vmem:[#allocation16_spill] sm:$0xff] %v10881_v52 }
 0x6bb   :  { %v8137_v1 = vpop.eup %8136  ;;  %v4420_v24 = vadd.f32 %v4356_v55, %v4009_v44  ;;  %v4049_v47 = vadd.f32 %v4048_v27, %v10382_v40  ;;  %v10807_v50 = vpop.f32.mrb[105].mxu1 }
 0x6bc   :  { %v8139_v59 = vpop.eup %8138  ;;  %v4281_v56 = vmul.f32 1.442695, %v8137_v1  ;;  %4537 = vadd.xlane.f32.xlu1 %v8137_v1  ;;  %v4051_v36 = vadd.f32 %v10807_v50, %v10426_v61  ;;  %v10893_v12 = vpop.xlane.xlu1 %3008 }
 0x6bd   :  { %6221 = vst [vmem:[#allocation8 + $0x2d8] sm:$0xff] %v4420_v24  ;;  %v4357_v21 = vmul.f32 %v8139_v59, %v12443_v34  ;;  %8148 = vtanh.f32 %v4049_v47  ;;  %7140 = vmatmul.mubr.f32.gmra.mrb[236].mxu0 %v4420_v24  ;;  %v12444_v59 = vld [vmem:[#allocation26_spill] sm:$0xff]  ;;  %12458 = vst [vmem:[#allocation17_spill] sm:$0xff] %v10893_v12  ;;  %v10901_v54 = vpop.xlane.xlu0 %3010 }
 0x6be   :  { %8150 = vpow2.f32 %v4281_v56  ;;  %v4054_v20 = vpop.f32.mrb[106].mxu1  ;;  %12460 = vst [vmem:[#allocation18_spill] sm:$0xff] %v10901_v54 }
 0x6bf   :  { %v8141_v33 = vpop.eup %8140  ;;  %v4421_v44 = vadd.f32 %v4357_v21, %v4015_v58  ;;  %v4055_v29 = vadd.f32 %v4054_v20, %v10382_v40  ;;  %v10815_v55 = vpop.f32.mrb[107].mxu1 }
 0x6c0   :  { %v8143_v27 = vpop.eup %8142  ;;  %v4283_v1 = vmul.f32 1.442695, %v8141_v33  ;;  %4539 = vadd.xlane.f32.xlu0 %v8141_v33  ;;  %v4057_v50 = vadd.f32 %v10815_v55, %v10426_v61 }
 0x6c1   :  { %6222 = vst [vmem:[#allocation8 + $0x2e8] sm:$0xff] %v4421_v44  ;;  %v4358_v47 = vmul.f32 %v8143_v27, %v12444_v59  ;;  %8152 = vtanh.f32 %v4055_v29  ;;  %7142 = vmatprep.mubr.f32.mxu0 %v4421_v44  ;;  %v12445_v27 = vld [vmem:[#allocation27_spill] sm:$0xff] }
 0x6c2   :  { %8154 = vpow2.f32 %v4283_v1  ;;  %v4060_v24 = vpop.f32.mrb[108].mxu1 }
 0x6c3   :  { %v8145_v56 = vpop.eup %8144  ;;  %v4422_v58 = vadd.f32 %v4358_v47, %v4021_v4  ;;  %v4061_v34 = vadd.f32 %v4060_v24, %v10382_v40  ;;  %v10823_v21 = vpop.f32.mrb[109].mxu1 }
 0x6c4   :  { %v8147_v20 = vpop.eup %8146  ;;  %v4285_v33 = vmul.f32 1.442695, %v8145_v56  ;;  %4541 = vadd.xlane.f32.xlu1 %v8145_v56  ;;  %v4063_v55 = vadd.f32 %v10823_v21, %v10426_v61 }
 0x6c5   :  { %6223 = vst [vmem:[#allocation8 + $0x2f8] sm:$0xff] %v4422_v58  ;;  %v4359_v29 = vmul.f32 %v8147_v20, %v12445_v27  ;;  %8156 = vtanh.f32 %v4061_v34  ;;  %7143 = vmatmul.mubr.f32.gmra.mrb[238].mxu0 %v4422_v58  ;;  %v12446_v20 = vld [vmem:[#allocation28_spill] sm:$0xff] }
 0x6c6   :  { %8158 = vpow2.f32 %v4285_v33  ;;  %v4066_v44 = vpop.f32.mrb[110].mxu1 }
 0x6c7   :  { %v8149_v1 = vpop.eup %8148  ;;  %v4423_v4 = vadd.f32 %v4359_v29, %v4027_v32  ;;  %v4067_v59 = vadd.f32 %v4066_v44, %v10382_v40  ;;  %v10831_v47 = vpop.f32.mrb[111].mxu1 }
 0x6c8   :  { %v8151_v24 = vpop.eup %8150  ;;  %v4287_v56 = vmul.f32 1.442695, %v8149_v1  ;;  %4543 = vadd.xlane.f32.xlu0 %v8149_v1  ;;  %v4069_v21 = vadd.f32 %v10831_v47, %v10426_v61 }
 0x6c9   :  { %6224 = vst [vmem:[#allocation8 + $0x308] sm:$0xff] %v4423_v4  ;;  %v4360_v34 = vmul.f32 %v8151_v24, %v12446_v20  ;;  %8160 = vtanh.f32 %v4067_v59  ;;  %7145 = vmatprep.mubr.f32.mxu0 %v4423_v4  ;;  %v12447_v24 = vld [vmem:[#allocation29_spill] sm:$0xff] }
 0x6ca   :  { %8162 = vpow2.f32 %v4287_v56  ;;  %v4072_v58 = vpop.f32.mrb[112].mxu1 }
 0x6cb   :  { %v8153_v33 = vpop.eup %8152  ;;  %v4424_v32 = vadd.f32 %v4360_v34, %v4033_v8  ;;  %v4073_v27 = vadd.f32 %v4072_v58, %v10382_v40  ;;  %v10839_v29 = vpop.f32.mrb[113].mxu1 }
 0x6cc   :  { %v8155_v44 = vpop.eup %8154  ;;  %v4289_v1 = vmul.f32 1.442695, %v8153_v33  ;;  %4545 = vadd.xlane.f32.xlu1 %v8153_v33  ;;  %v4075_v47 = vadd.f32 %v10839_v29, %v10426_v61 }
 0x6cd   :  { %6225 = vst [vmem:[#allocation8 + $0x318] sm:$0xff] %v4424_v32  ;;  %v4361_v59 = vmul.f32 %v8155_v44, %v12447_v24  ;;  %8164 = vtanh.f32 %v4073_v27  ;;  %7146 = vmatmul.mubr.f32.gmra.mrb[240].mxu0 %v4424_v32  ;;  %v12449_v44 = vld [vmem:[#allocation30_spill] sm:$0xff] }
 0x6ce   :  { %8166 = vpow2.f32 %v4289_v1  ;;  %v4078_v4 = vpop.f32.mrb[114].mxu1 }
 0x6cf   :  { %v8157_v56 = vpop.eup %8156  ;;  %v4425_v8 = vadd.f32 %v4361_v59, %v4039_v45  ;;  %v4079_v20 = vadd.f32 %v4078_v4, %v10382_v40  ;;  %v10847_v34 = vpop.f32.mrb[115].mxu1 }
 0x6d0   :  { %v8159_v58 = vpop.eup %8158  ;;  %v4291_v33 = vmul.f32 1.442695, %v8157_v56  ;;  %4547 = vadd.xlane.f32.xlu0 %v8157_v56  ;;  %v4081_v29 = vadd.f32 %v10847_v34, %v10426_v61 }
 0x6d1   :  { %6226 = vst [vmem:[#allocation8 + $0x328] sm:$0xff] %v4425_v8  ;;  %v4362_v27 = vmul.f32 %v8159_v58, %v12449_v44  ;;  %8168 = vtanh.f32 %v4079_v20  ;;  %7148 = vmatprep.mubr.f32.mxu0 %v4425_v8  ;;  %v12451_v58 = vld [vmem:[#allocation31_spill] sm:$0xff] }
 0x6d2   :  { %8170 = vpow2.f32 %v4291_v33  ;;  %v4084_v32 = vpop.f32.mrb[116].mxu1 }
 0x6d3   :  { %v8161_v1 = vpop.eup %8160  ;;  %v4426_v45 = vadd.f32 %v4362_v27, %v4045_v60  ;;  %v4085_v24 = vadd.f32 %v4084_v32, %v10382_v40  ;;  %v10855_v59 = vpop.f32.mrb[117].mxu1 }
 0x6d4   :  { %v8163_v4 = vpop.eup %8162  ;;  %v4293_v56 = vmul.f32 1.442695, %v8161_v1  ;;  %4549 = vadd.xlane.f32.xlu1 %v8161_v1 }
 0x6d5   :  { %6227 = vst [vmem:[#allocation8 + $0x338] sm:$0xff] %v4426_v45  ;;  %v4363_v20 = vmul.f32 %v8163_v4, %v12451_v58  ;;  %8172 = vtanh.f32 %v4085_v24  ;;  %7149 = vmatmul.mubr.f32.gmra.mrb[242].mxu0 %v4426_v45  ;;  %v12453_v4 = vld [vmem:[#allocation32_spill] sm:$0xff] }
 0x6d6   :  { %8174 = vpow2.f32 %v4293_v56  ;;  %v4090_v8 = vpop.f32.mrb[118].mxu1 }
 0x6d7   :  { %v8165_v33 = vpop.eup %8164  ;;  %v4427_v60 = vadd.f32 %v4363_v20, %v4051_v36  ;;  %v4091_v44 = vadd.f32 %v4090_v8, %v10382_v40  ;;  %v10863_v27 = vpop.f32.mrb[119].mxu1 }
 0x6d8   :  { %v8167_v32 = vpop.eup %8166  ;;  %v4295_v1 = vmul.f32 1.442695, %v8165_v33  ;;  %4551 = vadd.xlane.f32.xlu0 %v8165_v33 }
 0x6d9   :  { %6228 = vst [vmem:[#allocation8 + $0x348] sm:$0xff] %v4427_v60  ;;  %v4364_v24 = vmul.f32 %v8167_v32, %v12453_v4  ;;  %8176 = vtanh.f32 %v4091_v44  ;;  %7151 = vmatprep.mubr.f32.mxu0 %v4427_v60  ;;  %v12455_v32 = vld [vmem:[#allocation33_spill] sm:$0xff] }
 0x6da   :  { %8178 = vpow2.f32 %v4295_v1  ;;  %v4096_v45 = vpop.f32.mrb[120].mxu1 }
 0x6db   :  { %v8169_v56 = vpop.eup %8168  ;;  %v4428_v36 = vadd.f32 %v4364_v24, %v4057_v50  ;;  %v4097_v58 = vadd.f32 %v4096_v45, %v10382_v40  ;;  %v10871_v20 = vpop.f32.mrb[121].mxu1 }
 0x6dc   :  { %v8171_v8 = vpop.eup %8170  ;;  %v4297_v33 = vmul.f32 1.442695, %v8169_v56  ;;  %4553 = vadd.xlane.f32.xlu1 %v8169_v56 }
 0x6dd   :  { %6229 = vst [vmem:[#allocation8 + $0x358] sm:$0xff] %v4428_v36  ;;  %v4365_v44 = vmul.f32 %v8171_v8, %v12455_v32  ;;  %8180 = vtanh.f32 %v4097_v58  ;;  %7152 = vmatmul.mubr.f32.gmra.mrb[244].mxu0 %v4428_v36  ;;  %v12457_v36 = vld [vmem:[#allocation34_spill] sm:$0xff] }
 0x6de   :  { %8182 = vpow2.f32 %v4297_v33  ;;  %v4102_v60 = vpop.f32.mrb[122].mxu1 }
 0x6df   :  { %v8173_v1 = vpop.eup %8172  ;;  %v4429_v50 = vadd.f32 %v4365_v44, %v4063_v55  ;;  %v4103_v4 = vadd.f32 %v4102_v60, %v10382_v40  ;;  %v10879_v24 = vpop.f32.mrb[123].mxu1 }
 0x6e0   :  { %v8175_v45 = vpop.eup %8174  ;;  %v4299_v56 = vmul.f32 1.442695, %v8173_v1  ;;  %4555 = vadd.xlane.f32.xlu0 %v8173_v1  ;;  %v10883_v16 = vpop.f32.mrb[192].mxu0 }
 0x6e1   :  { %6230 = vst [vmem:[#allocation8 + $0x368] sm:$0xff] %v4429_v50  ;;  %v4366_v58 = vmul.f32 %v8175_v45, %v12457_v36  ;;  %8184 = vtanh.f32 %v4103_v4  ;;  %v10888_v8 = vpop.f32.mrb[193].mxu0  ;;  %7154 = vmatprep.mubr.f32.mxu0 %v4429_v50  ;;  %v12459_v4 = vld [vmem:[#allocation35_spill] sm:$0xff] }
 0x6e2   :  { %8186 = vpow2.f32 %v4299_v56  ;;  %v4108_v33 = vpop.f32.mrb[124].mxu1 }
 0x6e3   :  { %v8177_v55 = vpop.eup %8176  ;;  %v4430_v32 = vadd.f32 %v4366_v58, %v4069_v21  ;;  %v4109_v44 = vadd.f32 %v4108_v33, %v10382_v40  ;;  %v10891_v60 = vpop.f32.mrb[125].mxu1 }
 0x6e4   :  { %v8179_v1 = vpop.eup %8178  ;;  %v4301_v7 = vmul.f32 1.442695, %v8177_v55  ;;  %4557 = vadd.xlane.f32.xlu1 %v8177_v55 }
 0x6e5   :  { %6231 = vst [vmem:[#allocation8 + $0x378] sm:$0xff] %v4430_v32  ;;  %v4367_v45 = vmul.f32 %v8179_v1, %v12459_v4  ;;  %8188 = vtanh.f32 %v4109_v44  ;;  %7155 = vmatmul.mubr.f32.gmra.mrb[246].mxu0 %v4430_v32  ;;  %v12461_v32 = vld [vmem:[#allocation36_spill] sm:$0xff]  ;;  %v10910_v4 = vpop.xlane.xlu1 %3012 }
 0x6e6   :  { %8190 = vpow2.f32 %v4301_v7  ;;  %v4114_v50 = vpop.f32.mrb[126].mxu1  ;;  %12462 = vst [vmem:[#allocation19_spill] sm:$0xff] %v10910_v4 }
 0x6e7   :  { %v8181_v56 = vpop.eup %8180  ;;  %v4431_v21 = vadd.f32 %v4367_v45, %v4075_v47  ;;  %v4115_v36 = vadd.f32 %v4114_v50, %v10382_v40  ;;  %v10899_v58 = vpop.f32.mrb[127].mxu1  ;;  %v4087_v50 = vadd.f32 %v10855_v59, %v10426_v61 }
 0x6e8   :  { %v8183_v33 = vpop.eup %8182  ;;  %v4303_v55 = vmul.f32 1.442695, %v8181_v56  ;;  %4559 = vadd.xlane.f32.xlu0 %v8181_v56  ;;  %v10903_v15 = vpop.f32.mrb[194].mxu0  ;;  %v12463_v56 = vld [vmem:[#allocation37_spill] sm:$0xff] }
 0x6e9   :  { %6232 = vst [vmem:[#allocation8 + $0x388] sm:$0xff] %v4431_v21  ;;  %v4368_v7 = vmul.f32 %v8183_v33, %v12461_v32  ;;  %8192 = vtanh.f32 %v4115_v36  ;;  %v10908_v44 = vpop.f32.mrb[195].mxu0  ;;  %7157 = vmatprep.mubr.f32.mxu0 %v4431_v21  ;;  %v10915_v21 = vpop.xlane.xlu0 %3014 }
 0x6ea   :  { %8194 = vpow2.f32 %v4303_v55  ;;  %12464 = vst [vmem:[#allocation20_spill] sm:$0xff] %v10915_v21 }
 0x6eb   :  { %v8185_v40 = vpop.eup %8184  ;;  %v4432_v1 = vadd.f32 %v4368_v7, %v4081_v29  ;;  %v4093_v7 = vadd.f32 %v10863_v27, %v10426_v61 }
 0x6ec   :  { %v8187_v47 = vpop.eup %8186  ;;  %v4305_v45 = vmul.f32 1.442695, %v8185_v40  ;;  %4561 = vadd.xlane.f32.xlu1 %v8185_v40  ;;  %v12465_v40 = vld [vmem:[#allocation38_spill] sm:$0xff] }
 0x6ed   :  { %6233 = vst [vmem:[#allocation8 + $0x398] sm:$0xff] %v4432_v1  ;;  %v4369_v34 = vmul.f32 %v8187_v47, %v12463_v56  ;;  %7158 = vmatmul.mubr.f32.gmra.mrb[248].mxu0 %v4432_v1 }
 0x6ee   :  { %8196 = vpow2.f32 %v4305_v45 }
 0x6ef   :  { %v8189_v36 = vpop.eup %8188  ;;  %v4433_v33 = vadd.f32 %v4369_v34, %v4087_v50  ;;  %v10922_v50 = vpop.xlane.xlu1 %3016  ;;  %v4099_v34 = vadd.f32 %v10871_v20, %v10426_v61  ;;  %v4111_v20 = vadd.f32 %v10891_v60, %v10426_v61 }
 0x6f0   :  { %v8191_v32 = vpop.eup %8190  ;;  %v4307_v55 = vmul.f32 1.442695, %v8189_v36  ;;  %4563 = vadd.xlane.f32.xlu0 %v8189_v36  ;;  %v10917_v29 = vpop.f32.mrb[196].mxu0  ;;  %12466 = vst [vmem:[#allocation21_spill] sm:$0xff] %v10922_v50  ;;  %v12467_v36 = vld [vmem:[#allocation39_spill] sm:$0xff] }
 0x6f1   :  { %6234 = vst [vmem:[#allocation8 + $0x3a8] sm:$0xff] %v4433_v33  ;;  %v4370_v63 = vmul.f32 %v8191_v32, %v12465_v40  ;;  %v4742_v59 = vpop.f32.mrb[197].mxu0  ;;  %7160 = vmatprep.mubr.f32.mxu0 %v4433_v33  ;;  %v12468_v33 = vld [vmem:[#allocation40_spill] sm:$0xff] }
 0x6f2   :  { %8198 = vpow2.f32 %v4307_v55 }
 0x6f3   :  { %v8193_v1 = vpop.eup %8192  ;;  %v4434_v47 = vadd.f32 %v4370_v63, %v4093_v7  ;;  %v4105_v63 = vadd.f32 %v10879_v24, %v10426_v61 }
 0x6f4   :  { %v8195_v45 = vpop.eup %8194  ;;  %v4309_v56 = vmul.f32 1.442695, %v8193_v1  ;;  %4565 = vadd.xlane.f32.xlu1 %v8193_v1 }
 0x6f5   :  { %6235 = vst [vmem:[#allocation8 + $0x3b8] sm:$0xff] %v4434_v47  ;;  %v4371_v35 = vmul.f32 %v8195_v45, %v12467_v36  ;;  %7161 = vmatmul.mubr.f32.gmra.mrb[250].mxu0 %v4434_v47  ;;  %v12469_v45 = vld [vmem:[#allocation41_spill] sm:$0xff]  ;;  %v4117_v36 = vadd.f32 %v10899_v58, %v10426_v61 }
 0x6f6   :  { %8200 = vpow2.f32 %v4309_v56 }
 0x6f7   :  { %v4435_v27 = vadd.f32 %v4371_v35, %v4099_v34  ;;  %v10936_v34 = vld [vmem:[%s12168_s2 + $0x3] ss:$0 sm:$0xff] }
 0x6f8   :  { %v8197_v32 = vpop.eup %8196  ;;  %v7084_v40 = vpop.f32.mrb[198].mxu0  ;;  %v4733_v58 = vadd.f32 %v10936_v34, %v10908_v44  ;;  %v4748_v44 = vadd.f32 %v10917_v29, %v10936_v34 }
 0x6f9   :  { %6236 = vst [vmem:[#allocation8 + $0x3c8] sm:$0xff] %v4435_v27  ;;  %v4372_v55 = vmul.f32 %v8197_v32, %v12468_v33  ;;  %v4752_v7 = vpop.f32.mrb[199].mxu0  ;;  %7163 = vmatprep.mubr.f32.mxu0 %v4435_v27  ;;  %v12470_v27 = vld [vmem:[#allocation42_spill] sm:$0xff]  ;;  %v4728_v33 = vadd.f32 %v10883_v16, %v10936_v34 }
 0x6fb   :  { %v4436_v1 = vadd.f32 %v4372_v55, %v4105_v63  ;;  %v5042_v61 = vmax.f32 %v4728_v33, 0.0 }
 0x6fc   :  { %v8199_v3 = vpop.eup %8198 }
 0x6fd   :  { %6237 = vst [vmem:[#allocation8 + $0x3d8] sm:$0xff] %v4436_v1  ;;  %v4373_v47 = vmul.f32 %v8199_v3, %v12469_v45  ;;  %7164 = vmatmul.mubr.f32.gmra.mrb[252].mxu0 %v4436_v1  ;;  %v4723_v3 = vadd.f32 %v10936_v34, %v10888_v8  ;;  %v4738_v8 = vadd.f32 %v10903_v15, %v10936_v34  ;;  %v5043_v45 = vmax.f32 %v4733_v58, 0.0 }
 0x6fe   :  { %v5046_v15 = vmax.f32 %v4748_v44, 0.0 }
 0x6ff   :  { %v4437_v35 = vadd.f32 %v4373_v47, %v4111_v20  ;;  %v5041_v55 = vmax.f32 %v4723_v3, 0.0  ;;  %v5044_v16 = vmax.f32 %v4738_v8, 0.0  ;;  %v4753_v3 = vadd.f32 %v10936_v34, %v4752_v7 }
 0x700   :  { %v8201_v56 = vpop.eup %8200  ;;  %v7087_v24 = vpop.f32.mrb[200].mxu0 }
 0x701   :  { %6238 = vst [vmem:[#allocation8 + $0x3e8] sm:$0xff] %v4437_v35  ;;  %v4374_v32 = vmul.f32 %v8201_v56, %v12470_v27  ;;  %v4762_v63 = vpop.f32.mrb[201].mxu0  ;;  %7166 = vmatprep.mubr.f32.mxu0 %v4437_v35  ;;  %v4743_v56 = vadd.f32 %v10936_v34, %v4742_v59  ;;  %v4758_v59 = vadd.f32 %v7084_v40, %v10936_v34 }
 0x702   :  { %v4768_v58 = vadd.f32 %v7087_v24, %v10936_v34 }
 0x703   :  { %v4438_v60 = vadd.f32 %v4374_v32, %v4117_v36  ;;  %v5045_v36 = vmax.f32 %v4743_v56, 0.0  ;;  %v5048_v29 = vmax.f32 %v4758_v59, 0.0 }
 0x704   :  { %v5050_v40 = vmax.f32 %v4768_v58, 0.0 }
 0x705   :  { %6239 = vst [vmem:[#allocation8 + $0x3f8] sm:$0xff] %v4438_v60  ;;  %7167 = vmatmul.mubr.f32.gmra.mrb[254].mxu0 %v4438_v60  ;;  %v5047_v60 = vmax.f32 %v4753_v3, 0.0 }
 0x706   :  { %5215 = vmatprep.mubr.f32.mxu0 %v12301_v42 }
 0x708   :  { %v7090_v1 = vpop.f32.mrb[202].mxu0 }
 0x709   :  { %v4772_v20 = vpop.f32.mrb[203].mxu0  ;;  %5216 = vmatmul.mubr.f32.vlgmr.msra.gmra.mrb[0].mxu0 %v5041_v55  ;;  %v4778_v56 = vadd.f32 %v7090_v1, %v10936_v34 }
 0x70a   :  { %5221 = vmatprep.mubr.f32.mxu0 %v12301_v42 }
 0x70b   :  { %v5052_v24 = vmax.f32 %v4778_v56, 0.0 }
 0x70d   :  { %5222 = vmatmul.mubr.f32.gmra.mrb[2].mxu0 %v5042_v61  ;;  %v4763_v61 = vadd.f32 %v10936_v34, %v4762_v63 }
 0x70e   :  { %5227 = vmatprep.mubr.f32.mxu0 %v12301_v42 }
 0x70f   :  { %v5049_v7 = vmax.f32 %v4763_v61, 0.0 }
 0x710   :  { %v7093_v47 = vpop.f32.mrb[204].mxu0 }
 0x711   :  { %v4782_v35 = vpop.f32.mrb[205].mxu0  ;;  %5228 = vmatmul.mubr.f32.gmra.mrb[4].mxu0 %v5043_v45  ;;  %v4788_v3 = vadd.f32 %v7093_v47, %v10936_v34 }
 0x712   :  { %5233 = vmatprep.mubr.f32.mxu0 %v12301_v42 }
 0x713   :  { %v5054_v1 = vmax.f32 %v4788_v3, 0.0 }
 0x715   :  { %5234 = vmatmul.mubr.f32.gmra.mrb[6].mxu0 %v5044_v16  ;;  %v4773_v16 = vadd.f32 %v10936_v34, %v4772_v20 }
 0x716   :  { %5239 = vmatprep.mubr.f32.mxu0 %v12301_v42 }
 0x717   :  { %v5051_v63 = vmax.f32 %v4773_v16, 0.0 }
 0x718   :  { %v7096_v27 = vpop.f32.mrb[206].mxu0 }
 0x719   :  { %v4792_v32 = vpop.f32.mrb[207].mxu0  ;;  %5240 = vmatmul.mubr.f32.gmra.mrb[8].mxu0 %v5045_v36  ;;  %v4798_v61 = vadd.f32 %v7096_v27, %v10936_v34 }
 0x71a   :  { %5245 = vmatprep.mubr.f32.mxu0 %v12301_v42 }
 0x71b   :  { %v5056_v47 = vmax.f32 %v4798_v61, 0.0 }
 0x71d   :  { %5246 = vmatmul.mubr.f32.gmra.mrb[10].mxu0 %v5046_v15  ;;  %v4783_v15 = vadd.f32 %v10936_v34, %v4782_v35 }
 0x71e   :  { %5251 = vmatprep.mubr.f32.mxu0 %v12301_v42 }
 0x71f   :  { %v5053_v20 = vmax.f32 %v4783_v15, 0.0 }
 0x720   :  { %v7099_v33 = vpop.f32.mrb[208].mxu0 }
 0x721   :  { %v4802_v55 = vpop.f32.mrb[209].mxu0  ;;  %5252 = vmatmul.mubr.f32.gmra.mrb[12].mxu0 %v5047_v60  ;;  %v4808_v16 = vadd.f32 %v7099_v33, %v10936_v34 }
 0x722   :  { %5257 = vmatprep.mubr.f32.mxu0 %v12301_v42 }
 0x723   :  { %v5058_v27 = vmax.f32 %v4808_v16, 0.0 }
 0x725   :  { %5258 = vmatmul.mubr.f32.gmra.mrb[14].mxu0 %v5048_v29  ;;  %v4793_v29 = vadd.f32 %v10936_v34, %v4792_v32 }
 0x726   :  { %5263 = vmatprep.mubr.f32.mxu0 %v12301_v42 }
 0x727   :  { %v5055_v35 = vmax.f32 %v4793_v29, 0.0 }
 0x728   :  { %v7102_v8 = vpop.f32.mrb[210].mxu0 }
 0x729   :  { %v4812_v45 = vpop.f32.mrb[211].mxu0  ;;  %5264 = vmatmul.mubr.f32.gmra.mrb[16].mxu0 %v5049_v7  ;;  %v4818_v15 = vadd.f32 %v7102_v8, %v10936_v34 }
 0x72a   :  { %5269 = vmatprep.mubr.f32.mxu0 %v12301_v42 }
 0x72b   :  { %v5060_v33 = vmax.f32 %v4818_v15, 0.0 }
 0x72d   :  { %5270 = vmatmul.mubr.f32.gmra.mrb[18].mxu0 %v5050_v40  ;;  %v4803_v40 = vadd.f32 %v10936_v34, %v4802_v55 }
 0x72e   :  { %5275 = vmatprep.mubr.f32.mxu0 %v12301_v42 }
 0x72f   :  { %v5057_v32 = vmax.f32 %v4803_v40, 0.0 }
 0x730   :  { %v7105_v44 = vpop.f32.mrb[212].mxu0 }
 0x731   :  { %v4822_v36 = vpop.f32.mrb[213].mxu0  ;;  %5276 = vmatmul.mubr.f32.gmra.mrb[20].mxu0 %v5051_v63  ;;  %v4828_v29 = vadd.f32 %v7105_v44, %v10936_v34 }
 0x732   :  { %5281 = vmatprep.mubr.f32.mxu0 %v12301_v42 }
 0x733   :  { %v5062_v8 = vmax.f32 %v4828_v29, 0.0 }
 0x735   :  { %5282 = vmatmul.mubr.f32.gmra.mrb[22].mxu0 %v5052_v24  ;;  %v4813_v24 = vadd.f32 %v10936_v34, %v4812_v45 }
 0x736   :  { %5287 = vmatprep.mubr.f32.mxu0 %v12301_v42 }
 0x737   :  { %v5059_v55 = vmax.f32 %v4813_v24, 0.0 }
 0x738   :  { %v7108_v59 = vpop.f32.mrb[214].mxu0 }
 0x739   :  { %v4832_v60 = vpop.f32.mrb[215].mxu0  ;;  %5288 = vmatmul.mubr.f32.gmra.mrb[24].mxu0 %v5053_v20  ;;  %v4838_v40 = vadd.f32 %v7108_v59, %v10936_v34 }
 0x73a   :  { %5293 = vmatprep.mubr.f32.mxu0 %v12301_v42 }
 0x73b   :  { %v5064_v44 = vmax.f32 %v4838_v40, 0.0 }
 0x73d   :  { %5294 = vmatmul.mubr.f32.gmra.mrb[26].mxu0 %v5054_v1  ;;  %v4823_v1 = vadd.f32 %v10936_v34, %v4822_v36 }
 0x73e   :  { %5299 = vmatprep.mubr.f32.mxu0 %v12301_v42 }
 0x73f   :  { %v5061_v45 = vmax.f32 %v4823_v1, 0.0 }
 0x740   :  { %v7111_v58 = vpop.f32.mrb[216].mxu0 }
 0x741   :  { %v4842_v7 = vpop.f32.mrb[217].mxu0  ;;  %5300 = vmatmul.mubr.f32.gmra.mrb[28].mxu0 %v5055_v35  ;;  %v4848_v24 = vadd.f32 %v7111_v58, %v10936_v34 }
 0x742   :  { %5305 = vmatprep.mubr.f32.mxu0 %v12301_v42 }
 0x743   :  { %v5066_v59 = vmax.f32 %v4848_v24, 0.0 }
 0x745   :  { %5306 = vmatmul.mubr.f32.gmra.mrb[30].mxu0 %v5056_v47  ;;  %v4833_v47 = vadd.f32 %v10936_v34, %v4832_v60 }
 0x746   :  { %5311 = vmatprep.mubr.f32.mxu0 %v12301_v42 }
 0x747   :  { %v5063_v36 = vmax.f32 %v4833_v47, 0.0 }
 0x748   :  { %v7114_v56 = vpop.f32.mrb[218].mxu0 }
 0x749   :  { %v4852_v63 = vpop.f32.mrb[219].mxu0  ;;  %5312 = vmatmul.mubr.f32.gmra.mrb[32].mxu0 %v5057_v32  ;;  %v4858_v1 = vadd.f32 %v7114_v56, %v10936_v34 }
 0x74a   :  { %5317 = vmatprep.mubr.f32.mxu0 %v12301_v42 }
 0x74b   :  { %v5068_v58 = vmax.f32 %v4858_v1, 0.0 }
 0x74d   :  { %5318 = vmatmul.mubr.f32.gmra.mrb[34].mxu0 %v5058_v27  ;;  %v4843_v27 = vadd.f32 %v10936_v34, %v4842_v7 }
 0x74e   :  { %5323 = vmatprep.mubr.f32.mxu0 %v12301_v42 }
 0x74f   :  { %v5065_v60 = vmax.f32 %v4843_v27, 0.0 }
 0x750   :  { %v7117_v3 = vpop.f32.mrb[220].mxu0 }
 0x751   :  { %v4862_v20 = vpop.f32.mrb[221].mxu0  ;;  %5324 = vmatmul.mubr.f32.gmra.mrb[36].mxu0 %v5059_v55  ;;  %v4868_v47 = vadd.f32 %v7117_v3, %v10936_v34 }
 0x752   :  { %5329 = vmatprep.mubr.f32.mxu0 %v12301_v42 }
 0x753   :  { %v5070_v56 = vmax.f32 %v4868_v47, 0.0 }
 0x755   :  { %5330 = vmatmul.mubr.f32.gmra.mrb[38].mxu0 %v5060_v33  ;;  %v4853_v33 = vadd.f32 %v10936_v34, %v4852_v63 }
 0x756   :  { %5335 = vmatprep.mubr.f32.mxu0 %v12301_v42 }
 0x757   :  { %v5067_v7 = vmax.f32 %v4853_v33, 0.0 }
 0x758   :  { %v7120_v61 = vpop.f32.mrb[222].mxu0 }
 0x759   :  { %v4872_v35 = vpop.f32.mrb[223].mxu0  ;;  %5336 = vmatmul.mubr.f32.gmra.mrb[40].mxu0 %v5061_v45  ;;  %v4878_v27 = vadd.f32 %v7120_v61, %v10936_v34 }
 0x75a   :  { %5341 = vmatprep.mubr.f32.mxu0 %v12301_v42 }
 0x75b   :  { %v5072_v3 = vmax.f32 %v4878_v27, 0.0 }
 0x75d   :  { %5342 = vmatmul.mubr.f32.gmra.mrb[42].mxu0 %v5062_v8  ;;  %v4863_v8 = vadd.f32 %v10936_v34, %v4862_v20 }
 0x75e   :  { %5347 = vmatprep.mubr.f32.mxu0 %v12301_v42 }
 0x75f   :  { %v5069_v63 = vmax.f32 %v4863_v8, 0.0 }
 0x760   :  { %v7123_v16 = vpop.f32.mrb[224].mxu0 }
 0x761   :  { %v4882_v32 = vpop.f32.mrb[225].mxu0  ;;  %5348 = vmatmul.mubr.f32.gmra.mrb[44].mxu0 %v5063_v36  ;;  %v4888_v33 = vadd.f32 %v7123_v16, %v10936_v34 }
 0x762   :  { %5353 = vmatprep.mubr.f32.mxu0 %v12301_v42 }
 0x763   :  { %v5074_v61 = vmax.f32 %v4888_v33, 0.0 }
 0x765   :  { %5354 = vmatmul.mubr.f32.gmra.mrb[46].mxu0 %v5064_v44  ;;  %v4873_v44 = vadd.f32 %v10936_v34, %v4872_v35 }
 0x766   :  { %5359 = vmatprep.mubr.f32.mxu0 %v12301_v42 }
 0x767   :  { %v5071_v20 = vmax.f32 %v4873_v44, 0.0 }
 0x768   :  { %v7126_v15 = vpop.f32.mrb[226].mxu0 }
 0x769   :  { %v4892_v55 = vpop.f32.mrb[227].mxu0  ;;  %5360 = vmatmul.mubr.f32.gmra.mrb[48].mxu0 %v5065_v60  ;;  %v4898_v8 = vadd.f32 %v7126_v15, %v10936_v34 }
 0x76a   :  { %5365 = vmatprep.mubr.f32.mxu0 %v12301_v42 }
 0x76b   :  { %v5076_v16 = vmax.f32 %v4898_v8, 0.0 }
 0x76d   :  { %5366 = vmatmul.mubr.f32.gmra.mrb[50].mxu0 %v5066_v59  ;;  %v4883_v59 = vadd.f32 %v10936_v34, %v4882_v32 }
 0x76e   :  { %5371 = vmatprep.mubr.f32.mxu0 %v12301_v42 }
 0x76f   :  { %v5073_v35 = vmax.f32 %v4883_v59, 0.0 }
 0x770   :  { %v7129_v29 = vpop.f32.mrb[228].mxu0 }
 0x771   :  { %v4902_v45 = vpop.f32.mrb[229].mxu0  ;;  %5372 = vmatmul.mubr.f32.gmra.mrb[52].mxu0 %v5067_v7  ;;  %v4908_v44 = vadd.f32 %v7129_v29, %v10936_v34 }
 0x772   :  { %5377 = vmatprep.mubr.f32.mxu0 %v12301_v42 }
 0x773   :  { %v5078_v15 = vmax.f32 %v4908_v44, 0.0 }
 0x775   :  { %5378 = vmatmul.mubr.f32.gmra.mrb[54].mxu0 %v5068_v58  ;;  %v4893_v58 = vadd.f32 %v10936_v34, %v4892_v55 }
 0x776   :  { %5383 = vmatprep.mubr.f32.mxu0 %v12301_v42 }
 0x777   :  { %v5075_v32 = vmax.f32 %v4893_v58, 0.0 }
 0x778   :  { %v7132_v40 = vpop.f32.mrb[230].mxu0 }
 0x779   :  { %v4912_v36 = vpop.f32.mrb[231].mxu0  ;;  %5384 = vmatmul.mubr.f32.gmra.mrb[56].mxu0 %v5069_v63  ;;  %v4918_v59 = vadd.f32 %v7132_v40, %v10936_v34 }
 0x77a   :  { %5389 = vmatprep.mubr.f32.mxu0 %v12301_v42 }
 0x77b   :  { %v5080_v29 = vmax.f32 %v4918_v59, 0.0 }
 0x77d   :  { %5390 = vmatmul.mubr.f32.gmra.mrb[58].mxu0 %v5070_v56  ;;  %v4903_v56 = vadd.f32 %v10936_v34, %v4902_v45 }
 0x77e   :  { %5395 = vmatprep.mubr.f32.mxu0 %v12301_v42 }
 0x77f   :  { %v5077_v55 = vmax.f32 %v4903_v56, 0.0 }
 0x780   :  { %v7135_v24 = vpop.f32.mrb[232].mxu0 }
 0x781   :  { %v4922_v60 = vpop.f32.mrb[233].mxu0  ;;  %5396 = vmatmul.mubr.f32.gmra.mrb[60].mxu0 %v5071_v20  ;;  %v4928_v58 = vadd.f32 %v7135_v24, %v10936_v34  ;;  %v11038_v24 = vpop.xlane.xlu0 %3018 }
 0x782   :  { %5401 = vmatprep.mubr.f32.mxu0 %v12301_v42  ;;  %12471 = vst [vmem:[#allocation22_spill] sm:$0xff] %v11038_v24 }
 0x783   :  { %v5082_v40 = vmax.f32 %v4928_v58, 0.0 }
 0x785   :  { %5402 = vmatmul.mubr.f32.gmra.mrb[62].mxu0 %v5072_v3  ;;  %v4913_v3 = vadd.f32 %v10936_v34, %v4912_v36  ;;  %v11044_v59 = vpop.xlane.xlu0 %3022 }
 0x786   :  { %5407 = vmatprep.mubr.f32.mxu0 %v12301_v42  ;;  %12473 = vst [vmem:[#allocation24_spill] sm:$0xff] %v11044_v59 }
 0x787   :  { %v5079_v45 = vmax.f32 %v4913_v3, 0.0 }
 0x788   :  { %v7138_v1 = vpop.f32.mrb[234].mxu0 }
 0x789   :  { %v4932_v7 = vpop.f32.mrb[235].mxu0  ;;  %5408 = vmatmul.mubr.f32.gmra.mrb[64].mxu0 %v5073_v35 }
 0x78a   :  { %5413 = vmatprep.mubr.f32.mxu0 %v12301_v42 }
 0x78d   :  { %5414 = vmatmul.mubr.f32.gmra.mrb[66].mxu0 %v5074_v61  ;;  %v4923_v61 = vadd.f32 %v10936_v34, %v4922_v60  ;;  %v4938_v60 = vadd.f32 %v7138_v1, %v10936_v34 }
 0x78e   :  { %5419 = vmatprep.mubr.f32.mxu0 %v12301_v42 }
 0x78f   :  { %v5081_v36 = vmax.f32 %v4923_v61, 0.0 }
 0x790   :  { %v7141_v47 = vpop.f32.mrb[236].mxu0 }
 0x791   :  { %v4942_v63 = vpop.f32.mrb[237].mxu0  ;;  %5420 = vmatmul.mubr.f32.gmra.mrb[68].mxu0 %v5075_v32  ;;  %v4948_v1 = vadd.f32 %v7141_v47, %v10936_v34 }
 0x792   :  { %5425 = vmatprep.mubr.f32.mxu0 %v12301_v42  ;;  %v4943_v3 = vadd.f32 %v10936_v34, %v4942_v63  ;;  %v11054_v63 = vpop.xlane.xlu0 %3026 }
 0x793   :  { %12475 = vst [vmem:[#allocation26_spill] sm:$0xff] %v11054_v63 }
 0x795   :  { %5426 = vmatmul.mubr.f32.gmra.mrb[70].mxu0 %v5076_v16  ;;  %v4933_v16 = vadd.f32 %v10936_v34, %v4932_v7  ;;  %v11042_v7 = vpop.xlane.xlu1 %3020 }
 0x796   :  { %5431 = vmatprep.mubr.f32.mxu0 %v12301_v42  ;;  %12472 = vst [vmem:[#allocation23_spill] sm:$0xff] %v11042_v7  ;;  %v11060_v47 = vpop.xlane.xlu0 %3030 }
 0x797   :  { %v5083_v56 = vmax.f32 %v4933_v16, 0.0  ;;  %12477 = vst [vmem:[#allocation28_spill] sm:$0xff] %v11060_v47 }
 0x798   :  { %v7144_v27 = vpop.f32.mrb[238].mxu0 }
 0x799   :  { %v4952_v20 = vpop.f32.mrb[239].mxu0  ;;  %5432 = vmatmul.mubr.f32.gmra.mrb[72].mxu0 %v5077_v55  ;;  %v11052_v58 = vpop.xlane.xlu1 %3024 }
 0x79a   :  { %5437 = vmatprep.mubr.f32.mxu0 %v12301_v42  ;;  %12474 = vst [vmem:[#allocation25_spill] sm:$0xff] %v11052_v58 }
 0x79d   :  { %5438 = vmatmul.mubr.f32.gmra.mrb[74].mxu0 %v5078_v15  ;;  %v5084_v15 = vmax.f32 %v4938_v60, 0.0  ;;  %v11058_v16 = vpop.xlane.xlu1 %3028  ;;  %v4958_v60 = vadd.f32 %v7144_v27, %v10936_v34 }
 0x79e   :  { %5443 = vmatprep.mubr.f32.mxu0 %v12301_v42  ;;  %12476 = vst [vmem:[#allocation27_spill] sm:$0xff] %v11058_v16 }
 0x7a0   :  { %v7147_v33 = vpop.f32.mrb[240].mxu0 }
 0x7a1   :  { %v4962_v35 = vpop.f32.mrb[241].mxu0  ;;  %5444 = vmatmul.mubr.f32.gmra.mrb[76].mxu0 %v5079_v45  ;;  %v5085_v45 = vmax.f32 %v4943_v3, 0.0 }
 0x7a2   :  { %5449 = vmatprep.mubr.f32.mxu0 %v12301_v42 }
 0x7a5   :  { %5450 = vmatmul.mubr.f32.gmra.mrb[78].mxu0 %v5080_v29 }
 0x7a6   :  { %5455 = vmatprep.mubr.f32.mxu0 %v12301_v42 }
 0x7a8   :  { %v11029_v8 = vpop.f32.mrb[242].mxu0 }
 0x7a9   :  { %v4972_v32 = vpop.f32.mrb[243].mxu0  ;;  %5456 = vmatmul.mubr.f32.gmra.mrb[80].mxu0 %v5081_v36  ;;  %v5086_v36 = vmax.f32 %v4948_v1, 0.0  ;;  %v11068_v1 = vpop.xlane.xlu1 %3032 }
 0x7aa   :  { %5461 = vmatprep.mubr.f32.mxu0 %v12301_v42  ;;  %12478 = vst [vmem:[#allocation29_spill] sm:$0xff] %v11068_v1 }
 0x7ad   :  { %5462 = vmatmul.mubr.f32.gmra.mrb[82].mxu0 %v5082_v40  ;;  %v4953_v40 = vadd.f32 %v10936_v34, %v4952_v20  ;;  %v11070_v20 = vpop.xlane.xlu0 %3034  ;;  %v11074_v51 = vpop.xlane.xlu1 %3036 }
 0x7ae   :  { %5467 = vmatprep.mubr.f32.mxu0 %v12301_v42  ;;  %12479 = vst [vmem:[#allocation30_spill] sm:$0xff] %v11070_v20  ;;  %12480 = vst [vmem:[#allocation31_spill] sm:$0xff] %v11074_v51  ;;  %v4973_v20 = vadd.f32 %v10936_v34, %v4972_v32 }
 0x7b0   :  { %v11035_v44 = vpop.f32.mrb[244].mxu0 }
 0x7b1   :  { %v4982_v55 = vpop.f32.mrb[245].mxu0  ;;  %5468 = vmatmul.mubr.f32.gmra.mrb[84].mxu0 %v5083_v56  ;;  %v5087_v56 = vmax.f32 %v4953_v40, 0.0  ;;  %v11076_v27 = vpop.xlane.xlu0 %3038  ;;  %v4968_v40 = vadd.f32 %v7147_v33, %v10936_v34 }
 0x7b2   :  { %5473 = vmatprep.mubr.f32.mxu0 %v12301_v42  ;;  %12481 = vst [vmem:[#allocation32_spill] sm:$0xff] %v11076_v27 }
 0x7b5   :  { %5474 = vmatmul.mubr.f32.gmra.mrb[86].mxu0 %v5084_v15 }
 0x7b6   :  { %5479 = vmatprep.mubr.f32.mxu0 %v12301_v42 }
 0x7b8   :  { %v11047_v29 = vpop.f32.mrb[246].mxu0 }
 0x7b9   :  { %v11049_v61 = vpop.f32.mrb[247].mxu0  ;;  %5480 = vmatmul.mubr.f32.gmra.mrb[88].mxu0 %v5085_v45  ;;  %v5088_v45 = vmax.f32 %v4958_v60, 0.0  ;;  %v11084_v60 = vpop.xlane.xlu1 %3040 }
 0x7ba   :  { %5485 = vmatprep.mubr.f32.mxu0 %v12301_v42  ;;  %12482 = vst [vmem:[#allocation33_spill] sm:$0xff] %v11084_v60 }
 0x7bd   :  { %5486 = vmatmul.mubr.f32.gmra.mrb[90].mxu0 %v5086_v36  ;;  %v4963_v36 = vadd.f32 %v10936_v34, %v4962_v35  ;;  %v11086_v35 = vpop.xlane.xlu0 %3042  ;;  %v11090_v27 = vpop.xlane.xlu1 %3044 }
 0x7be   :  { %5491 = vmatprep.mubr.f32.mxu0 %v12301_v42  ;;  %12483 = vst [vmem:[#allocation34_spill] sm:$0xff] %v11086_v35  ;;  %12484 = vst [vmem:[#allocation35_spill] sm:$0xff] %v11090_v27  ;;  %v4983_v27 = vadd.f32 %v10936_v34, %v4982_v55 }
 0x7bf   :  { %v5089_v14 = vmax.f32 %v4963_v36, 0.0  ;;  %v4978_v36 = vadd.f32 %v11029_v8, %v10936_v34  ;;  %v11110_v8 = vld [vmem:[%s12170_s4 + $0x6] sm:$0x3] }
 0x7c0   :  { %v11063_v15 = vpop.f32.mrb[248].mxu0  ;;  %v11124_v55 = vrot.slane %v11110_v8, %v8927_v48 }
 0x7c1   :  { %v11065_v3 = vpop.f32.mrb[249].mxu0  ;;  %5492 = vmatmul.mubr.f32.gmra.mrb[92].mxu0 %v5087_v56  ;;  %v11092_v33 = vpop.xlane.xlu0 %3046 }
 0x7c2   :  { %5497 = vmatprep.mubr.f32.mxu0 %v12301_v42  ;;  %12485 = vst [vmem:[#allocation36_spill] sm:$0xff] %v11092_v33  ;;  %v5093_v33 = vmax.f32 %v4983_v27, 0.0 }
 0x7c5   :  { %5498 = vmatmul.mubr.f32.gmra.mrb[94].mxu0 %v5088_v45  ;;  %v5090_v45 = vmax.f32 %v4968_v40, 0.0  ;;  %v11101_v40 = vpop.xlane.xlu1 %3048  ;;  %v11103_v32 = vpop.xlane.xlu0 %3050 }
 0x7c6   :  { %5503 = vmatprep.mubr.f32.mxu0 %v12301_v42  ;;  %12486 = vst [vmem:[#allocation37_spill] sm:$0xff] %v11101_v40  ;;  %12487 = vst [vmem:[#allocation38_spill] sm:$0xff] %v11103_v32  ;;  %v4988_v40 = vadd.f32 %v11035_v44, %v10936_v34  ;;  %v4993_v44 = vadd.f32 %v10936_v34, %v11049_v61 }
 0x7c8   :  { %v11079_v56 = vpop.f32.mrb[250].mxu0 }
 0x7c9   :  { %v11081_v47 = vpop.f32.mrb[251].mxu0  ;;  %5504 = vmatmul.mubr.f32.gmra.mrb[96].mxu0 %v5089_v14  ;;  %v5091_v14 = vmax.f32 %v4973_v20, 0.0  ;;  %v11112_v20 = vpop.xlane.xlu1 %3052 }
 0x7ca   :  { %5509 = vmatprep.mubr.f32.mxu0 %v12301_v42  ;;  %12488 = vst [vmem:[#allocation39_spill] sm:$0xff] %v11112_v20 }
 0x7cd   :  { %5510 = vmatmul.mubr.f32.gmra.mrb[98].mxu0 %v5090_v45  ;;  %v5092_v45 = vmax.f32 %v4978_v36, 0.0 }
 0x7ce   :  { %5515 = vmatprep.mubr.f32.mxu0 %v12301_v42 }
 0x7d0   :  { %v11096_v51 = vpop.f32.mrb[252].mxu0 }
 0x7d1   :  { %v11098_v1 = vpop.f32.mrb[253].mxu0  ;;  %5516 = vmatmul.mubr.f32.gmra.mrb[100].mxu0 %v5091_v14  ;;  %v11114_v14 = vpop.xlane.xlu0 %3054 }
 0x7d2   :  { %5521 = vmatprep.mubr.f32.mxu0 %v12301_v42  ;;  %12489 = vst [vmem:[#allocation40_spill] sm:$0xff] %v11114_v14  ;;  %v5094_v14 = vmax.f32 %v4988_v40, 0.0 }
 0x7d5   :  { %5522 = vmatmul.mubr.f32.gmra.mrb[102].mxu0 %v5092_v45  ;;  %v11127_v45 = vpop.xlane.xlu1 %3056  ;;  %v11129_v20 = vpop.xlane.xlu0 %3058 }
 0x7d6   :  { %5527 = vmatprep.mubr.f32.mxu0 %v12301_v42  ;;  %12490 = vst [vmem:[#allocation41_spill] sm:$0xff] %v11127_v45  ;;  %12491 = vst [vmem:[#allocation42_spill] sm:$0xff] %v11129_v20  ;;  %v4998_v45 = vadd.f32 %v11047_v29, %v10936_v34  ;;  %v5095_v20 = vmax.f32 %v4993_v44, 0.0 }
 0x7d8   :  { %v11118_v32 = vpop.f32.mrb[254].mxu0 }
 0x7d9   :  { %v11120_v36 = vpop.f32.mrb[255].mxu0  ;;  %5528 = vmatmul.mubr.f32.gmra.mrb[104].mxu0 %v5093_v33  ;;  %v11137_v48 = vpop.xlane.xlu1 %3060 }
 0x7da   :  { %5533 = vmatprep.mubr.f32.mxu0 %v12301_v42  ;;  %12492 = vst [vmem:[#allocation171_spill] sm:$0xff] %v11137_v48  ;;  %v11139_v33 = vpop.xlane.xlu0 %3062  ;;  %v5096_v48 = vmax.f32 %v4998_v45, 0.0 }
 0x7db   :  { %12493 = vst [vmem:[#allocation172_spill] sm:$0xff] %v11139_v33  ;;  %v5003_v33 = vadd.f32 %v10936_v34, %v11065_v3 }
 0x7dc   :  { %v5217_v27 = vpop.f32.mrb[0].mxu0 }
 0x7dd   :  { %v5218_v35 = vadd.f32 %v5217_v27, %v11124_v55  ;;  %v11134_v60 = vpop.f32.mrb[1].mxu0  ;;  %5534 = vmatmul.mubr.f32.gmra.mrb[106].mxu0 %v5094_v14  ;;  %v11147_v14 = vpop.xlane.xlu1 %3064  ;;  %v5097_v45 = vmax.f32 %v5003_v33, 0.0 }
 0x7de   :  { %5539 = vmatprep.mubr.f32.mxu0 %v12301_v42  ;;  %12494 = vst [vmem:[#allocation173_spill] sm:$0xff] %v11147_v14  ;;  %v11149_v27 = vpop.xlane.xlu0 %3066 }
 0x7df   :  { %8202 = vtanh.f32 %v5218_v35  ;;  %12495 = vst [vmem:[#allocation174_spill] sm:$0xff] %v11149_v27  ;;  %v5008_v27 = vadd.f32 %v11063_v15, %v10936_v34  ;;  %v5013_v15 = vadd.f32 %v10936_v34, %v11081_v47  ;;  %v5018_v47 = vadd.f32 %v11079_v56, %v10936_v34 }
 0x7e0   :  { %v5223_v40 = vpop.f32.mrb[2].mxu0  ;;  %v5023_v56 = vadd.f32 %v10936_v34, %v11098_v1 }
 0x7e1   :  { %v5224_v61 = vadd.f32 %v5223_v40, %v11124_v55  ;;  %v11144_v53 = vpop.f32.mrb[3].mxu0  ;;  %5540 = vmatmul.mubr.f32.gmra.mrb[108].mxu0 %v5095_v20  ;;  %v11157_v20 = vpop.xlane.xlu1 %3068 }
 0x7e2   :  { %5545 = vmatprep.mubr.f32.mxu0 %v12301_v42  ;;  %12496 = vst [vmem:[#allocation175_spill] sm:$0xff] %v11157_v20  ;;  %v11159_v40 = vpop.xlane.xlu0 %3070 }
 0x7e3   :  { %8204 = vtanh.f32 %v5224_v61  ;;  %12497 = vst [vmem:[#allocation176_spill] sm:$0xff] %v11159_v40  ;;  %v5098_v40 = vmax.f32 %v5008_v27, 0.0  ;;  %v5099_v27 = vmax.f32 %v5013_v15, 0.0  ;;  %v11195_v15 = vrot.slane %v11110_v8, %v8974_v30 }
 0x7e4   :  { %v5229_v29 = vpop.f32.mrb[4].mxu0  ;;  %v5101_v8 = vmax.f32 %v5023_v56, 0.0 }
 0x7e5   :  { %v5230_v35 = vadd.f32 %v5229_v29, %v11124_v55  ;;  %v11154_v44 = vpop.f32.mrb[5].mxu0  ;;  %5546 = vmatmul.mubr.f32.gmra.mrb[110].mxu0 %v5096_v48  ;;  %v11167_v48 = vpop.xlane.xlu1 %3072 }
 0x7e6   :  { %5551 = vmatprep.mubr.f32.mxu0 %v12301_v42  ;;  %12498 = vst [vmem:[#allocation177_spill] sm:$0xff] %v11167_v48  ;;  %v11169_v20 = vpop.xlane.xlu0 %3074 }
 0x7e7   :  { %8206 = vtanh.f32 %v5230_v35  ;;  %12499 = vst [vmem:[#allocation178_spill] sm:$0xff] %v11169_v20 }
 0x7e8   :  { %v5235_v14 = vpop.f32.mrb[6].mxu0 }
 0x7e9   :  { %v8203_v3 = vpop.eup %8202  ;;  %v5236_v61 = vadd.f32 %v5235_v14, %v11124_v55  ;;  %v11164_v16 = vpop.f32.mrb[7].mxu0  ;;  %5552 = vmatmul.mubr.f32.gmra.mrb[112].mxu0 %v5097_v45 }
 0x7ea   :  { %v5664_v29 = vmul.f32 1.442695, %v8203_v3  ;;  %5920 = vadd.xlane.f32.xlu0 %v8203_v3  ;;  %5557 = vmatprep.mubr.f32.mxu0 %v12301_v42  ;;  %v11177_v3 = vpop.xlane.xlu1 %3076  ;;  %v11179_v20 = vpop.xlane.xlu0 %3078 }
 0x7eb   :  { %8208 = vtanh.f32 %v5236_v61  ;;  %12500 = vst [vmem:[#allocation179_spill] sm:$0xff] %v11177_v3  ;;  %12501 = vst [vmem:[#allocation180_spill] sm:$0xff] %v11179_v20  ;;  %v5100_v3 = vmax.f32 %v5018_v47, 0.0  ;;  %v5028_v47 = vadd.f32 %v11096_v51, %v10936_v34 }
 0x7ec   :  { %8210 = vpow2.f32 %v5664_v29  ;;  %v5241_v33 = vpop.f32.mrb[8].mxu0 }
 0x7ed   :  { %v8205_v35 = vpop.eup %8204  ;;  %v5242_v14 = vadd.f32 %v5241_v33, %v11124_v55  ;;  %v11174_v13 = vpop.f32.mrb[9].mxu0  ;;  %5558 = vmatmul.mubr.f32.gmra.mrb[114].mxu0 %v5098_v40 }
 0x7ee   :  { %v5666_v45 = vmul.f32 1.442695, %v8205_v35  ;;  %5922 = vadd.xlane.f32.xlu1 %v8205_v35  ;;  %5563 = vmatprep.mubr.f32.mxu0 %v12301_v42  ;;  %v11187_v35 = vpop.xlane.xlu1 %3080  ;;  %v11189_v20 = vpop.xlane.xlu0 %3082 }
 0x7ef   :  { %8212 = vtanh.f32 %v5242_v14  ;;  %12502 = vst [vmem:[#allocation181_spill] sm:$0xff] %v11187_v35  ;;  %12503 = vst [vmem:[#allocation182_spill] sm:$0xff] %v11189_v20 }
 0x7f0   :  { %8214 = vpow2.f32 %v5666_v45  ;;  %v5247_v61 = vpop.f32.mrb[10].mxu0 }
 0x7f1   :  { %v8207_v29 = vpop.eup %8206  ;;  %v5248_v33 = vadd.f32 %v5247_v61, %v11124_v55  ;;  %v11184_v48 = vpop.f32.mrb[11].mxu0  ;;  %5564 = vmatmul.mubr.f32.gmra.mrb[116].mxu0 %v5099_v27 }
 0x7f2   :  { %v5668_v40 = vmul.f32 1.442695, %v8207_v29  ;;  %5924 = vadd.xlane.f32.xlu0 %v8207_v29  ;;  %5569 = vmatprep.mubr.f32.mxu0 %v12301_v42  ;;  %v11203_v1 = vpop.xlane.xlu1 %3084  ;;  %v11205_v30 = vpop.xlane.xlu0 %4439 }
 0x7f3   :  { %8216 = vtanh.f32 %v5248_v33  ;;  %12504 = vst [vmem:[#allocation183_spill] sm:$0xff] %v11203_v1  ;;  %v5220_v33 = vadd.f32 %v11134_v60, %v11195_v15  ;;  %v5102_v1 = vmax.f32 %v5028_v47, 0.0 }
 0x7f4   :  { %8218 = vpow2.f32 %v5668_v40  ;;  %v5253_v14 = vpop.f32.mrb[12].mxu0  ;;  %v12505_v40 = vld [vmem:[#allocation43_spill] sm:$0xff] }
 0x7f5   :  { %v8209_v45 = vpop.eup %8208  ;;  %v5254_v27 = vadd.f32 %v5253_v14, %v11124_v55  ;;  %v11198_v61 = vpop.f32.mrb[13].mxu0  ;;  %5570 = vmatmul.mubr.f32.gmra.mrb[118].mxu0 %v5100_v3 }
 0x7f6   :  { %v8211_v29 = vpop.eup %8210  ;;  %v5670_v20 = vmul.f32 1.442695, %v8209_v45  ;;  %5926 = vadd.xlane.f32.xlu1 %v8209_v45  ;;  %5575 = vmatprep.mubr.f32.mxu0 %v12301_v42  ;;  %v11214_v56 = vpop.xlane.xlu1 %4441 }
 0x7f7   :  { %v5792_v14 = vmul.f32 %v8211_v29, %v12505_v40  ;;  %8220 = vtanh.f32 %v5254_v27  ;;  %v11216_v60 = vpop.xlane.xlu0 %4443  ;;  %v5226_v27 = vadd.f32 %v11144_v53, %v11195_v15  ;;  %v12506_v29 = vld [vmem:[#allocation44_spill] sm:$0xff] }
 0x7f8   :  { %8222 = vpow2.f32 %v5670_v20  ;;  %v5259_v3 = vpop.f32.mrb[14].mxu0  ;;  %v5033_v20 = vadd.f32 %v10936_v34, %v11120_v36  ;;  %v5038_v36 = vadd.f32 %v11118_v32, %v10936_v34 }
 0x7f9   :  { %v8213_v35 = vpop.eup %8212  ;;  %v5856_v63 = vadd.f32 %v5792_v14, %v5220_v33  ;;  %v5260_v51 = vadd.f32 %v5259_v3, %v11124_v55  ;;  %v11211_v45 = vpop.f32.mrb[15].mxu0  ;;  %5576 = vmatmul.mubr.f32.gmra.mrb[120].mxu0 %v5101_v8 }
 0x7fa   :  { %v8215_v39 = vpop.eup %8214  ;;  %v5672_v58 = vmul.f32 1.442695, %v8213_v35  ;;  %5928 = vadd.xlane.f32.xlu0 %v8213_v35  ;;  %5581 = vmatprep.mubr.f32.mxu0 %v12301_v42  ;;  %v11229_v53 = vpop.xlane.xlu1 %4445 }
 0x7fb   :  { %6112 = vst [vmem:[#allocation8] sm:$0xff] %v5856_v63  ;;  %v5793_v33 = vmul.f32 %v8215_v39, %v12506_v29  ;;  %8224 = vtanh.f32 %v5260_v51  ;;  %v11231_v39 = vpop.xlane.xlu0 %4447  ;;  %v5232_v51 = vadd.f32 %v11154_v44, %v11195_v15 }
 0x7fc   :  { %8226 = vpow2.f32 %v5672_v58  ;;  %v5265_v47 = vpop.f32.mrb[16].mxu0  ;;  %v5103_v58 = vmax.f32 %v5033_v20, 0.0 }
 0x7fd   :  { %v8217_v8 = vpop.eup %8216  ;;  %v5857_v35 = vadd.f32 %v5793_v33, %v5226_v27  ;;  %v5266_v40 = vadd.f32 %v5265_v47, %v11124_v55  ;;  %v11224_v14 = vpop.f32.mrb[17].mxu0  ;;  %5582 = vmatmul.mubr.f32.gmra.mrb[122].mxu0 %v5102_v1  ;;  %v12507_v27 = vld [vmem:[#allocation45_spill] sm:$0xff] }
 0x7fe   :  { %v8219_v3 = vpop.eup %8218  ;;  %v5674_v63 = vmul.f32 1.442695, %v8217_v8  ;;  %5930 = vadd.xlane.f32.xlu1 %v8217_v8  ;;  %5587 = vmatprep.mubr.f32.mxu0 %v12301_v42  ;;  %v11240_v20 = vpop.xlane.xlu1 %4449 }
 0x7ff   :  { %6113 = vst [vmem:[#allocation8 + $0x10] sm:$0xff] %v5857_v35  ;;  %v5794_v29 = vmul.f32 %v8219_v3, %v12507_v27  ;;  %8228 = vtanh.f32 %v5266_v40  ;;  %v11242_v44 = vpop.xlane.xlu0 %4451  ;;  %v5104_v35 = vmax.f32 %v5038_v36, 0.0  ;;  %v5238_v40 = vadd.f32 %v11164_v16, %v11195_v15  ;;  %v12508_v3 = vld [vmem:[#allocation46_spill] sm:$0xff] }
 0x800   :  { %8230 = vpow2.f32 %v5674_v63  ;;  %v5271_v1 = vpop.f32.mrb[18].mxu0  ;;  %v5244_v16 = vadd.f32 %v11174_v13, %v11195_v15  ;;  %v5250_v13 = vadd.f32 %v11184_v48, %v11195_v15  ;;  %v5256_v48 = vadd.f32 %v11198_v61, %v11195_v15 }
 0x801   :  { %v8221_v33 = vpop.eup %8220  ;;  %v5858_v34 = vadd.f32 %v5794_v29, %v5232_v51  ;;  %v5272_v32 = vadd.f32 %v5271_v1, %v11124_v55  ;;  %v11237_v47 = vpop.f32.mrb[19].mxu0  ;;  %5588 = vmatmul.mubr.f32.gmra.mrb[124].mxu0 %v5103_v58  ;;  %v5262_v61 = vadd.f32 %v11211_v45, %v11195_v15  ;;  %v5268_v45 = vadd.f32 %v11224_v14, %v11195_v15 }
 0x802   :  { %v8223_v8 = vpop.eup %8222  ;;  %v5676_v59 = vmul.f32 1.442695, %v8221_v33  ;;  %5932 = vadd.xlane.f32.xlu0 %v8221_v33  ;;  %5593 = vmatprep.mubr.f32.mxu0 %v12301_v42  ;;  %v11250_v36 = vpop.xlane.xlu1 %4453  ;;  %v5274_v14 = vadd.f32 %v11237_v47, %v11195_v15 }
 0x803   :  { %6114 = vst [vmem:[#allocation8 + $0x20] sm:$0xff] %v5858_v34  ;;  %v5795_v63 = vmul.f32 %v8223_v8, %v12508_v3  ;;  %8232 = vtanh.f32 %v5272_v32  ;;  %v11252_v34 = vpop.xlane.xlu0 %4455 }
 0x804   :  { %8234 = vpow2.f32 %v5676_v59  ;;  %v5277_v51 = vpop.f32.mrb[20].mxu0  ;;  %v12509_v59 = vld [vmem:[#allocation47_spill] sm:$0xff] }
 0x805   :  { %v8225_v58 = vpop.eup %8224  ;;  %v5859_v27 = vadd.f32 %v5795_v63, %v5238_v40  ;;  %v5278_v29 = vadd.f32 %v5277_v51, %v11124_v55  ;;  %v11248_v1 = vpop.f32.mrb[21].mxu0  ;;  %5594 = vmatmul.mubr.f32.gmra.mrb[126].mxu0 %v5104_v35 }
 0x806   :  { %v8227_v42 = vpop.eup %8226  ;;  %v5678_v33 = vmul.f32 1.442695, %v8225_v58  ;;  %5934 = vadd.xlane.f32.xlu1 %v8225_v58  ;;  %v11260_v7 = vpop.xlane.xlu1 %4457  ;;  %v5280_v47 = vadd.f32 %v11248_v1, %v11195_v15 }
 0x807   :  { %6115 = vst [vmem:[#allocation8 + $0x30] sm:$0xff] %v5859_v27  ;;  %v5796_v32 = vmul.f32 %v8227_v42, %v12509_v59  ;;  %8236 = vtanh.f32 %v5278_v29  ;;  %v11262_v27 = vpop.xlane.xlu0 %4459  ;;  %v12510_v29 = vld [vmem:[#allocation48_spill] sm:$0xff] }
 0x808   :  { %8238 = vpow2.f32 %v5678_v33  ;;  %v5283_v8 = vpop.f32.mrb[22].mxu0 }
 0x809   :  { %v8229_v40 = vpop.eup %8228  ;;  %v5860_v3 = vadd.f32 %v5796_v32, %v5244_v16  ;;  %v5284_v35 = vadd.f32 %v5283_v8, %v11124_v55  ;;  %v11258_v63 = vpop.f32.mrb[23].mxu0 }
 0x80a   :  { %v8231_v51 = vpop.eup %8230  ;;  %v5680_v58 = vmul.f32 1.442695, %v8229_v40  ;;  %5936 = vadd.xlane.f32.xlu0 %v8229_v40  ;;  %v11270_v50 = vpop.xlane.xlu1 %4461  ;;  %v5286_v1 = vadd.f32 %v11258_v63, %v11195_v15 }
 0x80b   :  { %6116 = vst [vmem:[#allocation8 + $0x40] sm:$0xff] %v5860_v3  ;;  %v5797_v42 = vmul.f32 %v8231_v51, %v12510_v29  ;;  %8240 = vtanh.f32 %v5284_v35  ;;  %v11272_v3 = vpop.xlane.xlu0 %4463  ;;  %v12511_v35 = vld [vmem:[#allocation49_spill] sm:$0xff] }
 0x80c   :  { %8242 = vpow2.f32 %v5680_v58  ;;  %v5289_v33 = vpop.f32.mrb[24].mxu0 }
 0x80d   :  { %v8233_v16 = vpop.eup %8232  ;;  %v5861_v59 = vadd.f32 %v5797_v42, %v5250_v13  ;;  %v5290_v32 = vadd.f32 %v5289_v33, %v11124_v55  ;;  %v11268_v8 = vpop.f32.mrb[25].mxu0 }
 0x80e   :  { %v8235_v40 = vpop.eup %8234  ;;  %v5682_v24 = vmul.f32 1.442695, %v8233_v16  ;;  %5938 = vadd.xlane.f32.xlu1 %v8233_v16  ;;  %v11280_v4 = vpop.xlane.xlu1 %4465  ;;  %v5292_v63 = vadd.f32 %v11268_v8, %v11195_v15 }
 0x80f   :  { %6117 = vst [vmem:[#allocation8 + $0x50] sm:$0xff] %v5861_v59  ;;  %v5798_v51 = vmul.f32 %v8235_v40, %v12511_v35  ;;  %8244 = vtanh.f32 %v5290_v32  ;;  %v11282_v59 = vpop.xlane.xlu0 %4467  ;;  %v12512_v32 = vld [vmem:[#allocation50_spill] sm:$0xff] }
 0x810   :  { %8246 = vpow2.f32 %v5682_v24  ;;  %v5295_v58 = vpop.f32.mrb[26].mxu0 }
 0x811   :  { %v8237_v13 = vpop.eup %8236  ;;  %v5862_v29 = vadd.f32 %v5798_v51, %v5256_v48  ;;  %v5296_v42 = vadd.f32 %v5295_v58, %v11124_v55  ;;  %v11278_v33 = vpop.f32.mrb[27].mxu0 }
 0x812   :  { %v8239_v16 = vpop.eup %8238  ;;  %v5684_v21 = vmul.f32 1.442695, %v8237_v13  ;;  %5940 = vadd.xlane.f32.xlu0 %v8237_v13  ;;  %v11290_v12 = vpop.xlane.xlu1 %4469  ;;  %v5298_v8 = vadd.f32 %v11278_v33, %v11195_v15 }
 0x813   :  { %6118 = vst [vmem:[#allocation8 + $0x60] sm:$0xff] %v5862_v29  ;;  %v5799_v24 = vmul.f32 %v8239_v16, %v12512_v32  ;;  %8248 = vtanh.f32 %v5296_v42  ;;  %v11292_v29 = vpop.xlane.xlu0 %4471  ;;  %v12513_v42 = vld [vmem:[#allocation51_spill] sm:$0xff] }
 0x814   :  { %8250 = vpow2.f32 %v5684_v21  ;;  %v5301_v40 = vpop.f32.mrb[28].mxu0 }
 0x815   :  { %v8241_v48 = vpop.eup %8240  ;;  %v5863_v35 = vadd.f32 %v5799_v24, %v5262_v61  ;;  %v5302_v51 = vadd.f32 %v5301_v40, %v11124_v55  ;;  %v11288_v58 = vpop.f32.mrb[29].mxu0 }
 0x816   :  { %v8243_v13 = vpop.eup %8242  ;;  %v5686_v54 = vmul.f32 1.442695, %v8241_v48  ;;  %5942 = vadd.xlane.f32.xlu1 %v8241_v48  ;;  %v11300_v57 = vpop.xlane.xlu1 %4473  ;;  %v5304_v33 = vadd.f32 %v11288_v58, %v11195_v15 }
 0x817   :  { %6119 = vst [vmem:[#allocation8 + $0x70] sm:$0xff] %v5863_v35  ;;  %v5800_v21 = vmul.f32 %v8243_v13, %v12513_v42  ;;  %8252 = vtanh.f32 %v5302_v51  ;;  %v11302_v35 = vpop.xlane.xlu0 %4475  ;;  %v12514_v51 = vld [vmem:[#allocation52_spill] sm:$0xff] }
 0x818   :  { %8254 = vpow2.f32 %v5686_v54  ;;  %v5307_v16 = vpop.f32.mrb[30].mxu0 }
 0x819   :  { %v8245_v61 = vpop.eup %8244  ;;  %v5864_v32 = vadd.f32 %v5800_v21, %v5268_v45  ;;  %v5308_v24 = vadd.f32 %v5307_v16, %v11124_v55  ;;  %v11298_v40 = vpop.f32.mrb[31].mxu0 }
 0x81a   :  { %v8247_v48 = vpop.eup %8246  ;;  %v5688_v52 = vmul.f32 1.442695, %v8245_v61  ;;  %5944 = vadd.xlane.f32.xlu0 %v8245_v61  ;;  %v11310_v17 = vpop.xlane.xlu1 %4477  ;;  %v5310_v58 = vadd.f32 %v11298_v40, %v11195_v15 }
 0x81b   :  { %6120 = vst [vmem:[#allocation8 + $0x80] sm:$0xff] %v5864_v32  ;;  %v5801_v54 = vmul.f32 %v8247_v48, %v12514_v51  ;;  %8256 = vtanh.f32 %v5308_v24  ;;  %12515 = vst [vmem:[#allocation43_spill] sm:$0xff] %v11310_v17  ;;  %v11312_v32 = vpop.xlane.xlu0 %4479  ;;  %v12517_v24 = vld [vmem:[#allocation53_spill] sm:$0xff] }
 0x81c   :  { %8258 = vpow2.f32 %v5688_v52  ;;  %v5313_v13 = vpop.f32.mrb[32].mxu0  ;;  %12516 = vst [vmem:[#allocation44_spill] sm:$0xff] %v11312_v32 }
 0x81d   :  { %v8249_v45 = vpop.eup %8248  ;;  %v5865_v42 = vadd.f32 %v5801_v54, %v5274_v14  ;;  %v5314_v21 = vadd.f32 %v5313_v13, %v11124_v55  ;;  %v11308_v16 = vpop.f32.mrb[33].mxu0 }
 0x81e   :  { %v8251_v61 = vpop.eup %8250  ;;  %v5690_v41 = vmul.f32 1.442695, %v8249_v45  ;;  %5946 = vadd.xlane.f32.xlu1 %v8249_v45  ;;  %v11320_v17 = vpop.xlane.xlu1 %4481  ;;  %v5316_v40 = vadd.f32 %v11308_v16, %v11195_v15 }
 0x81f   :  { %6121 = vst [vmem:[#allocation8 + $0x90] sm:$0xff] %v5865_v42  ;;  %v5802_v52 = vmul.f32 %v8251_v61, %v12517_v24  ;;  %8260 = vtanh.f32 %v5314_v21  ;;  %12518 = vst [vmem:[#allocation45_spill] sm:$0xff] %v11320_v17  ;;  %v11322_v42 = vpop.xlane.xlu0 %4483  ;;  %v12520_v21 = vld [vmem:[#allocation54_spill] sm:$0xff] }
 0x820   :  { %8262 = vpow2.f32 %v5690_v41  ;;  %v5319_v48 = vpop.f32.mrb[34].mxu0  ;;  %12519 = vst [vmem:[#allocation46_spill] sm:$0xff] %v11322_v42 }
 0x821   :  { %v8253_v14 = vpop.eup %8252  ;;  %v5866_v51 = vadd.f32 %v5802_v52, %v5280_v47  ;;  %v5320_v54 = vadd.f32 %v5319_v48, %v11124_v55  ;;  %v11318_v13 = vpop.f32.mrb[35].mxu0 }
 0x822   :  { %v8255_v45 = vpop.eup %8254  ;;  %v5692_v43 = vmul.f32 1.442695, %v8253_v14  ;;  %5948 = vadd.xlane.f32.xlu0 %v8253_v14  ;;  %v11330_v17 = vpop.xlane.xlu1 %4485  ;;  %v5322_v16 = vadd.f32 %v11318_v13, %v11195_v15 }
 0x823   :  { %6122 = vst [vmem:[#allocation8 + $0xa0] sm:$0xff] %v5866_v51  ;;  %v5803_v41 = vmul.f32 %v8255_v45, %v12520_v21  ;;  %8264 = vtanh.f32 %v5320_v54  ;;  %12521 = vst [vmem:[#allocation47_spill] sm:$0xff] %v11330_v17  ;;  %v11332_v51 = vpop.xlane.xlu0 %4487  ;;  %v12523_v54 = vld [vmem:[#allocation55_spill] sm:$0xff] }
 0x824   :  { %8266 = vpow2.f32 %v5692_v43  ;;  %v5325_v61 = vpop.f32.mrb[36].mxu0  ;;  %12522 = vst [vmem:[#allocation48_spill] sm:$0xff] %v11332_v51 }
 0x825   :  { %v8257_v47 = vpop.eup %8256  ;;  %v5867_v24 = vadd.f32 %v5803_v41, %v5286_v1  ;;  %v5326_v52 = vadd.f32 %v5325_v61, %v11124_v55  ;;  %v11328_v48 = vpop.f32.mrb[37].mxu0 }
 0x826   :  { %v8259_v14 = vpop.eup %8258  ;;  %v5694_v32 = vmul.f32 1.442695, %v8257_v47  ;;  %5950 = vadd.xlane.f32.xlu1 %v8257_v47  ;;  %v11340_v17 = vpop.xlane.xlu1 %4489  ;;  %v5328_v13 = vadd.f32 %v11328_v48, %v11195_v15 }
 0x827   :  { %6123 = vst [vmem:[#allocation8 + $0xb0] sm:$0xff] %v5867_v24  ;;  %v5804_v43 = vmul.f32 %v8259_v14, %v12523_v54  ;;  %8268 = vtanh.f32 %v5326_v52  ;;  %12524 = vst [vmem:[#allocation49_spill] sm:$0xff] %v11340_v17  ;;  %v11342_v24 = vpop.xlane.xlu0 %4491  ;;  %v12526_v52 = vld [vmem:[#allocation56_spill] sm:$0xff] }
 0x828   :  { %8270 = vpow2.f32 %v5694_v32  ;;  %v5331_v45 = vpop.f32.mrb[38].mxu0  ;;  %12525 = vst [vmem:[#allocation50_spill] sm:$0xff] %v11342_v24 }
 0x829   :  { %v8261_v1 = vpop.eup %8260  ;;  %v5868_v21 = vadd.f32 %v5804_v43, %v5292_v63  ;;  %v5332_v41 = vadd.f32 %v5331_v45, %v11124_v55  ;;  %v11338_v61 = vpop.f32.mrb[39].mxu0 }
 0x82a   :  { %v8263_v47 = vpop.eup %8262  ;;  %v5696_v42 = vmul.f32 1.442695, %v8261_v1  ;;  %5952 = vadd.xlane.f32.xlu0 %v8261_v1  ;;  %v11350_v17 = vpop.xlane.xlu1 %4493  ;;  %v5334_v48 = vadd.f32 %v11338_v61, %v11195_v15 }
 0x82b   :  { %6124 = vst [vmem:[#allocation8 + $0xc0] sm:$0xff] %v5868_v21  ;;  %v5805_v32 = vmul.f32 %v8263_v47, %v12526_v52  ;;  %8272 = vtanh.f32 %v5332_v41  ;;  %12527 = vst [vmem:[#allocation51_spill] sm:$0xff] %v11350_v17  ;;  %v11352_v21 = vpop.xlane.xlu0 %4495  ;;  %v12529_v41 = vld [vmem:[#allocation57_spill] sm:$0xff] }
 0x82c   :  { %8274 = vpow2.f32 %v5696_v42  ;;  %v5337_v14 = vpop.f32.mrb[40].mxu0  ;;  %12528 = vst [vmem:[#allocation52_spill] sm:$0xff] %v11352_v21 }
 0x82d   :  { %v8265_v63 = vpop.eup %8264  ;;  %v5869_v54 = vadd.f32 %v5805_v32, %v5298_v8  ;;  %v5338_v43 = vadd.f32 %v5337_v14, %v11124_v55  ;;  %v11348_v45 = vpop.f32.mrb[41].mxu0 }
 0x82e   :  { %v8267_v1 = vpop.eup %8266  ;;  %v5698_v51 = vmul.f32 1.442695, %v8265_v63  ;;  %5954 = vadd.xlane.f32.xlu1 %v8265_v63  ;;  %v11360_v17 = vpop.xlane.xlu1 %4497  ;;  %v5340_v61 = vadd.f32 %v11348_v45, %v11195_v15 }
 0x82f   :  { %6125 = vst [vmem:[#allocation8 + $0xd0] sm:$0xff] %v5869_v54  ;;  %v5806_v42 = vmul.f32 %v8267_v1, %v12529_v41  ;;  %8276 = vtanh.f32 %v5338_v43  ;;  %12530 = vst [vmem:[#allocation53_spill] sm:$0xff] %v11360_v17  ;;  %v11362_v54 = vpop.xlane.xlu0 %4499  ;;  %v12532_v43 = vld [vmem:[#allocation58_spill] sm:$0xff] }
 0x830   :  { %8278 = vpow2.f32 %v5698_v51  ;;  %v5343_v47 = vpop.f32.mrb[42].mxu0  ;;  %12531 = vst [vmem:[#allocation54_spill] sm:$0xff] %v11362_v54 }
 0x831   :  { %v8269_v8 = vpop.eup %8268  ;;  %v5870_v52 = vadd.f32 %v5806_v42, %v5304_v33  ;;  %v5344_v32 = vadd.f32 %v5343_v47, %v11124_v55  ;;  %v11358_v14 = vpop.f32.mrb[43].mxu0 }
 0x832   :  { %v8271_v63 = vpop.eup %8270  ;;  %v5700_v24 = vmul.f32 1.442695, %v8269_v8  ;;  %5956 = vadd.xlane.f32.xlu0 %v8269_v8  ;;  %v11370_v17 = vpop.xlane.xlu1 %4501  ;;  %v5346_v45 = vadd.f32 %v11358_v14, %v11195_v15 }
 0x833   :  { %6126 = vst [vmem:[#allocation8 + $0xe0] sm:$0xff] %v5870_v52  ;;  %v5807_v51 = vmul.f32 %v8271_v63, %v12532_v43  ;;  %8280 = vtanh.f32 %v5344_v32  ;;  %12533 = vst [vmem:[#allocation55_spill] sm:$0xff] %v11370_v17  ;;  %v11372_v52 = vpop.xlane.xlu0 %4503  ;;  %v12535_v32 = vld [vmem:[#allocation59_spill] sm:$0xff] }
 0x834   :  { %8282 = vpow2.f32 %v5700_v24  ;;  %v5349_v1 = vpop.f32.mrb[44].mxu0  ;;  %12534 = vst [vmem:[#allocation56_spill] sm:$0xff] %v11372_v52 }
 0x835   :  { %v8273_v33 = vpop.eup %8272  ;;  %v5871_v41 = vadd.f32 %v5807_v51, %v5310_v58  ;;  %v5350_v42 = vadd.f32 %v5349_v1, %v11124_v55  ;;  %v11368_v47 = vpop.f32.mrb[45].mxu0 }
 0x836   :  { %v8275_v8 = vpop.eup %8274  ;;  %v5702_v21 = vmul.f32 1.442695, %v8273_v33  ;;  %5958 = vadd.xlane.f32.xlu1 %v8273_v33  ;;  %v11380_v17 = vpop.xlane.xlu1 %4505  ;;  %v5352_v14 = vadd.f32 %v11368_v47, %v11195_v15 }
 0x837   :  { %6127 = vst [vmem:[#allocation8 + $0xf0] sm:$0xff] %v5871_v41  ;;  %v5808_v24 = vmul.f32 %v8275_v8, %v12535_v32  ;;  %8284 = vtanh.f32 %v5350_v42  ;;  %12536 = vst [vmem:[#allocation57_spill] sm:$0xff] %v11380_v17  ;;  %v11382_v41 = vpop.xlane.xlu0 %4507  ;;  %v12538_v42 = vld [vmem:[#allocation60_spill] sm:$0xff] }
 0x838   :  { %8286 = vpow2.f32 %v5702_v21  ;;  %v5355_v63 = vpop.f32.mrb[46].mxu0  ;;  %12537 = vst [vmem:[#allocation58_spill] sm:$0xff] %v11382_v41 }
 0x839   :  { %v8277_v58 = vpop.eup %8276  ;;  %v5872_v43 = vadd.f32 %v5808_v24, %v5316_v40  ;;  %v5356_v51 = vadd.f32 %v5355_v63, %v11124_v55  ;;  %v11378_v1 = vpop.f32.mrb[47].mxu0 }
 0x83a   :  { %v8279_v33 = vpop.eup %8278  ;;  %v5704_v54 = vmul.f32 1.442695, %v8277_v58  ;;  %5960 = vadd.xlane.f32.xlu0 %v8277_v58  ;;  %v11390_v17 = vpop.xlane.xlu1 %4509  ;;  %v5358_v47 = vadd.f32 %v11378_v1, %v11195_v15 }
 0x83b   :  { %6128 = vst [vmem:[#allocation8 + $0x100] sm:$0xff] %v5872_v43  ;;  %v5809_v21 = vmul.f32 %v8279_v33, %v12538_v42  ;;  %8288 = vtanh.f32 %v5356_v51  ;;  %12539 = vst [vmem:[#allocation59_spill] sm:$0xff] %v11390_v17  ;;  %v11392_v43 = vpop.xlane.xlu0 %4511  ;;  %v12541_v51 = vld [vmem:[#allocation61_spill] sm:$0xff] }
 0x83c   :  { %8290 = vpow2.f32 %v5704_v54  ;;  %v5361_v8 = vpop.f32.mrb[48].mxu0  ;;  %12540 = vst [vmem:[#allocation60_spill] sm:$0xff] %v11392_v43 }
 0x83d   :  { %v8281_v40 = vpop.eup %8280  ;;  %v5873_v32 = vadd.f32 %v5809_v21, %v5322_v16  ;;  %v5362_v24 = vadd.f32 %v5361_v8, %v11124_v55  ;;  %v11388_v63 = vpop.f32.mrb[49].mxu0 }
 0x83e   :  { %v8283_v58 = vpop.eup %8282  ;;  %v5706_v52 = vmul.f32 1.442695, %v8281_v40  ;;  %5962 = vadd.xlane.f32.xlu1 %v8281_v40  ;;  %v11400_v17 = vpop.xlane.xlu1 %4513  ;;  %v5364_v1 = vadd.f32 %v11388_v63, %v11195_v15 }
 0x83f   :  { %6129 = vst [vmem:[#allocation8 + $0x110] sm:$0xff] %v5873_v32  ;;  %v5810_v54 = vmul.f32 %v8283_v58, %v12541_v51  ;;  %8292 = vtanh.f32 %v5362_v24  ;;  %12542 = vst [vmem:[#allocation61_spill] sm:$0xff] %v11400_v17  ;;  %v11402_v32 = vpop.xlane.xlu0 %4515  ;;  %v12544_v24 = vld [vmem:[#allocation62_spill] sm:$0xff] }
 0x840   :  { %8294 = vpow2.f32 %v5706_v52  ;;  %v5367_v33 = vpop.f32.mrb[50].mxu0  ;;  %12543 = vst [vmem:[#allocation184_spill] sm:$0xff] %v11402_v32 }
 0x841   :  { %v8285_v16 = vpop.eup %8284  ;;  %v5874_v42 = vadd.f32 %v5810_v54, %v5328_v13  ;;  %v5368_v21 = vadd.f32 %v5367_v33, %v11124_v55  ;;  %v11398_v8 = vpop.f32.mrb[51].mxu0 }
 0x842   :  { %v8287_v40 = vpop.eup %8286  ;;  %v5708_v41 = vmul.f32 1.442695, %v8285_v16  ;;  %5964 = vadd.xlane.f32.xlu0 %v8285_v16  ;;  %v11410_v17 = vpop.xlane.xlu1 %4517  ;;  %v5370_v63 = vadd.f32 %v11398_v8, %v11195_v15 }
 0x843   :  { %6130 = vst [vmem:[#allocation8 + $0x120] sm:$0xff] %v5874_v42  ;;  %v5811_v52 = vmul.f32 %v8287_v40, %v12544_v24  ;;  %8296 = vtanh.f32 %v5368_v21  ;;  %12545 = vst [vmem:[#allocation62_spill] sm:$0xff] %v11410_v17  ;;  %v11412_v42 = vpop.xlane.xlu0 %4519  ;;  %v12547_v21 = vld [vmem:[#allocation63_spill] sm:$0xff] }
 0x844   :  { %8298 = vpow2.f32 %v5708_v41  ;;  %v5373_v58 = vpop.f32.mrb[52].mxu0  ;;  %12546 = vst [vmem:[#allocation185_spill] sm:$0xff] %v11412_v42 }
 0x845   :  { %v8289_v13 = vpop.eup %8288  ;;  %v5875_v51 = vadd.f32 %v5811_v52, %v5334_v48  ;;  %v5374_v54 = vadd.f32 %v5373_v58, %v11124_v55  ;;  %v11408_v33 = vpop.f32.mrb[53].mxu0 }
 0x846   :  { %v8291_v16 = vpop.eup %8290  ;;  %v5710_v43 = vmul.f32 1.442695, %v8289_v13  ;;  %5966 = vadd.xlane.f32.xlu1 %v8289_v13  ;;  %v11420_v17 = vpop.xlane.xlu1 %4521  ;;  %v5376_v8 = vadd.f32 %v11408_v33, %v11195_v15 }
 0x847   :  { %6131 = vst [vmem:[#allocation8 + $0x130] sm:$0xff] %v5875_v51  ;;  %v5812_v41 = vmul.f32 %v8291_v16, %v12547_v21  ;;  %8300 = vtanh.f32 %v5374_v54  ;;  %12548 = vst [vmem:[#allocation63_spill] sm:$0xff] %v11420_v17  ;;  %v11422_v51 = vpop.xlane.xlu0 %4523  ;;  %v12550_v54 = vld [vmem:[#allocation64_spill] sm:$0xff] }
 0x848   :  { %8302 = vpow2.f32 %v5710_v43  ;;  %v5379_v40 = vpop.f32.mrb[54].mxu0  ;;  %12549 = vst [vmem:[#allocation186_spill] sm:$0xff] %v11422_v51 }
 0x849   :  { %v8293_v48 = vpop.eup %8292  ;;  %v5876_v24 = vadd.f32 %v5812_v41, %v5340_v61  ;;  %v5380_v52 = vadd.f32 %v5379_v40, %v11124_v55  ;;  %v11418_v58 = vpop.f32.mrb[55].mxu0 }
 0x84a   :  { %v8295_v13 = vpop.eup %8294  ;;  %v5712_v32 = vmul.f32 1.442695, %v8293_v48  ;;  %5968 = vadd.xlane.f32.xlu0 %v8293_v48  ;;  %v11430_v17 = vpop.xlane.xlu1 %4525  ;;  %v5382_v33 = vadd.f32 %v11418_v58, %v11195_v15 }
 0x84b   :  { %6132 = vst [vmem:[#allocation8 + $0x140] sm:$0xff] %v5876_v24  ;;  %v5813_v43 = vmul.f32 %v8295_v13, %v12550_v54  ;;  %8304 = vtanh.f32 %v5380_v52  ;;  %12551 = vst [vmem:[#allocation64_spill] sm:$0xff] %v11430_v17  ;;  %v11432_v24 = vpop.xlane.xlu0 %4527  ;;  %v12553_v52 = vld [vmem:[#allocation65_spill] sm:$0xff] }
 0x84c   :  { %8306 = vpow2.f32 %v5712_v32  ;;  %v5385_v16 = vpop.f32.mrb[56].mxu0  ;;  %12552 = vst [vmem:[#allocation187_spill] sm:$0xff] %v11432_v24 }
 0x84d   :  { %v8297_v61 = vpop.eup %8296  ;;  %v5877_v21 = vadd.f32 %v5813_v43, %v5346_v45  ;;  %v5386_v41 = vadd.f32 %v5385_v16, %v11124_v55  ;;  %v11428_v40 = vpop.f32.mrb[57].mxu0 }
 0x84e   :  { %v8299_v48 = vpop.eup %8298  ;;  %v5714_v42 = vmul.f32 1.442695, %v8297_v61  ;;  %5970 = vadd.xlane.f32.xlu1 %v8297_v61  ;;  %v11440_v17 = vpop.xlane.xlu1 %4529  ;;  %v5388_v58 = vadd.f32 %v11428_v40, %v11195_v15 }
 0x84f   :  { %6133 = vst [vmem:[#allocation8 + $0x150] sm:$0xff] %v5877_v21  ;;  %v5814_v32 = vmul.f32 %v8299_v48, %v12553_v52  ;;  %8308 = vtanh.f32 %v5386_v41  ;;  %12554 = vst [vmem:[#allocation65_spill] sm:$0xff] %v11440_v17  ;;  %v11442_v21 = vpop.xlane.xlu0 %4531  ;;  %v12556_v41 = vld [vmem:[#allocation66_spill] sm:$0xff] }
 0x850   :  { %8310 = vpow2.f32 %v5714_v42  ;;  %v5391_v13 = vpop.f32.mrb[58].mxu0  ;;  %12555 = vst [vmem:[#allocation188_spill] sm:$0xff] %v11442_v21 }
 0x851   :  { %v8301_v45 = vpop.eup %8300  ;;  %v5878_v54 = vadd.f32 %v5814_v32, %v5352_v14  ;;  %v5392_v43 = vadd.f32 %v5391_v13, %v11124_v55  ;;  %v11438_v16 = vpop.f32.mrb[59].mxu0 }
 0x852   :  { %v8303_v61 = vpop.eup %8302  ;;  %v5716_v51 = vmul.f32 1.442695, %v8301_v45  ;;  %5972 = vadd.xlane.f32.xlu0 %v8301_v45  ;;  %v11450_v17 = vpop.xlane.xlu1 %4533  ;;  %v5394_v40 = vadd.f32 %v11438_v16, %v11195_v15 }
 0x853   :  { %6134 = vst [vmem:[#allocation8 + $0x160] sm:$0xff] %v5878_v54  ;;  %v5815_v42 = vmul.f32 %v8303_v61, %v12556_v41  ;;  %8312 = vtanh.f32 %v5392_v43  ;;  %12557 = vst [vmem:[#allocation66_spill] sm:$0xff] %v11450_v17  ;;  %v11452_v54 = vpop.xlane.xlu0 %4535  ;;  %v12559_v43 = vld [vmem:[#allocation67_spill] sm:$0xff] }
 0x854   :  { %8314 = vpow2.f32 %v5716_v51  ;;  %v5397_v48 = vpop.f32.mrb[60].mxu0  ;;  %12558 = vst [vmem:[#allocation189_spill] sm:$0xff] %v11452_v54 }
 0x855   :  { %v8305_v14 = vpop.eup %8304  ;;  %v5879_v52 = vadd.f32 %v5815_v42, %v5358_v47  ;;  %v5398_v32 = vadd.f32 %v5397_v48, %v11124_v55  ;;  %v11448_v13 = vpop.f32.mrb[61].mxu0 }
 0x856   :  { %v8307_v45 = vpop.eup %8306  ;;  %v5718_v24 = vmul.f32 1.442695, %v8305_v14  ;;  %5974 = vadd.xlane.f32.xlu1 %v8305_v14  ;;  %v11460_v17 = vpop.xlane.xlu1 %4537  ;;  %v5400_v16 = vadd.f32 %v11448_v13, %v11195_v15 }
 0x857   :  { %6135 = vst [vmem:[#allocation8 + $0x170] sm:$0xff] %v5879_v52  ;;  %v5816_v51 = vmul.f32 %v8307_v45, %v12559_v43  ;;  %8316 = vtanh.f32 %v5398_v32  ;;  %12560 = vst [vmem:[#allocation67_spill] sm:$0xff] %v11460_v17  ;;  %v11462_v52 = vpop.xlane.xlu0 %4539  ;;  %v12562_v32 = vld [vmem:[#allocation68_spill] sm:$0xff] }
 0x858   :  { %8318 = vpow2.f32 %v5718_v24  ;;  %v5403_v61 = vpop.f32.mrb[62].mxu0  ;;  %12561 = vst [vmem:[#allocation190_spill] sm:$0xff] %v11462_v52 }
 0x859   :  { %v8309_v47 = vpop.eup %8308  ;;  %v5880_v41 = vadd.f32 %v5816_v51, %v5364_v1  ;;  %v5404_v42 = vadd.f32 %v5403_v61, %v11124_v55  ;;  %v11458_v48 = vpop.f32.mrb[63].mxu0 }
 0x85a   :  { %v8311_v14 = vpop.eup %8310  ;;  %v5720_v21 = vmul.f32 1.442695, %v8309_v47  ;;  %5976 = vadd.xlane.f32.xlu0 %v8309_v47  ;;  %v11470_v17 = vpop.xlane.xlu1 %4541  ;;  %v5406_v13 = vadd.f32 %v11458_v48, %v11195_v15 }
 0x85b   :  { %6136 = vst [vmem:[#allocation8 + $0x180] sm:$0xff] %v5880_v41  ;;  %v5817_v24 = vmul.f32 %v8311_v14, %v12562_v32  ;;  %8320 = vtanh.f32 %v5404_v42  ;;  %12563 = vst [vmem:[#allocation68_spill] sm:$0xff] %v11470_v17  ;;  %v11472_v41 = vpop.xlane.xlu0 %4543  ;;  %v12565_v42 = vld [vmem:[#allocation69_spill] sm:$0xff] }
 0x85c   :  { %8322 = vpow2.f32 %v5720_v21  ;;  %v5409_v45 = vpop.f32.mrb[64].mxu0  ;;  %12564 = vst [vmem:[#allocation191_spill] sm:$0xff] %v11472_v41 }
 0x85d   :  { %v8313_v1 = vpop.eup %8312  ;;  %v5881_v43 = vadd.f32 %v5817_v24, %v5370_v63  ;;  %v5410_v51 = vadd.f32 %v5409_v45, %v11124_v55  ;;  %v11468_v61 = vpop.f32.mrb[65].mxu0 }
 0x85e   :  { %v8315_v47 = vpop.eup %8314  ;;  %v5722_v54 = vmul.f32 1.442695, %v8313_v1  ;;  %5978 = vadd.xlane.f32.xlu1 %v8313_v1  ;;  %v11480_v17 = vpop.xlane.xlu1 %4545 }
 0x85f   :  { %6137 = vst [vmem:[#allocation8 + $0x190] sm:$0xff] %v5881_v43  ;;  %v5818_v21 = vmul.f32 %v8315_v47, %v12565_v42  ;;  %8324 = vtanh.f32 %v5410_v51  ;;  %12566 = vst [vmem:[#allocation69_spill] sm:$0xff] %v11480_v17  ;;  %v11482_v43 = vpop.xlane.xlu0 %4547  ;;  %v12568_v51 = vld [vmem:[#allocation70_spill] sm:$0xff] }
 0x860   :  { %8326 = vpow2.f32 %v5722_v54  ;;  %v5415_v14 = vpop.f32.mrb[66].mxu0  ;;  %12567 = vst [vmem:[#allocation192_spill] sm:$0xff] %v11482_v43 }
 0x861   :  { %v8317_v63 = vpop.eup %8316  ;;  %v5882_v32 = vadd.f32 %v5818_v21, %v5376_v8  ;;  %v5416_v24 = vadd.f32 %v5415_v14, %v11124_v55  ;;  %v11478_v45 = vpop.f32.mrb[67].mxu0 }
 0x862   :  { %v8319_v1 = vpop.eup %8318  ;;  %v5724_v52 = vmul.f32 1.442695, %v8317_v63  ;;  %5980 = vadd.xlane.f32.xlu0 %v8317_v63  ;;  %v11490_v17 = vpop.xlane.xlu1 %4549 }
 0x863   :  { %6138 = vst [vmem:[#allocation8 + $0x1a0] sm:$0xff] %v5882_v32  ;;  %v5819_v54 = vmul.f32 %v8319_v1, %v12568_v51  ;;  %8328 = vtanh.f32 %v5416_v24  ;;  %12569 = vst [vmem:[#allocation70_spill] sm:$0xff] %v11490_v17  ;;  %v11492_v32 = vpop.xlane.xlu0 %4551  ;;  %v12571_v24 = vld [vmem:[#allocation71_spill] sm:$0xff] }
 0x864   :  { %8330 = vpow2.f32 %v5724_v52  ;;  %v5421_v47 = vpop.f32.mrb[68].mxu0  ;;  %12570 = vst [vmem:[#allocation193_spill] sm:$0xff] %v11492_v32 }
 0x865   :  { %v8321_v8 = vpop.eup %8320  ;;  %v5883_v42 = vadd.f32 %v5819_v54, %v5382_v33  ;;  %v5422_v21 = vadd.f32 %v5421_v47, %v11124_v55  ;;  %v11488_v14 = vpop.f32.mrb[69].mxu0 }
 0x866   :  { %v8323_v63 = vpop.eup %8322  ;;  %v5726_v41 = vmul.f32 1.442695, %v8321_v8  ;;  %5982 = vadd.xlane.f32.xlu1 %v8321_v8  ;;  %v11500_v17 = vpop.xlane.xlu1 %4553 }
 0x867   :  { %6139 = vst [vmem:[#allocation8 + $0x1b0] sm:$0xff] %v5883_v42  ;;  %v5820_v52 = vmul.f32 %v8323_v63, %v12571_v24  ;;  %8332 = vtanh.f32 %v5422_v21  ;;  %12572 = vst [vmem:[#allocation71_spill] sm:$0xff] %v11500_v17  ;;  %v11502_v42 = vpop.xlane.xlu0 %4555  ;;  %v12574_v21 = vld [vmem:[#allocation72_spill] sm:$0xff] }
 0x868   :  { %8334 = vpow2.f32 %v5726_v41  ;;  %v5427_v1 = vpop.f32.mrb[70].mxu0  ;;  %12573 = vst [vmem:[#allocation194_spill] sm:$0xff] %v11502_v42 }
 0x869   :  { %v8325_v33 = vpop.eup %8324  ;;  %v5884_v51 = vadd.f32 %v5820_v52, %v5388_v58  ;;  %v5428_v54 = vadd.f32 %v5427_v1, %v11124_v55  ;;  %v11498_v47 = vpop.f32.mrb[71].mxu0 }
 0x86a   :  { %v8327_v8 = vpop.eup %8326  ;;  %v5728_v43 = vmul.f32 1.442695, %v8325_v33  ;;  %5984 = vadd.xlane.f32.xlu0 %v8325_v33  ;;  %v11510_v17 = vpop.xlane.xlu1 %4557 }
 0x86b   :  { %6140 = vst [vmem:[#allocation8 + $0x1c0] sm:$0xff] %v5884_v51  ;;  %v5821_v41 = vmul.f32 %v8327_v8, %v12574_v21  ;;  %8336 = vtanh.f32 %v5428_v54  ;;  %12575 = vst [vmem:[#allocation72_spill] sm:$0xff] %v11510_v17  ;;  %v11512_v51 = vpop.xlane.xlu0 %4559  ;;  %v12577_v54 = vld [vmem:[#allocation73_spill] sm:$0xff] }
 0x86c   :  { %8338 = vpow2.f32 %v5728_v43  ;;  %v5433_v63 = vpop.f32.mrb[72].mxu0  ;;  %12576 = vst [vmem:[#allocation195_spill] sm:$0xff] %v11512_v51 }
 0x86d   :  { %v8329_v58 = vpop.eup %8328  ;;  %v5885_v24 = vadd.f32 %v5821_v41, %v5394_v40  ;;  %v5434_v52 = vadd.f32 %v5433_v63, %v11124_v55  ;;  %v11508_v1 = vpop.f32.mrb[73].mxu0 }
 0x86e   :  { %v8331_v33 = vpop.eup %8330  ;;  %v5730_v32 = vmul.f32 1.442695, %v8329_v58  ;;  %5986 = vadd.xlane.f32.xlu1 %v8329_v58  ;;  %v11520_v17 = vpop.xlane.xlu1 %4561 }
 0x86f   :  { %6141 = vst [vmem:[#allocation8 + $0x1d0] sm:$0xff] %v5885_v24  ;;  %v5822_v43 = vmul.f32 %v8331_v33, %v12577_v54  ;;  %8340 = vtanh.f32 %v5434_v52  ;;  %12578 = vst [vmem:[#allocation73_spill] sm:$0xff] %v11520_v17  ;;  %v11522_v24 = vpop.xlane.xlu0 %4563  ;;  %v12580_v52 = vld [vmem:[#allocation75_spill] sm:$0xff]  ;;  %v12581_v33 = vld [vmem:[#allocation74_spill] sm:$0xff] }
 0x870   :  { %8342 = vpow2.f32 %v5730_v32  ;;  %v5439_v8 = vpop.f32.mrb[74].mxu0  ;;  %12579 = vst [vmem:[#allocation196_spill] sm:$0xff] %v11522_v24 }
 0x871   :  { %v8333_v40 = vpop.eup %8332  ;;  %v5886_v21 = vadd.f32 %v5822_v43, %v5400_v16  ;;  %v5440_v41 = vadd.f32 %v5439_v8, %v11124_v55  ;;  %v11518_v63 = vpop.f32.mrb[75].mxu0  ;;  %v3086_v16 = vadd.f32 %v10689_v11, %v12581_v33  ;;  %v12583_v11 = vld [vmem:[#allocation77_spill] sm:$0xff] }
 0x872   :  { %v8335_v58 = vpop.eup %8334  ;;  %v5732_v42 = vmul.f32 1.442695, %v8333_v40  ;;  %5988 = vadd.xlane.f32.xlu0 %v8333_v40  ;;  %v11533_v48 = vpop.xlane.xlu1 %4565 }
 0x873   :  { %6142 = vst [vmem:[#allocation8 + $0x1e0] sm:$0xff] %v5886_v21  ;;  %v5823_v32 = vmul.f32 %v8335_v58, %v12580_v52  ;;  %8344 = vtanh.f32 %v5440_v41  ;;  %v4567_v21 = vadd.f32 %v11205_v30, %v3086_v16  ;;  %12582 = vst [vmem:[#allocation75_spill] sm:$0xff] %v11533_v48  ;;  %v5412_v41 = vadd.f32 %v11468_v61, %v11195_v15 }
 0x874   :  { %8346 = vpow2.f32 %v5732_v42  ;;  %v5445_v54 = vpop.f32.mrb[76].mxu0 }
 0x875   :  { %v8337_v43 = vpop.eup %8336  ;;  %v5887_v8 = vadd.f32 %v5823_v32, %v5406_v13  ;;  %v5446_v40 = vadd.f32 %v5445_v54, %v11124_v55  ;;  %v11530_v51 = vpop.f32.mrb[77].mxu0  ;;  %v12584_v13 = vld [vmem:[#allocation78_spill] sm:$0xff] }
 0x876   :  { %v8339_v17 = vpop.eup %8338  ;;  %v5734_v24 = vmul.f32 1.442695, %v8337_v43  ;;  %5990 = vadd.xlane.f32.xlu1 %v8337_v43  ;;  %v3087_v52 = vadd.f32 %v10697_v18, %v12584_v13  ;;  %v12585_v18 = vld [vmem:[#allocation79_spill] sm:$0xff] }
 0x877   :  { %6143 = vst [vmem:[#allocation8 + $0x1f0] sm:$0xff] %v5887_v8  ;;  %v5824_v42 = vmul.f32 %v8339_v17, %v12583_v11  ;;  %8348 = vtanh.f32 %v5446_v40  ;;  %v5921_v58 = vpop.xlane.xlu0 %5920  ;;  %v5418_v17 = vadd.f32 %v11478_v45, %v11195_v15 }
 0x878   :  { %8350 = vpow2.f32 %v5734_v24  ;;  %v6048_v32 = vadd.f32 %v5921_v58, %v4567_v21  ;;  %v5451_v33 = vpop.f32.mrb[78].mxu0  ;;  %v4568_v61 = vadd.f32 %v11214_v56, %v3087_v52  ;;  %v12586_v21 = vld [vmem:[#allocation76_spill] sm:$0xff] }
 0x879   :  { %v8341_v30 = vpop.eup %8340  ;;  %v5888_v16 = vadd.f32 %v5824_v42, %v5412_v41  ;;  %v5452_v54 = vadd.f32 %v5451_v33, %v11124_v55  ;;  %v11541_v43 = vpop.f32.mrb[79].mxu0  ;;  %v3088_v41 = vadd.f32 %v10705_v46, %v12586_v21  ;;  %v5424_v46 = vadd.f32 %v11488_v14, %v11195_v15 }
 0x87a   :  { %v8343_v8 = vpop.eup %8342  ;;  %v5736_v48 = vmul.f32 1.442695, %v8341_v30  ;;  %6241 = vst.msk [vmem:[%s12172_s6] sm:$0xff] %vm6240_vm0, %v6048_v32  ;;  %5992 = vadd.xlane.f32.xlu0 %v8341_v30 }
 0x87b   :  { %6144 = vst [vmem:[#allocation8 + $0x200] sm:$0xff] %v5888_v16  ;;  %v5825_v24 = vmul.f32 %v8343_v8, %v12585_v18  ;;  %8352 = vtanh.f32 %v5452_v54  ;;  %v5923_v40 = vpop.xlane.xlu1 %5922  ;;  %v4569_v33 = vadd.f32 %v11216_v60, %v3088_v41  ;;  %v12588_v54 = vld [vmem:[#allocation80_spill] sm:$0xff] }
 0x87c   :  { %8354 = vpow2.f32 %v5736_v48  ;;  %v6049_v56 = vadd.f32 %v5923_v40, %v4568_v61  ;;  %v5457_v11 = vpop.f32.mrb[80].mxu0  ;;  %v12587_v48 = vld [vmem:[#allocation81_spill] sm:$0xff]  ;;  %v3089_v8 = vadd.f32 %v10713_v25, %v12588_v54  ;;  %v5430_v25 = vadd.f32 %v11498_v47, %v11195_v15 }
 0x87d   :  { %v8345_v42 = vpop.eup %8344  ;;  %v5889_v58 = vadd.f32 %v5825_v24, %v5418_v17  ;;  %v5458_v13 = vadd.f32 %v5457_v11, %v11124_v55  ;;  %v11554_v52 = vpop.f32.mrb[81].mxu0  ;;  %v12591_v54 = vld [vmem:[#allocation85_spill] sm:$0xff] }
 0x87e   :  { %v8347_v32 = vpop.eup %8346  ;;  %v5738_v45 = vmul.f32 1.442695, %v8345_v42  ;;  %6242 = vst.msk [vmem:[%s12172_s6 + $0x8] sm:$0xff] %vm6240_vm0, %v6049_v56  ;;  %5994 = vadd.xlane.f32.xlu1 %v8345_v42  ;;  %v4570_v41 = vadd.f32 %v11229_v53, %v3089_v8  ;;  %v12589_v56 = vld [vmem:[#allocation83_spill] sm:$0xff] }
 0x87f   :  { %6145 = vst [vmem:[#allocation8 + $0x210] sm:$0xff] %v5889_v58  ;;  %v5826_v30 = vmul.f32 %v8347_v32, %v12587_v48  ;;  %8356 = vtanh.f32 %v5458_v13  ;;  %v5925_v16 = vpop.xlane.xlu0 %5924  ;;  %v12590_v58 = vld [vmem:[#allocation82_spill] sm:$0xff] }
 0x880   :  { %8358 = vpow2.f32 %v5738_v45  ;;  %v6050_v60 = vadd.f32 %v5925_v16, %v4569_v33  ;;  %v5463_v61 = vpop.f32.mrb[82].mxu0  ;;  %v3090_v13 = vadd.f32 %v10721_v5, %v12590_v58  ;;  %v5436_v5 = vadd.f32 %v11508_v1, %v11195_v15 }
 0x881   :  { %v8349_v17 = vpop.eup %8348  ;;  %v5890_v18 = vadd.f32 %v5826_v30, %v5424_v46  ;;  %v5464_v24 = vadd.f32 %v5463_v61, %v11124_v55  ;;  %v11567_v40 = vpop.f32.mrb[83].mxu0  ;;  %v12592_v61 = vld [vmem:[#allocation84_spill] sm:$0xff] }
 0x882   :  { %v8351_v21 = vpop.eup %8350  ;;  %v5740_v14 = vmul.f32 1.442695, %v8349_v17  ;;  %6243 = vst.msk [vmem:[%s12172_s6 + $0x10] sm:$0xff] %vm6240_vm0, %v6050_v60  ;;  %5996 = vadd.xlane.f32.xlu0 %v8349_v17  ;;  %v4571_v16 = vadd.f32 %v11231_v39, %v3090_v13  ;;  %v3091_v17 = vadd.f32 %v10729_v62, %v12592_v61  ;;  %v5442_v62 = vadd.f32 %v11518_v63, %v11195_v15  ;;  %v12594_v13 = vld [vmem:[#allocation86_spill] sm:$0xff] }
 0x883   :  { %6146 = vst [vmem:[#allocation8 + $0x220] sm:$0xff] %v5890_v18  ;;  %v5827_v11 = vmul.f32 %v8351_v21, %v12589_v56  ;;  %8360 = vtanh.f32 %v5464_v24  ;;  %v5927_v42 = vpop.xlane.xlu1 %5926 }
 0x884   :  { %8362 = vpow2.f32 %v5740_v14  ;;  %v6051_v53 = vadd.f32 %v5927_v42, %v4570_v41  ;;  %v5469_v32 = vpop.f32.mrb[84].mxu0  ;;  %v4572_v56 = vadd.f32 %v11240_v20, %v3091_v17 }
 0x885   :  { %v8353_v33 = vpop.eup %8352  ;;  %v5891_v45 = vadd.f32 %v5827_v11, %v5430_v25  ;;  %v5470_v46 = vadd.f32 %v5469_v32, %v11124_v55  ;;  %v11580_v48 = vpop.f32.mrb[85].mxu0  ;;  %v12593_v11 = vld [vmem:[#allocation87_spill] sm:$0xff] }
 0x886   :  { %v8355_v30 = vpop.eup %8354  ;;  %v5742_v47 = vmul.f32 1.442695, %v8353_v33  ;;  %6244 = vst.msk [vmem:[%s12172_s6 + $0x18] sm:$0xff] %vm6240_vm0, %v6051_v53  ;;  %5998 = vadd.xlane.f32.xlu1 %v8353_v33  ;;  %v3092_v53 = vadd.f32 %v10737_v31, %v12594_v13  ;;  %v5448_v31 = vadd.f32 %v11530_v51, %v11195_v15 }
 0x887   :  { %6147 = vst [vmem:[#allocation8 + $0x230] sm:$0xff] %v5891_v45  ;;  %v5828_v8 = vmul.f32 %v8355_v30, %v12591_v54  ;;  %8364 = vtanh.f32 %v5470_v46  ;;  %v5929_v60 = vpop.xlane.xlu0 %5928 }
 0x888   :  { %8366 = vpow2.f32 %v5742_v47  ;;  %v6052_v39 = vadd.f32 %v5929_v60, %v4571_v16  ;;  %v5475_v18 = vpop.f32.mrb[86].mxu0  ;;  %v4573_v47 = vadd.f32 %v11242_v44, %v3092_v53  ;;  %v12596_v60 = vld [vmem:[#allocation88_spill] sm:$0xff] }
 0x889   :  { %v8357_v24 = vpop.eup %8356  ;;  %v5892_v21 = vadd.f32 %v5828_v8, %v5436_v5  ;;  %v5476_v41 = vadd.f32 %v5475_v18, %v11124_v55  ;;  %v11593_v14 = vpop.f32.mrb[87].mxu0  ;;  %v12595_v5 = vld [vmem:[#allocation89_spill] sm:$0xff]  ;;  %v3093_v61 = vadd.f32 %v10745_v37, %v12596_v60  ;;  %v5454_v37 = vadd.f32 %v11541_v43, %v11195_v15 }
 0x88a   :  { %v8359_v25 = vpop.eup %8358  ;;  %v5744_v1 = vmul.f32 1.442695, %v8357_v24  ;;  %6245 = vst.msk [vmem:[%s12172_s6 + $0x20] sm:$0xff] %vm6240_vm0, %v6052_v39  ;;  %6000 = vadd.xlane.f32.xlu0 %v8357_v24 }
 0x88b   :  { %6148 = vst [vmem:[#allocation8 + $0x240] sm:$0xff] %v5892_v21  ;;  %v5829_v42 = vmul.f32 %v8359_v25, %v12593_v11  ;;  %8368 = vtanh.f32 %v5476_v41  ;;  %v5931_v58 = vpop.xlane.xlu1 %5930  ;;  %v4574_v25 = vadd.f32 %v11250_v36, %v3093_v61  ;;  %v12598_v11 = vld [vmem:[#allocation90_spill] sm:$0xff] }
 0x88c   :  { %8370 = vpow2.f32 %v5744_v1  ;;  %v6053_v20 = vadd.f32 %v5931_v58, %v4572_v56  ;;  %v5481_v32 = vpop.f32.mrb[88].mxu0  ;;  %v12597_v56 = vld [vmem:[#allocation91_spill] sm:$0xff] }
 0x88d   :  { %v8361_v33 = vpop.eup %8360  ;;  %v5893_v45 = vadd.f32 %v5829_v42, %v5442_v62  ;;  %v5482_v46 = vadd.f32 %v5481_v32, %v11124_v55  ;;  %v11606_v30 = vpop.f32.mrb[89].mxu0  ;;  %v3094_v42 = vadd.f32 %v10753_v28, %v12598_v11  ;;  %v5460_v28 = vadd.f32 %v11554_v52, %v11195_v15 }
 0x88e   :  { %v8363_v16 = vpop.eup %8362  ;;  %v5746_v63 = vmul.f32 1.442695, %v8361_v33  ;;  %6246 = vst.msk [vmem:[%s12172_s6 + $0x28] sm:$0xff] %vm6240_vm0, %v6053_v20  ;;  %6002 = vadd.xlane.f32.xlu1 %v8361_v33 }
 0x88f   :  { %6149 = vst [vmem:[#allocation8 + $0x250] sm:$0xff] %v5893_v45  ;;  %v5830_v54 = vmul.f32 %v8363_v16, %v12595_v5  ;;  %8372 = vtanh.f32 %v5482_v46  ;;  %v5933_v8 = vpop.xlane.xlu0 %5932  ;;  %v4575_v45 = vadd.f32 %v11252_v34, %v3094_v42  ;;  %v12599_v46 = vld [vmem:[#allocation93_spill] sm:$0xff] }
 0x890   :  { %8374 = vpow2.f32 %v5746_v63  ;;  %v6054_v44 = vadd.f32 %v5933_v8, %v4573_v47  ;;  %v5487_v17 = vpop.f32.mrb[90].mxu0  ;;  %v12600_v63 = vld [vmem:[#allocation92_spill] sm:$0xff] }
 0x891   :  { %v8365_v39 = vpop.eup %8364  ;;  %v5894_v18 = vadd.f32 %v5830_v54, %v5448_v31  ;;  %v5488_v24 = vadd.f32 %v5487_v17, %v11124_v55  ;;  %v11619_v21 = vpop.f32.mrb[91].mxu0  ;;  %v3095_v31 = vadd.f32 %v10761_v0, %v12600_v63  ;;  %v5466_v0 = vadd.f32 %v11567_v40, %v11195_v15  ;;  %v12605_v63 = vld [vmem:[#allocation99_spill] sm:$0xff] }
 0x892   :  { %v8367_v41 = vpop.eup %8366  ;;  %v5748_v51 = vmul.f32 1.442695, %v8365_v39  ;;  %6247 = vst.msk [vmem:[%s12172_s6 + $0x30] sm:$0xff] %vm6240_vm0, %v6054_v44  ;;  %6004 = vadd.xlane.f32.xlu0 %v8365_v39  ;;  %v12601_v39 = vld [vmem:[#allocation95_spill] sm:$0xff] }
 0x893   :  { %6150 = vst [vmem:[#allocation8 + $0x260] sm:$0xff] %v5894_v18  ;;  %v5831_v1 = vmul.f32 %v8367_v41, %v12597_v56  ;;  %8376 = vtanh.f32 %v5488_v24  ;;  %v5935_v62 = vpop.xlane.xlu1 %5934  ;;  %v4576_v17 = vadd.f32 %v11260_v7, %v3095_v31  ;;  %v12602_v41 = vld [vmem:[#allocation94_spill] sm:$0xff] }
 0x894   :  { %8378 = vpow2.f32 %v5748_v51  ;;  %v6055_v36 = vadd.f32 %v5935_v62, %v4574_v25  ;;  %v5493_v58 = vpop.f32.mrb[92].mxu0  ;;  %v3096_v25 = vadd.f32 %v10769_v9, %v12602_v41  ;;  %v5472_v9 = vadd.f32 %v11580_v48, %v11195_v15 }
 0x895   :  { %v8369_v13 = vpop.eup %8368  ;;  %v5895_v53 = vadd.f32 %v5831_v1, %v5454_v37  ;;  %v5494_v20 = vadd.f32 %v5493_v58, %v11124_v55  ;;  %v11632_v32 = vpop.f32.mrb[93].mxu0 }
 0x896   :  { %v8371_v33 = vpop.eup %8370  ;;  %v5750_v43 = vmul.f32 1.442695, %v8369_v13  ;;  %6248 = vst.msk [vmem:[%s12172_s6 + $0x38] sm:$0xff] %vm6240_vm0, %v6055_v36  ;;  %6006 = vadd.xlane.f32.xlu1 %v8369_v13  ;;  %v4577_v42 = vadd.f32 %v11262_v27, %v3096_v25  ;;  %v12603_v36 = vld [vmem:[#allocation97_spill] sm:$0xff]  ;;  %v12608_v25 = vld [vmem:[#allocation100_spill] sm:$0xff] }
 0x897   :  { %6151 = vst [vmem:[#allocation8 + $0x270] sm:$0xff] %v5895_v53  ;;  %v5832_v16 = vmul.f32 %v8371_v33, %v12599_v46  ;;  %8380 = vtanh.f32 %v5494_v20  ;;  %v5937_v47 = vpop.xlane.xlu0 %5936  ;;  %v12604_v53 = vld [vmem:[#allocation96_spill] sm:$0xff] }
 0x898   :  { %8382 = vpow2.f32 %v5750_v43  ;;  %v6056_v34 = vadd.f32 %v5937_v47, %v4575_v45  ;;  %v5499_v5 = vpop.f32.mrb[94].mxu0  ;;  %v3097_v20 = vadd.f32 %v10777_v26, %v12604_v53  ;;  %v5478_v26 = vadd.f32 %v11593_v14, %v11195_v15 }
 0x899   :  { %v8373_v54 = vpop.eup %8372  ;;  %v5896_v8 = vadd.f32 %v5832_v16, %v5460_v28  ;;  %v5500_v60 = vadd.f32 %v5499_v5, %v11124_v55  ;;  %v11645_v61 = vpop.f32.mrb[95].mxu0  ;;  %v12606_v5 = vld [vmem:[#allocation98_spill] sm:$0xff] }
 0x89a   :  { %v8375_v44 = vpop.eup %8374  ;;  %v5752_v52 = vmul.f32 1.442695, %v8373_v54  ;;  %6249 = vst.msk [vmem:[%s12172_s6 + $0x40] sm:$0xff] %vm6240_vm0, %v6056_v34  ;;  %6008 = vadd.xlane.f32.xlu0 %v8373_v54  ;;  %v4578_v47 = vadd.f32 %v11270_v50, %v3097_v20  ;;  %v3098_v54 = vadd.f32 %v10785_v2, %v12606_v5  ;;  %v5484_v2 = vadd.f32 %v11606_v30, %v11195_v15 }
 0x89b   :  { %6152 = vst [vmem:[#allocation8 + $0x280] sm:$0xff] %v5896_v8  ;;  %v5833_v18 = vmul.f32 %v8375_v44, %v12601_v39  ;;  %8384 = vtanh.f32 %v5500_v60  ;;  %v5939_v24 = vpop.xlane.xlu1 %5938 }
 0x89c   :  { %8386 = vpow2.f32 %v5752_v52  ;;  %v6057_v7 = vadd.f32 %v5939_v24, %v4576_v17  ;;  %v5505_v51 = vpop.f32.mrb[96].mxu0  ;;  %v4579_v39 = vadd.f32 %v11272_v3, %v3098_v54 }
 0x89d   :  { %v8377_v37 = vpop.eup %8376  ;;  %v5897_v56 = vadd.f32 %v5833_v18, %v5466_v0  ;;  %v5506_v1 = vadd.f32 %v5505_v51, %v11124_v55  ;;  %v11658_v62 = vpop.f32.mrb[97].mxu0  ;;  %v12607_v18 = vld [vmem:[#allocation101_spill] sm:$0xff] }
 0x89e   :  { %v8379_v11 = vpop.eup %8378  ;;  %v5754_v40 = vmul.f32 1.442695, %v8377_v37  ;;  %6250 = vst.msk [vmem:[%s12172_s6 + $0x48] sm:$0xff] %vm6240_vm0, %v6057_v7  ;;  %6010 = vadd.xlane.f32.xlu1 %v8377_v37  ;;  %v3099_v7 = vadd.f32 %v10793_v22, %v12608_v25  ;;  %v5490_v22 = vadd.f32 %v11619_v21, %v11195_v15 }
 0x89f   :  { %6153 = vst [vmem:[#allocation8 + $0x290] sm:$0xff] %v5897_v56  ;;  %v5834_v58 = vmul.f32 %v8379_v11, %v12603_v36  ;;  %8388 = vtanh.f32 %v5506_v1  ;;  %v5941_v13 = vpop.xlane.xlu0 %5940 }
 0x8a0   :  { %8390 = vpow2.f32 %v5754_v40  ;;  %v6058_v27 = vadd.f32 %v5941_v13, %v4577_v42  ;;  %v5511_v33 = vpop.f32.mrb[98].mxu0  ;;  %v4580_v40 = vadd.f32 %v11280_v4, %v3099_v7  ;;  %v12610_v13 = vld [vmem:[#allocation102_spill] sm:$0xff] }
 0x8a1   :  { %v8381_v45 = vpop.eup %8380  ;;  %v5898_v43 = vadd.f32 %v5834_v58, %v5472_v9  ;;  %v5512_v28 = vadd.f32 %v5511_v33, %v11124_v55  ;;  %v11671_v46 = vpop.f32.mrb[99].mxu0  ;;  %v12609_v9 = vld [vmem:[#allocation103_spill] sm:$0xff]  ;;  %v3100_v53 = vadd.f32 %v10801_v38, %v12610_v13  ;;  %v5496_v38 = vadd.f32 %v11632_v32, %v11195_v15 }
 0x8a2   :  { %v8383_v16 = vpop.eup %8382  ;;  %v5756_v48 = vmul.f32 1.442695, %v8381_v45  ;;  %6251 = vst.msk [vmem:[%s12172_s6 + $0x50] sm:$0xff] %vm6240_vm0, %v6058_v27  ;;  %6012 = vadd.xlane.f32.xlu0 %v8381_v45 }
 0x8a3   :  { %6154 = vst [vmem:[#allocation8 + $0x2a0] sm:$0xff] %v5898_v43  ;;  %v5835_v31 = vmul.f32 %v8383_v16, %v12605_v63  ;;  %8392 = vtanh.f32 %v5512_v28  ;;  %v5943_v34 = vpop.xlane.xlu1 %5942  ;;  %v4581_v16 = vadd.f32 %v11282_v59, %v3100_v53  ;;  %v12612_v63 = vld [vmem:[#allocation104_spill] sm:$0xff] }
 0x8a4   :  { %8394 = vpow2.f32 %v5756_v48  ;;  %v6059_v50 = vadd.f32 %v5943_v34, %v4578_v47  ;;  %v5517_v8 = vpop.f32.mrb[100].mxu0  ;;  %v12611_v47 = vld [vmem:[#allocation105_spill] sm:$0xff] }
 0x8a5   :  { %v8385_v60 = vpop.eup %8384  ;;  %v5899_v44 = vadd.f32 %v5835_v31, %v5478_v26  ;;  %v5518_v17 = vadd.f32 %v5517_v8, %v11124_v55  ;;  %v11684_v52 = vpop.f32.mrb[101].mxu0  ;;  %v3101_v31 = vadd.f32 %v10809_v10, %v12612_v63  ;;  %v5502_v10 = vadd.f32 %v11645_v61, %v11195_v15  ;;  %v12619_v63 = vld [vmem:[#allocation113_spill] sm:$0xff] }
 0x8a6   :  { %v8387_v0 = vpop.eup %8386  ;;  %v5758_v14 = vmul.f32 1.442695, %v8385_v60  ;;  %6252 = vst.msk [vmem:[%s12172_s6 + $0x58] sm:$0xff] %vm6240_vm0, %v6059_v50  ;;  %6014 = vadd.xlane.f32.xlu1 %v8385_v60 }
 0x8a7   :  { %6155 = vst [vmem:[#allocation8 + $0x2b0] sm:$0xff] %v5899_v44  ;;  %v5836_v24 = vmul.f32 %v8387_v0, %v12607_v18  ;;  %8396 = vtanh.f32 %v5518_v17  ;;  %v5945_v41 = vpop.xlane.xlu0 %5944  ;;  %v4582_v44 = vadd.f32 %v11290_v12, %v3101_v31  ;;  %v12613_v17 = vld [vmem:[#allocation107_spill] sm:$0xff] }
 0x8a8   :  { %8398 = vpow2.f32 %v5758_v14  ;;  %v6060_v3 = vadd.f32 %v5945_v41, %v4579_v39  ;;  %v5523_v51 = vpop.f32.mrb[102].mxu0  ;;  %v12614_v14 = vld [vmem:[#allocation106_spill] sm:$0xff] }
 0x8a9   :  { %v8389_v37 = vpop.eup %8388  ;;  %v5900_v56 = vadd.f32 %v5836_v24, %v5484_v2  ;;  %v5524_v1 = vadd.f32 %v5523_v51, %v11124_v55  ;;  %v11697_v11 = vpop.f32.mrb[103].mxu0  ;;  %v3102_v2 = vadd.f32 %v10817_v49, %v12614_v14  ;;  %v5508_v49 = vadd.f32 %v11658_v62, %v11195_v15 }
 0x8aa   :  { %v8391_v42 = vpop.eup %8390  ;;  %v5760_v30 = vmul.f32 1.442695, %v8389_v37  ;;  %6253 = vst.msk [vmem:[%s12172_s6 + $0x60] sm:$0xff] %vm6240_vm0, %v6060_v3  ;;  %6016 = vadd.xlane.f32.xlu0 %v8389_v37  ;;  %v12615_v37 = vld [vmem:[#allocation109_spill] sm:$0xff] }
 0x8ab   :  { %6156 = vst [vmem:[#allocation8 + $0x2c0] sm:$0xff] %v5900_v56  ;;  %v5837_v36 = vmul.f32 %v8391_v42, %v12609_v9  ;;  %8400 = vtanh.f32 %v5524_v1  ;;  %v5947_v58 = vpop.xlane.xlu1 %5946  ;;  %v4583_v51 = vadd.f32 %v11292_v29, %v3102_v2  ;;  %v12616_v42 = vld [vmem:[#allocation108_spill] sm:$0xff] }
 0x8ac   :  { %8402 = vpow2.f32 %v5760_v30  ;;  %v6061_v4 = vadd.f32 %v5947_v58, %v4580_v40  ;;  %v5529_v20 = vpop.f32.mrb[104].mxu0  ;;  %v3103_v40 = vadd.f32 %v10825_v19, %v12616_v42  ;;  %v5514_v19 = vadd.f32 %v11671_v46, %v11195_v15 }
 0x8ad   :  { %v8393_v27 = vpop.eup %8392  ;;  %v5901_v33 = vadd.f32 %v5837_v36, %v5490_v22  ;;  %v5530_v45 = vadd.f32 %v5529_v20, %v11124_v55  ;;  %v11710_v43 = vpop.f32.mrb[105].mxu0 }
 0x8ae   :  { %v8395_v28 = vpop.eup %8394  ;;  %v5762_v21 = vmul.f32 1.442695, %v8393_v27  ;;  %6254 = vst.msk [vmem:[%s12172_s6 + $0x68] sm:$0xff] %vm6240_vm0, %v6061_v4  ;;  %6018 = vadd.xlane.f32.xlu1 %v8393_v27  ;;  %v4584_v53 = vadd.f32 %v11300_v57, %v3103_v40  ;;  %v12617_v4 = vld [vmem:[#allocation111_spill] sm:$0xff]  ;;  %v5532_v42 = vadd.f32 %v11710_v43, %v11195_v15  ;;  %v12626_v40 = vld [vmem:[#allocation117_spill] sm:$0xff] }
 0x8af   :  { %6157 = vst [vmem:[#allocation8 + $0x2d0] sm:$0xff] %v5901_v33  ;;  %v5838_v48 = vmul.f32 %v8395_v28, %v12611_v47  ;;  %8404 = vtanh.f32 %v5530_v45  ;;  %v5949_v26 = vpop.xlane.xlu0 %5948  ;;  %v12618_v33 = vld [vmem:[#allocation110_spill] sm:$0xff] }
 0x8b0   :  { %8406 = vpow2.f32 %v5762_v21  ;;  %v6062_v59 = vadd.f32 %v5949_v26, %v4581_v16  ;;  %v5535_v34 = vpop.f32.mrb[106].mxu0  ;;  %v3104_v45 = vadd.f32 %v10833_v23, %v12618_v33  ;;  %v5520_v23 = vadd.f32 %v11684_v52, %v11195_v15  ;;  %v12629_v33 = vld [vmem:[#allocation45_spill] sm:$0xff] }
 0x8b1   :  { %v8397_v5 = vpop.eup %8396  ;;  %v5902_v54 = vadd.f32 %v5838_v48, %v5496_v38  ;;  %v5536_v50 = vadd.f32 %v5535_v34, %v11124_v55  ;;  %v11723_v8 = vpop.f32.mrb[107].mxu0  ;;  %v12620_v34 = vld [vmem:[#allocation112_spill] sm:$0xff] }
 0x8b2   :  { %v8399_v60 = vpop.eup %8398  ;;  %v5764_v32 = vmul.f32 1.442695, %v8397_v5  ;;  %6255 = vst.msk [vmem:[%s12172_s6 + $0x70] sm:$0xff] %vm6240_vm0, %v6062_v59  ;;  %6020 = vadd.xlane.f32.xlu0 %v8397_v5  ;;  %v4585_v26 = vadd.f32 %v11302_v35, %v3104_v45  ;;  %v3105_v5 = vadd.f32 %v10841_v6, %v12620_v34  ;;  %v5526_v6 = vadd.f32 %v11697_v11, %v11195_v15 }
 0x8b3   :  { %6158 = vst [vmem:[#allocation8 + $0x2e0] sm:$0xff] %v5902_v54  ;;  %v5839_v0 = vmul.f32 %v8399_v60, %v12613_v17  ;;  %8408 = vtanh.f32 %v5536_v50  ;;  %v5951_v39 = vpop.xlane.xlu1 %5950  ;;  %v12621_v17 = vld [vmem:[#allocation43_spill] sm:$0xff] }
 0x8b4   :  { %8410 = vpow2.f32 %v5764_v32  ;;  %v6063_v12 = vadd.f32 %v5951_v39, %v4582_v44  ;;  %v5541_v18 = vpop.f32.mrb[108].mxu0  ;;  %v12622_v39 = vld [vmem:[#allocation115_spill] sm:$0xff] }
 0x8b5   :  { %v8401_v24 = vpop.eup %8400  ;;  %v5903_v41 = vadd.f32 %v5839_v0, %v5502_v10  ;;  %v5542_v25 = vadd.f32 %v5541_v18, %v11124_v55  ;;  %v11736_v7 = vpop.f32.mrb[109].mxu0  ;;  %v4586_v0 = vadd.f32 %v12621_v17, %v3105_v5  ;;  %v12624_v18 = vld [vmem:[#allocation12_spill] sm:$0xff] }
 0x8b6   :  { %v8403_v3 = vpop.eup %8402  ;;  %v5766_v61 = vmul.f32 1.442695, %v8401_v24  ;;  %6256 = vst.msk [vmem:[%s12172_s6 + $0x78] sm:$0xff] %vm6240_vm0, %v6063_v12  ;;  %6022 = vadd.xlane.f32.xlu1 %v8401_v24  ;;  %v12623_v12 = vld [vmem:[#allocation114_spill] sm:$0xff]  ;;  %v12635_v17 = vld [vmem:[#allocation120_spill] sm:$0xff] }
 0x8b7   :  { %6159 = vst [vmem:[#allocation8 + $0x2f0] sm:$0xff] %v5903_v41  ;;  %v5840_v56 = vmul.f32 %v8403_v3, %v12615_v37  ;;  %8412 = vtanh.f32 %v5542_v25  ;;  %v5953_v1 = vpop.xlane.xlu0 %5952  ;;  %v3106_v24 = vadd.f32 %v12624_v18, %v12623_v12 }
 0x8b8   :  { %8414 = vpow2.f32 %v5766_v61  ;;  %v6064_v29 = vadd.f32 %v5953_v1, %v4583_v51  ;;  %v5547_v30 = vpop.f32.mrb[110].mxu0 }
 0x8b9   :  { %v8405_v22 = vpop.eup %8404  ;;  %v5904_v9 = vadd.f32 %v5840_v56, %v5508_v49  ;;  %v5548_v36 = vadd.f32 %v5547_v30, %v11124_v55  ;;  %v11749_v58 = vpop.f32.mrb[111].mxu0  ;;  %v12625_v56 = vld [vmem:[#allocation44_spill] sm:$0xff] }
 0x8ba   :  { %v8407_v13 = vpop.eup %8406  ;;  %v5768_v62 = vmul.f32 1.442695, %v8405_v22  ;;  %6257 = vst.msk [vmem:[%s12172_s6 + $0x80] sm:$0xff] %vm6240_vm0, %v6064_v29  ;;  %6024 = vadd.xlane.f32.xlu0 %v8405_v22  ;;  %v4587_v1 = vadd.f32 %v12625_v56, %v3106_v24  ;;  %v12627_v22 = vld [vmem:[#allocation116_spill] sm:$0xff]  ;;  %v12639_v56 = vld [vmem:[#allocation122_spill] sm:$0xff] }
 0x8bb   :  { %6160 = vst [vmem:[#allocation8 + $0x300] sm:$0xff] %v5904_v9  ;;  %v5841_v20 = vmul.f32 %v8407_v13, %v12617_v4  ;;  %8416 = vtanh.f32 %v5548_v36  ;;  %v5955_v27 = vpop.xlane.xlu1 %5954  ;;  %v12628_v9 = vld [vmem:[#allocation13_spill] sm:$0xff] }
 0x8bc   :  { %8418 = vpow2.f32 %v5768_v62  ;;  %v6065_v57 = vadd.f32 %v5955_v27, %v4584_v53  ;;  %v5553_v28 = vpop.f32.mrb[112].mxu0  ;;  %v3107_v36 = vadd.f32 %v12628_v9, %v12627_v22 }
 0x8bd   :  { %v8409_v16 = vpop.eup %8408  ;;  %v5905_v21 = vadd.f32 %v5841_v20, %v5514_v19  ;;  %v5554_v38 = vadd.f32 %v5553_v28, %v11124_v55  ;;  %v11762_v47 = vpop.f32.mrb[113].mxu0  ;;  %v12630_v28 = vld [vmem:[#allocation119_spill] sm:$0xff] }
 0x8be   :  { %v8411_v48 = vpop.eup %8410  ;;  %v5770_v46 = vmul.f32 1.442695, %v8409_v16  ;;  %6258 = vst.msk [vmem:[%s12172_s6 + $0x88] sm:$0xff] %vm6240_vm0, %v6065_v57  ;;  %6026 = vadd.xlane.f32.xlu1 %v8409_v16  ;;  %v4588_v45 = vadd.f32 %v12629_v33, %v3107_v36  ;;  %v5538_v57 = vadd.f32 %v11723_v8, %v11195_v15  ;;  %v12643_v33 = vld [vmem:[#allocation124_spill] sm:$0xff] }
 0x8bf   :  { %6161 = vst [vmem:[#allocation8 + $0x310] sm:$0xff] %v5905_v21  ;;  %v5842_v31 = vmul.f32 %v8411_v48, %v12619_v63  ;;  %8420 = vtanh.f32 %v5554_v38  ;;  %v5957_v59 = vpop.xlane.xlu0 %5956  ;;  %v12631_v38 = vld [vmem:[#allocation118_spill] sm:$0xff] }
 0x8c0   :  { %8422 = vpow2.f32 %v5770_v46  ;;  %v6066_v35 = vadd.f32 %v5957_v59, %v4585_v26  ;;  %v5559_v54 = vpop.f32.mrb[114].mxu0  ;;  %v12632_v48 = vld [vmem:[#allocation14_spill] sm:$0xff] }
 0x8c1   :  { %v8413_v50 = vpop.eup %8412  ;;  %v5906_v60 = vadd.f32 %v5842_v31, %v5520_v23  ;;  %v5560_v44 = vadd.f32 %v5559_v54, %v11124_v55  ;;  %v11775_v32 = vpop.f32.mrb[115].mxu0  ;;  %v3108_v26 = vadd.f32 %v12632_v48, %v12631_v38 }
 0x8c2   :  { %v8415_v10 = vpop.eup %8414  ;;  %v5772_v52 = vmul.f32 1.442695, %v8413_v50  ;;  %6259 = vst.msk [vmem:[%s12172_s6 + $0x90] sm:$0xff] %vm6240_vm0, %v6066_v35  ;;  %6028 = vadd.xlane.f32.xlu0 %v8413_v50  ;;  %v12633_v35 = vld [vmem:[#allocation46_spill] sm:$0xff]  ;;  %v5544_v50 = vadd.f32 %v11736_v7, %v11195_v15 }
 0x8c3   :  { %6162 = vst [vmem:[#allocation8 + $0x320] sm:$0xff] %v5906_v60  ;;  %v5843_v14 = vmul.f32 %v8415_v10, %v12622_v39  ;;  %8424 = vtanh.f32 %v5560_v44  ;;  %v5959_v2 = vpop.xlane.xlu1 %5958  ;;  %v4589_v54 = vadd.f32 %v12633_v35, %v3108_v26  ;;  %v12634_v60 = vld [vmem:[#allocation121_spill] sm:$0xff]  ;;  %v12648_v35 = vld [vmem:[#allocation18_spill] sm:$0xff] }
 0x8c4   :  { %8426 = vpow2.f32 %v5772_v52  ;;  %v6067_v41 = vadd.f32 %v5959_v2, %v4586_v0  ;;  %v5565_v25 = vpop.f32.mrb[116].mxu0  ;;  %v12636_v0 = vld [vmem:[#allocation15_spill] sm:$0xff] }
 0x8c5   :  { %v8417_v3 = vpop.eup %8416  ;;  %v5907_v51 = vadd.f32 %v5843_v14, %v5526_v6  ;;  %v5566_v61 = vadd.f32 %v5565_v25, %v11124_v55  ;;  %v11788_v49 = vpop.f32.mrb[117].mxu0  ;;  %v3109_v52 = vadd.f32 %v12636_v0, %v12635_v17 }
 0x8c6   :  { %v8419_v37 = vpop.eup %8418  ;;  %v5774_v11 = vmul.f32 1.442695, %v8417_v3  ;;  %6260 = vst.msk [vmem:[%s12172_s6 + $0x98] sm:$0xff] %vm6240_vm0, %v6067_v41  ;;  %6030 = vadd.xlane.f32.xlu1 %v8417_v3  ;;  %v12637_v41 = vld [vmem:[#allocation47_spill] sm:$0xff]  ;;  %v5550_v3 = vadd.f32 %v11749_v58, %v11195_v15 }
 0x8c7   :  { %6163 = vst [vmem:[#allocation8 + $0x330] sm:$0xff] %v5907_v51  ;;  %v5844_v29 = vmul.f32 %v8419_v37, %v12626_v40  ;;  %8428 = vtanh.f32 %v5566_v61  ;;  %v5961_v30 = vpop.xlane.xlu0 %5960  ;;  %v4590_v25 = vadd.f32 %v12637_v41, %v3109_v52  ;;  %v12638_v51 = vld [vmem:[#allocation123_spill] sm:$0xff]  ;;  %v12650_v52 = vld [vmem:[#allocation129_spill] sm:$0xff] }
 0x8c8   :  { %8430 = vpow2.f32 %v5774_v11  ;;  %v6068_v13 = vadd.f32 %v5961_v30, %v4587_v1  ;;  %v5571_v53 = vpop.f32.mrb[118].mxu0  ;;  %v12640_v1 = vld [vmem:[#allocation16_spill] sm:$0xff] }
 0x8c9   :  { %v8421_v62 = vpop.eup %8420  ;;  %v5908_v19 = vadd.f32 %v5844_v29, %v5532_v42  ;;  %v5572_v4 = vadd.f32 %v5571_v53, %v11124_v55  ;;  %v11801_v20 = vpop.f32.mrb[119].mxu0  ;;  %v3110_v11 = vadd.f32 %v12640_v1, %v12639_v56 }
 0x8ca   :  { %v8423_v27 = vpop.eup %8422  ;;  %v5776_v43 = vmul.f32 1.442695, %v8421_v62  ;;  %6261 = vst.msk [vmem:[%s12172_s6 + $0xa0] sm:$0xff] %vm6240_vm0, %v6068_v13  ;;  %6032 = vadd.xlane.f32.xlu0 %v8421_v62  ;;  %v12641_v13 = vld [vmem:[#allocation48_spill] sm:$0xff]  ;;  %v5556_v62 = vadd.f32 %v11762_v47, %v11195_v15 }
 0x8cb   :  { %6164 = vst [vmem:[#allocation8 + $0x340] sm:$0xff] %v5908_v19  ;;  %v5845_v16 = vmul.f32 %v8423_v27, %v12630_v28  ;;  %8432 = vtanh.f32 %v5572_v4  ;;  %v5963_v21 = vpop.xlane.xlu1 %5962  ;;  %v4591_v53 = vadd.f32 %v12641_v13, %v3110_v11  ;;  %v12642_v19 = vld [vmem:[#allocation125_spill] sm:$0xff]  ;;  %v12655_v11 = vld [vmem:[#allocation130_spill] sm:$0xff]  ;;  %v12657_v13 = vld [vmem:[#allocation52_spill] sm:$0xff] }
 0x8cc   :  { %8434 = vpow2.f32 %v5776_v43  ;;  %v6069_v46 = vadd.f32 %v5963_v21, %v4588_v45  ;;  %v5577_v23 = vpop.f32.mrb[120].mxu0  ;;  %v12644_v45 = vld [vmem:[#allocation17_spill] sm:$0xff] }
 0x8cd   :  { %v8425_v63 = vpop.eup %8424  ;;  %v5909_v31 = vadd.f32 %v5845_v16, %v5538_v57  ;;  %v5578_v59 = vadd.f32 %v5577_v23, %v11124_v55  ;;  %v11814_v34 = vpop.f32.mrb[121].mxu0  ;;  %v3111_v43 = vadd.f32 %v12644_v45, %v12643_v33  ;;  %v12660_v33 = vld [vmem:[#allocation21_spill] sm:$0xff] }
 0x8ce   :  { %v8427_v5 = vpop.eup %8426  ;;  %v5778_v8 = vmul.f32 1.442695, %v8425_v63  ;;  %6262 = vst.msk [vmem:[%s12172_s6 + $0xa8] sm:$0xff] %vm6240_vm0, %v6069_v46  ;;  %6034 = vadd.xlane.f32.xlu1 %v8425_v63  ;;  %v12645_v46 = vld [vmem:[#allocation49_spill] sm:$0xff]  ;;  %v5562_v63 = vadd.f32 %v11775_v32, %v11195_v15  ;;  %v5568_v32 = vadd.f32 %v11788_v49, %v11195_v15  ;;  %v5574_v49 = vadd.f32 %v11801_v20, %v11195_v15 }
 0x8cf   :  { %6165 = vst [vmem:[#allocation8 + $0x350] sm:$0xff] %v5909_v31  ;;  %v5846_v44 = vmul.f32 %v8427_v5, %v12634_v60  ;;  %8436 = vtanh.f32 %v5578_v59  ;;  %v5965_v10 = vpop.xlane.xlu0 %5964  ;;  %v4592_v23 = vadd.f32 %v12645_v46, %v3111_v43  ;;  %v12646_v31 = vld [vmem:[#allocation127_spill] sm:$0xff]  ;;  %v12647_v5 = vld [vmem:[#allocation126_spill] sm:$0xff]  ;;  %v5580_v20 = vadd.f32 %v11814_v34, %v11195_v15 }
 0x8d0   :  { %8438 = vpow2.f32 %v5778_v8  ;;  %v6070_v6 = vadd.f32 %v5965_v10, %v4589_v54  ;;  %v5583_v39 = vpop.f32.mrb[122].mxu0  ;;  %v3112_v54 = vadd.f32 %v12648_v35, %v12647_v5  ;;  %v12649_v10 = vld [vmem:[#allocation50_spill] sm:$0xff] }
 0x8d1   :  { %v8429_v14 = vpop.eup %8428  ;;  %v5910_v2 = vadd.f32 %v5846_v44, %v5544_v50  ;;  %v5584_v12 = vadd.f32 %v5583_v39, %v11124_v55  ;;  %v11827_v18 = vpop.f32.mrb[123].mxu0  ;;  %v12665_v5 = vld [vmem:[#allocation54_spill] sm:$0xff] }
 0x8d2   :  { %v8431_v24 = vpop.eup %8430  ;;  %v5780_v7 = vmul.f32 1.442695, %v8429_v14  ;;  %6263 = vst.msk [vmem:[%s12172_s6 + $0xb0] sm:$0xff] %vm6240_vm0, %v6070_v6  ;;  %6036 = vadd.xlane.f32.xlu0 %v8429_v14  ;;  %v4593_v17 = vadd.f32 %v12649_v10, %v3112_v54  ;;  %v12651_v14 = vld [vmem:[#allocation128_spill] sm:$0xff]  ;;  %v5586_v34 = vadd.f32 %v11827_v18, %v11195_v15  ;;  %v12666_v54 = vld [vmem:[#allocation135_spill] sm:$0xff] }
 0x8d3   :  { %6166 = vst [vmem:[#allocation8 + $0x360] sm:$0xff] %v5910_v2  ;;  %v5847_v61 = vmul.f32 %v8431_v24, %v12638_v51  ;;  %8440 = vtanh.f32 %v5584_v12  ;;  %v5967_v37 = vpop.xlane.xlu1 %5966  ;;  %v12652_v2 = vld [vmem:[#allocation19_spill] sm:$0xff] }
 0x8d4   :  { %8442 = vpow2.f32 %v5780_v7  ;;  %v6071_v42 = vadd.f32 %v5967_v37, %v4590_v25  ;;  %v5589_v40 = vpop.f32.mrb[124].mxu0  ;;  %v3113_v12 = vadd.f32 %v12652_v2, %v12651_v14  ;;  %v12654_v37 = vld [vmem:[#allocation131_spill] sm:$0xff] }
 0x8d5   :  { %v8433_v29 = vpop.eup %8432  ;;  %v5911_v30 = vadd.f32 %v5847_v61, %v5550_v3  ;;  %v5590_v22 = vadd.f32 %v5589_v40, %v11124_v55  ;;  %v11840_v9 = vpop.f32.mrb[125].mxu0  ;;  %v12653_v3 = vld [vmem:[#allocation51_spill] sm:$0xff] }
 0x8d6   :  { %v8435_v36 = vpop.eup %8434  ;;  %v5782_v58 = vmul.f32 1.442695, %v8433_v29  ;;  %6264 = vst.msk [vmem:[%s12172_s6 + $0xb8] sm:$0xff] %vm6240_vm0, %v6071_v42  ;;  %6038 = vadd.xlane.f32.xlu1 %v8433_v29  ;;  %v4594_v51 = vadd.f32 %v12653_v3, %v3113_v12  ;;  %v12656_v42 = vld [vmem:[#allocation20_spill] sm:$0xff]  ;;  %v5592_v18 = vadd.f32 %v11840_v9, %v11195_v15  ;;  %v12671_v12 = vld [vmem:[#allocation139_spill] sm:$0xff] }
 0x8d7   :  { %6167 = vst [vmem:[#allocation8 + $0x370] sm:$0xff] %v5911_v30  ;;  %v5848_v4 = vmul.f32 %v8435_v36, %v12642_v19  ;;  %8444 = vtanh.f32 %v5590_v22  ;;  %v5969_v27 = vpop.xlane.xlu0 %5968  ;;  %v3114_v40 = vadd.f32 %v12656_v42, %v12655_v11  ;;  %v12673_v3 = vld [vmem:[#allocation56_spill] sm:$0xff] }
 0x8d8   :  { %8446 = vpow2.f32 %v5782_v58  ;;  %v6072_v57 = vadd.f32 %v5969_v27, %v4591_v53  ;;  %v5595_v28 = vpop.f32.mrb[126].mxu0  ;;  %v12659_v27 = vld [vmem:[#allocation132_spill] sm:$0xff] }
 0x8d9   :  { %v8437_v16 = vpop.eup %8436  ;;  %v5912_v21 = vadd.f32 %v5848_v4, %v5556_v62  ;;  %v5596_v38 = vadd.f32 %v5595_v28, %v11124_v55  ;;  %v11853_v48 = vpop.f32.mrb[127].mxu0  ;;  %v4595_v53 = vadd.f32 %v12657_v13, %v3114_v40  ;;  %v12658_v62 = vld [vmem:[#allocation133_spill] sm:$0xff]  ;;  %v3115_v45 = vadd.f32 %v12660_v33, %v12659_v27 }
 0x8da   :  { %v8439_v26 = vpop.eup %8438  ;;  %v5784_v47 = vmul.f32 1.442695, %v8437_v16  ;;  %6265 = vst.msk [vmem:[%s12172_s6 + $0xc0] sm:$0xff] %vm6240_vm0, %v6072_v57  ;;  %6040 = vadd.xlane.f32.xlu0 %v8437_v16  ;;  %v12661_v16 = vld [vmem:[#allocation53_spill] sm:$0xff]  ;;  %v5598_v9 = vadd.f32 %v11853_v48, %v11195_v15  ;;  %v12674_v48 = vld [vmem:[#allocation140_spill] sm:$0xff] }
 0x8db   :  { %6168 = vst [vmem:[#allocation8 + $0x380] sm:$0xff] %v5912_v21  ;;  %v5849_v59 = vmul.f32 %v8439_v26, %v12646_v31  ;;  %8448 = vtanh.f32 %v5596_v38  ;;  %v5971_v55 = vpop.xlane.xlu1 %5970  ;;  %v4596_v21 = vadd.f32 %v12661_v16, %v3115_v45  ;;  %v12662_v38 = vld [vmem:[#allocation134_spill] sm:$0xff] }
 0x8dc   :  { %8450 = vpow2.f32 %v5784_v47  ;;  %v6073_v8 = vadd.f32 %v5971_v55, %v4592_v23  ;;  %v12663_v23 = vld [vmem:[#allocation137_spill] sm:$0xff]  ;;  %v12664_v47 = vld [vmem:[#allocation22_spill] sm:$0xff] }
 0x8dd   :  { %v8441_v50 = vpop.eup %8440  ;;  %v5913_v60 = vadd.f32 %v5849_v59, %v5562_v63  ;;  %v3116_v63 = vadd.f32 %v12664_v47, %v12663_v23 }
 0x8de   :  { %v8443_v44 = vpop.eup %8442  ;;  %v5786_v0 = vmul.f32 1.442695, %v8441_v50  ;;  %6266 = vst.msk [vmem:[%s12172_s6 + $0xc8] sm:$0xff] %vm6240_vm0, %v6073_v8  ;;  %6042 = vadd.xlane.f32.xlu1 %v8441_v50 }
 0x8df   :  { %6169 = vst [vmem:[#allocation8 + $0x390] sm:$0xff] %v5913_v60  ;;  %v5850_v6 = vmul.f32 %v8443_v44, %v12650_v52  ;;  %v5973_v39 = vpop.xlane.xlu0 %5972  ;;  %v4597_v35 = vadd.f32 %v12665_v5, %v3116_v63  ;;  %v12667_v60 = vld [vmem:[#allocation138_spill] sm:$0xff]  ;;  %v12668_v44 = vld [vmem:[#allocation23_spill] sm:$0xff] }
 0x8e0   :  { %8452 = vpow2.f32 %v5786_v0  ;;  %v6074_v24 = vadd.f32 %v5973_v39, %v4593_v17  ;;  %v3117_v10 = vadd.f32 %v12668_v44, %v12667_v60  ;;  %v12669_v52 = vld [vmem:[#allocation55_spill] sm:$0xff]  ;;  %v12670_v39 = vld [vmem:[#allocation136_spill] sm:$0xff] }
 0x8e1   :  { %v8445_v41 = vpop.eup %8444  ;;  %v5914_v25 = vadd.f32 %v5850_v6, %v5568_v32 }
 0x8e2   :  { %v8447_v7 = vpop.eup %8446  ;;  %v5788_v61 = vmul.f32 1.442695, %v8445_v41  ;;  %6267 = vst.msk [vmem:[%s12172_s6 + $0xd0] sm:$0xff] %vm6240_vm0, %v6074_v24  ;;  %6044 = vadd.xlane.f32.xlu0 %v8445_v41  ;;  %v4598_v6 = vadd.f32 %v12669_v52, %v3117_v10  ;;  %v12672_v24 = vld [vmem:[#allocation24_spill] sm:$0xff] }
 0x8e3   :  { %6170 = vst [vmem:[#allocation8 + $0x3a0] sm:$0xff] %v5914_v25  ;;  %v5851_v56 = vmul.f32 %v8447_v7, %v12654_v37  ;;  %v5975_v1 = vpop.xlane.xlu1 %5974  ;;  %v3118_v41 = vadd.f32 %v12672_v24, %v12671_v12 }
 0x8e4   :  { %8454 = vpow2.f32 %v5788_v61  ;;  %v6075_v29 = vadd.f32 %v5975_v1, %v4594_v51  ;;  %v12675_v61 = vld [vmem:[#allocation25_spill] sm:$0xff] }
 0x8e5   :  { %v8449_v30 = vpop.eup %8448  ;;  %v5915_v22 = vadd.f32 %v5851_v56, %v5574_v49  ;;  %v4599_v51 = vadd.f32 %v12673_v3, %v3118_v41  ;;  %v3119_v49 = vadd.f32 %v12675_v61, %v12674_v48 }
 0x8e6   :  { %v8451_v36 = vpop.eup %8450  ;;  %v5790_v58 = vmul.f32 1.442695, %v8449_v30  ;;  %6268 = vst.msk [vmem:[%s12172_s6 + $0xd8] sm:$0xff] %vm6240_vm0, %v6075_v29  ;;  %6046 = vadd.xlane.f32.xlu1 %v8449_v30 }
 0x8e7   :  { %6171 = vst [vmem:[#allocation8 + $0x3b0] sm:$0xff] %v5915_v22  ;;  %v5852_v19 = vmul.f32 %v8451_v36, %v12658_v62  ;;  %v5977_v4 = vpop.xlane.xlu0 %5976 }
 0x8e8   :  { %8456 = vpow2.f32 %v5790_v58  ;;  %v6076_v43 = vadd.f32 %v5977_v4, %v4595_v53 }
 0x8e9   :  { %v5916_v57 = vadd.f32 %v5852_v19, %v5580_v20 }
 0x8ea   :  { %v8453_v28 = vpop.eup %8452  ;;  %6269 = vst.msk [vmem:[%s12172_s6 + $0xe0] sm:$0xff] %vm6240_vm0, %v6076_v43 }
 0x8eb   :  { %6172 = vst [vmem:[#allocation8 + $0x3c0] sm:$0xff] %v5916_v57  ;;  %v5853_v26 = vmul.f32 %v8453_v28, %v12662_v38  ;;  %v5979_v46 = vpop.xlane.xlu1 %5978 }
 0x8ec   :  { %v6077_v31 = vadd.f32 %v5979_v46, %v4596_v21 }
 0x8ed   :  { %v5917_v59 = vadd.f32 %v5853_v26, %v5586_v34 }
 0x8ee   :  { %v8455_v55 = vpop.eup %8454  ;;  %6270 = vst.msk [vmem:[%s12172_s6 + $0xe8] sm:$0xff] %vm6240_vm0, %v6077_v31 }
 0x8ef   :  { %6173 = vst [vmem:[#allocation8 + $0x3d0] sm:$0xff] %v5917_v59  ;;  %v5854_v8 = vmul.f32 %v8455_v55, %v12666_v54  ;;  %v5981_v50 = vpop.xlane.xlu0 %5980 }
 0x8f0   :  { %v6078_v17 = vadd.f32 %v5981_v50, %v4597_v35 }
 0x8f1   :  { %v5918_v0 = vadd.f32 %v5854_v8, %v5592_v18 }
 0x8f2   :  { %v8457_v32 = vpop.eup %8456  ;;  %6271 = vst.msk [vmem:[%s12172_s6 + $0xf0] sm:$0xff] %vm6240_vm0, %v6078_v17 }
 0x8f3   :  { %6174 = vst [vmem:[#allocation8 + $0x3e0] sm:$0xff] %v5918_v0  ;;  %v5855_v14 = vmul.f32 %v8457_v32, %v12670_v39  ;;  %v5983_v2 = vpop.xlane.xlu1 %5982 }
 0x8f4   :  { %v6079_v25 = vadd.f32 %v5983_v2, %v4598_v6 }
 0x8f5   :  { %v5919_v7 = vadd.f32 %v5855_v14, %v5598_v9 }
 0x8f6   :  { %6272 = vst.msk [vmem:[%s12172_s6 + $0xf8] sm:$0xff] %vm6240_vm0, %v6079_v25 }
 0x8f7   :  { %6175 = vst [vmem:[#allocation8 + $0x3f0] sm:$0xff] %v5919_v7  ;;  %v5985_v15 = vpop.xlane.xlu0 %5984 }
 0x8f8   :  { %v6080_v37 = vadd.f32 %v5985_v15, %v4599_v51 }
 0x8f9   :  { %8599 = shalt.err (!%p8596_p0)
}
 0x8fa   :  { %s8600_s14 = scalar_lea.hbm %s12171_s5, 16384 }
 0x8fb   :  { %p8601_p1 = scmp.ne.s32.totalorder %s12171_s5, %s8600_s14  ;;  %p8604_p2 = scmp.lt.u32.totalorder %s8600_s14, %s12171_s5 }
 0x8fd   :  { %p8606_p3 = pnand %p8604_p2, %p8601_p1 }
 0x8ff   :  { %8609 = shalt.err (!%p8606_p3)
}
 0x900   :  { %6316 = dma.vmem_to_hbm [thread:$0]  %s6311_s0, 16384, %s12171_s5, [#allocation4], %s8620_s1, %s8620_s1, %s8621_s21   ;;  %v12676_v56 = vld [vmem:[#allocation57_spill] sm:$0xff]  ;;  %v5987_v11 = vpop.xlane.xlu1 %5986  ;;  %v12678_v40 = vld [vmem:[#allocation26_spill] sm:$0xff]  ;;  %v5989_v13 = vpop.xlane.xlu0 %5988  ;;  %v12681_v58 = vld [vmem:[#allocation27_spill] sm:$0xff] }
 0x901   :  { %v4600_v1 = vadd.f32 %v12676_v56, %v3119_v49  ;;  %6273 = vst.msk [vmem:[%s12172_s6 + $0x100] sm:$0xff] %vm6240_vm0, %v6080_v37  ;;  %v12677_v42 = vld [vmem:[#allocation141_spill] sm:$0xff]  ;;  %v12679_v22 = vld [vmem:[#allocation58_spill] sm:$0xff]  ;;  %v12682_v19 = vld [vmem:[#allocation59_spill] sm:$0xff] }
 0x902   :  { %v3120_v29 = vadd.f32 %v12678_v40, %v12677_v42  ;;  %v12680_v53 = vld [vmem:[#allocation142_spill] sm:$0xff]  ;;  %v12683_v33 = vld [vmem:[#allocation143_spill] sm:$0xff]  ;;  %v12684_v45 = vld [vmem:[#allocation28_spill] sm:$0xff] }
 0x903   :  { %v6081_v30 = vadd.f32 %v5987_v11, %v4600_v1  ;;  %v3121_v20 = vadd.f32 %v12681_v58, %v12680_v53  ;;  %v3122_v43 = vadd.f32 %v12684_v45, %v12683_v33  ;;  %v12685_v28 = vld [vmem:[#allocation60_spill] sm:$0xff]  ;;  %v12687_v38 = vld [vmem:[#allocation29_spill] sm:$0xff]  ;;  %v12690_v59 = vld [vmem:[#allocation30_spill] sm:$0xff] }
 0x904   :  { %v4601_v36 = vadd.f32 %v12679_v22, %v3120_v29  ;;  %v5991_v27 = vpop.xlane.xlu1 %5990  ;;  %v12686_v34 = vld [vmem:[#allocation144_spill] sm:$0xff]  ;;  %v12688_v23 = vld [vmem:[#allocation61_spill] sm:$0xff]  ;;  %v12692_v8 = vld [vmem:[#allocation146_spill] sm:$0xff] }
 0x905   :  { %6274 = vst.msk [vmem:[%s12172_s6 + $0x108] sm:$0xff] %vm6240_vm0, %v6081_v30  ;;  %v4602_v4 = vadd.f32 %v12682_v19, %v3121_v20  ;;  %v4603_v16 = vadd.f32 %v12685_v28, %v3122_v43  ;;  %v3123_v26 = vadd.f32 %v12687_v38, %v12686_v34  ;;  %v12689_v31 = vld [vmem:[#allocation145_spill] sm:$0xff]  ;;  %v12691_v35 = vld [vmem:[#allocation184_spill] sm:$0xff]  ;;  %v12693_v50 = vld [vmem:[#allocation31_spill] sm:$0xff] }
 0x906   :  { %v6082_v62 = vadd.f32 %v5989_v13, %v4601_v36  ;;  %v3124_v55 = vadd.f32 %v12690_v59, %v12689_v31  ;;  %v3125_v60 = vadd.f32 %v12693_v50, %v12692_v8  ;;  %v12694_v10 = vld [vmem:[#allocation62_spill] sm:$0xff]  ;;  %v12695_v32 = vld [vmem:[#allocation147_spill] sm:$0xff]  ;;  %v12696_v52 = vld [vmem:[#allocation32_spill] sm:$0xff] }
 0x907   :  { %v6083_v57 = vadd.f32 %v5991_v27, %v4602_v4  ;;  %v5993_v21 = vpop.xlane.xlu0 %5992  ;;  %v4604_v47 = vadd.f32 %v12688_v23, %v3123_v26  ;;  %v3126_v6 = vadd.f32 %v12696_v52, %v12695_v32  ;;  %v12697_v39 = vld [vmem:[#allocation185_spill] sm:$0xff]  ;;  %v12698_v12 = vld [vmem:[#allocation148_spill] sm:$0xff]  ;;  %v12700_v7 = vld [vmem:[#allocation63_spill] sm:$0xff] }
 0x908   :  { %6275 = vst.msk [vmem:[%s12172_s6 + $0x110] sm:$0xff] %vm6240_vm0, %v6082_v62  ;;  %v6084_v46 = vadd.f32 %v5993_v21, %v4603_v16  ;;  %v4605_v18 = vadd.f32 %v12691_v35, %v3124_v55  ;;  %v4606_v17 = vadd.f32 %v12694_v10, %v3125_v60  ;;  %v12699_v24 = vld [vmem:[#allocation33_spill] sm:$0xff]  ;;  %v12702_v48 = vld [vmem:[#allocation34_spill] sm:$0xff]  ;;  %v12705_v42 = vld [vmem:[#allocation35_spill] sm:$0xff] }
 0x909   :  { %6276 = vst.msk [vmem:[%s12172_s6 + $0x118] sm:$0xff] %vm6240_vm0, %v6083_v57  ;;  %v4607_v14 = vadd.f32 %v12697_v39, %v3126_v6  ;;  %v3127_v41 = vadd.f32 %v12699_v24, %v12698_v12  ;;  %v12701_v15 = vld [vmem:[#allocation149_spill] sm:$0xff]  ;;  %v12703_v37 = vld [vmem:[#allocation186_spill] sm:$0xff]  ;;  %v12706_v30 = vld [vmem:[#allocation64_spill] sm:$0xff] }
 0x90a   :  { %6277 = vst.msk [vmem:[%s12172_s6 + $0x120] sm:$0xff] %vm6240_vm0, %v6084_v46  ;;  %v3128_v61 = vadd.f32 %v12702_v48, %v12701_v15  ;;  %v12704_v11 = vld [vmem:[#allocation150_spill] sm:$0xff]  ;;  %v12707_v13 = vld [vmem:[#allocation151_spill] sm:$0xff]  ;;  %v12708_v53 = vld [vmem:[#allocation36_spill] sm:$0xff] }
 0x90b   :  { %v5995_v63 = vpop.xlane.xlu1 %5994  ;;  %v4608_v3 = vadd.f32 %v12700_v7, %v3127_v41  ;;  %v3129_v40 = vadd.f32 %v12705_v42, %v12704_v11  ;;  %v3130_v58 = vadd.f32 %v12708_v53, %v12707_v13  ;;  %v12709_v62 = vld [vmem:[#allocation187_spill] sm:$0xff]  ;;  %v12710_v27 = vld [vmem:[#allocation152_spill] sm:$0xff]  ;;  %v12711_v33 = vld [vmem:[#allocation37_spill] sm:$0xff] }
 0x90c   :  { %v6085_v5 = vadd.f32 %v5995_v63, %v4604_v47  ;;  %v4609_v56 = vadd.f32 %v12703_v37, %v3128_v61  ;;  %v3131_v45 = vadd.f32 %v12711_v33, %v12710_v27  ;;  %v12712_v57 = vld [vmem:[#allocation65_spill] sm:$0xff]  ;;  %v12714_v34 = vld [vmem:[#allocation38_spill] sm:$0xff]  ;;  %v12715_v46 = vld [vmem:[#allocation188_spill] sm:$0xff] }
 0x90d   :  { %v4610_v22 = vadd.f32 %v12706_v30, %v3129_v40  ;;  %v4611_v19 = vadd.f32 %v12709_v62, %v3130_v58  ;;  %v12713_v21 = vld [vmem:[#allocation153_spill] sm:$0xff]  ;;  %v12716_v63 = vld [vmem:[#allocation154_spill] sm:$0xff]  ;;  %v12717_v31 = vld [vmem:[#allocation39_spill] sm:$0xff] }
 0x90e   :  { %6278 = vst.msk [vmem:[%s12172_s6 + $0x128] sm:$0xff] %vm6240_vm0, %v6085_v5  ;;  %v4612_v28 = vadd.f32 %v12712_v57, %v3131_v45  ;;  %v3132_v38 = vadd.f32 %v12714_v34, %v12713_v21  ;;  %v3133_v59 = vadd.f32 %v12717_v31, %v12716_v63  ;;  %v12718_v5 = vld [vmem:[#allocation66_spill] sm:$0xff]  ;;  %v12720_v8 = vld [vmem:[#allocation40_spill] sm:$0xff]  ;;  %v12723_v32 = vld [vmem:[#allocation41_spill] sm:$0xff] }
 0x90f   :  { %v5997_v54 = vpop.xlane.xlu0 %5996  ;;  %v12726_v12 = vld [vmem:[#allocation42_spill] sm:$0xff]  ;;  %v12729_v15 = vld [vmem:[#allocation171_spill] sm:$0xff]  ;;  %v12732_v11 = vld [vmem:[#allocation172_spill] sm:$0xff] }
 0x910   :  { %v6086_v44 = vadd.f32 %v5997_v54, %v4605_v18  ;;  %v4613_v23 = vadd.f32 %v12715_v46, %v3132_v38  ;;  %v4614_v35 = vadd.f32 %v12718_v5, %v3133_v59  ;;  %v12719_v54 = vld [vmem:[#allocation155_spill] sm:$0xff]  ;;  %v12735_v13 = vld [vmem:[#allocation173_spill] sm:$0xff]  ;;  %v12738_v27 = vld [vmem:[#allocation174_spill] sm:$0xff] }
 0x911   :  { %v3134_v50 = vadd.f32 %v12720_v8, %v12719_v54  ;;  %v12741_v21 = vld [vmem:[#allocation175_spill] sm:$0xff]  ;;  %v12744_v63 = vld [vmem:[#allocation176_spill] sm:$0xff]  ;;  %v12747_v54 = vld [vmem:[#allocation177_spill] sm:$0xff] }
 0x912   :  { %6279 = vst.msk [vmem:[%s12172_s6 + $0x130] sm:$0xff] %vm6240_vm0, %v6086_v44  ;;  %v12721_v44 = vld [vmem:[#allocation189_spill] sm:$0xff] }
 0x913   :  { %v5999_v0 = vpop.xlane.xlu1 %5998  ;;  %v4615_v10 = vadd.f32 %v12721_v44, %v3134_v50 }
 0x914   :  { %v6087_v9 = vadd.f32 %v5999_v0, %v4606_v17  ;;  %v12722_v0 = vld [vmem:[#allocation156_spill] sm:$0xff] }
 0x915   :  { %v3135_v52 = vadd.f32 %v12723_v32, %v12722_v0  ;;  %v12750_v0 = vld [vmem:[#allocation178_spill] sm:$0xff] }
 0x916   :  { %6280 = vst.msk [vmem:[%s12172_s6 + $0x138] sm:$0xff] %vm6240_vm0, %v6087_v9  ;;  %v12724_v9 = vld [vmem:[#allocation67_spill] sm:$0xff] }
 0x917   :  { %v6001_v2 = vpop.xlane.xlu0 %6000  ;;  %v4616_v39 = vadd.f32 %v12724_v9, %v3135_v52 }
 0x918   :  { %v6088_v25 = vadd.f32 %v6001_v2, %v4607_v14  ;;  %v12725_v2 = vld [vmem:[#allocation157_spill] sm:$0xff] }
 0x919   :  { %v3136_v24 = vadd.f32 %v12726_v12, %v12725_v2  ;;  %v12753_v2 = vld [vmem:[#allocation179_spill] sm:$0xff] }
 0x91a   :  { %6281 = vst.msk [vmem:[%s12172_s6 + $0x140] sm:$0xff] %vm6240_vm0, %v6088_v25  ;;  %v12727_v25 = vld [vmem:[#allocation190_spill] sm:$0xff] }
 0x91b   :  { %v6003_v51 = vpop.xlane.xlu1 %6002  ;;  %v4617_v7 = vadd.f32 %v12727_v25, %v3136_v24 }
 0x91c   :  { %v6089_v49 = vadd.f32 %v6003_v51, %v4608_v3  ;;  %v12728_v51 = vld [vmem:[#allocation158_spill] sm:$0xff] }
 0x91d   :  { %v3137_v48 = vadd.f32 %v12729_v15, %v12728_v51  ;;  %v12756_v51 = vld [vmem:[#allocation180_spill] sm:$0xff] }
 0x91e   :  { %6282 = vst.msk [vmem:[%s12172_s6 + $0x148] sm:$0xff] %vm6240_vm0, %v6089_v49  ;;  %v12730_v49 = vld [vmem:[#allocation68_spill] sm:$0xff] }
 0x91f   :  { %v6005_v1 = vpop.xlane.xlu0 %6004  ;;  %v4618_v37 = vadd.f32 %v12730_v49, %v3137_v48 }
 0x920   :  { %v6090_v29 = vadd.f32 %v6005_v1, %v4609_v56  ;;  %v12731_v1 = vld [vmem:[#allocation159_spill] sm:$0xff] }
 0x921   :  { %v3138_v42 = vadd.f32 %v12732_v11, %v12731_v1  ;;  %v12759_v1 = vld [vmem:[#allocation181_spill] sm:$0xff] }
 0x922   :  { %6283 = vst.msk [vmem:[%s12172_s6 + $0x150] sm:$0xff] %vm6240_vm0, %v6090_v29  ;;  %v12733_v29 = vld [vmem:[#allocation191_spill] sm:$0xff] }
 0x923   :  { %v6007_v36 = vpop.xlane.xlu1 %6006  ;;  %v4619_v30 = vadd.f32 %v12733_v29, %v3138_v42 }
 0x924   :  { %v6091_v20 = vadd.f32 %v6007_v36, %v4610_v22  ;;  %v12734_v36 = vld [vmem:[#allocation160_spill] sm:$0xff] }
 0x925   :  { %v3139_v53 = vadd.f32 %v12735_v13, %v12734_v36  ;;  %v12762_v36 = vld [vmem:[#allocation182_spill] sm:$0xff] }
 0x926   :  { %6284 = vst.msk [vmem:[%s12172_s6 + $0x158] sm:$0xff] %vm6240_vm0, %v6091_v20  ;;  %v12736_v20 = vld [vmem:[#allocation69_spill] sm:$0xff] }
 0x927   :  { %v6009_v4 = vpop.xlane.xlu0 %6008  ;;  %v4620_v62 = vadd.f32 %v12736_v20, %v3139_v53 }
 0x928   :  { %v6092_v43 = vadd.f32 %v6009_v4, %v4611_v19  ;;  %v12737_v4 = vld [vmem:[#allocation161_spill] sm:$0xff] }
 0x929   :  { %v3140_v33 = vadd.f32 %v12738_v27, %v12737_v4  ;;  %v12765_v4 = vld [vmem:[#allocation183_spill] sm:$0xff] }
 0x92a   :  { %6285 = vst.msk [vmem:[%s12172_s6 + $0x160] sm:$0xff] %vm6240_vm0, %v6092_v43  ;;  %v12739_v43 = vld [vmem:[#allocation192_spill] sm:$0xff] }
 0x92b   :  { %v6011_v16 = vpop.xlane.xlu1 %6010  ;;  %v4621_v57 = vadd.f32 %v12739_v43, %v3140_v33 }
 0x92c   :  { %v6093_v26 = vadd.f32 %v6011_v16, %v4612_v28  ;;  %v12740_v16 = vld [vmem:[#allocation162_spill] sm:$0xff] }
 0x92d   :  { %v3141_v34 = vadd.f32 %v12741_v21, %v12740_v16 }
 0x92e   :  { %6286 = vst.msk [vmem:[%s12172_s6 + $0x168] sm:$0xff] %vm6240_vm0, %v6093_v26  ;;  %v12742_v26 = vld [vmem:[#allocation70_spill] sm:$0xff] }
 0x92f   :  { %v6013_v47 = vpop.xlane.xlu0 %6012  ;;  %v4622_v46 = vadd.f32 %v12742_v26, %v3141_v34 }
 0x930   :  { %v6094_v55 = vadd.f32 %v6013_v47, %v4613_v23  ;;  %v12743_v47 = vld [vmem:[#allocation163_spill] sm:$0xff] }
 0x931   :  { %v3142_v31 = vadd.f32 %v12744_v63, %v12743_v47 }
 0x932   :  { %6287 = vst.msk [vmem:[%s12172_s6 + $0x170] sm:$0xff] %vm6240_vm0, %v6094_v55  ;;  %v12745_v55 = vld [vmem:[#allocation193_spill] sm:$0xff] }
 0x933   :  { %v6015_v18 = vpop.xlane.xlu1 %6014  ;;  %v4623_v5 = vadd.f32 %v12745_v55, %v3142_v31 }
 0x934   :  { %v6095_v60 = vadd.f32 %v6015_v18, %v4614_v35  ;;  %v12746_v18 = vld [vmem:[#allocation164_spill] sm:$0xff] }
 0x935   :  { %v3143_v8 = vadd.f32 %v12747_v54, %v12746_v18 }
 0x936   :  { %6288 = vst.msk [vmem:[%s12172_s6 + $0x178] sm:$0xff] %vm6240_vm0, %v6095_v60  ;;  %v12748_v60 = vld [vmem:[#allocation71_spill] sm:$0xff] }
 0x937   :  { %v6017_v17 = vpop.xlane.xlu0 %6016  ;;  %v4624_v44 = vadd.f32 %v12748_v60, %v3143_v8 }
 0x938   :  { %v6096_v6 = vadd.f32 %v6017_v17, %v4615_v10  ;;  %v12749_v17 = vld [vmem:[#allocation165_spill] sm:$0xff] }
 0x939   :  { %v3144_v32 = vadd.f32 %v12750_v0, %v12749_v17 }
 0x93a   :  { %6289 = vst.msk [vmem:[%s12172_s6 + $0x180] sm:$0xff] %vm6240_vm0, %v6096_v6  ;;  %v12751_v6 = vld [vmem:[#allocation194_spill] sm:$0xff] }
 0x93b   :  { %v6019_v14 = vpop.xlane.xlu1 %6018  ;;  %v4625_v9 = vadd.f32 %v12751_v6, %v3144_v32 }
 0x93c   :  { %v6097_v41 = vadd.f32 %v6019_v14, %v4616_v39  ;;  %v12752_v14 = vld [vmem:[#allocation166_spill] sm:$0xff] }
 0x93d   :  { %v3145_v12 = vadd.f32 %v12753_v2, %v12752_v14 }
 0x93e   :  { %6290 = vst.msk [vmem:[%s12172_s6 + $0x188] sm:$0xff] %vm6240_vm0, %v6097_v41  ;;  %v12754_v41 = vld [vmem:[#allocation72_spill] sm:$0xff] }
 0x93f   :  { %v6021_v3 = vpop.xlane.xlu0 %6020  ;;  %v4626_v25 = vadd.f32 %v12754_v41, %v3145_v12 }
 0x940   :  { %v6098_v61 = vadd.f32 %v6021_v3, %v4617_v7  ;;  %v12755_v3 = vld [vmem:[#allocation167_spill] sm:$0xff] }
 0x941   :  { %v3146_v15 = vadd.f32 %v12756_v51, %v12755_v3 }
 0x942   :  { %6291 = vst.msk [vmem:[%s12172_s6 + $0x190] sm:$0xff] %vm6240_vm0, %v6098_v61  ;;  %v12757_v61 = vld [vmem:[#allocation195_spill] sm:$0xff] }
 0x943   :  { %v6023_v56 = vpop.xlane.xlu1 %6022  ;;  %v4627_v49 = vadd.f32 %v12757_v61, %v3146_v15 }
 0x944   :  { %v6099_v40 = vadd.f32 %v6023_v56, %v4618_v37  ;;  %v12758_v56 = vld [vmem:[#allocation168_spill] sm:$0xff] }
 0x945   :  { %v3147_v11 = vadd.f32 %v12759_v1, %v12758_v56 }
 0x946   :  { %6292 = vst.msk [vmem:[%s12172_s6 + $0x198] sm:$0xff] %vm6240_vm0, %v6099_v40  ;;  %v12760_v40 = vld [vmem:[#allocation73_spill] sm:$0xff] }
 0x947   :  { %v6025_v22 = vpop.xlane.xlu0 %6024  ;;  %v4628_v29 = vadd.f32 %v12760_v40, %v3147_v11 }
 0x948   :  { %v6100_v58 = vadd.f32 %v6025_v22, %v4619_v30  ;;  %v12761_v22 = vld [vmem:[#allocation169_spill] sm:$0xff] }
 0x949   :  { %v3148_v13 = vadd.f32 %v12762_v36, %v12761_v22 }
 0x94a   :  { %6293 = vst.msk [vmem:[%s12172_s6 + $0x1a0] sm:$0xff] %vm6240_vm0, %v6100_v58  ;;  %v12763_v58 = vld [vmem:[#allocation196_spill] sm:$0xff] }
 0x94b   :  { %v6027_v19 = vpop.xlane.xlu1 %6026  ;;  %v4629_v20 = vadd.f32 %v12763_v58, %v3148_v13 }
 0x94c   :  { %v6101_v45 = vadd.f32 %v6027_v19, %v4620_v62  ;;  %v12764_v19 = vld [vmem:[#allocation170_spill] sm:$0xff] }
 0x94d   :  { %v3149_v27 = vadd.f32 %v12765_v4, %v12764_v19 }
 0x94e   :  { %6294 = vst.msk [vmem:[%s12172_s6 + $0x1a8] sm:$0xff] %vm6240_vm0, %v6101_v45  ;;  %v12766_v45 = vld [vmem:[#allocation75_spill] sm:$0xff] }
 0x94f   :  { %v6029_v28 = vpop.xlane.xlu0 %6028  ;;  %v4630_v43 = vadd.f32 %v12766_v45, %v3149_v27 }
 0x950   :  { %v6102_v38 = vadd.f32 %v6029_v28, %v4621_v57 }
 0x952   :  { %6295 = vst.msk [vmem:[%s12172_s6 + $0x1b0] sm:$0xff] %vm6240_vm0, %v6102_v38 }
 0x953   :  { %v6031_v23 = vpop.xlane.xlu1 %6030 }
 0x954   :  { %v6103_v59 = vadd.f32 %v6031_v23, %v4622_v46 }
 0x956   :  { %6296 = vst.msk [vmem:[%s12172_s6 + $0x1b8] sm:$0xff] %vm6240_vm0, %v6103_v59 }
 0x957   :  { %v6033_v35 = vpop.xlane.xlu0 %6032 }
 0x958   :  { %v6104_v50 = vadd.f32 %v6033_v35, %v4623_v5 }
 0x95a   :  { %6297 = vst.msk [vmem:[%s12172_s6 + $0x1c0] sm:$0xff] %vm6240_vm0, %v6104_v50 }
 0x95b   :  { %v6035_v10 = vpop.xlane.xlu1 %6034 }
 0x95c   :  { %v6105_v52 = vadd.f32 %v6035_v10, %v4624_v44 }
 0x95e   :  { %6298 = vst.msk [vmem:[%s12172_s6 + $0x1c8] sm:$0xff] %vm6240_vm0, %v6105_v52 }
 0x95f   :  { %v6037_v39 = vpop.xlane.xlu0 %6036 }
 0x960   :  { %v6106_v24 = vadd.f32 %v6037_v39, %v4625_v9 }
 0x962   :  { %6299 = vst.msk [vmem:[%s12172_s6 + $0x1d0] sm:$0xff] %vm6240_vm0, %v6106_v24 }
 0x963   :  { %v6039_v7 = vpop.xlane.xlu1 %6038 }
 0x964   :  { %v6107_v48 = vadd.f32 %v6039_v7, %v4626_v25 }
 0x966   :  { %6300 = vst.msk [vmem:[%s12172_s6 + $0x1d8] sm:$0xff] %vm6240_vm0, %v6107_v48 }
 0x967   :  { %v6041_v37 = vpop.xlane.xlu0 %6040 }
 0x968   :  { %v6108_v42 = vadd.f32 %v6041_v37, %v4627_v49 }
 0x96a   :  { %6301 = vst.msk [vmem:[%s12172_s6 + $0x1e0] sm:$0xff] %vm6240_vm0, %v6108_v42 }
 0x96b   :  { %v6043_v30 = vpop.xlane.xlu1 %6042 }
 0x96c   :  { %v6109_v53 = vadd.f32 %v6043_v30, %v4628_v29 }
 0x96e   :  { %6302 = vst.msk [vmem:[%s12172_s6 + $0x1e8] sm:$0xff] %vm6240_vm0, %v6109_v53 }
 0x96f   :  { %v6045_v62 = vpop.xlane.xlu0 %6044 }
 0x970   :  { %v6110_v33 = vadd.f32 %v6045_v62, %v4629_v20 }
 0x972   :  { %6303 = vst.msk [vmem:[%s12172_s6 + $0x1f0] sm:$0xff] %vm6240_vm0, %v6110_v33 }
 0x973   :  { %v6047_v57 = vpop.xlane.xlu1 %6046 }
 0x974   :  { %v6111_v28 = vadd.f32 %v6047_v57, %v4630_v43 }
 0x976   :  { %6304 = vst.msk [vmem:[%s12172_s6 + $0x1f8] sm:$0xff] %vm6240_vm0, %v6111_v28 }
 0x977   :  { %8614 = dma.done.wait [#allocation4], 16384  }
 0x978   :  { %8615 = vsyncadd [#allocation4], 4294950912 }
 0x979   :  { %6324 = vsyncpa [#allocation3], 1 }
 0x97a   :  { %6325 = vsyncpa [#allocation6], 1 }
 0x97b   :  { %6326 = vsyncpa [#allocation4], 1 }

</bundles_post_ra>
